<compile_context>
chip_gen: v7x
topology: tpu7x:2x2x1
jax: 0.10.0
libtpu: 0.0.40
codegen_flags: <defaults>
</compile_context>

<pallas_src>
import math
import functools

import jax
import jax.numpy as jnp
from jax import lax
from jax.experimental import pallas as pl
from jax.experimental.pallas import tpu as pltpu


# ----------------------------------- kernel -------------------------------------

def _layer_kernel(len_ref,
                  x_ref, g1_ref, b1_ref, g2_ref, b2_ref,
                  wq_ref, wk_ref, wv_ref, wpre_ref, wpost_ref,
                  wfc_ref, bfc_ref,
                  w1_ref, b1c_ref, w2_ref, b2c_ref,
                  out_ref,
                  *, bb, H, Dh, T, E, HID, K, PADL, alpha, start_i):
    """One grid step == bb batch elements.  All dropout layers are identity (eval)."""
    f32 = jnp.float32
    bf16 = jnp.bfloat16
    rows = bb * T
    g = pl.program_id(0)

    x = x_ref[...]                                   # (rows, E) f32

    # ------------------------- LayerNorm 1 (f32 stats) --------------------------
    mu = jnp.mean(x, axis=-1, keepdims=True)
    var = jnp.mean((x - mu) ** 2, axis=-1, keepdims=True)
    xn = (x - mu) * lax.rsqrt(var + 1e-5) * g1_ref[...] + b1_ref[...]
    xn16 = xn.astype(bf16)

    # --------------- q/k/v via block-diag weights, bf16 MXU matmuls -------------
    # wq is pre-scaled by 1/sqrt(E) on the host (softmax scale folded in).
    q = jnp.dot(xn16, wq_ref[...], preferred_element_type=f32)   # (rows, E)
    k = jnp.dot(xn16, wk_ref[...], preferred_element_type=f32)
    v = jnp.dot(xn16, wv_ref[...], preferred_element_type=f32)

    # -------------- split to (bb*H, T, Dh) heads (batch-major), bf16 ------------
    def split_heads(z):
        parts = []
        for b in range(bb):
            zb = z[b * T:(b + 1) * T, :]
            for h in range(H):
                parts.append(zb[:, h * Dh:(h + 1) * Dh][None])
        return jnp.concatenate(parts, axis=0).astype(bf16)       # (bb*H, T, Dh)

    q3 = split_heads(q)
    k3 = split_heads(k)
    v3 = split_heads(v)

    # ---------------- batched QK^T over all bb*H heads (one einsum) -------------
    e = jnp.einsum('btd,bsd->bts', q3, k3,
                   preferred_element_type=f32)                   # (bb*H, T, T)

    # --------- ALiBi bias: static Python slopes, one (T,T) iota pair ------------
    inv_sqrt_e = 1.0 / math.sqrt(E)
    tq2 = lax.broadcasted_iota(jnp.int32, (T, T), 0)
    tk2 = lax.broadcasted_iota(jnp.int32, (T, T), 1)
    neg_dist = -jnp.abs(tq2 - tk2).astype(f32)                   # (T, T)
    bias = jnp.concatenate(
        [(neg_dist * (2.0 ** (-alpha * (h + 1 + start_i)) * inv_sqrt_e))[None]
         for h in range(H)], axis=0)                             # (H, T, T)

    # -------- talking-heads (H,H) mixing: exact per-head combine (SMEM W) -------
    def mix_heads(w_ref, e3):                                    # e3: (H, T, T)
        mixed = []
        for i in range(H):
            acc = w_ref[i, 0] * e3[0]
            for j in range(1, H):
                acc = acc + w_ref[i, j] * e3[j]
            mixed.append(acc[None])
        return jnp.concatenate(mixed, axis=0)

    # ------ per batch element: bias, pre-mix, key-pad mask, softmax, post-mix ---
    a_parts = []
    for b in range(bb):
        L = len_ref[g * bb + b]                                  # valid length
        eb = e[b * H:(b + 1) * H] + bias                         # (H, T, T)
        eb = mix_heads(wpre_ref, eb)
        keep = jnp.broadcast_to((tk2 < L)[None], (H, T, T))
        eb = jnp.where(keep, eb, -1e4)
        m = jnp.max(eb, axis=-1, keepdims=True)
        p = jnp.exp(eb - m)
        a = p * pl.reciprocal(jnp.sum(p, axis=-1, keepdims=True), approx=True)
        a_parts.append(mix_heads(wpost_ref, a))
    a_all = jnp.concatenate(a_parts, axis=0).astype(bf16)        # (bb*H, T, T)

    # -------------- attn @ V (one batched einsum), fold heads to lanes ----------
    o = jnp.einsum('bts,bsd->btd', a_all, v3,
                   preferred_element_type=f32)                   # (bb*H, T, Dh)
    att = jnp.concatenate(
        [jnp.concatenate([o[b * H + h] for h in range(H)], axis=1)
         for b in range(bb)], axis=0)                            # (rows, E)

    att = jnp.dot(att.astype(bf16), wfc_ref[...],
                  preferred_element_type=f32) + bfc_ref[...]
    x1 = x + att                                                 # residual (dropout=id)

    # ------------------------------ LayerNorm 2 ---------------------------------
    mu2 = jnp.mean(x1, axis=-1, keepdims=True)
    var2 = jnp.mean((x1 - mu2) ** 2, axis=-1, keepdims=True)
    y = (x1 - mu2) * lax.rsqrt(var2 + 1e-5) * g2_ref[...] + b2_ref[...]

    # --------------------- valid-length row mask (per batch) --------------------
    t1 = lax.broadcasted_iota(jnp.int32, (T, 1), 0)
    keep_rows = []
    for b in range(bb):
        L = len_ref[g * bb + b]
        keep_rows.append((t1 < L).astype(f32))
    keep_t = jnp.concatenate(keep_rows, axis=0)                  # (rows, 1)

    # -------- SwiGLU Conv FFN: shift + tap-mask + im2col, one matmul per conv ---
    def conv_same(z, w_ref, b_ref):
        cols = []
        for j in range(K):
            s = j - PADL                    # out[t] += w_j . z[t + s]
            if s == 0:
                cols.append(z)
            else:
                shifted = jnp.roll(z, -s, axis=0)
                lo, hi = max(0, -s), min(T, T - s)
                tap = ((t1 >= lo) & (t1 < hi)).astype(f32)       # (T, 1)
                tap = jnp.concatenate([tap] * bb, axis=0)        # (rows, 1)
                cols.append(shifted * tap)
        zcat = jnp.concatenate(cols, axis=1).astype(bf16)        # (rows, K*Cin)
        return jnp.dot(zcat, w_ref[...],
                       preferred_element_type=f32) + b_ref[...]

    y = y * keep_t                                               # apply_mask before conv1
    x12 = conv_same(y, w1_ref, b1c_ref)                          # (rows, 2*HID)
    a1 = x12[:, :HID]
    a2 = x12[:, HID:]
    hid = (a1 * (1.0 / (1.0 + jnp.exp(-a1)))) * a2               # SwiGLU (f32)
    hid = hid * keep_t                                           # apply_mask before conv2
    ff = conv_same(hid, w2_ref, b2c_ref)                         # (rows, E)

    out_ref[...] = x1 + ff                                       # second residual


# ------------------------------ pallas_call wrapper ------------------------------

def _build_in_out_specs(bb, T, E, H, HID, K, single_buffer_weights):
    xmap = lambda g, lens: (g, 0)
    cmap = lambda g, lens: (0, 0)

    def wspec(shape):
        if single_buffer_weights:
            return pl.BlockSpec(shape, cmap, pipeline_mode=pl.Buffered(1))
        return pl.BlockSpec(shape, cmap)

    def smem_spec(shape):
        return pl.BlockSpec(shape, cmap, memory_space=pltpu.MemorySpace.SMEM)

    in_specs = [
        pl.BlockSpec((bb * T, E), xmap),                 # x (activations)
        wspec((1, E)), wspec((1, E)),                    # norm1 gamma/beta
        wspec((1, E)), wspec((1, E)),                    # norm2 gamma/beta
        wspec((E, E)), wspec((E, E)), wspec((E, E)),     # Wq/Wk/Wv block-diag (bf16)
        smem_spec((H, H)), smem_spec((H, H)),            # talking-heads weights (SMEM)
        wspec((E, E)), wspec((1, E)),                    # fc_out W^T (bf16), bias
        wspec((K * E, 2 * HID)), wspec((1, 2 * HID)),    # conv1 im2col W (bf16), bias
        wspec((K * HID, E)), wspec((1, E)),              # conv2 im2col W (bf16), bias
    ]
    out_specs = pl.BlockSpec((bb * T, E), xmap)
    return in_specs, out_specs


def transformer_encoder_layer(x, lengths, p):
    """x: (B, T, E) float32, lengths: (B,) int32 valid lengths (key-padding mask)."""
    B, T, E = x.shape
    H, K, HID = p['H'], p['K'], p['HID']
    Dh = E // H

    # batch-block so each grid step works on >= ~256 rows (MXU fill); bb divides B
    bb = min(B, max(1, 256 // T))
    while B % bb:
        bb -= 1

    kern = functools.partial(
        _layer_kernel, bb=bb, H=H, Dh=Dh, T=T, E=E, HID=HID, K=K,
        PADL=(K - 1) // 2, alpha=float(p['alibi_alpha']), start_i=float(p['start_i']))

    x2d = x.reshape(B * T, E)
    args = (lengths, x2d, p['g1'], p['b1'], p['g2'], p['b2'],
            p['wq_bd'], p['wk_bd'], p['wv_bd'], p['wpre'], p['wpost'],
            p['wfc_t'], p['bfc'], p['w1_t'], p['b1c'], p['w2_t'], p['b2c'])

    def run(single_buffer_weights):
        in_specs, out_specs = _build_in_out_specs(bb, T, E, H, HID, K,
                                                  single_buffer_weights)
        grid_spec = pltpu.PrefetchScalarGridSpec(
            num_scalar_prefetch=1,                       # lengths -> SMEM
            grid=(B // bb,),
            in_specs=in_specs,
            out_specs=out_specs)
        return pl.pallas_call(
            kern,
            out_shape=jax.ShapeDtypeStruct((B * T, E), jnp.float32),
            grid_spec=grid_spec,
            compiler_params=pltpu.CompilerParams(
                dimension_semantics=("parallel",),
                # toy sizes need only a few MiB; re-derive for production T/E
                # (v7x has 64 MiB / TensorCore, v6e default scoped limit is 32 MiB)
                vmem_limit_bytes=48 * 1024 * 1024),
        )(*args)

    try:
        out2d = run(True)                                # single-buffered weights
    except Exception:
        out2d = run(False)                               # fallback: default buffering
    return out2d.reshape(B, T, E)


# ---------------------------- parameters (PyTorch layout) ------------------------

def init_raw_params(key, E, H, forward_expansion, K):
    Dh = E // H
    HID = forward_expansion * E
    ks = jax.random.split(key, 15)
    n = lambda k, s, sc: sc * jax.random.normal(k, s, jnp.float32)
    return dict(
        H=H, HID=HID, K=K,
        g1=1.0 + 0.1 * jax.random.normal(ks[0], (E,), jnp.float32),
        b1=n(ks[1], (E,), 0.1),
        g2=1.0 + 0.1 * jax.random.normal(ks[2], (E,), jnp.float32),
        b2=n(ks[3], (E,), 0.1),
        wq=n(ks[4], (Dh, Dh), 0.3),     # nn.Linear(head_dim, head_dim, bias=False)
        wk=n(ks[5], (Dh, Dh), 0.3),
        wv=n(ks[6], (Dh, Dh), 0.3),
        wpre=n(ks[7], (H, H), 0.4),     # Conv2d(H,H,1,bias=False) squeezed
        wpost=n(ks[8], (H, H), 0.4),
        wfc=n(ks[9], (E, E), 0.2),      # fc_out
        bfc=n(ks[10], (E,), 0.1),
        w1=n(ks[11], (2 * HID, E, K), 0.1),   # Conv1d(E, 2*HID, K)
        b1c=n(ks[12], (2 * HID,), 0.1),
        w2=n(ks[13], (E, HID, K), 0.1),       # Conv1d(HID, E, K)
        b2c=n(ks[14], (E,), 0.1),
    )


def prepare_kernel_params(raw, T, alibi_alpha, start_i_increment):
    E = raw['wfc'].shape[0]
    H = raw['H']
    K = raw['K']
    HID = raw['HID']
    inv_sqrt_e = 1.0 / math.sqrt(E)
    eye_h = jnp.eye(H, dtype=jnp.float32)
    bf16 = jnp.bfloat16
    # conv weights reshaped for in-kernel im2col: rows = tap-major (K, Cin) blocks
    w1_t = jnp.transpose(raw['w1'], (2, 1, 0)).reshape(K * E, 2 * HID)
    w2_t = jnp.transpose(raw['w2'], (2, 1, 0)).reshape(K * HID, E)
    return dict(
        H=H, K=K, HID=HID,
        alibi_alpha=alibi_alpha, start_i=start_i_increment,
        g1=raw['g1'][None, :], b1=raw['b1'][None, :],
        g2=raw['g2'][None, :], b2=raw['b2'][None, :],
        wq_bd=(jnp.kron(eye_h, raw['wq'].T) * inv_sqrt_e).astype(bf16),  # scale folded
        wk_bd=jnp.kron(eye_h, raw['wk'].T).astype(bf16),
        wv_bd=jnp.kron(eye_h, raw['wv'].T).astype(bf16),
        wpre=raw['wpre'], wpost=raw['wpost'],            # (H,H) f32, read from SMEM
        wfc_t=raw['wfc'].T.astype(bf16), bfc=raw['bfc'][None, :],
        w1_t=w1_t.astype(bf16), b1c=raw['b1c'][None, :],
        w2_t=w2_t.astype(bf16), b2c=raw['b2c'][None, :],
    )


# ------------------------------- pure-JAX reference ------------------------------

def ref_layer(x, lengths, raw, alibi_alpha, start_i):
    B, T, E = x.shape
    H, HID, K = raw['H'], raw['HID'], raw['K']
    Dh = E // H
    keep = jnp.arange(T)[None, :] < lengths[:, None]        # (B, T) True = valid key
    mask4 = keep[:, None, None, :]

    def ln(z, g, b):
        mu = z.mean(-1, keepdims=True)
        var = ((z - mu) ** 2).mean(-1, keepdims=True)
        return (z - mu) / jnp.sqrt(var + 1e-5) * g + b

    xn = ln(x, raw['g1'], raw['b1'])
    xh = xn.reshape(B, T, H, Dh)
    q = xh @ raw['wq'].T
    k = xh @ raw['wk'].T
    v = xh @ raw['wv'].T
    energy = jnp.einsum('nqhd,nkhd->nhqk', q, k)
    slopes = jnp.array([2.0 ** (-alibi_alpha * (i + start_i)) for i in range(1, H + 1)],
                       jnp.float32)
    t = jnp.arange(T)
    bias = -jnp.abs(t[:, None] - t[None, :]).astype(jnp.float32)
    energy = energy + bias[None, None] * slopes[None, :, None, None]
    energy = jnp.einsum('ij,njqk->niqk', raw['wpre'], energy)
    energy = jnp.where(mask4, energy, -1e4)
    attn = jax.nn.softmax(energy / math.sqrt(E), axis=3)
    attn = jnp.einsum('ij,njqk->niqk', raw['wpost'], attn)
    out = jnp.einsum('nhql,nlhd->nqhd', attn, v).reshape(B, T, E)
    out = out @ raw['wfc'].T + raw['bfc']
    x1 = x + out

    y = ln(x1, raw['g2'], raw['b2'])
    yc = jnp.transpose(y, (0, 2, 1)) * keep[:, None, :].astype(jnp.float32)
    padl, padr = (K - 1) // 2, K // 2
    ypad = jnp.pad(yc, ((0, 0), (0, 0), (padl, padr)))
    x12 = sum(jnp.einsum('oc,bct->bot', raw['w1'][:, :, j], ypad[:, :, j:j + T])
              for j in range(K)) + raw['b1c'][None, :, None]
    a1, a2 = x12[:, :HID], x12[:, HID:]
    hid = (a1 * jax.nn.sigmoid(a1)) * a2
    hid = hid * keep[:, None, :].astype(jnp.float32)
    hpad = jnp.pad(hid, ((0, 0), (0, 0), (padl, padr)))
    ff = sum(jnp.einsum('oc,bct->bot', raw['w2'][:, :, j], hpad[:, :, j:j + T])
             for j in range(K)) + raw['b2c'][None, :, None]
    ff = jnp.transpose(ff, (0, 2, 1))
    return x1 + ff


# ------------------------------------- main ---------------------------------------

if __name__ == "__main__":
    # TODO(synk): rma_mem_dim>0 (persistent memory / GatedRetention), conv_att=True
    #             (MaskedCBAM1d) and coarse_fine=True paths are not implemented (their
    #             helper classes are not defined in the reference source); defaults
    #             are 0/False.  Dropout is identity (inference).
    B, T, E = 2, 16, 32
    H = 4
    forward_expansion = 2
    K = 3
    alibi_alpha = 1.0
    start_i_increment = 0

    key = jax.random.PRNGKey(0)
    kx, kp = jax.random.split(key)
    x = jax.random.normal(kx, (B, T, E), jnp.float32)
    lengths = jnp.array([T, 11], jnp.int32)          # key-padding: batch1 has 5 pads

    raw = init_raw_params(kp, E, H, forward_expansion, K)
    kparams = prepare_kernel_params(raw, T, alibi_alpha, start_i_increment)

    out = transformer_encoder_layer(x, lengths, kparams)
    out = jax.block_until_ready(out)
    assert out.shape == (B, T, E)

    ref = ref_layer(x, lengths, raw, alibi_alpha, start_i_increment)
    err = float(jnp.max(jnp.abs(out - ref)))
    # bf16 MXU operands (weights + activations) widen the tolerance vs the f32 ref
    assert err < 1.5e-1, f"max abs diff vs reference: {err}"

    print("KERNEL_OK")
</pallas_src>

<mosaic_0001>
module attributes {stable_mosaic.version = 11 : i64} {
  func.func @_layer_kernel(%arg0: i32, %arg1: memref<2xi32, #tpu.memory_space<smem>>, %arg2: memref<32x32xf32, #tpu.memory_space<vmem>>, %arg3: memref<1x32xf32, #tpu.memory_space<vmem>>, %arg4: memref<1x32xf32, #tpu.memory_space<vmem>>, %arg5: memref<1x32xf32, #tpu.memory_space<vmem>>, %arg6: memref<1x32xf32, #tpu.memory_space<vmem>>, %arg7: memref<32x32xbf16, #tpu.memory_space<vmem>>, %arg8: memref<32x32xbf16, #tpu.memory_space<vmem>>, %arg9: memref<32x32xbf16, #tpu.memory_space<vmem>>, %arg10: memref<4x4xf32, #tpu.memory_space<smem>>, %arg11: memref<4x4xf32, #tpu.memory_space<smem>>, %arg12: memref<32x32xbf16, #tpu.memory_space<vmem>>, %arg13: memref<1x32xf32, #tpu.memory_space<vmem>>, %arg14: memref<96x128xbf16, #tpu.memory_space<vmem>>, %arg15: memref<1x128xf32, #tpu.memory_space<vmem>>, %arg16: memref<192x32xbf16, #tpu.memory_space<vmem>>, %arg17: memref<1x32xf32, #tpu.memory_space<vmem>>, %arg18: memref<32x32xf32, #tpu.memory_space<vmem>>) attributes {dimension_semantics = [#tpu.dimension_semantics<parallel>], iteration_bounds = array<i64: 1>, scalar_prefetch = 1 : i64, scratch_operands = 0 : i64, tpu.core_type = #tpu.core_type<tc>, window_params = [{transform_indices = @transform_0, window_bounds = array<i64: 32, 32>}, {pipeline_mode = #tpu.pipeline_mode<synchronous>, transform_indices = @transform_1, window_bounds = array<i64: 1, 32>}, {pipeline_mode = #tpu.pipeline_mode<synchronous>, transform_indices = @transform_2, window_bounds = array<i64: 1, 32>}, {pipeline_mode = #tpu.pipeline_mode<synchronous>, transform_indices = @transform_3, window_bounds = array<i64: 1, 32>}, {pipeline_mode = #tpu.pipeline_mode<synchronous>, transform_indices = @transform_4, window_bounds = array<i64: 1, 32>}, {pipeline_mode = #tpu.pipeline_mode<synchronous>, transform_indices = @transform_5, window_bounds = array<i64: 32, 32>}, {pipeline_mode = #tpu.pipeline_mode<synchronous>, transform_indices = @transform_6, window_bounds = array<i64: 32, 32>}, {pipeline_mode = #tpu.pipeline_mode<synchronous>, transform_indices = @transform_7, window_bounds = array<i64: 32, 32>}, {transform_indices = @transform_8, window_bounds = array<i64: 4, 4>}, {transform_indices = @transform_9, window_bounds = array<i64: 4, 4>}, {pipeline_mode = #tpu.pipeline_mode<synchronous>, transform_indices = @transform_10, window_bounds = array<i64: 32, 32>}, {pipeline_mode = #tpu.pipeline_mode<synchronous>, transform_indices = @transform_11, window_bounds = array<i64: 1, 32>}, {pipeline_mode = #tpu.pipeline_mode<synchronous>, transform_indices = @transform_12, window_bounds = array<i64: 96, 128>}, {pipeline_mode = #tpu.pipeline_mode<synchronous>, transform_indices = @transform_13, window_bounds = array<i64: 1, 128>}, {pipeline_mode = #tpu.pipeline_mode<synchronous>, transform_indices = @transform_14, window_bounds = array<i64: 192, 32>}, {pipeline_mode = #tpu.pipeline_mode<synchronous>, transform_indices = @transform_15, window_bounds = array<i64: 1, 32>}, {transform_indices = @transform_16, window_bounds = array<i64: 32, 32>}]} {
    %c0 = arith.constant 0 : index
    %c0_0 = arith.constant 0 : index
    %0 = vector.load %arg2[%c0, %c0_0] : memref<32x32xf32, #tpu.memory_space<vmem>>, vector<32x32xf32>
    %cst = arith.constant dense<0.000000e+00> : vector<32xf32>
    %1 = vector.multi_reduction <add>, %0, %cst [1] : vector<32x32xf32> to vector<32xf32>
    %2 = vector.shape_cast %1 : vector<32xf32> to vector<32x1xf32>
    %cst_1 = arith.constant 3.200000e+01 : f32
    %3 = vector.broadcast %cst_1 : f32 to vector<32x1xf32>
    %4 = arith.divf %2, %3 : vector<32x1xf32>
    %5 = vector.broadcast %4 : vector<32x1xf32> to vector<32x32xf32>
    %6 = arith.subf %0, %5 : vector<32x32xf32>
    %7 = arith.mulf %6, %6 : vector<32x32xf32>
    %cst_2 = arith.constant dense<0.000000e+00> : vector<32xf32>
    %8 = vector.multi_reduction <add>, %7, %cst_2 [1] : vector<32x32xf32> to vector<32xf32>
    %9 = vector.shape_cast %8 : vector<32xf32> to vector<32x1xf32>
    %cst_3 = arith.constant 3.200000e+01 : f32
    %10 = vector.broadcast %cst_3 : f32 to vector<32x1xf32>
    %11 = arith.divf %9, %10 : vector<32x1xf32>
    %12 = vector.broadcast %4 : vector<32x1xf32> to vector<32x32xf32>
    %13 = arith.subf %0, %12 : vector<32x32xf32>
    %cst_4 = arith.constant 9.99999974E-6 : f32
    %14 = vector.broadcast %cst_4 : f32 to vector<32x1xf32>
    %15 = arith.addf %11, %14 : vector<32x1xf32>
    %16 = math.rsqrt %15 : vector<32x1xf32>
    %17 = vector.broadcast %16 : vector<32x1xf32> to vector<32x32xf32>
    %18 = arith.mulf %13, %17 : vector<32x32xf32>
    %c0_5 = arith.constant 0 : index
    %c0_6 = arith.constant 0 : index
    %19 = vector.load %arg3[%c0_5, %c0_6] : memref<1x32xf32, #tpu.memory_space<vmem>>, vector<1x32xf32>
    %20 = vector.broadcast %19 : vector<1x32xf32> to vector<32x32xf32>
    %21 = arith.mulf %18, %20 : vector<32x32xf32>
    %c0_7 = arith.constant 0 : index
    %c0_8 = arith.constant 0 : index
    %22 = vector.load %arg4[%c0_7, %c0_8] : memref<1x32xf32, #tpu.memory_space<vmem>>, vector<1x32xf32>
    %23 = vector.broadcast %22 : vector<1x32xf32> to vector<32x32xf32>
    %24 = arith.addf %21, %23 : vector<32x32xf32>
    %25 = arith.truncf %24 : vector<32x32xf32> to vector<32x32xbf16>
    %c0_9 = arith.constant 0 : index
    %c0_10 = arith.constant 0 : index
    %26 = vector.load %arg7[%c0_9, %c0_10] : memref<32x32xbf16, #tpu.memory_space<vmem>>, vector<32x32xbf16>
    %cst_11 = arith.constant dense<0.000000e+00> : vector<32x32xf32>
    %27 = tpu.matmul %25, %26, %cst_11 {dimension_numbers = #tpu.dot_dimension_numbers<[1], [0], [0], [1], [0, 0, 1, 1], [], []>} : vector<32x32xbf16>, vector<32x32xbf16>, vector<32x32xf32> -> vector<32x32xf32>
    %c0_12 = arith.constant 0 : index
    %c0_13 = arith.constant 0 : index
    %28 = vector.load %arg8[%c0_12, %c0_13] : memref<32x32xbf16, #tpu.memory_space<vmem>>, vector<32x32xbf16>
    %cst_14 = arith.constant dense<0.000000e+00> : vector<32x32xf32>
    %29 = tpu.matmul %25, %28, %cst_14 {dimension_numbers = #tpu.dot_dimension_numbers<[1], [0], [0], [1], [0, 0, 1, 1], [], []>} : vector<32x32xbf16>, vector<32x32xbf16>, vector<32x32xf32> -> vector<32x32xf32>
    %c0_15 = arith.constant 0 : index
    %c0_16 = arith.constant 0 : index
    %30 = vector.load %arg9[%c0_15, %c0_16] : memref<32x32xbf16, #tpu.memory_space<vmem>>, vector<32x32xbf16>
    %cst_17 = arith.constant dense<0.000000e+00> : vector<32x32xf32>
    %31 = tpu.matmul %25, %30, %cst_17 {dimension_numbers = #tpu.dot_dimension_numbers<[1], [0], [0], [1], [0, 0, 1, 1], [], []>} : vector<32x32xbf16>, vector<32x32xbf16>, vector<32x32xf32> -> vector<32x32xf32>
    %32 = vector.extract_strided_slice %27 {offsets = [0, 0], sizes = [16, 32], strides = [1, 1]} : vector<32x32xf32> to vector<16x32xf32>
    %33 = vector.extract_strided_slice %32 {offsets = [0, 0], sizes = [16, 8], strides = [1, 1]} : vector<16x32xf32> to vector<16x8xf32>
    %34 = vector.shape_cast %33 : vector<16x8xf32> to vector<1x16x8xf32>
    %35 = vector.extract_strided_slice %32 {offsets = [0, 8], sizes = [16, 8], strides = [1, 1]} : vector<16x32xf32> to vector<16x8xf32>
    %36 = vector.shape_cast %35 : vector<16x8xf32> to vector<1x16x8xf32>
    %37 = vector.extract_strided_slice %32 {offsets = [0, 16], sizes = [16, 8], strides = [1, 1]} : vector<16x32xf32> to vector<16x8xf32>
    %38 = vector.shape_cast %37 : vector<16x8xf32> to vector<1x16x8xf32>
    %39 = vector.extract_strided_slice %32 {offsets = [0, 24], sizes = [16, 8], strides = [1, 1]} : vector<16x32xf32> to vector<16x8xf32>
    %40 = vector.shape_cast %39 : vector<16x8xf32> to vector<1x16x8xf32>
    %41 = vector.extract_strided_slice %27 {offsets = [16, 0], sizes = [16, 32], strides = [1, 1]} : vector<32x32xf32> to vector<16x32xf32>
    %42 = vector.extract_strided_slice %41 {offsets = [0, 0], sizes = [16, 8], strides = [1, 1]} : vector<16x32xf32> to vector<16x8xf32>
    %43 = vector.shape_cast %42 : vector<16x8xf32> to vector<1x16x8xf32>
    %44 = vector.extract_strided_slice %41 {offsets = [0, 8], sizes = [16, 8], strides = [1, 1]} : vector<16x32xf32> to vector<16x8xf32>
    %45 = vector.shape_cast %44 : vector<16x8xf32> to vector<1x16x8xf32>
    %46 = vector.extract_strided_slice %41 {offsets = [0, 16], sizes = [16, 8], strides = [1, 1]} : vector<16x32xf32> to vector<16x8xf32>
    %47 = vector.shape_cast %46 : vector<16x8xf32> to vector<1x16x8xf32>
    %48 = vector.extract_strided_slice %41 {offsets = [0, 24], sizes = [16, 8], strides = [1, 1]} : vector<16x32xf32> to vector<16x8xf32>
    %49 = vector.shape_cast %48 : vector<16x8xf32> to vector<1x16x8xf32>
    %50 = tpu.concatenate %34, %36, %38, %40, %43, %45, %47, %49 in 0 : vector<1x16x8xf32>, vector<1x16x8xf32>, vector<1x16x8xf32>, vector<1x16x8xf32>, vector<1x16x8xf32>, vector<1x16x8xf32>, vector<1x16x8xf32>, vector<1x16x8xf32> -> vector<8x16x8xf32>
    %51 = arith.truncf %50 : vector<8x16x8xf32> to vector<8x16x8xbf16>
    %52 = vector.extract_strided_slice %29 {offsets = [0, 0], sizes = [16, 32], strides = [1, 1]} : vector<32x32xf32> to vector<16x32xf32>
    %53 = vector.extract_strided_slice %52 {offsets = [0, 0], sizes = [16, 8], strides = [1, 1]} : vector<16x32xf32> to vector<16x8xf32>
    %54 = vector.shape_cast %53 : vector<16x8xf32> to vector<1x16x8xf32>
    %55 = vector.extract_strided_slice %52 {offsets = [0, 8], sizes = [16, 8], strides = [1, 1]} : vector<16x32xf32> to vector<16x8xf32>
    %56 = vector.shape_cast %55 : vector<16x8xf32> to vector<1x16x8xf32>
    %57 = vector.extract_strided_slice %52 {offsets = [0, 16], sizes = [16, 8], strides = [1, 1]} : vector<16x32xf32> to vector<16x8xf32>
    %58 = vector.shape_cast %57 : vector<16x8xf32> to vector<1x16x8xf32>
    %59 = vector.extract_strided_slice %52 {offsets = [0, 24], sizes = [16, 8], strides = [1, 1]} : vector<16x32xf32> to vector<16x8xf32>
    %60 = vector.shape_cast %59 : vector<16x8xf32> to vector<1x16x8xf32>
    %61 = vector.extract_strided_slice %29 {offsets = [16, 0], sizes = [16, 32], strides = [1, 1]} : vector<32x32xf32> to vector<16x32xf32>
    %62 = vector.extract_strided_slice %61 {offsets = [0, 0], sizes = [16, 8], strides = [1, 1]} : vector<16x32xf32> to vector<16x8xf32>
    %63 = vector.shape_cast %62 : vector<16x8xf32> to vector<1x16x8xf32>
    %64 = vector.extract_strided_slice %61 {offsets = [0, 8], sizes = [16, 8], strides = [1, 1]} : vector<16x32xf32> to vector<16x8xf32>
    %65 = vector.shape_cast %64 : vector<16x8xf32> to vector<1x16x8xf32>
    %66 = vector.extract_strided_slice %61 {offsets = [0, 16], sizes = [16, 8], strides = [1, 1]} : vector<16x32xf32> to vector<16x8xf32>
    %67 = vector.shape_cast %66 : vector<16x8xf32> to vector<1x16x8xf32>
    %68 = vector.extract_strided_slice %61 {offsets = [0, 24], sizes = [16, 8], strides = [1, 1]} : vector<16x32xf32> to vector<16x8xf32>
    %69 = vector.shape_cast %68 : vector<16x8xf32> to vector<1x16x8xf32>
    %70 = tpu.concatenate %54, %56, %58, %60, %63, %65, %67, %69 in 0 : vector<1x16x8xf32>, vector<1x16x8xf32>, vector<1x16x8xf32>, vector<1x16x8xf32>, vector<1x16x8xf32>, vector<1x16x8xf32>, vector<1x16x8xf32>, vector<1x16x8xf32> -> vector<8x16x8xf32>
    %71 = arith.truncf %70 : vector<8x16x8xf32> to vector<8x16x8xbf16>
    %72 = vector.extract_strided_slice %31 {offsets = [0, 0], sizes = [16, 32], strides = [1, 1]} : vector<32x32xf32> to vector<16x32xf32>
    %73 = vector.extract_strided_slice %72 {offsets = [0, 0], sizes = [16, 8], strides = [1, 1]} : vector<16x32xf32> to vector<16x8xf32>
    %74 = vector.shape_cast %73 : vector<16x8xf32> to vector<1x16x8xf32>
    %75 = vector.extract_strided_slice %72 {offsets = [0, 8], sizes = [16, 8], strides = [1, 1]} : vector<16x32xf32> to vector<16x8xf32>
    %76 = vector.shape_cast %75 : vector<16x8xf32> to vector<1x16x8xf32>
    %77 = vector.extract_strided_slice %72 {offsets = [0, 16], sizes = [16, 8], strides = [1, 1]} : vector<16x32xf32> to vector<16x8xf32>
    %78 = vector.shape_cast %77 : vector<16x8xf32> to vector<1x16x8xf32>
    %79 = vector.extract_strided_slice %72 {offsets = [0, 24], sizes = [16, 8], strides = [1, 1]} : vector<16x32xf32> to vector<16x8xf32>
    %80 = vector.shape_cast %79 : vector<16x8xf32> to vector<1x16x8xf32>
    %81 = vector.extract_strided_slice %31 {offsets = [16, 0], sizes = [16, 32], strides = [1, 1]} : vector<32x32xf32> to vector<16x32xf32>
    %82 = vector.extract_strided_slice %81 {offsets = [0, 0], sizes = [16, 8], strides = [1, 1]} : vector<16x32xf32> to vector<16x8xf32>
    %83 = vector.shape_cast %82 : vector<16x8xf32> to vector<1x16x8xf32>
    %84 = vector.extract_strided_slice %81 {offsets = [0, 8], sizes = [16, 8], strides = [1, 1]} : vector<16x32xf32> to vector<16x8xf32>
    %85 = vector.shape_cast %84 : vector<16x8xf32> to vector<1x16x8xf32>
    %86 = vector.extract_strided_slice %81 {offsets = [0, 16], sizes = [16, 8], strides = [1, 1]} : vector<16x32xf32> to vector<16x8xf32>
    %87 = vector.shape_cast %86 : vector<16x8xf32> to vector<1x16x8xf32>
    %88 = vector.extract_strided_slice %81 {offsets = [0, 24], sizes = [16, 8], strides = [1, 1]} : vector<16x32xf32> to vector<16x8xf32>
    %89 = vector.shape_cast %88 : vector<16x8xf32> to vector<1x16x8xf32>
    %90 = tpu.concatenate %74, %76, %78, %80, %83, %85, %87, %89 in 0 : vector<1x16x8xf32>, vector<1x16x8xf32>, vector<1x16x8xf32>, vector<1x16x8xf32>, vector<1x16x8xf32>, vector<1x16x8xf32>, vector<1x16x8xf32>, vector<1x16x8xf32> -> vector<8x16x8xf32>
    %91 = arith.truncf %90 : vector<8x16x8xf32> to vector<8x16x8xbf16>
    "tpu.trace_start"() <{level = 10 : i32, message = "btd,bsd->bts"}> : () -> ()
    %cst_18 = arith.constant dense<0.000000e+00> : vector<8x16x16xf32>
    %92 = tpu.matmul %51, %71, %cst_18 {dimension_numbers = #tpu.dot_dimension_numbers<[2], [2], [1], [1], [0, 0, 0, 1, 1, 1], [0], [0]>} : vector<8x16x8xbf16>, vector<8x16x8xbf16>, vector<8x16x16xf32> -> vector<8x16x16xf32>
    "tpu.trace_stop"() : () -> ()
    %93 = tpu.iota {dimensions = array<i32: 0>} : vector<16x16xi32>
    %94 = tpu.iota {dimensions = array<i32: 1>} : vector<16x16xi32>
    %95 = arith.subi %93, %94 : vector<16x16xi32>
    %96 = math.absi %95 : vector<16x16xi32>
    %97 = arith.sitofp %96 : vector<16x16xi32> to vector<16x16xf32>
    %cst_19 = arith.constant 0.000000e+00 : f32
    %98 = vector.broadcast %cst_19 : f32 to vector<16x16xf32>
    %99 = arith.subf %98, %97 : vector<16x16xf32>
    %cst_20 = arith.constant 0.0883883461 : f32
    %100 = vector.broadcast %cst_20 : f32 to vector<16x16xf32>
    %101 = arith.mulf %99, %100 : vector<16x16xf32>
    %102 = vector.shape_cast %101 : vector<16x16xf32> to vector<1x16x16xf32>
    %cst_21 = arith.constant 0.0441941731 : f32
    %103 = vector.broadcast %cst_21 : f32 to vector<16x16xf32>
    %104 = arith.mulf %99, %103 : vector<16x16xf32>
    %105 = vector.shape_cast %104 : vector<16x16xf32> to vector<1x16x16xf32>
    %cst_22 = arith.constant 0.0220970865 : f32
    %106 = vector.broadcast %cst_22 : f32 to vector<16x16xf32>
    %107 = arith.mulf %99, %106 : vector<16x16xf32>
    %108 = vector.shape_cast %107 : vector<16x16xf32> to vector<1x16x16xf32>
    %cst_23 = arith.constant 0.0110485433 : f32
    %109 = vector.broadcast %cst_23 : f32 to vector<16x16xf32>
    %110 = arith.mulf %99, %109 : vector<16x16xf32>
    %111 = vector.shape_cast %110 : vector<16x16xf32> to vector<1x16x16xf32>
    %112 = tpu.concatenate %102, %105, %108, %111 in 0 : vector<1x16x16xf32>, vector<1x16x16xf32>, vector<1x16x16xf32>, vector<1x16x16xf32> -> vector<4x16x16xf32>
    %c2_i32 = arith.constant 2 : i32
    %113 = arith.muli %arg0, %c2_i32 : i32
    %c0_i32 = arith.constant 0 : i32
    %114 = arith.addi %113, %c0_i32 : i32
    %115 = arith.index_cast %114 : i32 to index
    %116 = memref.load %arg1[%115] : memref<2xi32, #tpu.memory_space<smem>>
    %117 = vector.extract_strided_slice %92 {offsets = [0, 0, 0], sizes = [4, 16, 16], strides = [1, 1, 1]} : vector<8x16x16xf32> to vector<4x16x16xf32>
    %118 = arith.addf %117, %112 : vector<4x16x16xf32>
    %c0_24 = arith.constant 0 : index
    %c0_25 = arith.constant 0 : index
    %119 = memref.load %arg10[%c0_24, %c0_25] : memref<4x4xf32, #tpu.memory_space<smem>>
    %120 = vector.extract_strided_slice %118 {offsets = [0, 0, 0], sizes = [1, 16, 16], strides = [1, 1, 1]} : vector<4x16x16xf32> to vector<1x16x16xf32>
    %121 = vector.shape_cast %120 : vector<1x16x16xf32> to vector<16x16xf32>
    %122 = vector.broadcast %119 : f32 to vector<16x16xf32>
    %123 = arith.mulf %122, %121 : vector<16x16xf32>
    %c0_26 = arith.constant 0 : index
    %c1 = arith.constant 1 : index
    %124 = memref.load %arg10[%c0_26, %c1] : memref<4x4xf32, #tpu.memory_space<smem>>
    %125 = vector.extract_strided_slice %118 {offsets = [1, 0, 0], sizes = [1, 16, 16], strides = [1, 1, 1]} : vector<4x16x16xf32> to vector<1x16x16xf32>
    %126 = vector.shape_cast %125 : vector<1x16x16xf32> to vector<16x16xf32>
    %127 = vector.broadcast %124 : f32 to vector<16x16xf32>
    %128 = arith.mulf %127, %126 : vector<16x16xf32>
    %129 = arith.addf %123, %128 : vector<16x16xf32>
    %c0_27 = arith.constant 0 : index
    %c2 = arith.constant 2 : index
    %130 = memref.load %arg10[%c0_27, %c2] : memref<4x4xf32, #tpu.memory_space<smem>>
    %131 = vector.extract_strided_slice %118 {offsets = [2, 0, 0], sizes = [1, 16, 16], strides = [1, 1, 1]} : vector<4x16x16xf32> to vector<1x16x16xf32>
    %132 = vector.shape_cast %131 : vector<1x16x16xf32> to vector<16x16xf32>
    %133 = vector.broadcast %130 : f32 to vector<16x16xf32>
    %134 = arith.mulf %133, %132 : vector<16x16xf32>
    %135 = arith.addf %129, %134 : vector<16x16xf32>
    %c0_28 = arith.constant 0 : index
    %c3 = arith.constant 3 : index
    %136 = memref.load %arg10[%c0_28, %c3] : memref<4x4xf32, #tpu.memory_space<smem>>
    %137 = vector.extract_strided_slice %118 {offsets = [3, 0, 0], sizes = [1, 16, 16], strides = [1, 1, 1]} : vector<4x16x16xf32> to vector<1x16x16xf32>
    %138 = vector.shape_cast %137 : vector<1x16x16xf32> to vector<16x16xf32>
    %139 = vector.broadcast %136 : f32 to vector<16x16xf32>
    %140 = arith.mulf %139, %138 : vector<16x16xf32>
    %141 = arith.addf %135, %140 : vector<16x16xf32>
    %142 = vector.shape_cast %141 : vector<16x16xf32> to vector<1x16x16xf32>
    %c1_29 = arith.constant 1 : index
    %c0_30 = arith.constant 0 : index
    %143 = memref.load %arg10[%c1_29, %c0_30] : memref<4x4xf32, #tpu.memory_space<smem>>
    %144 = vector.extract_strided_slice %118 {offsets = [0, 0, 0], sizes = [1, 16, 16], strides = [1, 1, 1]} : vector<4x16x16xf32> to vector<1x16x16xf32>
    %145 = vector.shape_cast %144 : vector<1x16x16xf32> to vector<16x16xf32>
    %146 = vector.broadcast %143 : f32 to vector<16x16xf32>
    %147 = arith.mulf %146, %145 : vector<16x16xf32>
    %c1_31 = arith.constant 1 : index
    %c1_32 = arith.constant 1 : index
    %148 = memref.load %arg10[%c1_31, %c1_32] : memref<4x4xf32, #tpu.memory_space<smem>>
    %149 = vector.extract_strided_slice %118 {offsets = [1, 0, 0], sizes = [1, 16, 16], strides = [1, 1, 1]} : vector<4x16x16xf32> to vector<1x16x16xf32>
    %150 = vector.shape_cast %149 : vector<1x16x16xf32> to vector<16x16xf32>
    %151 = vector.broadcast %148 : f32 to vector<16x16xf32>
    %152 = arith.mulf %151, %150 : vector<16x16xf32>
    %153 = arith.addf %147, %152 : vector<16x16xf32>
    %c1_33 = arith.constant 1 : index
    %c2_34 = arith.constant 2 : index
    %154 = memref.load %arg10[%c1_33, %c2_34] : memref<4x4xf32, #tpu.memory_space<smem>>
    %155 = vector.extract_strided_slice %118 {offsets = [2, 0, 0], sizes = [1, 16, 16], strides = [1, 1, 1]} : vector<4x16x16xf32> to vector<1x16x16xf32>
    %156 = vector.shape_cast %155 : vector<1x16x16xf32> to vector<16x16xf32>
    %157 = vector.broadcast %154 : f32 to vector<16x16xf32>
    %158 = arith.mulf %157, %156 : vector<16x16xf32>
    %159 = arith.addf %153, %158 : vector<16x16xf32>
    %c1_35 = arith.constant 1 : index
    %c3_36 = arith.constant 3 : index
    %160 = memref.load %arg10[%c1_35, %c3_36] : memref<4x4xf32, #tpu.memory_space<smem>>
    %161 = vector.extract_strided_slice %118 {offsets = [3, 0, 0], sizes = [1, 16, 16], strides = [1, 1, 1]} : vector<4x16x16xf32> to vector<1x16x16xf32>
    %162 = vector.shape_cast %161 : vector<1x16x16xf32> to vector<16x16xf32>
    %163 = vector.broadcast %160 : f32 to vector<16x16xf32>
    %164 = arith.mulf %163, %162 : vector<16x16xf32>
    %165 = arith.addf %159, %164 : vector<16x16xf32>
    %166 = vector.shape_cast %165 : vector<16x16xf32> to vector<1x16x16xf32>
    %c2_37 = arith.constant 2 : index
    %c0_38 = arith.constant 0 : index
    %167 = memref.load %arg10[%c2_37, %c0_38] : memref<4x4xf32, #tpu.memory_space<smem>>
    %168 = vector.extract_strided_slice %118 {offsets = [0, 0, 0], sizes = [1, 16, 16], strides = [1, 1, 1]} : vector<4x16x16xf32> to vector<1x16x16xf32>
    %169 = vector.shape_cast %168 : vector<1x16x16xf32> to vector<16x16xf32>
    %170 = vector.broadcast %167 : f32 to vector<16x16xf32>
    %171 = arith.mulf %170, %169 : vector<16x16xf32>
    %c2_39 = arith.constant 2 : index
    %c1_40 = arith.constant 1 : index
    %172 = memref.load %arg10[%c2_39, %c1_40] : memref<4x4xf32, #tpu.memory_space<smem>>
    %173 = vector.extract_strided_slice %118 {offsets = [1, 0, 0], sizes = [1, 16, 16], strides = [1, 1, 1]} : vector<4x16x16xf32> to vector<1x16x16xf32>
    %174 = vector.shape_cast %173 : vector<1x16x16xf32> to vector<16x16xf32>
    %175 = vector.broadcast %172 : f32 to vector<16x16xf32>
    %176 = arith.mulf %175, %174 : vector<16x16xf32>
    %177 = arith.addf %171, %176 : vector<16x16xf32>
    %c2_41 = arith.constant 2 : index
    %c2_42 = arith.constant 2 : index
    %178 = memref.load %arg10[%c2_41, %c2_42] : memref<4x4xf32, #tpu.memory_space<smem>>
    %179 = vector.extract_strided_slice %118 {offsets = [2, 0, 0], sizes = [1, 16, 16], strides = [1, 1, 1]} : vector<4x16x16xf32> to vector<1x16x16xf32>
    %180 = vector.shape_cast %179 : vector<1x16x16xf32> to vector<16x16xf32>
    %181 = vector.broadcast %178 : f32 to vector<16x16xf32>
    %182 = arith.mulf %181, %180 : vector<16x16xf32>
    %183 = arith.addf %177, %182 : vector<16x16xf32>
    %c2_43 = arith.constant 2 : index
    %c3_44 = arith.constant 3 : index
    %184 = memref.load %arg10[%c2_43, %c3_44] : memref<4x4xf32, #tpu.memory_space<smem>>
    %185 = vector.extract_strided_slice %118 {offsets = [3, 0, 0], sizes = [1, 16, 16], strides = [1, 1, 1]} : vector<4x16x16xf32> to vector<1x16x16xf32>
    %186 = vector.shape_cast %185 : vector<1x16x16xf32> to vector<16x16xf32>
    %187 = vector.broadcast %184 : f32 to vector<16x16xf32>
    %188 = arith.mulf %187, %186 : vector<16x16xf32>
    %189 = arith.addf %183, %188 : vector<16x16xf32>
    %190 = vector.shape_cast %189 : vector<16x16xf32> to vector<1x16x16xf32>
    %c3_45 = arith.constant 3 : index
    %c0_46 = arith.constant 0 : index
    %191 = memref.load %arg10[%c3_45, %c0_46] : memref<4x4xf32, #tpu.memory_space<smem>>
    %192 = vector.extract_strided_slice %118 {offsets = [0, 0, 0], sizes = [1, 16, 16], strides = [1, 1, 1]} : vector<4x16x16xf32> to vector<1x16x16xf32>
    %193 = vector.shape_cast %192 : vector<1x16x16xf32> to vector<16x16xf32>
    %194 = vector.broadcast %191 : f32 to vector<16x16xf32>
    %195 = arith.mulf %194, %193 : vector<16x16xf32>
    %c3_47 = arith.constant 3 : index
    %c1_48 = arith.constant 1 : index
    %196 = memref.load %arg10[%c3_47, %c1_48] : memref<4x4xf32, #tpu.memory_space<smem>>
    %197 = vector.extract_strided_slice %118 {offsets = [1, 0, 0], sizes = [1, 16, 16], strides = [1, 1, 1]} : vector<4x16x16xf32> to vector<1x16x16xf32>
    %198 = vector.shape_cast %197 : vector<1x16x16xf32> to vector<16x16xf32>
    %199 = vector.broadcast %196 : f32 to vector<16x16xf32>
    %200 = arith.mulf %199, %198 : vector<16x16xf32>
    %201 = arith.addf %195, %200 : vector<16x16xf32>
    %c3_49 = arith.constant 3 : index
    %c2_50 = arith.constant 2 : index
    %202 = memref.load %arg10[%c3_49, %c2_50] : memref<4x4xf32, #tpu.memory_space<smem>>
    %203 = vector.extract_strided_slice %118 {offsets = [2, 0, 0], sizes = [1, 16, 16], strides = [1, 1, 1]} : vector<4x16x16xf32> to vector<1x16x16xf32>
    %204 = vector.shape_cast %203 : vector<1x16x16xf32> to vector<16x16xf32>
    %205 = vector.broadcast %202 : f32 to vector<16x16xf32>
    %206 = arith.mulf %205, %204 : vector<16x16xf32>
    %207 = arith.addf %201, %206 : vector<16x16xf32>
    %c3_51 = arith.constant 3 : index
    %c3_52 = arith.constant 3 : index
    %208 = memref.load %arg10[%c3_51, %c3_52] : memref<4x4xf32, #tpu.memory_space<smem>>
    %209 = vector.extract_strided_slice %118 {offsets = [3, 0, 0], sizes = [1, 16, 16], strides = [1, 1, 1]} : vector<4x16x16xf32> to vector<1x16x16xf32>
    %210 = vector.shape_cast %209 : vector<1x16x16xf32> to vector<16x16xf32>
    %211 = vector.broadcast %208 : f32 to vector<16x16xf32>
    %212 = arith.mulf %211, %210 : vector<16x16xf32>
    %213 = arith.addf %207, %212 : vector<16x16xf32>
    %214 = vector.shape_cast %213 : vector<16x16xf32> to vector<1x16x16xf32>
    %215 = tpu.concatenate %142, %166, %190, %214 in 0 : vector<1x16x16xf32>, vector<1x16x16xf32>, vector<1x16x16xf32>, vector<1x16x16xf32> -> vector<4x16x16xf32>
    %216 = vector.broadcast %116 : i32 to vector<16x16xi32>
    %217 = arith.cmpi slt, %94, %216 : vector<16x16xi32>
    %218 = vector.shape_cast %217 : vector<16x16xi1> to vector<1x16x16xi1>
    %219 = vector.shape_cast %218 : vector<1x16x16xi1> to vector<1x16x16xi1>
    %220 = vector.broadcast %219 : vector<1x16x16xi1> to vector<4x16x16xi1>
    %cst_53 = arith.constant -1.000000e+04 : f32
    %221 = vector.broadcast %cst_53 : f32 to vector<4x16x16xf32>
    %222 = arith.select %220, %215, %221 : vector<4x16x16xi1>, vector<4x16x16xf32>
    %cst_54 = arith.constant dense<0xFF800000> : vector<4x16xf32>
    %223 = vector.multi_reduction <maximumf>, %222, %cst_54 [2] : vector<4x16x16xf32> to vector<4x16xf32>
    %224 = vector.shape_cast %223 : vector<4x16xf32> to vector<4x16x1xf32>
    %225 = vector.broadcast %224 : vector<4x16x1xf32> to vector<4x16x16xf32>
    %226 = arith.subf %222, %225 : vector<4x16x16xf32>
    %227 = math.exp %226 : vector<4x16x16xf32>
    %cst_55 = arith.constant dense<0.000000e+00> : vector<4x16xf32>
    %228 = vector.multi_reduction <add>, %227, %cst_55 [2] : vector<4x16x16xf32> to vector<4x16xf32>
    %229 = vector.shape_cast %228 : vector<4x16xf32> to vector<4x16x1xf32>
    %230 = tpu.reciprocal %229 {approx = true} : vector<4x16x1xf32> -> vector<4x16x1xf32>
    %231 = vector.broadcast %230 : vector<4x16x1xf32> to vector<4x16x16xf32>
    %232 = arith.mulf %227, %231 : vector<4x16x16xf32>
    %c0_56 = arith.constant 0 : index
    %c0_57 = arith.constant 0 : index
    %233 = memref.load %arg11[%c0_56, %c0_57] : memref<4x4xf32, #tpu.memory_space<smem>>
    %234 = vector.extract_strided_slice %232 {offsets = [0, 0, 0], sizes = [1, 16, 16], strides = [1, 1, 1]} : vector<4x16x16xf32> to vector<1x16x16xf32>
    %235 = vector.shape_cast %234 : vector<1x16x16xf32> to vector<16x16xf32>
    %236 = vector.broadcast %233 : f32 to vector<16x16xf32>
    %237 = arith.mulf %236, %235 : vector<16x16xf32>
    %c0_58 = arith.constant 0 : index
    %c1_59 = arith.constant 1 : index
    %238 = memref.load %arg11[%c0_58, %c1_59] : memref<4x4xf32, #tpu.memory_space<smem>>
    %239 = vector.extract_strided_slice %232 {offsets = [1, 0, 0], sizes = [1, 16, 16], strides = [1, 1, 1]} : vector<4x16x16xf32> to vector<1x16x16xf32>
    %240 = vector.shape_cast %239 : vector<1x16x16xf32> to vector<16x16xf32>
    %241 = vector.broadcast %238 : f32 to vector<16x16xf32>
    %242 = arith.mulf %241, %240 : vector<16x16xf32>
    %243 = arith.addf %237, %242 : vector<16x16xf32>
    %c0_60 = arith.constant 0 : index
    %c2_61 = arith.constant 2 : index
    %244 = memref.load %arg11[%c0_60, %c2_61] : memref<4x4xf32, #tpu.memory_space<smem>>
    %245 = vector.extract_strided_slice %232 {offsets = [2, 0, 0], sizes = [1, 16, 16], strides = [1, 1, 1]} : vector<4x16x16xf32> to vector<1x16x16xf32>
    %246 = vector.shape_cast %245 : vector<1x16x16xf32> to vector<16x16xf32>
    %247 = vector.broadcast %244 : f32 to vector<16x16xf32>
    %248 = arith.mulf %247, %246 : vector<16x16xf32>
    %249 = arith.addf %243, %248 : vector<16x16xf32>
    %c0_62 = arith.constant 0 : index
    %c3_63 = arith.constant 3 : index
    %250 = memref.load %arg11[%c0_62, %c3_63] : memref<4x4xf32, #tpu.memory_space<smem>>
    %251 = vector.extract_strided_slice %232 {offsets = [3, 0, 0], sizes = [1, 16, 16], strides = [1, 1, 1]} : vector<4x16x16xf32> to vector<1x16x16xf32>
    %252 = vector.shape_cast %251 : vector<1x16x16xf32> to vector<16x16xf32>
    %253 = vector.broadcast %250 : f32 to vector<16x16xf32>
    %254 = arith.mulf %253, %252 : vector<16x16xf32>
    %255 = arith.addf %249, %254 : vector<16x16xf32>
    %256 = vector.shape_cast %255 : vector<16x16xf32> to vector<1x16x16xf32>
    %c1_64 = arith.constant 1 : index
    %c0_65 = arith.constant 0 : index
    %257 = memref.load %arg11[%c1_64, %c0_65] : memref<4x4xf32, #tpu.memory_space<smem>>
    %258 = vector.extract_strided_slice %232 {offsets = [0, 0, 0], sizes = [1, 16, 16], strides = [1, 1, 1]} : vector<4x16x16xf32> to vector<1x16x16xf32>
    %259 = vector.shape_cast %258 : vector<1x16x16xf32> to vector<16x16xf32>
    %260 = vector.broadcast %257 : f32 to vector<16x16xf32>
    %261 = arith.mulf %260, %259 : vector<16x16xf32>
    %c1_66 = arith.constant 1 : index
    %c1_67 = arith.constant 1 : index
    %262 = memref.load %arg11[%c1_66, %c1_67] : memref<4x4xf32, #tpu.memory_space<smem>>
    %263 = vector.extract_strided_slice %232 {offsets = [1, 0, 0], sizes = [1, 16, 16], strides = [1, 1, 1]} : vector<4x16x16xf32> to vector<1x16x16xf32>
    %264 = vector.shape_cast %263 : vector<1x16x16xf32> to vector<16x16xf32>
    %265 = vector.broadcast %262 : f32 to vector<16x16xf32>
    %266 = arith.mulf %265, %264 : vector<16x16xf32>
    %267 = arith.addf %261, %266 : vector<16x16xf32>
    %c1_68 = arith.constant 1 : index
    %c2_69 = arith.constant 2 : index
    %268 = memref.load %arg11[%c1_68, %c2_69] : memref<4x4xf32, #tpu.memory_space<smem>>
    %269 = vector.extract_strided_slice %232 {offsets = [2, 0, 0], sizes = [1, 16, 16], strides = [1, 1, 1]} : vector<4x16x16xf32> to vector<1x16x16xf32>
    %270 = vector.shape_cast %269 : vector<1x16x16xf32> to vector<16x16xf32>
    %271 = vector.broadcast %268 : f32 to vector<16x16xf32>
    %272 = arith.mulf %271, %270 : vector<16x16xf32>
    %273 = arith.addf %267, %272 : vector<16x16xf32>
    %c1_70 = arith.constant 1 : index
    %c3_71 = arith.constant 3 : index
    %274 = memref.load %arg11[%c1_70, %c3_71] : memref<4x4xf32, #tpu.memory_space<smem>>
    %275 = vector.extract_strided_slice %232 {offsets = [3, 0, 0], sizes = [1, 16, 16], strides = [1, 1, 1]} : vector<4x16x16xf32> to vector<1x16x16xf32>
    %276 = vector.shape_cast %275 : vector<1x16x16xf32> to vector<16x16xf32>
    %277 = vector.broadcast %274 : f32 to vector<16x16xf32>
    %278 = arith.mulf %277, %276 : vector<16x16xf32>
    %279 = arith.addf %273, %278 : vector<16x16xf32>
    %280 = vector.shape_cast %279 : vector<16x16xf32> to vector<1x16x16xf32>
    %c2_72 = arith.constant 2 : index
    %c0_73 = arith.constant 0 : index
    %281 = memref.load %arg11[%c2_72, %c0_73] : memref<4x4xf32, #tpu.memory_space<smem>>
    %282 = vector.extract_strided_slice %232 {offsets = [0, 0, 0], sizes = [1, 16, 16], strides = [1, 1, 1]} : vector<4x16x16xf32> to vector<1x16x16xf32>
    %283 = vector.shape_cast %282 : vector<1x16x16xf32> to vector<16x16xf32>
    %284 = vector.broadcast %281 : f32 to vector<16x16xf32>
    %285 = arith.mulf %284, %283 : vector<16x16xf32>
    %c2_74 = arith.constant 2 : index
    %c1_75 = arith.constant 1 : index
    %286 = memref.load %arg11[%c2_74, %c1_75] : memref<4x4xf32, #tpu.memory_space<smem>>
    %287 = vector.extract_strided_slice %232 {offsets = [1, 0, 0], sizes = [1, 16, 16], strides = [1, 1, 1]} : vector<4x16x16xf32> to vector<1x16x16xf32>
    %288 = vector.shape_cast %287 : vector<1x16x16xf32> to vector<16x16xf32>
    %289 = vector.broadcast %286 : f32 to vector<16x16xf32>
    %290 = arith.mulf %289, %288 : vector<16x16xf32>
    %291 = arith.addf %285, %290 : vector<16x16xf32>
    %c2_76 = arith.constant 2 : index
    %c2_77 = arith.constant 2 : index
    %292 = memref.load %arg11[%c2_76, %c2_77] : memref<4x4xf32, #tpu.memory_space<smem>>
    %293 = vector.extract_strided_slice %232 {offsets = [2, 0, 0], sizes = [1, 16, 16], strides = [1, 1, 1]} : vector<4x16x16xf32> to vector<1x16x16xf32>
    %294 = vector.shape_cast %293 : vector<1x16x16xf32> to vector<16x16xf32>
    %295 = vector.broadcast %292 : f32 to vector<16x16xf32>
    %296 = arith.mulf %295, %294 : vector<16x16xf32>
    %297 = arith.addf %291, %296 : vector<16x16xf32>
    %c2_78 = arith.constant 2 : index
    %c3_79 = arith.constant 3 : index
    %298 = memref.load %arg11[%c2_78, %c3_79] : memref<4x4xf32, #tpu.memory_space<smem>>
    %299 = vector.extract_strided_slice %232 {offsets = [3, 0, 0], sizes = [1, 16, 16], strides = [1, 1, 1]} : vector<4x16x16xf32> to vector<1x16x16xf32>
    %300 = vector.shape_cast %299 : vector<1x16x16xf32> to vector<16x16xf32>
    %301 = vector.broadcast %298 : f32 to vector<16x16xf32>
    %302 = arith.mulf %301, %300 : vector<16x16xf32>
    %303 = arith.addf %297, %302 : vector<16x16xf32>
    %304 = vector.shape_cast %303 : vector<16x16xf32> to vector<1x16x16xf32>
    %c3_80 = arith.constant 3 : index
    %c0_81 = arith.constant 0 : index
    %305 = memref.load %arg11[%c3_80, %c0_81] : memref<4x4xf32, #tpu.memory_space<smem>>
    %306 = vector.extract_strided_slice %232 {offsets = [0, 0, 0], sizes = [1, 16, 16], strides = [1, 1, 1]} : vector<4x16x16xf32> to vector<1x16x16xf32>
    %307 = vector.shape_cast %306 : vector<1x16x16xf32> to vector<16x16xf32>
    %308 = vector.broadcast %305 : f32 to vector<16x16xf32>
    %309 = arith.mulf %308, %307 : vector<16x16xf32>
    %c3_82 = arith.constant 3 : index
    %c1_83 = arith.constant 1 : index
    %310 = memref.load %arg11[%c3_82, %c1_83] : memref<4x4xf32, #tpu.memory_space<smem>>
    %311 = vector.extract_strided_slice %232 {offsets = [1, 0, 0], sizes = [1, 16, 16], strides = [1, 1, 1]} : vector<4x16x16xf32> to vector<1x16x16xf32>
    %312 = vector.shape_cast %311 : vector<1x16x16xf32> to vector<16x16xf32>
    %313 = vector.broadcast %310 : f32 to vector<16x16xf32>
    %314 = arith.mulf %313, %312 : vector<16x16xf32>
    %315 = arith.addf %309, %314 : vector<16x16xf32>
    %c3_84 = arith.constant 3 : index
    %c2_85 = arith.constant 2 : index
    %316 = memref.load %arg11[%c3_84, %c2_85] : memref<4x4xf32, #tpu.memory_space<smem>>
    %317 = vector.extract_strided_slice %232 {offsets = [2, 0, 0], sizes = [1, 16, 16], strides = [1, 1, 1]} : vector<4x16x16xf32> to vector<1x16x16xf32>
    %318 = vector.shape_cast %317 : vector<1x16x16xf32> to vector<16x16xf32>
    %319 = vector.broadcast %316 : f32 to vector<16x16xf32>
    %320 = arith.mulf %319, %318 : vector<16x16xf32>
    %321 = arith.addf %315, %320 : vector<16x16xf32>
    %c3_86 = arith.constant 3 : index
    %c3_87 = arith.constant 3 : index
    %322 = memref.load %arg11[%c3_86, %c3_87] : memref<4x4xf32, #tpu.memory_space<smem>>
    %323 = vector.extract_strided_slice %232 {offsets = [3, 0, 0], sizes = [1, 16, 16], strides = [1, 1, 1]} : vector<4x16x16xf32> to vector<1x16x16xf32>
    %324 = vector.shape_cast %323 : vector<1x16x16xf32> to vector<16x16xf32>
    %325 = vector.broadcast %322 : f32 to vector<16x16xf32>
    %326 = arith.mulf %325, %324 : vector<16x16xf32>
    %327 = arith.addf %321, %326 : vector<16x16xf32>
    %328 = vector.shape_cast %327 : vector<16x16xf32> to vector<1x16x16xf32>
    %329 = tpu.concatenate %256, %280, %304, %328 in 0 : vector<1x16x16xf32>, vector<1x16x16xf32>, vector<1x16x16xf32>, vector<1x16x16xf32> -> vector<4x16x16xf32>
    %c2_i32_88 = arith.constant 2 : i32
    %330 = arith.muli %arg0, %c2_i32_88 : i32
    %c1_i32 = arith.constant 1 : i32
    %331 = arith.addi %330, %c1_i32 : i32
    %332 = arith.index_cast %331 : i32 to index
    %333 = memref.load %arg1[%332] : memref<2xi32, #tpu.memory_space<smem>>
    %334 = vector.extract_strided_slice %92 {offsets = [4, 0, 0], sizes = [4, 16, 16], strides = [1, 1, 1]} : vector<8x16x16xf32> to vector<4x16x16xf32>
    %335 = arith.addf %334, %112 : vector<4x16x16xf32>
    %c0_89 = arith.constant 0 : index
    %c0_90 = arith.constant 0 : index
    %336 = memref.load %arg10[%c0_89, %c0_90] : memref<4x4xf32, #tpu.memory_space<smem>>
    %337 = vector.extract_strided_slice %335 {offsets = [0, 0, 0], sizes = [1, 16, 16], strides = [1, 1, 1]} : vector<4x16x16xf32> to vector<1x16x16xf32>
    %338 = vector.shape_cast %337 : vector<1x16x16xf32> to vector<16x16xf32>
    %339 = vector.broadcast %336 : f32 to vector<16x16xf32>
    %340 = arith.mulf %339, %338 : vector<16x16xf32>
    %c0_91 = arith.constant 0 : index
    %c1_92 = arith.constant 1 : index
    %341 = memref.load %arg10[%c0_91, %c1_92] : memref<4x4xf32, #tpu.memory_space<smem>>
    %342 = vector.extract_strided_slice %335 {offsets = [1, 0, 0], sizes = [1, 16, 16], strides = [1, 1, 1]} : vector<4x16x16xf32> to vector<1x16x16xf32>
    %343 = vector.shape_cast %342 : vector<1x16x16xf32> to vector<16x16xf32>
    %344 = vector.broadcast %341 : f32 to vector<16x16xf32>
    %345 = arith.mulf %344, %343 : vector<16x16xf32>
    %346 = arith.addf %340, %345 : vector<16x16xf32>
    %c0_93 = arith.constant 0 : index
    %c2_94 = arith.constant 2 : index
    %347 = memref.load %arg10[%c0_93, %c2_94] : memref<4x4xf32, #tpu.memory_space<smem>>
    %348 = vector.extract_strided_slice %335 {offsets = [2, 0, 0], sizes = [1, 16, 16], strides = [1, 1, 1]} : vector<4x16x16xf32> to vector<1x16x16xf32>
    %349 = vector.shape_cast %348 : vector<1x16x16xf32> to vector<16x16xf32>
    %350 = vector.broadcast %347 : f32 to vector<16x16xf32>
    %351 = arith.mulf %350, %349 : vector<16x16xf32>
    %352 = arith.addf %346, %351 : vector<16x16xf32>
    %c0_95 = arith.constant 0 : index
    %c3_96 = arith.constant 3 : index
    %353 = memref.load %arg10[%c0_95, %c3_96] : memref<4x4xf32, #tpu.memory_space<smem>>
    %354 = vector.extract_strided_slice %335 {offsets = [3, 0, 0], sizes = [1, 16, 16], strides = [1, 1, 1]} : vector<4x16x16xf32> to vector<1x16x16xf32>
    %355 = vector.shape_cast %354 : vector<1x16x16xf32> to vector<16x16xf32>
    %356 = vector.broadcast %353 : f32 to vector<16x16xf32>
    %357 = arith.mulf %356, %355 : vector<16x16xf32>
    %358 = arith.addf %352, %357 : vector<16x16xf32>
    %359 = vector.shape_cast %358 : vector<16x16xf32> to vector<1x16x16xf32>
    %c1_97 = arith.constant 1 : index
    %c0_98 = arith.constant 0 : index
    %360 = memref.load %arg10[%c1_97, %c0_98] : memref<4x4xf32, #tpu.memory_space<smem>>
    %361 = vector.extract_strided_slice %335 {offsets = [0, 0, 0], sizes = [1, 16, 16], strides = [1, 1, 1]} : vector<4x16x16xf32> to vector<1x16x16xf32>
    %362 = vector.shape_cast %361 : vector<1x16x16xf32> to vector<16x16xf32>
    %363 = vector.broadcast %360 : f32 to vector<16x16xf32>
    %364 = arith.mulf %363, %362 : vector<16x16xf32>
    %c1_99 = arith.constant 1 : index
    %c1_100 = arith.constant 1 : index
    %365 = memref.load %arg10[%c1_99, %c1_100] : memref<4x4xf32, #tpu.memory_space<smem>>
    %366 = vector.extract_strided_slice %335 {offsets = [1, 0, 0], sizes = [1, 16, 16], strides = [1, 1, 1]} : vector<4x16x16xf32> to vector<1x16x16xf32>
    %367 = vector.shape_cast %366 : vector<1x16x16xf32> to vector<16x16xf32>
    %368 = vector.broadcast %365 : f32 to vector<16x16xf32>
    %369 = arith.mulf %368, %367 : vector<16x16xf32>
    %370 = arith.addf %364, %369 : vector<16x16xf32>
    %c1_101 = arith.constant 1 : index
    %c2_102 = arith.constant 2 : index
    %371 = memref.load %arg10[%c1_101, %c2_102] : memref<4x4xf32, #tpu.memory_space<smem>>
    %372 = vector.extract_strided_slice %335 {offsets = [2, 0, 0], sizes = [1, 16, 16], strides = [1, 1, 1]} : vector<4x16x16xf32> to vector<1x16x16xf32>
    %373 = vector.shape_cast %372 : vector<1x16x16xf32> to vector<16x16xf32>
    %374 = vector.broadcast %371 : f32 to vector<16x16xf32>
    %375 = arith.mulf %374, %373 : vector<16x16xf32>
    %376 = arith.addf %370, %375 : vector<16x16xf32>
    %c1_103 = arith.constant 1 : index
    %c3_104 = arith.constant 3 : index
    %377 = memref.load %arg10[%c1_103, %c3_104] : memref<4x4xf32, #tpu.memory_space<smem>>
    %378 = vector.extract_strided_slice %335 {offsets = [3, 0, 0], sizes = [1, 16, 16], strides = [1, 1, 1]} : vector<4x16x16xf32> to vector<1x16x16xf32>
    %379 = vector.shape_cast %378 : vector<1x16x16xf32> to vector<16x16xf32>
    %380 = vector.broadcast %377 : f32 to vector<16x16xf32>
    %381 = arith.mulf %380, %379 : vector<16x16xf32>
    %382 = arith.addf %376, %381 : vector<16x16xf32>
    %383 = vector.shape_cast %382 : vector<16x16xf32> to vector<1x16x16xf32>
    %c2_105 = arith.constant 2 : index
    %c0_106 = arith.constant 0 : index
    %384 = memref.load %arg10[%c2_105, %c0_106] : memref<4x4xf32, #tpu.memory_space<smem>>
    %385 = vector.extract_strided_slice %335 {offsets = [0, 0, 0], sizes = [1, 16, 16], strides = [1, 1, 1]} : vector<4x16x16xf32> to vector<1x16x16xf32>
    %386 = vector.shape_cast %385 : vector<1x16x16xf32> to vector<16x16xf32>
    %387 = vector.broadcast %384 : f32 to vector<16x16xf32>
    %388 = arith.mulf %387, %386 : vector<16x16xf32>
    %c2_107 = arith.constant 2 : index
    %c1_108 = arith.constant 1 : index
    %389 = memref.load %arg10[%c2_107, %c1_108] : memref<4x4xf32, #tpu.memory_space<smem>>
    %390 = vector.extract_strided_slice %335 {offsets = [1, 0, 0], sizes = [1, 16, 16], strides = [1, 1, 1]} : vector<4x16x16xf32> to vector<1x16x16xf32>
    %391 = vector.shape_cast %390 : vector<1x16x16xf32> to vector<16x16xf32>
    %392 = vector.broadcast %389 : f32 to vector<16x16xf32>
    %393 = arith.mulf %392, %391 : vector<16x16xf32>
    %394 = arith.addf %388, %393 : vector<16x16xf32>
    %c2_109 = arith.constant 2 : index
    %c2_110 = arith.constant 2 : index
    %395 = memref.load %arg10[%c2_109, %c2_110] : memref<4x4xf32, #tpu.memory_space<smem>>
    %396 = vector.extract_strided_slice %335 {offsets = [2, 0, 0], sizes = [1, 16, 16], strides = [1, 1, 1]} : vector<4x16x16xf32> to vector<1x16x16xf32>
    %397 = vector.shape_cast %396 : vector<1x16x16xf32> to vector<16x16xf32>
    %398 = vector.broadcast %395 : f32 to vector<16x16xf32>
    %399 = arith.mulf %398, %397 : vector<16x16xf32>
    %400 = arith.addf %394, %399 : vector<16x16xf32>
    %c2_111 = arith.constant 2 : index
    %c3_112 = arith.constant 3 : index
    %401 = memref.load %arg10[%c2_111, %c3_112] : memref<4x4xf32, #tpu.memory_space<smem>>
    %402 = vector.extract_strided_slice %335 {offsets = [3, 0, 0], sizes = [1, 16, 16], strides = [1, 1, 1]} : vector<4x16x16xf32> to vector<1x16x16xf32>
    %403 = vector.shape_cast %402 : vector<1x16x16xf32> to vector<16x16xf32>
    %404 = vector.broadcast %401 : f32 to vector<16x16xf32>
    %405 = arith.mulf %404, %403 : vector<16x16xf32>
    %406 = arith.addf %400, %405 : vector<16x16xf32>
    %407 = vector.shape_cast %406 : vector<16x16xf32> to vector<1x16x16xf32>
    %c3_113 = arith.constant 3 : index
    %c0_114 = arith.constant 0 : index
    %408 = memref.load %arg10[%c3_113, %c0_114] : memref<4x4xf32, #tpu.memory_space<smem>>
    %409 = vector.extract_strided_slice %335 {offsets = [0, 0, 0], sizes = [1, 16, 16], strides = [1, 1, 1]} : vector<4x16x16xf32> to vector<1x16x16xf32>
    %410 = vector.shape_cast %409 : vector<1x16x16xf32> to vector<16x16xf32>
    %411 = vector.broadcast %408 : f32 to vector<16x16xf32>
    %412 = arith.mulf %411, %410 : vector<16x16xf32>
    %c3_115 = arith.constant 3 : index
    %c1_116 = arith.constant 1 : index
    %413 = memref.load %arg10[%c3_115, %c1_116] : memref<4x4xf32, #tpu.memory_space<smem>>
    %414 = vector.extract_strided_slice %335 {offsets = [1, 0, 0], sizes = [1, 16, 16], strides = [1, 1, 1]} : vector<4x16x16xf32> to vector<1x16x16xf32>
    %415 = vector.shape_cast %414 : vector<1x16x16xf32> to vector<16x16xf32>
    %416 = vector.broadcast %413 : f32 to vector<16x16xf32>
    %417 = arith.mulf %416, %415 : vector<16x16xf32>
    %418 = arith.addf %412, %417 : vector<16x16xf32>
    %c3_117 = arith.constant 3 : index
    %c2_118 = arith.constant 2 : index
    %419 = memref.load %arg10[%c3_117, %c2_118] : memref<4x4xf32, #tpu.memory_space<smem>>
    %420 = vector.extract_strided_slice %335 {offsets = [2, 0, 0], sizes = [1, 16, 16], strides = [1, 1, 1]} : vector<4x16x16xf32> to vector<1x16x16xf32>
    %421 = vector.shape_cast %420 : vector<1x16x16xf32> to vector<16x16xf32>
    %422 = vector.broadcast %419 : f32 to vector<16x16xf32>
    %423 = arith.mulf %422, %421 : vector<16x16xf32>
    %424 = arith.addf %418, %423 : vector<16x16xf32>
    %c3_119 = arith.constant 3 : index
    %c3_120 = arith.constant 3 : index
    %425 = memref.load %arg10[%c3_119, %c3_120] : memref<4x4xf32, #tpu.memory_space<smem>>
    %426 = vector.extract_strided_slice %335 {offsets = [3, 0, 0], sizes = [1, 16, 16], strides = [1, 1, 1]} : vector<4x16x16xf32> to vector<1x16x16xf32>
    %427 = vector.shape_cast %426 : vector<1x16x16xf32> to vector<16x16xf32>
    %428 = vector.broadcast %425 : f32 to vector<16x16xf32>
    %429 = arith.mulf %428, %427 : vector<16x16xf32>
    %430 = arith.addf %424, %429 : vector<16x16xf32>
    %431 = vector.shape_cast %430 : vector<16x16xf32> to vector<1x16x16xf32>
    %432 = tpu.concatenate %359, %383, %407, %431 in 0 : vector<1x16x16xf32>, vector<1x16x16xf32>, vector<1x16x16xf32>, vector<1x16x16xf32> -> vector<4x16x16xf32>
    %433 = vector.broadcast %333 : i32 to vector<16x16xi32>
    %434 = arith.cmpi slt, %94, %433 : vector<16x16xi32>
    %435 = vector.shape_cast %434 : vector<16x16xi1> to vector<1x16x16xi1>
    %436 = vector.shape_cast %435 : vector<1x16x16xi1> to vector<1x16x16xi1>
    %437 = vector.broadcast %436 : vector<1x16x16xi1> to vector<4x16x16xi1>
    %cst_121 = arith.constant -1.000000e+04 : f32
    %438 = vector.broadcast %cst_121 : f32 to vector<4x16x16xf32>
    %439 = arith.select %437, %432, %438 : vector<4x16x16xi1>, vector<4x16x16xf32>
    %cst_122 = arith.constant dense<0xFF800000> : vector<4x16xf32>
    %440 = vector.multi_reduction <maximumf>, %439, %cst_122 [2] : vector<4x16x16xf32> to vector<4x16xf32>
    %441 = vector.shape_cast %440 : vector<4x16xf32> to vector<4x16x1xf32>
    %442 = vector.broadcast %441 : vector<4x16x1xf32> to vector<4x16x16xf32>
    %443 = arith.subf %439, %442 : vector<4x16x16xf32>
    %444 = math.exp %443 : vector<4x16x16xf32>
    %cst_123 = arith.constant dense<0.000000e+00> : vector<4x16xf32>
    %445 = vector.multi_reduction <add>, %444, %cst_123 [2] : vector<4x16x16xf32> to vector<4x16xf32>
    %446 = vector.shape_cast %445 : vector<4x16xf32> to vector<4x16x1xf32>
    %447 = tpu.reciprocal %446 {approx = true} : vector<4x16x1xf32> -> vector<4x16x1xf32>
    %448 = vector.broadcast %447 : vector<4x16x1xf32> to vector<4x16x16xf32>
    %449 = arith.mulf %444, %448 : vector<4x16x16xf32>
    %c0_124 = arith.constant 0 : index
    %c0_125 = arith.constant 0 : index
    %450 = memref.load %arg11[%c0_124, %c0_125] : memref<4x4xf32, #tpu.memory_space<smem>>
    %451 = vector.extract_strided_slice %449 {offsets = [0, 0, 0], sizes = [1, 16, 16], strides = [1, 1, 1]} : vector<4x16x16xf32> to vector<1x16x16xf32>
    %452 = vector.shape_cast %451 : vector<1x16x16xf32> to vector<16x16xf32>
    %453 = vector.broadcast %450 : f32 to vector<16x16xf32>
    %454 = arith.mulf %453, %452 : vector<16x16xf32>
    %c0_126 = arith.constant 0 : index
    %c1_127 = arith.constant 1 : index
    %455 = memref.load %arg11[%c0_126, %c1_127] : memref<4x4xf32, #tpu.memory_space<smem>>
    %456 = vector.extract_strided_slice %449 {offsets = [1, 0, 0], sizes = [1, 16, 16], strides = [1, 1, 1]} : vector<4x16x16xf32> to vector<1x16x16xf32>
    %457 = vector.shape_cast %456 : vector<1x16x16xf32> to vector<16x16xf32>
    %458 = vector.broadcast %455 : f32 to vector<16x16xf32>
    %459 = arith.mulf %458, %457 : vector<16x16xf32>
    %460 = arith.addf %454, %459 : vector<16x16xf32>
    %c0_128 = arith.constant 0 : index
    %c2_129 = arith.constant 2 : index
    %461 = memref.load %arg11[%c0_128, %c2_129] : memref<4x4xf32, #tpu.memory_space<smem>>
    %462 = vector.extract_strided_slice %449 {offsets = [2, 0, 0], sizes = [1, 16, 16], strides = [1, 1, 1]} : vector<4x16x16xf32> to vector<1x16x16xf32>
    %463 = vector.shape_cast %462 : vector<1x16x16xf32> to vector<16x16xf32>
    %464 = vector.broadcast %461 : f32 to vector<16x16xf32>
    %465 = arith.mulf %464, %463 : vector<16x16xf32>
    %466 = arith.addf %460, %465 : vector<16x16xf32>
    %c0_130 = arith.constant 0 : index
    %c3_131 = arith.constant 3 : index
    %467 = memref.load %arg11[%c0_130, %c3_131] : memref<4x4xf32, #tpu.memory_space<smem>>
    %468 = vector.extract_strided_slice %449 {offsets = [3, 0, 0], sizes = [1, 16, 16], strides = [1, 1, 1]} : vector<4x16x16xf32> to vector<1x16x16xf32>
    %469 = vector.shape_cast %468 : vector<1x16x16xf32> to vector<16x16xf32>
    %470 = vector.broadcast %467 : f32 to vector<16x16xf32>
    %471 = arith.mulf %470, %469 : vector<16x16xf32>
    %472 = arith.addf %466, %471 : vector<16x16xf32>
    %473 = vector.shape_cast %472 : vector<16x16xf32> to vector<1x16x16xf32>
    %c1_132 = arith.constant 1 : index
    %c0_133 = arith.constant 0 : index
    %474 = memref.load %arg11[%c1_132, %c0_133] : memref<4x4xf32, #tpu.memory_space<smem>>
    %475 = vector.extract_strided_slice %449 {offsets = [0, 0, 0], sizes = [1, 16, 16], strides = [1, 1, 1]} : vector<4x16x16xf32> to vector<1x16x16xf32>
    %476 = vector.shape_cast %475 : vector<1x16x16xf32> to vector<16x16xf32>
    %477 = vector.broadcast %474 : f32 to vector<16x16xf32>
    %478 = arith.mulf %477, %476 : vector<16x16xf32>
    %c1_134 = arith.constant 1 : index
    %c1_135 = arith.constant 1 : index
    %479 = memref.load %arg11[%c1_134, %c1_135] : memref<4x4xf32, #tpu.memory_space<smem>>
    %480 = vector.extract_strided_slice %449 {offsets = [1, 0, 0], sizes = [1, 16, 16], strides = [1, 1, 1]} : vector<4x16x16xf32> to vector<1x16x16xf32>
    %481 = vector.shape_cast %480 : vector<1x16x16xf32> to vector<16x16xf32>
    %482 = vector.broadcast %479 : f32 to vector<16x16xf32>
    %483 = arith.mulf %482, %481 : vector<16x16xf32>
    %484 = arith.addf %478, %483 : vector<16x16xf32>
    %c1_136 = arith.constant 1 : index
    %c2_137 = arith.constant 2 : index
    %485 = memref.load %arg11[%c1_136, %c2_137] : memref<4x4xf32, #tpu.memory_space<smem>>
    %486 = vector.extract_strided_slice %449 {offsets = [2, 0, 0], sizes = [1, 16, 16], strides = [1, 1, 1]} : vector<4x16x16xf32> to vector<1x16x16xf32>
    %487 = vector.shape_cast %486 : vector<1x16x16xf32> to vector<16x16xf32>
    %488 = vector.broadcast %485 : f32 to vector<16x16xf32>
    %489 = arith.mulf %488, %487 : vector<16x16xf32>
    %490 = arith.addf %484, %489 : vector<16x16xf32>
    %c1_138 = arith.constant 1 : index
    %c3_139 = arith.constant 3 : index
    %491 = memref.load %arg11[%c1_138, %c3_139] : memref<4x4xf32, #tpu.memory_space<smem>>
    %492 = vector.extract_strided_slice %449 {offsets = [3, 0, 0], sizes = [1, 16, 16], strides = [1, 1, 1]} : vector<4x16x16xf32> to vector<1x16x16xf32>
    %493 = vector.shape_cast %492 : vector<1x16x16xf32> to vector<16x16xf32>
    %494 = vector.broadcast %491 : f32 to vector<16x16xf32>
    %495 = arith.mulf %494, %493 : vector<16x16xf32>
    %496 = arith.addf %490, %495 : vector<16x16xf32>
    %497 = vector.shape_cast %496 : vector<16x16xf32> to vector<1x16x16xf32>
    %c2_140 = arith.constant 2 : index
    %c0_141 = arith.constant 0 : index
    %498 = memref.load %arg11[%c2_140, %c0_141] : memref<4x4xf32, #tpu.memory_space<smem>>
    %499 = vector.extract_strided_slice %449 {offsets = [0, 0, 0], sizes = [1, 16, 16], strides = [1, 1, 1]} : vector<4x16x16xf32> to vector<1x16x16xf32>
    %500 = vector.shape_cast %499 : vector<1x16x16xf32> to vector<16x16xf32>
    %501 = vector.broadcast %498 : f32 to vector<16x16xf32>
    %502 = arith.mulf %501, %500 : vector<16x16xf32>
    %c2_142 = arith.constant 2 : index
    %c1_143 = arith.constant 1 : index
    %503 = memref.load %arg11[%c2_142, %c1_143] : memref<4x4xf32, #tpu.memory_space<smem>>
    %504 = vector.extract_strided_slice %449 {offsets = [1, 0, 0], sizes = [1, 16, 16], strides = [1, 1, 1]} : vector<4x16x16xf32> to vector<1x16x16xf32>
    %505 = vector.shape_cast %504 : vector<1x16x16xf32> to vector<16x16xf32>
    %506 = vector.broadcast %503 : f32 to vector<16x16xf32>
    %507 = arith.mulf %506, %505 : vector<16x16xf32>
    %508 = arith.addf %502, %507 : vector<16x16xf32>
    %c2_144 = arith.constant 2 : index
    %c2_145 = arith.constant 2 : index
    %509 = memref.load %arg11[%c2_144, %c2_145] : memref<4x4xf32, #tpu.memory_space<smem>>
    %510 = vector.extract_strided_slice %449 {offsets = [2, 0, 0], sizes = [1, 16, 16], strides = [1, 1, 1]} : vector<4x16x16xf32> to vector<1x16x16xf32>
    %511 = vector.shape_cast %510 : vector<1x16x16xf32> to vector<16x16xf32>
    %512 = vector.broadcast %509 : f32 to vector<16x16xf32>
    %513 = arith.mulf %512, %511 : vector<16x16xf32>
    %514 = arith.addf %508, %513 : vector<16x16xf32>
    %c2_146 = arith.constant 2 : index
    %c3_147 = arith.constant 3 : index
    %515 = memref.load %arg11[%c2_146, %c3_147] : memref<4x4xf32, #tpu.memory_space<smem>>
    %516 = vector.extract_strided_slice %449 {offsets = [3, 0, 0], sizes = [1, 16, 16], strides = [1, 1, 1]} : vector<4x16x16xf32> to vector<1x16x16xf32>
    %517 = vector.shape_cast %516 : vector<1x16x16xf32> to vector<16x16xf32>
    %518 = vector.broadcast %515 : f32 to vector<16x16xf32>
    %519 = arith.mulf %518, %517 : vector<16x16xf32>
    %520 = arith.addf %514, %519 : vector<16x16xf32>
    %521 = vector.shape_cast %520 : vector<16x16xf32> to vector<1x16x16xf32>
    %c3_148 = arith.constant 3 : index
    %c0_149 = arith.constant 0 : index
    %522 = memref.load %arg11[%c3_148, %c0_149] : memref<4x4xf32, #tpu.memory_space<smem>>
    %523 = vector.extract_strided_slice %449 {offsets = [0, 0, 0], sizes = [1, 16, 16], strides = [1, 1, 1]} : vector<4x16x16xf32> to vector<1x16x16xf32>
    %524 = vector.shape_cast %523 : vector<1x16x16xf32> to vector<16x16xf32>
    %525 = vector.broadcast %522 : f32 to vector<16x16xf32>
    %526 = arith.mulf %525, %524 : vector<16x16xf32>
    %c3_150 = arith.constant 3 : index
    %c1_151 = arith.constant 1 : index
    %527 = memref.load %arg11[%c3_150, %c1_151] : memref<4x4xf32, #tpu.memory_space<smem>>
    %528 = vector.extract_strided_slice %449 {offsets = [1, 0, 0], sizes = [1, 16, 16], strides = [1, 1, 1]} : vector<4x16x16xf32> to vector<1x16x16xf32>
    %529 = vector.shape_cast %528 : vector<1x16x16xf32> to vector<16x16xf32>
    %530 = vector.broadcast %527 : f32 to vector<16x16xf32>
    %531 = arith.mulf %530, %529 : vector<16x16xf32>
    %532 = arith.addf %526, %531 : vector<16x16xf32>
    %c3_152 = arith.constant 3 : index
    %c2_153 = arith.constant 2 : index
    %533 = memref.load %arg11[%c3_152, %c2_153] : memref<4x4xf32, #tpu.memory_space<smem>>
    %534 = vector.extract_strided_slice %449 {offsets = [2, 0, 0], sizes = [1, 16, 16], strides = [1, 1, 1]} : vector<4x16x16xf32> to vector<1x16x16xf32>
    %535 = vector.shape_cast %534 : vector<1x16x16xf32> to vector<16x16xf32>
    %536 = vector.broadcast %533 : f32 to vector<16x16xf32>
    %537 = arith.mulf %536, %535 : vector<16x16xf32>
    %538 = arith.addf %532, %537 : vector<16x16xf32>
    %c3_154 = arith.constant 3 : index
    %c3_155 = arith.constant 3 : index
    %539 = memref.load %arg11[%c3_154, %c3_155] : memref<4x4xf32, #tpu.memory_space<smem>>
    %540 = vector.extract_strided_slice %449 {offsets = [3, 0, 0], sizes = [1, 16, 16], strides = [1, 1, 1]} : vector<4x16x16xf32> to vector<1x16x16xf32>
    %541 = vector.shape_cast %540 : vector<1x16x16xf32> to vector<16x16xf32>
    %542 = vector.broadcast %539 : f32 to vector<16x16xf32>
    %543 = arith.mulf %542, %541 : vector<16x16xf32>
    %544 = arith.addf %538, %543 : vector<16x16xf32>
    %545 = vector.shape_cast %544 : vector<16x16xf32> to vector<1x16x16xf32>
    %546 = tpu.concatenate %473, %497, %521, %545 in 0 : vector<1x16x16xf32>, vector<1x16x16xf32>, vector<1x16x16xf32>, vector<1x16x16xf32> -> vector<4x16x16xf32>
    %547 = tpu.concatenate %329, %546 in 0 : vector<4x16x16xf32>, vector<4x16x16xf32> -> vector<8x16x16xf32>
    %548 = arith.truncf %547 : vector<8x16x16xf32> to vector<8x16x16xbf16>
    "tpu.trace_start"() <{level = 10 : i32, message = "bts,bsd->btd"}> : () -> ()
    %cst_156 = arith.constant dense<0.000000e+00> : vector<8x16x8xf32>
    %549 = tpu.matmul %548, %91, %cst_156 {dimension_numbers = #tpu.dot_dimension_numbers<[2], [1], [1], [2], [0, 0, 0, 1, 1, 2], [0], [0]>} : vector<8x16x16xbf16>, vector<8x16x8xbf16>, vector<8x16x8xf32> -> vector<8x16x8xf32>
    "tpu.trace_stop"() : () -> ()
    %550 = vector.extract_strided_slice %549 {offsets = [0, 0, 0], sizes = [1, 16, 8], strides = [1, 1, 1]} : vector<8x16x8xf32> to vector<1x16x8xf32>
    %551 = vector.shape_cast %550 : vector<1x16x8xf32> to vector<16x8xf32>
    %552 = vector.extract_strided_slice %549 {offsets = [1, 0, 0], sizes = [1, 16, 8], strides = [1, 1, 1]} : vector<8x16x8xf32> to vector<1x16x8xf32>
    %553 = vector.shape_cast %552 : vector<1x16x8xf32> to vector<16x8xf32>
    %554 = vector.extract_strided_slice %549 {offsets = [2, 0, 0], sizes = [1, 16, 8], strides = [1, 1, 1]} : vector<8x16x8xf32> to vector<1x16x8xf32>
    %555 = vector.shape_cast %554 : vector<1x16x8xf32> to vector<16x8xf32>
    %556 = vector.extract_strided_slice %549 {offsets = [3, 0, 0], sizes = [1, 16, 8], strides = [1, 1, 1]} : vector<8x16x8xf32> to vector<1x16x8xf32>
    %557 = vector.shape_cast %556 : vector<1x16x8xf32> to vector<16x8xf32>
    %558 = tpu.concatenate %551, %553, %555, %557 in 1 : vector<16x8xf32>, vector<16x8xf32>, vector<16x8xf32>, vector<16x8xf32> -> vector<16x32xf32>
    %559 = vector.extract_strided_slice %549 {offsets = [4, 0, 0], sizes = [1, 16, 8], strides = [1, 1, 1]} : vector<8x16x8xf32> to vector<1x16x8xf32>
    %560 = vector.shape_cast %559 : vector<1x16x8xf32> to vector<16x8xf32>
    %561 = vector.extract_strided_slice %549 {offsets = [5, 0, 0], sizes = [1, 16, 8], strides = [1, 1, 1]} : vector<8x16x8xf32> to vector<1x16x8xf32>
    %562 = vector.shape_cast %561 : vector<1x16x8xf32> to vector<16x8xf32>
    %563 = vector.extract_strided_slice %549 {offsets = [6, 0, 0], sizes = [1, 16, 8], strides = [1, 1, 1]} : vector<8x16x8xf32> to vector<1x16x8xf32>
    %564 = vector.shape_cast %563 : vector<1x16x8xf32> to vector<16x8xf32>
    %565 = vector.extract_strided_slice %549 {offsets = [7, 0, 0], sizes = [1, 16, 8], strides = [1, 1, 1]} : vector<8x16x8xf32> to vector<1x16x8xf32>
    %566 = vector.shape_cast %565 : vector<1x16x8xf32> to vector<16x8xf32>
    %567 = tpu.concatenate %560, %562, %564, %566 in 1 : vector<16x8xf32>, vector<16x8xf32>, vector<16x8xf32>, vector<16x8xf32> -> vector<16x32xf32>
    %568 = tpu.concatenate %558, %567 in 0 : vector<16x32xf32>, vector<16x32xf32> -> vector<32x32xf32>
    %569 = arith.truncf %568 : vector<32x32xf32> to vector<32x32xbf16>
    %c0_157 = arith.constant 0 : index
    %c0_158 = arith.constant 0 : index
    %570 = vector.load %arg12[%c0_157, %c0_158] : memref<32x32xbf16, #tpu.memory_space<vmem>>, vector<32x32xbf16>
    %cst_159 = arith.constant dense<0.000000e+00> : vector<32x32xf32>
    %571 = tpu.matmul %569, %570, %cst_159 {dimension_numbers = #tpu.dot_dimension_numbers<[1], [0], [0], [1], [0, 0, 1, 1], [], []>} : vector<32x32xbf16>, vector<32x32xbf16>, vector<32x32xf32> -> vector<32x32xf32>
    %c0_160 = arith.constant 0 : index
    %c0_161 = arith.constant 0 : index
    %572 = vector.load %arg13[%c0_160, %c0_161] : memref<1x32xf32, #tpu.memory_space<vmem>>, vector<1x32xf32>
    %573 = vector.broadcast %572 : vector<1x32xf32> to vector<32x32xf32>
    %574 = arith.addf %571, %573 : vector<32x32xf32>
    %575 = arith.addf %0, %574 : vector<32x32xf32>
    %cst_162 = arith.constant dense<0.000000e+00> : vector<32xf32>
    %576 = vector.multi_reduction <add>, %575, %cst_162 [1] : vector<32x32xf32> to vector<32xf32>
    %577 = vector.shape_cast %576 : vector<32xf32> to vector<32x1xf32>
    %cst_163 = arith.constant 3.200000e+01 : f32
    %578 = vector.broadcast %cst_163 : f32 to vector<32x1xf32>
    %579 = arith.divf %577, %578 : vector<32x1xf32>
    %580 = vector.broadcast %579 : vector<32x1xf32> to vector<32x32xf32>
    %581 = arith.subf %575, %580 : vector<32x32xf32>
    %582 = arith.mulf %581, %581 : vector<32x32xf32>
    %cst_164 = arith.constant dense<0.000000e+00> : vector<32xf32>
    %583 = vector.multi_reduction <add>, %582, %cst_164 [1] : vector<32x32xf32> to vector<32xf32>
    %584 = vector.shape_cast %583 : vector<32xf32> to vector<32x1xf32>
    %cst_165 = arith.constant 3.200000e+01 : f32
    %585 = vector.broadcast %cst_165 : f32 to vector<32x1xf32>
    %586 = arith.divf %584, %585 : vector<32x1xf32>
    %587 = vector.broadcast %579 : vector<32x1xf32> to vector<32x32xf32>
    %588 = arith.subf %575, %587 : vector<32x32xf32>
    %cst_166 = arith.constant 9.99999974E-6 : f32
    %589 = vector.broadcast %cst_166 : f32 to vector<32x1xf32>
    %590 = arith.addf %586, %589 : vector<32x1xf32>
    %591 = math.rsqrt %590 : vector<32x1xf32>
    %592 = vector.broadcast %591 : vector<32x1xf32> to vector<32x32xf32>
    %593 = arith.mulf %588, %592 : vector<32x32xf32>
    %c0_167 = arith.constant 0 : index
    %c0_168 = arith.constant 0 : index
    %594 = vector.load %arg5[%c0_167, %c0_168] : memref<1x32xf32, #tpu.memory_space<vmem>>, vector<1x32xf32>
    %595 = vector.broadcast %594 : vector<1x32xf32> to vector<32x32xf32>
    %596 = arith.mulf %593, %595 : vector<32x32xf32>
    %c0_169 = arith.constant 0 : index
    %c0_170 = arith.constant 0 : index
    %597 = vector.load %arg6[%c0_169, %c0_170] : memref<1x32xf32, #tpu.memory_space<vmem>>, vector<1x32xf32>
    %598 = vector.broadcast %597 : vector<1x32xf32> to vector<32x32xf32>
    %599 = arith.addf %596, %598 : vector<32x32xf32>
    %600 = tpu.iota {dimensions = array<i32: 0>} : vector<16x1xi32>
    %c2_i32_171 = arith.constant 2 : i32
    %601 = arith.muli %arg0, %c2_i32_171 : i32
    %c0_i32_172 = arith.constant 0 : i32
    %602 = arith.addi %601, %c0_i32_172 : i32
    %603 = arith.index_cast %602 : i32 to index
    %604 = memref.load %arg1[%603] : memref<2xi32, #tpu.memory_space<smem>>
    %605 = vector.broadcast %604 : i32 to vector<16x1xi32>
    %606 = arith.cmpi slt, %600, %605 : vector<16x1xi32>
    %607 = arith.extui %606 : vector<16x1xi1> to vector<16x1xi32>
    %608 = arith.sitofp %607 : vector<16x1xi32> to vector<16x1xf32>
    %c2_i32_173 = arith.constant 2 : i32
    %609 = arith.muli %arg0, %c2_i32_173 : i32
    %c1_i32_174 = arith.constant 1 : i32
    %610 = arith.addi %609, %c1_i32_174 : i32
    %611 = arith.index_cast %610 : i32 to index
    %612 = memref.load %arg1[%611] : memref<2xi32, #tpu.memory_space<smem>>
    %613 = vector.broadcast %612 : i32 to vector<16x1xi32>
    %614 = arith.cmpi slt, %600, %613 : vector<16x1xi32>
    %615 = arith.extui %614 : vector<16x1xi1> to vector<16x1xi32>
    %616 = arith.sitofp %615 : vector<16x1xi32> to vector<16x1xf32>
    %617 = tpu.concatenate %608, %616 in 0 : vector<16x1xf32>, vector<16x1xf32> -> vector<32x1xf32>
    %618 = vector.broadcast %617 : vector<32x1xf32> to vector<32x32xf32>
    %619 = arith.mulf %599, %618 : vector<32x32xf32>
    %620 = vector.extract_strided_slice %619 {offsets = [31, 0], sizes = [1, 32], strides = [1, 1]} : vector<32x32xf32> to vector<1x32xf32>
    %621 = vector.extract_strided_slice %619 {offsets = [0, 0], sizes = [31, 32], strides = [1, 1]} : vector<32x32xf32> to vector<31x32xf32>
    %622 = tpu.concatenate %620, %621 in 0 : vector<1x32xf32>, vector<31x32xf32> -> vector<32x32xf32>
    %c1_i32_175 = arith.constant 1 : i32
    %623 = vector.broadcast %c1_i32_175 : i32 to vector<16x1xi32>
    %624 = arith.cmpi sge, %600, %623 : vector<16x1xi32>
    %c16_i32 = arith.constant 16 : i32
    %625 = vector.broadcast %c16_i32 : i32 to vector<16x1xi32>
    %626 = arith.cmpi slt, %600, %625 : vector<16x1xi32>
    %627 = arith.andi %624, %626 : vector<16x1xi1>
    %628 = arith.extui %627 : vector<16x1xi1> to vector<16x1xi32>
    %629 = arith.sitofp %628 : vector<16x1xi32> to vector<16x1xf32>
    %630 = tpu.concatenate %629, %629 in 0 : vector<16x1xf32>, vector<16x1xf32> -> vector<32x1xf32>
    %631 = vector.broadcast %630 : vector<32x1xf32> to vector<32x32xf32>
    %632 = arith.mulf %622, %631 : vector<32x32xf32>
    %633 = vector.extract_strided_slice %619 {offsets = [1, 0], sizes = [31, 32], strides = [1, 1]} : vector<32x32xf32> to vector<31x32xf32>
    %634 = vector.extract_strided_slice %619 {offsets = [0, 0], sizes = [1, 32], strides = [1, 1]} : vector<32x32xf32> to vector<1x32xf32>
    %635 = tpu.concatenate %633, %634 in 0 : vector<31x32xf32>, vector<1x32xf32> -> vector<32x32xf32>
    %c0_i32_176 = arith.constant 0 : i32
    %636 = vector.broadcast %c0_i32_176 : i32 to vector<16x1xi32>
    %637 = arith.cmpi sge, %600, %636 : vector<16x1xi32>
    %c15_i32 = arith.constant 15 : i32
    %638 = vector.broadcast %c15_i32 : i32 to vector<16x1xi32>
    %639 = arith.cmpi slt, %600, %638 : vector<16x1xi32>
    %640 = arith.andi %637, %639 : vector<16x1xi1>
    %641 = arith.extui %640 : vector<16x1xi1> to vector<16x1xi32>
    %642 = arith.sitofp %641 : vector<16x1xi32> to vector<16x1xf32>
    %643 = tpu.concatenate %642, %642 in 0 : vector<16x1xf32>, vector<16x1xf32> -> vector<32x1xf32>
    %644 = vector.broadcast %643 : vector<32x1xf32> to vector<32x32xf32>
    %645 = arith.mulf %635, %644 : vector<32x32xf32>
    %646 = tpu.concatenate %632, %619, %645 in 1 : vector<32x32xf32>, vector<32x32xf32>, vector<32x32xf32> -> vector<32x96xf32>
    %647 = arith.truncf %646 : vector<32x96xf32> to vector<32x96xbf16>
    %c0_177 = arith.constant 0 : index
    %c0_178 = arith.constant 0 : index
    %648 = vector.load %arg14[%c0_177, %c0_178] : memref<96x128xbf16, #tpu.memory_space<vmem>>, vector<96x128xbf16>
    %cst_179 = arith.constant dense<0.000000e+00> : vector<32x128xf32>
    %649 = tpu.matmul %647, %648, %cst_179 {dimension_numbers = #tpu.dot_dimension_numbers<[1], [0], [0], [1], [0, 0, 1, 1], [], []>} : vector<32x96xbf16>, vector<96x128xbf16>, vector<32x128xf32> -> vector<32x128xf32>
    %c0_180 = arith.constant 0 : index
    %c0_181 = arith.constant 0 : index
    %650 = vector.load %arg15[%c0_180, %c0_181] : memref<1x128xf32, #tpu.memory_space<vmem>>, vector<1x128xf32>
    %651 = vector.broadcast %650 : vector<1x128xf32> to vector<32x128xf32>
    %652 = arith.addf %649, %651 : vector<32x128xf32>
    %653 = vector.extract_strided_slice %652 {offsets = [0, 0], sizes = [32, 64], strides = [1, 1]} : vector<32x128xf32> to vector<32x64xf32>
    %654 = vector.extract_strided_slice %652 {offsets = [0, 64], sizes = [32, 64], strides = [1, 1]} : vector<32x128xf32> to vector<32x64xf32>
    %cst_182 = arith.constant 0.000000e+00 : f32
    %655 = vector.broadcast %cst_182 : f32 to vector<32x64xf32>
    %656 = arith.subf %655, %653 : vector<32x64xf32>
    %657 = math.exp %656 : vector<32x64xf32>
    %cst_183 = arith.constant 1.000000e+00 : f32
    %658 = vector.broadcast %cst_183 : f32 to vector<32x64xf32>
    %659 = arith.addf %658, %657 : vector<32x64xf32>
    %cst_184 = arith.constant 1.000000e+00 : f32
    %660 = vector.broadcast %cst_184 : f32 to vector<32x64xf32>
    %661 = arith.divf %660, %659 : vector<32x64xf32>
    %662 = arith.mulf %653, %661 : vector<32x64xf32>
    %663 = arith.mulf %662, %654 : vector<32x64xf32>
    %664 = vector.broadcast %617 : vector<32x1xf32> to vector<32x64xf32>
    %665 = arith.mulf %663, %664 : vector<32x64xf32>
    %666 = vector.extract_strided_slice %665 {offsets = [31, 0], sizes = [1, 64], strides = [1, 1]} : vector<32x64xf32> to vector<1x64xf32>
    %667 = vector.extract_strided_slice %665 {offsets = [0, 0], sizes = [31, 64], strides = [1, 1]} : vector<32x64xf32> to vector<31x64xf32>
    %668 = tpu.concatenate %666, %667 in 0 : vector<1x64xf32>, vector<31x64xf32> -> vector<32x64xf32>
    %c1_i32_185 = arith.constant 1 : i32
    %669 = vector.broadcast %c1_i32_185 : i32 to vector<16x1xi32>
    %670 = arith.cmpi sge, %600, %669 : vector<16x1xi32>
    %c16_i32_186 = arith.constant 16 : i32
    %671 = vector.broadcast %c16_i32_186 : i32 to vector<16x1xi32>
    %672 = arith.cmpi slt, %600, %671 : vector<16x1xi32>
    %673 = arith.andi %670, %672 : vector<16x1xi1>
    %674 = arith.extui %673 : vector<16x1xi1> to vector<16x1xi32>
    %675 = arith.sitofp %674 : vector<16x1xi32> to vector<16x1xf32>
    %676 = tpu.concatenate %675, %675 in 0 : vector<16x1xf32>, vector<16x1xf32> -> vector<32x1xf32>
    %677 = vector.broadcast %676 : vector<32x1xf32> to vector<32x64xf32>
    %678 = arith.mulf %668, %677 : vector<32x64xf32>
    %679 = vector.extract_strided_slice %665 {offsets = [1, 0], sizes = [31, 64], strides = [1, 1]} : vector<32x64xf32> to vector<31x64xf32>
    %680 = vector.extract_strided_slice %665 {offsets = [0, 0], sizes = [1, 64], strides = [1, 1]} : vector<32x64xf32> to vector<1x64xf32>
    %681 = tpu.concatenate %679, %680 in 0 : vector<31x64xf32>, vector<1x64xf32> -> vector<32x64xf32>
    %c0_i32_187 = arith.constant 0 : i32
    %682 = vector.broadcast %c0_i32_187 : i32 to vector<16x1xi32>
    %683 = arith.cmpi sge, %600, %682 : vector<16x1xi32>
    %c15_i32_188 = arith.constant 15 : i32
    %684 = vector.broadcast %c15_i32_188 : i32 to vector<16x1xi32>
    %685 = arith.cmpi slt, %600, %684 : vector<16x1xi32>
    %686 = arith.andi %683, %685 : vector<16x1xi1>
    %687 = arith.extui %686 : vector<16x1xi1> to vector<16x1xi32>
    %688 = arith.sitofp %687 : vector<16x1xi32> to vector<16x1xf32>
    %689 = tpu.concatenate %688, %688 in 0 : vector<16x1xf32>, vector<16x1xf32> -> vector<32x1xf32>
    %690 = vector.broadcast %689 : vector<32x1xf32> to vector<32x64xf32>
    %691 = arith.mulf %681, %690 : vector<32x64xf32>
    %692 = tpu.concatenate %678, %665, %691 in 1 : vector<32x64xf32>, vector<32x64xf32>, vector<32x64xf32> -> vector<32x192xf32>
    %693 = arith.truncf %692 : vector<32x192xf32> to vector<32x192xbf16>
    %c0_189 = arith.constant 0 : index
    %c0_190 = arith.constant 0 : index
    %694 = vector.load %arg16[%c0_189, %c0_190] : memref<192x32xbf16, #tpu.memory_space<vmem>>, vector<192x32xbf16>
    %cst_191 = arith.constant dense<0.000000e+00> : vector<32x32xf32>
    %695 = tpu.matmul %693, %694, %cst_191 {dimension_numbers = #tpu.dot_dimension_numbers<[1], [0], [0], [1], [0, 0, 1, 1], [], []>} : vector<32x192xbf16>, vector<192x32xbf16>, vector<32x32xf32> -> vector<32x32xf32>
    %c0_192 = arith.constant 0 : index
    %c0_193 = arith.constant 0 : index
    %696 = vector.load %arg17[%c0_192, %c0_193] : memref<1x32xf32, #tpu.memory_space<vmem>>, vector<1x32xf32>
    %697 = vector.broadcast %696 : vector<1x32xf32> to vector<32x32xf32>
    %698 = arith.addf %695, %697 : vector<32x32xf32>
    %699 = arith.addf %575, %698 : vector<32x32xf32>
    %c0_194 = arith.constant 0 : index
    %c0_195 = arith.constant 0 : index
    %700 = vector.load %arg18[%c0_194, %c0_195] : memref<32x32xf32, #tpu.memory_space<vmem>>, vector<32x32xf32>
    tpu.vector_store %arg18[%c0_194, %c0_195], %699 {strides = array<i32>} : memref<32x32xf32, #tpu.memory_space<vmem>>, vector<32x32xf32>,
    return
  }
  func.func @transform_0(%arg0: i32, %arg1: memref<2xi32, #tpu.memory_space<smem>>) -> (i32, i32) {
    %c0_i32 = arith.constant 0 : i32
    %c0_i32_0 = arith.constant 0 : i32
    return %arg0, %c0_i32 : i32, i32
  }
  func.func @transform_1(%arg0: i32, %arg1: memref<2xi32, #tpu.memory_space<smem>>) -> (i32, i32) {
    %c0_i32 = arith.constant 0 : i32
    %c0_i32_0 = arith.constant 0 : i32
    %c0_i32_1 = arith.constant 0 : i32
    return %c0_i32, %c0_i32_0 : i32, i32
  }
  func.func @transform_2(%arg0: i32, %arg1: memref<2xi32, #tpu.memory_space<smem>>) -> (i32, i32) {
    %c0_i32 = arith.constant 0 : i32
    %c0_i32_0 = arith.constant 0 : i32
    %c0_i32_1 = arith.constant 0 : i32
    return %c0_i32, %c0_i32_0 : i32, i32
  }
  func.func @transform_3(%arg0: i32, %arg1: memref<2xi32, #tpu.memory_space<smem>>) -> (i32, i32) {
    %c0_i32 = arith.constant 0 : i32
    %c0_i32_0 = arith.constant 0 : i32
    %c0_i32_1 = arith.constant 0 : i32
    return %c0_i32, %c0_i32_0 : i32, i32
  }
  func.func @transform_4(%arg0: i32, %arg1: memref<2xi32, #tpu.memory_space<smem>>) -> (i32, i32) {
    %c0_i32 = arith.constant 0 : i32
    %c0_i32_0 = arith.constant 0 : i32
    %c0_i32_1 = arith.constant 0 : i32
    return %c0_i32, %c0_i32_0 : i32, i32
  }
  func.func @transform_5(%arg0: i32, %arg1: memref<2xi32, #tpu.memory_space<smem>>) -> (i32, i32) {
    %c0_i32 = arith.constant 0 : i32
    %c0_i32_0 = arith.constant 0 : i32
    %c0_i32_1 = arith.constant 0 : i32
    return %c0_i32, %c0_i32_0 : i32, i32
  }
  func.func @transform_6(%arg0: i32, %arg1: memref<2xi32, #tpu.memory_space<smem>>) -> (i32, i32) {
    %c0_i32 = arith.constant 0 : i32
    %c0_i32_0 = arith.constant 0 : i32
    %c0_i32_1 = arith.constant 0 : i32
    return %c0_i32, %c0_i32_0 : i32, i32
  }
  func.func @transform_7(%arg0: i32, %arg1: memref<2xi32, #tpu.memory_space<smem>>) -> (i32, i32) {
    %c0_i32 = arith.constant 0 : i32
    %c0_i32_0 = arith.constant 0 : i32
    %c0_i32_1 = arith.constant 0 : i32
    return %c0_i32, %c0_i32_0 : i32, i32
  }
  func.func @transform_8(%arg0: i32, %arg1: memref<2xi32, #tpu.memory_space<smem>>) -> (i32, i32) {
    %c0_i32 = arith.constant 0 : i32
    %c0_i32_0 = arith.constant 0 : i32
    %c0_i32_1 = arith.constant 0 : i32
    return %c0_i32, %c0_i32_0 : i32, i32
  }
  func.func @transform_9(%arg0: i32, %arg1: memref<2xi32, #tpu.memory_space<smem>>) -> (i32, i32) {
    %c0_i32 = arith.constant 0 : i32
    %c0_i32_0 = arith.constant 0 : i32
    %c0_i32_1 = arith.constant 0 : i32
    return %c0_i32, %c0_i32_0 : i32, i32
  }
  func.func @transform_10(%arg0: i32, %arg1: memref<2xi32, #tpu.memory_space<smem>>) -> (i32, i32) {
    %c0_i32 = arith.constant 0 : i32
    %c0_i32_0 = arith.constant 0 : i32
    %c0_i32_1 = arith.constant 0 : i32
    return %c0_i32, %c0_i32_0 : i32, i32
  }
  func.func @transform_11(%arg0: i32, %arg1: memref<2xi32, #tpu.memory_space<smem>>) -> (i32, i32) {
    %c0_i32 = arith.constant 0 : i32
    %c0_i32_0 = arith.constant 0 : i32
    %c0_i32_1 = arith.constant 0 : i32
    return %c0_i32, %c0_i32_0 : i32, i32
  }
  func.func @transform_12(%arg0: i32, %arg1: memref<2xi32, #tpu.memory_space<smem>>) -> (i32, i32) {
    %c0_i32 = arith.constant 0 : i32
    %c0_i32_0 = arith.constant 0 : i32
    %c0_i32_1 = arith.constant 0 : i32
    return %c0_i32, %c0_i32_0 : i32, i32
  }
  func.func @transform_13(%arg0: i32, %arg1: memref<2xi32, #tpu.memory_space<smem>>) -> (i32, i32) {
    %c0_i32 = arith.constant 0 : i32
    %c0_i32_0 = arith.constant 0 : i32
    %c0_i32_1 = arith.constant 0 : i32
    return %c0_i32, %c0_i32_0 : i32, i32
  }
  func.func @transform_14(%arg0: i32, %arg1: memref<2xi32, #tpu.memory_space<smem>>) -> (i32, i32) {
    %c0_i32 = arith.constant 0 : i32
    %c0_i32_0 = arith.constant 0 : i32
    %c0_i32_1 = arith.constant 0 : i32
    return %c0_i32, %c0_i32_0 : i32, i32
  }
  func.func @transform_15(%arg0: i32, %arg1: memref<2xi32, #tpu.memory_space<smem>>) -> (i32, i32) {
    %c0_i32 = arith.constant 0 : i32
    %c0_i32_0 = arith.constant 0 : i32
    %c0_i32_1 = arith.constant 0 : i32
    return %c0_i32, %c0_i32_0 : i32, i32
  }
  func.func @transform_16(%arg0: i32, %arg1: memref<2xi32, #tpu.memory_space<smem>>) -> (i32, i32) {
    %c0_i32 = arith.constant 0 : i32
    %c0_i32_0 = arith.constant 0 : i32
    return %arg0, %c0_i32 : i32, i32
  }
}

module attributes {stable_mosaic.version = 11 : i64} {
  func.func @_layer_kernel(%arg0: i32, %arg1: memref<2xi32, #tpu.memory_space<smem>>, %arg2: memref<32x32xf32, #tpu.memory_space<vmem>>, %arg3: memref<1x32xf32, #tpu.memory_space<vmem>>, %arg4: memref<1x32xf32, #tpu.memory_space<vmem>>, %arg5: memref<1x32xf32, #tpu.memory_space<vmem>>, %arg6: memref<1x32xf32, #tpu.memory_space<vmem>>, %arg7: memref<32x32xbf16, #tpu.memory_space<vmem>>, %arg8: memref<32x32xbf16, #tpu.memory_space<vmem>>, %arg9: memref<32x32xbf16, #tpu.memory_space<vmem>>, %arg10: memref<4x4xf32, #tpu.memory_space<smem>>, %arg11: memref<4x4xf32, #tpu.memory_space<smem>>, %arg12: memref<32x32xbf16, #tpu.memory_space<vmem>>, %arg13: memref<1x32xf32, #tpu.memory_space<vmem>>, %arg14: memref<96x128xbf16, #tpu.memory_space<vmem>>, %arg15: memref<1x128xf32, #tpu.memory_space<vmem>>, %arg16: memref<192x32xbf16, #tpu.memory_space<vmem>>, %arg17: memref<1x32xf32, #tpu.memory_space<vmem>>, %arg18: memref<32x32xf32, #tpu.memory_space<vmem>>) attributes {dimension_semantics = [#tpu.dimension_semantics<parallel>], iteration_bounds = array<i64: 1>, scalar_prefetch = 1 : i64, scratch_operands = 0 : i64, tpu.core_type = #tpu.core_type<tc>, window_params = [{transform_indices = @transform_0, window_bounds = array<i64: 32, 32>}, {pipeline_mode = #tpu.pipeline_mode<synchronous>, transform_indices = @transform_1, window_bounds = array<i64: 1, 32>}, {pipeline_mode = #tpu.pipeline_mode<synchronous>, transform_indices = @transform_2, window_bounds = array<i64: 1, 32>}, {pipeline_mode = #tpu.pipeline_mode<synchronous>, transform_indices = @transform_3, window_bounds = array<i64: 1, 32>}, {pipeline_mode = #tpu.pipeline_mode<synchronous>, transform_indices = @transform_4, window_bounds = array<i64: 1, 32>}, {pipeline_mode = #tpu.pipeline_mode<synchronous>, transform_indices = @transform_5, window_bounds = array<i64: 32, 32>}, {pipeline_mode = #tpu.pipeline_mode<synchronous>, transform_indices = @transform_6, window_bounds = array<i64: 32, 32>}, {pipeline_mode = #tpu.pipeline_mode<synchronous>, transform_indices = @transform_7, window_bounds = array<i64: 32, 32>}, {transform_indices = @transform_8, window_bounds = array<i64: 4, 4>}, {transform_indices = @transform_9, window_bounds = array<i64: 4, 4>}, {pipeline_mode = #tpu.pipeline_mode<synchronous>, transform_indices = @transform_10, window_bounds = array<i64: 32, 32>}, {pipeline_mode = #tpu.pipeline_mode<synchronous>, transform_indices = @transform_11, window_bounds = array<i64: 1, 32>}, {pipeline_mode = #tpu.pipeline_mode<synchronous>, transform_indices = @transform_12, window_bounds = array<i64: 96, 128>}, {pipeline_mode = #tpu.pipeline_mode<synchronous>, transform_indices = @transform_13, window_bounds = array<i64: 1, 128>}, {pipeline_mode = #tpu.pipeline_mode<synchronous>, transform_indices = @transform_14, window_bounds = array<i64: 192, 32>}, {pipeline_mode = #tpu.pipeline_mode<synchronous>, transform_indices = @transform_15, window_bounds = array<i64: 1, 32>}, {transform_indices = @transform_16, window_bounds = array<i64: 32, 32>}]} {
    %c0 = arith.constant 0 : index
    %c0_0 = arith.constant 0 : index
    %0 = vector.load %arg2[%c0, %c0_0] : memref<32x32xf32, #tpu.memory_space<vmem>>, vector<32x32xf32>
    %cst = arith.constant dense<0.000000e+00> : vector<32xf32>
    %1 = vector.multi_reduction <add>, %0, %cst [1] : vector<32x32xf32> to vector<32xf32>
    %2 = vector.shape_cast %1 : vector<32xf32> to vector<32x1xf32>
    %cst_1 = arith.constant 3.200000e+01 : f32
    %3 = vector.broadcast %cst_1 : f32 to vector<32x1xf32>
    %4 = arith.divf %2, %3 : vector<32x1xf32>
    %5 = vector.broadcast %4 : vector<32x1xf32> to vector<32x32xf32>
    %6 = arith.subf %0, %5 : vector<32x32xf32>
    %7 = arith.mulf %6, %6 : vector<32x32xf32>
    %cst_2 = arith.constant dense<0.000000e+00> : vector<32xf32>
    %8 = vector.multi_reduction <add>, %7, %cst_2 [1] : vector<32x32xf32> to vector<32xf32>
    %9 = vector.shape_cast %8 : vector<32xf32> to vector<32x1xf32>
    %cst_3 = arith.constant 3.200000e+01 : f32
    %10 = vector.broadcast %cst_3 : f32 to vector<32x1xf32>
    %11 = arith.divf %9, %10 : vector<32x1xf32>
    %12 = vector.broadcast %4 : vector<32x1xf32> to vector<32x32xf32>
    %13 = arith.subf %0, %12 : vector<32x32xf32>
    %cst_4 = arith.constant 9.99999974E-6 : f32
    %14 = vector.broadcast %cst_4 : f32 to vector<32x1xf32>
    %15 = arith.addf %11, %14 : vector<32x1xf32>
    %16 = math.rsqrt %15 : vector<32x1xf32>
    %17 = vector.broadcast %16 : vector<32x1xf32> to vector<32x32xf32>
    %18 = arith.mulf %13, %17 : vector<32x32xf32>
    %c0_5 = arith.constant 0 : index
    %c0_6 = arith.constant 0 : index
    %19 = vector.load %arg3[%c0_5, %c0_6] : memref<1x32xf32, #tpu.memory_space<vmem>>, vector<1x32xf32>
    %20 = vector.broadcast %19 : vector<1x32xf32> to vector<32x32xf32>
    %21 = arith.mulf %18, %20 : vector<32x32xf32>
    %c0_7 = arith.constant 0 : index
    %c0_8 = arith.constant 0 : index
    %22 = vector.load %arg4[%c0_7, %c0_8] : memref<1x32xf32, #tpu.memory_space<vmem>>, vector<1x32xf32>
    %23 = vector.broadcast %22 : vector<1x32xf32> to vector<32x32xf32>
    %24 = arith.addf %21, %23 : vector<32x32xf32>
    %25 = arith.truncf %24 : vector<32x32xf32> to vector<32x32xbf16>
    %c0_9 = arith.constant 0 : index
    %c0_10 = arith.constant 0 : index
    %26 = vector.load %arg7[%c0_9, %c0_10] : memref<32x32xbf16, #tpu.memory_space<vmem>>, vector<32x32xbf16>
    %cst_11 = arith.constant dense<0.000000e+00> : vector<32x32xf32>
    %27 = tpu.matmul %25, %26, %cst_11 {dimension_numbers = #tpu.dot_dimension_numbers<[1], [0], [0], [1], [0, 0, 1, 1], [], []>} : vector<32x32xbf16>, vector<32x32xbf16>, vector<32x32xf32> -> vector<32x32xf32>
    %c0_12 = arith.constant 0 : index
    %c0_13 = arith.constant 0 : index
    %28 = vector.load %arg8[%c0_12, %c0_13] : memref<32x32xbf16, #tpu.memory_space<vmem>>, vector<32x32xbf16>
    %cst_14 = arith.constant dense<0.000000e+00> : vector<32x32xf32>
    %29 = tpu.matmul %25, %28, %cst_14 {dimension_numbers = #tpu.dot_dimension_numbers<[1], [0], [0], [1], [0, 0, 1, 1], [], []>} : vector<32x32xbf16>, vector<32x32xbf16>, vector<32x32xf32> -> vector<32x32xf32>
    %c0_15 = arith.constant 0 : index
    %c0_16 = arith.constant 0 : index
    %30 = vector.load %arg9[%c0_15, %c0_16] : memref<32x32xbf16, #tpu.memory_space<vmem>>, vector<32x32xbf16>
    %cst_17 = arith.constant dense<0.000000e+00> : vector<32x32xf32>
    %31 = tpu.matmul %25, %30, %cst_17 {dimension_numbers = #tpu.dot_dimension_numbers<[1], [0], [0], [1], [0, 0, 1, 1], [], []>} : vector<32x32xbf16>, vector<32x32xbf16>, vector<32x32xf32> -> vector<32x32xf32>
    %32 = vector.extract_strided_slice %27 {offsets = [0, 0], sizes = [16, 32], strides = [1, 1]} : vector<32x32xf32> to vector<16x32xf32>
    %33 = vector.extract_strided_slice %32 {offsets = [0, 0], sizes = [16, 8], strides = [1, 1]} : vector<16x32xf32> to vector<16x8xf32>
    %34 = vector.shape_cast %33 : vector<16x8xf32> to vector<1x16x8xf32>
    %35 = vector.extract_strided_slice %32 {offsets = [0, 8], sizes = [16, 8], strides = [1, 1]} : vector<16x32xf32> to vector<16x8xf32>
    %36 = vector.shape_cast %35 : vector<16x8xf32> to vector<1x16x8xf32>
    %37 = vector.extract_strided_slice %32 {offsets = [0, 16], sizes = [16, 8], strides = [1, 1]} : vector<16x32xf32> to vector<16x8xf32>
    %38 = vector.shape_cast %37 : vector<16x8xf32> to vector<1x16x8xf32>
    %39 = vector.extract_strided_slice %32 {offsets = [0, 24], sizes = [16, 8], strides = [1, 1]} : vector<16x32xf32> to vector<16x8xf32>
    %40 = vector.shape_cast %39 : vector<16x8xf32> to vector<1x16x8xf32>
    %41 = vector.extract_strided_slice %27 {offsets = [16, 0], sizes = [16, 32], strides = [1, 1]} : vector<32x32xf32> to vector<16x32xf32>
    %42 = vector.extract_strided_slice %41 {offsets = [0, 0], sizes = [16, 8], strides = [1, 1]} : vector<16x32xf32> to vector<16x8xf32>
    %43 = vector.shape_cast %42 : vector<16x8xf32> to vector<1x16x8xf32>
    %44 = vector.extract_strided_slice %41 {offsets = [0, 8], sizes = [16, 8], strides = [1, 1]} : vector<16x32xf32> to vector<16x8xf32>
    %45 = vector.shape_cast %44 : vector<16x8xf32> to vector<1x16x8xf32>
    %46 = vector.extract_strided_slice %41 {offsets = [0, 16], sizes = [16, 8], strides = [1, 1]} : vector<16x32xf32> to vector<16x8xf32>
    %47 = vector.shape_cast %46 : vector<16x8xf32> to vector<1x16x8xf32>
    %48 = vector.extract_strided_slice %41 {offsets = [0, 24], sizes = [16, 8], strides = [1, 1]} : vector<16x32xf32> to vector<16x8xf32>
    %49 = vector.shape_cast %48 : vector<16x8xf32> to vector<1x16x8xf32>
    %50 = tpu.concatenate %34, %36, %38, %40, %43, %45, %47, %49 in 0 : vector<1x16x8xf32>, vector<1x16x8xf32>, vector<1x16x8xf32>, vector<1x16x8xf32>, vector<1x16x8xf32>, vector<1x16x8xf32>, vector<1x16x8xf32>, vector<1x16x8xf32> -> vector<8x16x8xf32>
    %51 = arith.truncf %50 : vector<8x16x8xf32> to vector<8x16x8xbf16>
    %52 = vector.extract_strided_slice %29 {offsets = [0, 0], sizes = [16, 32], strides = [1, 1]} : vector<32x32xf32> to vector<16x32xf32>
    %53 = vector.extract_strided_slice %52 {offsets = [0, 0], sizes = [16, 8], strides = [1, 1]} : vector<16x32xf32> to vector<16x8xf32>
    %54 = vector.shape_cast %53 : vector<16x8xf32> to vector<1x16x8xf32>
    %55 = vector.extract_strided_slice %52 {offsets = [0, 8], sizes = [16, 8], strides = [1, 1]} : vector<16x32xf32> to vector<16x8xf32>
    %56 = vector.shape_cast %55 : vector<16x8xf32> to vector<1x16x8xf32>
    %57 = vector.extract_strided_slice %52 {offsets = [0, 16], sizes = [16, 8], strides = [1, 1]} : vector<16x32xf32> to vector<16x8xf32>
    %58 = vector.shape_cast %57 : vector<16x8xf32> to vector<1x16x8xf32>
    %59 = vector.extract_strided_slice %52 {offsets = [0, 24], sizes = [16, 8], strides = [1, 1]} : vector<16x32xf32> to vector<16x8xf32>
    %60 = vector.shape_cast %59 : vector<16x8xf32> to vector<1x16x8xf32>
    %61 = vector.extract_strided_slice %29 {offsets = [16, 0], sizes = [16, 32], strides = [1, 1]} : vector<32x32xf32> to vector<16x32xf32>
    %62 = vector.extract_strided_slice %61 {offsets = [0, 0], sizes = [16, 8], strides = [1, 1]} : vector<16x32xf32> to vector<16x8xf32>
    %63 = vector.shape_cast %62 : vector<16x8xf32> to vector<1x16x8xf32>
    %64 = vector.extract_strided_slice %61 {offsets = [0, 8], sizes = [16, 8], strides = [1, 1]} : vector<16x32xf32> to vector<16x8xf32>
    %65 = vector.shape_cast %64 : vector<16x8xf32> to vector<1x16x8xf32>
    %66 = vector.extract_strided_slice %61 {offsets = [0, 16], sizes = [16, 8], strides = [1, 1]} : vector<16x32xf32> to vector<16x8xf32>
    %67 = vector.shape_cast %66 : vector<16x8xf32> to vector<1x16x8xf32>
    %68 = vector.extract_strided_slice %61 {offsets = [0, 24], sizes = [16, 8], strides = [1, 1]} : vector<16x32xf32> to vector<16x8xf32>
    %69 = vector.shape_cast %68 : vector<16x8xf32> to vector<1x16x8xf32>
    %70 = tpu.concatenate %54, %56, %58, %60, %63, %65, %67, %69 in 0 : vector<1x16x8xf32>, vector<1x16x8xf32>, vector<1x16x8xf32>, vector<1x16x8xf32>, vector<1x16x8xf32>, vector<1x16x8xf32>, vector<1x16x8xf32>, vector<1x16x8xf32> -> vector<8x16x8xf32>
    %71 = arith.truncf %70 : vector<8x16x8xf32> to vector<8x16x8xbf16>
    %72 = vector.extract_strided_slice %31 {offsets = [0, 0], sizes = [16, 32], strides = [1, 1]} : vector<32x32xf32> to vector<16x32xf32>
    %73 = vector.extract_strided_slice %72 {offsets = [0, 0], sizes = [16, 8], strides = [1, 1]} : vector<16x32xf32> to vector<16x8xf32>
    %74 = vector.shape_cast %73 : vector<16x8xf32> to vector<1x16x8xf32>
    %75 = vector.extract_strided_slice %72 {offsets = [0, 8], sizes = [16, 8], strides = [1, 1]} : vector<16x32xf32> to vector<16x8xf32>
    %76 = vector.shape_cast %75 : vector<16x8xf32> to vector<1x16x8xf32>
    %77 = vector.extract_strided_slice %72 {offsets = [0, 16], sizes = [16, 8], strides = [1, 1]} : vector<16x32xf32> to vector<16x8xf32>
    %78 = vector.shape_cast %77 : vector<16x8xf32> to vector<1x16x8xf32>
    %79 = vector.extract_strided_slice %72 {offsets = [0, 24], sizes = [16, 8], strides = [1, 1]} : vector<16x32xf32> to vector<16x8xf32>
    %80 = vector.shape_cast %79 : vector<16x8xf32> to vector<1x16x8xf32>
    %81 = vector.extract_strided_slice %31 {offsets = [16, 0], sizes = [16, 32], strides = [1, 1]} : vector<32x32xf32> to vector<16x32xf32>
    %82 = vector.extract_strided_slice %81 {offsets = [0, 0], sizes = [16, 8], strides = [1, 1]} : vector<16x32xf32> to vector<16x8xf32>
    %83 = vector.shape_cast %82 : vector<16x8xf32> to vector<1x16x8xf32>
    %84 = vector.extract_strided_slice %81 {offsets = [0, 8], sizes = [16, 8], strides = [1, 1]} : vector<16x32xf32> to vector<16x8xf32>
    %85 = vector.shape_cast %84 : vector<16x8xf32> to vector<1x16x8xf32>
    %86 = vector.extract_strided_slice %81 {offsets = [0, 16], sizes = [16, 8], strides = [1, 1]} : vector<16x32xf32> to vector<16x8xf32>
    %87 = vector.shape_cast %86 : vector<16x8xf32> to vector<1x16x8xf32>
    %88 = vector.extract_strided_slice %81 {offsets = [0, 24], sizes = [16, 8], strides = [1, 1]} : vector<16x32xf32> to vector<16x8xf32>
    %89 = vector.shape_cast %88 : vector<16x8xf32> to vector<1x16x8xf32>
    %90 = tpu.concatenate %74, %76, %78, %80, %83, %85, %87, %89 in 0 : vector<1x16x8xf32>, vector<1x16x8xf32>, vector<1x16x8xf32>, vector<1x16x8xf32>, vector<1x16x8xf32>, vector<1x16x8xf32>, vector<1x16x8xf32>, vector<1x16x8xf32> -> vector<8x16x8xf32>
    %91 = arith.truncf %90 : vector<8x16x8xf32> to vector<8x16x8xbf16>
    "tpu.trace_start"() <{level = 10 : i32, message = "btd,bsd->bts"}> : () -> ()
    %cst_18 = arith.constant dense<0.000000e+00> : vector<8x16x16xf32>
    %92 = tpu.matmul %51, %71, %cst_18 {dimension_numbers = #tpu.dot_dimension_numbers<[2], [2], [1], [1], [0, 0, 0, 1, 1, 1], [0], [0]>} : vector<8x16x8xbf16>, vector<8x16x8xbf16>, vector<8x16x16xf32> -> vector<8x16x16xf32>
    "tpu.trace_stop"() : () -> ()
    %93 = tpu.iota {dimensions = array<i32: 0>} : vector<16x16xi32>
    %94 = tpu.iota {dimensions = array<i32: 1>} : vector<16x16xi32>
    %95 = arith.subi %93, %94 : vector<16x16xi32>
    %96 = math.absi %95 : vector<16x16xi32>
    %97 = arith.sitofp %96 : vector<16x16xi32> to vector<16x16xf32>
    %cst_19 = arith.constant 0.000000e+00 : f32
    %98 = vector.broadcast %cst_19 : f32 to vector<16x16xf32>
    %99 = arith.subf %98, %97 : vector<16x16xf32>
    %cst_20 = arith.constant 0.0883883461 : f32
    %100 = vector.broadcast %cst_20 : f32 to vector<16x16xf32>
    %101 = arith.mulf %99, %100 : vector<16x16xf32>
    %102 = vector.shape_cast %101 : vector<16x16xf32> to vector<1x16x16xf32>
    %cst_21 = arith.constant 0.0441941731 : f32
    %103 = vector.broadcast %cst_21 : f32 to vector<16x16xf32>
    %104 = arith.mulf %99, %103 : vector<16x16xf32>
    %105 = vector.shape_cast %104 : vector<16x16xf32> to vector<1x16x16xf32>
    %cst_22 = arith.constant 0.0220970865 : f32
    %106 = vector.broadcast %cst_22 : f32 to vector<16x16xf32>
    %107 = arith.mulf %99, %106 : vector<16x16xf32>
    %108 = vector.shape_cast %107 : vector<16x16xf32> to vector<1x16x16xf32>
    %cst_23 = arith.constant 0.0110485433 : f32
    %109 = vector.broadcast %cst_23 : f32 to vector<16x16xf32>
    %110 = arith.mulf %99, %109 : vector<16x16xf32>
    %111 = vector.shape_cast %110 : vector<16x16xf32> to vector<1x16x16xf32>
    %112 = tpu.concatenate %102, %105, %108, %111 in 0 : vector<1x16x16xf32>, vector<1x16x16xf32>, vector<1x16x16xf32>, vector<1x16x16xf32> -> vector<4x16x16xf32>
    %c2_i32 = arith.constant 2 : i32
    %113 = arith.muli %arg0, %c2_i32 : i32
    %c0_i32 = arith.constant 0 : i32
    %114 = arith.addi %113, %c0_i32 : i32
    %115 = arith.index_cast %114 : i32 to index
    %116 = memref.load %arg1[%115] : memref<2xi32, #tpu.memory_space<smem>>
    %117 = vector.extract_strided_slice %92 {offsets = [0, 0, 0], sizes = [4, 16, 16], strides = [1, 1, 1]} : vector<8x16x16xf32> to vector<4x16x16xf32>
    %118 = arith.addf %117, %112 : vector<4x16x16xf32>
    %c0_24 = arith.constant 0 : index
    %c0_25 = arith.constant 0 : index
    %119 = memref.load %arg10[%c0_24, %c0_25] : memref<4x4xf32, #tpu.memory_space<smem>>
    %120 = vector.extract_strided_slice %118 {offsets = [0, 0, 0], sizes = [1, 16, 16], strides = [1, 1, 1]} : vector<4x16x16xf32> to vector<1x16x16xf32>
    %121 = vector.shape_cast %120 : vector<1x16x16xf32> to vector<16x16xf32>
    %122 = vector.broadcast %119 : f32 to vector<16x16xf32>
    %123 = arith.mulf %122, %121 : vector<16x16xf32>
    %c0_26 = arith.constant 0 : index
    %c1 = arith.constant 1 : index
    %124 = memref.load %arg10[%c0_26, %c1] : memref<4x4xf32, #tpu.memory_space<smem>>
    %125 = vector.extract_strided_slice %118 {offsets = [1, 0, 0], sizes = [1, 16, 16], strides = [1, 1, 1]} : vector<4x16x16xf32> to vector<1x16x16xf32>
    %126 = vector.shape_cast %125 : vector<1x16x16xf32> to vector<16x16xf32>
    %127 = vector.broadcast %124 : f32 to vector<16x16xf32>
    %128 = arith.mulf %127, %126 : vector<16x16xf32>
    %129 = arith.addf %123, %128 : vector<16x16xf32>
    %c0_27 = arith.constant 0 : index
    %c2 = arith.constant 2 : index
    %130 = memref.load %arg10[%c0_27, %c2] : memref<4x4xf32, #tpu.memory_space<smem>>
    %131 = vector.extract_strided_slice %118 {offsets = [2, 0, 0], sizes = [1, 16, 16], strides = [1, 1, 1]} : vector<4x16x16xf32> to vector<1x16x16xf32>
    %132 = vector.shape_cast %131 : vector<1x16x16xf32> to vector<16x16xf32>
    %133 = vector.broadcast %130 : f32 to vector<16x16xf32>
    %134 = arith.mulf %133, %132 : vector<16x16xf32>
    %135 = arith.addf %129, %134 : vector<16x16xf32>
    %c0_28 = arith.constant 0 : index
    %c3 = arith.constant 3 : index
    %136 = memref.load %arg10[%c0_28, %c3] : memref<4x4xf32, #tpu.memory_space<smem>>
    %137 = vector.extract_strided_slice %118 {offsets = [3, 0, 0], sizes = [1, 16, 16], strides = [1, 1, 1]} : vector<4x16x16xf32> to vector<1x16x16xf32>
    %138 = vector.shape_cast %137 : vector<1x16x16xf32> to vector<16x16xf32>
    %139 = vector.broadcast %136 : f32 to vector<16x16xf32>
    %140 = arith.mulf %139, %138 : vector<16x16xf32>
    %141 = arith.addf %135, %140 : vector<16x16xf32>
    %142 = vector.shape_cast %141 : vector<16x16xf32> to vector<1x16x16xf32>
    %c1_29 = arith.constant 1 : index
    %c0_30 = arith.constant 0 : index
    %143 = memref.load %arg10[%c1_29, %c0_30] : memref<4x4xf32, #tpu.memory_space<smem>>
    %144 = vector.extract_strided_slice %118 {offsets = [0, 0, 0], sizes = [1, 16, 16], strides = [1, 1, 1]} : vector<4x16x16xf32> to vector<1x16x16xf32>
    %145 = vector.shape_cast %144 : vector<1x16x16xf32> to vector<16x16xf32>
    %146 = vector.broadcast %143 : f32 to vector<16x16xf32>
    %147 = arith.mulf %146, %145 : vector<16x16xf32>
    %c1_31 = arith.constant 1 : index
    %c1_32 = arith.constant 1 : index
    %148 = memref.load %arg10[%c1_31, %c1_32] : memref<4x4xf32, #tpu.memory_space<smem>>
    %149 = vector.extract_strided_slice %118 {offsets = [1, 0, 0], sizes = [1, 16, 16], strides = [1, 1, 1]} : vector<4x16x16xf32> to vector<1x16x16xf32>
    %150 = vector.shape_cast %149 : vector<1x16x16xf32> to vector<16x16xf32>
    %151 = vector.broadcast %148 : f32 to vector<16x16xf32>
    %152 = arith.mulf %151, %150 : vector<16x16xf32>
    %153 = arith.addf %147, %152 : vector<16x16xf32>
    %c1_33 = arith.constant 1 : index
    %c2_34 = arith.constant 2 : index
    %154 = memref.load %arg10[%c1_33, %c2_34] : memref<4x4xf32, #tpu.memory_space<smem>>
    %155 = vector.extract_strided_slice %118 {offsets = [2, 0, 0], sizes = [1, 16, 16], strides = [1, 1, 1]} : vector<4x16x16xf32> to vector<1x16x16xf32>
    %156 = vector.shape_cast %155 : vector<1x16x16xf32> to vector<16x16xf32>
    %157 = vector.broadcast %154 : f32 to vector<16x16xf32>
    %158 = arith.mulf %157, %156 : vector<16x16xf32>
    %159 = arith.addf %153, %158 : vector<16x16xf32>
    %c1_35 = arith.constant 1 : index
    %c3_36 = arith.constant 3 : index
    %160 = memref.load %arg10[%c1_35, %c3_36] : memref<4x4xf32, #tpu.memory_space<smem>>
    %161 = vector.extract_strided_slice %118 {offsets = [3, 0, 0], sizes = [1, 16, 16], strides = [1, 1, 1]} : vector<4x16x16xf32> to vector<1x16x16xf32>
    %162 = vector.shape_cast %161 : vector<1x16x16xf32> to vector<16x16xf32>
    %163 = vector.broadcast %160 : f32 to vector<16x16xf32>
    %164 = arith.mulf %163, %162 : vector<16x16xf32>
    %165 = arith.addf %159, %164 : vector<16x16xf32>
    %166 = vector.shape_cast %165 : vector<16x16xf32> to vector<1x16x16xf32>
    %c2_37 = arith.constant 2 : index
    %c0_38 = arith.constant 0 : index
    %167 = memref.load %arg10[%c2_37, %c0_38] : memref<4x4xf32, #tpu.memory_space<smem>>
    %168 = vector.extract_strided_slice %118 {offsets = [0, 0, 0], sizes = [1, 16, 16], strides = [1, 1, 1]} : vector<4x16x16xf32> to vector<1x16x16xf32>
    %169 = vector.shape_cast %168 : vector<1x16x16xf32> to vector<16x16xf32>
    %170 = vector.broadcast %167 : f32 to vector<16x16xf32>
    %171 = arith.mulf %170, %169 : vector<16x16xf32>
    %c2_39 = arith.constant 2 : index
    %c1_40 = arith.constant 1 : index
    %172 = memref.load %arg10[%c2_39, %c1_40] : memref<4x4xf32, #tpu.memory_space<smem>>
    %173 = vector.extract_strided_slice %118 {offsets = [1, 0, 0], sizes = [1, 16, 16], strides = [1, 1, 1]} : vector<4x16x16xf32> to vector<1x16x16xf32>
    %174 = vector.shape_cast %173 : vector<1x16x16xf32> to vector<16x16xf32>
    %175 = vector.broadcast %172 : f32 to vector<16x16xf32>
    %176 = arith.mulf %175, %174 : vector<16x16xf32>
    %177 = arith.addf %171, %176 : vector<16x16xf32>
    %c2_41 = arith.constant 2 : index
    %c2_42 = arith.constant 2 : index
    %178 = memref.load %arg10[%c2_41, %c2_42] : memref<4x4xf32, #tpu.memory_space<smem>>
    %179 = vector.extract_strided_slice %118 {offsets = [2, 0, 0], sizes = [1, 16, 16], strides = [1, 1, 1]} : vector<4x16x16xf32> to vector<1x16x16xf32>
    %180 = vector.shape_cast %179 : vector<1x16x16xf32> to vector<16x16xf32>
    %181 = vector.broadcast %178 : f32 to vector<16x16xf32>
    %182 = arith.mulf %181, %180 : vector<16x16xf32>
    %183 = arith.addf %177, %182 : vector<16x16xf32>
    %c2_43 = arith.constant 2 : index
    %c3_44 = arith.constant 3 : index
    %184 = memref.load %arg10[%c2_43, %c3_44] : memref<4x4xf32, #tpu.memory_space<smem>>
    %185 = vector.extract_strided_slice %118 {offsets = [3, 0, 0], sizes = [1, 16, 16], strides = [1, 1, 1]} : vector<4x16x16xf32> to vector<1x16x16xf32>
    %186 = vector.shape_cast %185 : vector<1x16x16xf32> to vector<16x16xf32>
    %187 = vector.broadcast %184 : f32 to vector<16x16xf32>
    %188 = arith.mulf %187, %186 : vector<16x16xf32>
    %189 = arith.addf %183, %188 : vector<16x16xf32>
    %190 = vector.shape_cast %189 : vector<16x16xf32> to vector<1x16x16xf32>
    %c3_45 = arith.constant 3 : index
    %c0_46 = arith.constant 0 : index
    %191 = memref.load %arg10[%c3_45, %c0_46] : memref<4x4xf32, #tpu.memory_space<smem>>
    %192 = vector.extract_strided_slice %118 {offsets = [0, 0, 0], sizes = [1, 16, 16], strides = [1, 1, 1]} : vector<4x16x16xf32> to vector<1x16x16xf32>
    %193 = vector.shape_cast %192 : vector<1x16x16xf32> to vector<16x16xf32>
    %194 = vector.broadcast %191 : f32 to vector<16x16xf32>
    %195 = arith.mulf %194, %193 : vector<16x16xf32>
    %c3_47 = arith.constant 3 : index
    %c1_48 = arith.constant 1 : index
    %196 = memref.load %arg10[%c3_47, %c1_48] : memref<4x4xf32, #tpu.memory_space<smem>>
    %197 = vector.extract_strided_slice %118 {offsets = [1, 0, 0], sizes = [1, 16, 16], strides = [1, 1, 1]} : vector<4x16x16xf32> to vector<1x16x16xf32>
    %198 = vector.shape_cast %197 : vector<1x16x16xf32> to vector<16x16xf32>
    %199 = vector.broadcast %196 : f32 to vector<16x16xf32>
    %200 = arith.mulf %199, %198 : vector<16x16xf32>
    %201 = arith.addf %195, %200 : vector<16x16xf32>
    %c3_49 = arith.constant 3 : index
    %c2_50 = arith.constant 2 : index
    %202 = memref.load %arg10[%c3_49, %c2_50] : memref<4x4xf32, #tpu.memory_space<smem>>
    %203 = vector.extract_strided_slice %118 {offsets = [2, 0, 0], sizes = [1, 16, 16], strides = [1, 1, 1]} : vector<4x16x16xf32> to vector<1x16x16xf32>
    %204 = vector.shape_cast %203 : vector<1x16x16xf32> to vector<16x16xf32>
    %205 = vector.broadcast %202 : f32 to vector<16x16xf32>
    %206 = arith.mulf %205, %204 : vector<16x16xf32>
    %207 = arith.addf %201, %206 : vector<16x16xf32>
    %c3_51 = arith.constant 3 : index
    %c3_52 = arith.constant 3 : index
    %208 = memref.load %arg10[%c3_51, %c3_52] : memref<4x4xf32, #tpu.memory_space<smem>>
    %209 = vector.extract_strided_slice %118 {offsets = [3, 0, 0], sizes = [1, 16, 16], strides = [1, 1, 1]} : vector<4x16x16xf32> to vector<1x16x16xf32>
    %210 = vector.shape_cast %209 : vector<1x16x16xf32> to vector<16x16xf32>
    %211 = vector.broadcast %208 : f32 to vector<16x16xf32>
    %212 = arith.mulf %211, %210 : vector<16x16xf32>
    %213 = arith.addf %207, %212 : vector<16x16xf32>
    %214 = vector.shape_cast %213 : vector<16x16xf32> to vector<1x16x16xf32>
    %215 = tpu.concatenate %142, %166, %190, %214 in 0 : vector<1x16x16xf32>, vector<1x16x16xf32>, vector<1x16x16xf32>, vector<1x16x16xf32> -> vector<4x16x16xf32>
    %216 = vector.broadcast %116 : i32 to vector<16x16xi32>
    %217 = arith.cmpi slt, %94, %216 : vector<16x16xi32>
    %218 = vector.shape_cast %217 : vector<16x16xi1> to vector<1x16x16xi1>
    %219 = vector.shape_cast %218 : vector<1x16x16xi1> to vector<1x16x16xi1>
    %220 = vector.broadcast %219 : vector<1x16x16xi1> to vector<4x16x16xi1>
    %cst_53 = arith.constant -1.000000e+04 : f32
    %221 = vector.broadcast %cst_53 : f32 to vector<4x16x16xf32>
    %222 = arith.select %220, %215, %221 : vector<4x16x16xi1>, vector<4x16x16xf32>
    %cst_54 = arith.constant dense<0xFF800000> : vector<4x16xf32>
    %223 = vector.multi_reduction <maximumf>, %222, %cst_54 [2] : vector<4x16x16xf32> to vector<4x16xf32>
    %224 = vector.shape_cast %223 : vector<4x16xf32> to vector<4x16x1xf32>
    %225 = vector.broadcast %224 : vector<4x16x1xf32> to vector<4x16x16xf32>
    %226 = arith.subf %222, %225 : vector<4x16x16xf32>
    %227 = math.exp %226 : vector<4x16x16xf32>
    %cst_55 = arith.constant dense<0.000000e+00> : vector<4x16xf32>
    %228 = vector.multi_reduction <add>, %227, %cst_55 [2] : vector<4x16x16xf32> to vector<4x16xf32>
    %229 = vector.shape_cast %228 : vector<4x16xf32> to vector<4x16x1xf32>
    %230 = tpu.reciprocal %229 {approx = true} : vector<4x16x1xf32> -> vector<4x16x1xf32>
    %231 = vector.broadcast %230 : vector<4x16x1xf32> to vector<4x16x16xf32>
    %232 = arith.mulf %227, %231 : vector<4x16x16xf32>
    %c0_56 = arith.constant 0 : index
    %c0_57 = arith.constant 0 : index
    %233 = memref.load %arg11[%c0_56, %c0_57] : memref<4x4xf32, #tpu.memory_space<smem>>
    %234 = vector.extract_strided_slice %232 {offsets = [0, 0, 0], sizes = [1, 16, 16], strides = [1, 1, 1]} : vector<4x16x16xf32> to vector<1x16x16xf32>
    %235 = vector.shape_cast %234 : vector<1x16x16xf32> to vector<16x16xf32>
    %236 = vector.broadcast %233 : f32 to vector<16x16xf32>
    %237 = arith.mulf %236, %235 : vector<16x16xf32>
    %c0_58 = arith.constant 0 : index
    %c1_59 = arith.constant 1 : index
    %238 = memref.load %arg11[%c0_58, %c1_59] : memref<4x4xf32, #tpu.memory_space<smem>>
    %239 = vector.extract_strided_slice %232 {offsets = [1, 0, 0], sizes = [1, 16, 16], strides = [1, 1, 1]} : vector<4x16x16xf32> to vector<1x16x16xf32>
    %240 = vector.shape_cast %239 : vector<1x16x16xf32> to vector<16x16xf32>
    %241 = vector.broadcast %238 : f32 to vector<16x16xf32>
    %242 = arith.mulf %241, %240 : vector<16x16xf32>
    %243 = arith.addf %237, %242 : vector<16x16xf32>
    %c0_60 = arith.constant 0 : index
    %c2_61 = arith.constant 2 : index
    %244 = memref.load %arg11[%c0_60, %c2_61] : memref<4x4xf32, #tpu.memory_space<smem>>
    %245 = vector.extract_strided_slice %232 {offsets = [2, 0, 0], sizes = [1, 16, 16], strides = [1, 1, 1]} : vector<4x16x16xf32> to vector<1x16x16xf32>
    %246 = vector.shape_cast %245 : vector<1x16x16xf32> to vector<16x16xf32>
    %247 = vector.broadcast %244 : f32 to vector<16x16xf32>
    %248 = arith.mulf %247, %246 : vector<16x16xf32>
    %249 = arith.addf %243, %248 : vector<16x16xf32>
    %c0_62 = arith.constant 0 : index
    %c3_63 = arith.constant 3 : index
    %250 = memref.load %arg11[%c0_62, %c3_63] : memref<4x4xf32, #tpu.memory_space<smem>>
    %251 = vector.extract_strided_slice %232 {offsets = [3, 0, 0], sizes = [1, 16, 16], strides = [1, 1, 1]} : vector<4x16x16xf32> to vector<1x16x16xf32>
    %252 = vector.shape_cast %251 : vector<1x16x16xf32> to vector<16x16xf32>
    %253 = vector.broadcast %250 : f32 to vector<16x16xf32>
    %254 = arith.mulf %253, %252 : vector<16x16xf32>
    %255 = arith.addf %249, %254 : vector<16x16xf32>
    %256 = vector.shape_cast %255 : vector<16x16xf32> to vector<1x16x16xf32>
    %c1_64 = arith.constant 1 : index
    %c0_65 = arith.constant 0 : index
    %257 = memref.load %arg11[%c1_64, %c0_65] : memref<4x4xf32, #tpu.memory_space<smem>>
    %258 = vector.extract_strided_slice %232 {offsets = [0, 0, 0], sizes = [1, 16, 16], strides = [1, 1, 1]} : vector<4x16x16xf32> to vector<1x16x16xf32>
    %259 = vector.shape_cast %258 : vector<1x16x16xf32> to vector<16x16xf32>
    %260 = vector.broadcast %257 : f32 to vector<16x16xf32>
    %261 = arith.mulf %260, %259 : vector<16x16xf32>
    %c1_66 = arith.constant 1 : index
    %c1_67 = arith.constant 1 : index
    %262 = memref.load %arg11[%c1_66, %c1_67] : memref<4x4xf32, #tpu.memory_space<smem>>
    %263 = vector.extract_strided_slice %232 {offsets = [1, 0, 0], sizes = [1, 16, 16], strides = [1, 1, 1]} : vector<4x16x16xf32> to vector<1x16x16xf32>
    %264 = vector.shape_cast %263 : vector<1x16x16xf32> to vector<16x16xf32>
    %265 = vector.broadcast %262 : f32 to vector<16x16xf32>
    %266 = arith.mulf %265, %264 : vector<16x16xf32>
    %267 = arith.addf %261, %266 : vector<16x16xf32>
    %c1_68 = arith.constant 1 : index
    %c2_69 = arith.constant 2 : index
    %268 = memref.load %arg11[%c1_68, %c2_69] : memref<4x4xf32, #tpu.memory_space<smem>>
    %269 = vector.extract_strided_slice %232 {offsets = [2, 0, 0], sizes = [1, 16, 16], strides = [1, 1, 1]} : vector<4x16x16xf32> to vector<1x16x16xf32>
    %270 = vector.shape_cast %269 : vector<1x16x16xf32> to vector<16x16xf32>
    %271 = vector.broadcast %268 : f32 to vector<16x16xf32>
    %272 = arith.mulf %271, %270 : vector<16x16xf32>
    %273 = arith.addf %267, %272 : vector<16x16xf32>
    %c1_70 = arith.constant 1 : index
    %c3_71 = arith.constant 3 : index
    %274 = memref.load %arg11[%c1_70, %c3_71] : memref<4x4xf32, #tpu.memory_space<smem>>
    %275 = vector.extract_strided_slice %232 {offsets = [3, 0, 0], sizes = [1, 16, 16], strides = [1, 1, 1]} : vector<4x16x16xf32> to vector<1x16x16xf32>
    %276 = vector.shape_cast %275 : vector<1x16x16xf32> to vector<16x16xf32>
    %277 = vector.broadcast %274 : f32 to vector<16x16xf32>
    %278 = arith.mulf %277, %276 : vector<16x16xf32>
    %279 = arith.addf %273, %278 : vector<16x16xf32>
    %280 = vector.shape_cast %279 : vector<16x16xf32> to vector<1x16x16xf32>
    %c2_72 = arith.constant 2 : index
    %c0_73 = arith.constant 0 : index
    %281 = memref.load %arg11[%c2_72, %c0_73] : memref<4x4xf32, #tpu.memory_space<smem>>
    %282 = vector.extract_strided_slice %232 {offsets = [0, 0, 0], sizes = [1, 16, 16], strides = [1, 1, 1]} : vector<4x16x16xf32> to vector<1x16x16xf32>
    %283 = vector.shape_cast %282 : vector<1x16x16xf32> to vector<16x16xf32>
    %284 = vector.broadcast %281 : f32 to vector<16x16xf32>
    %285 = arith.mulf %284, %283 : vector<16x16xf32>
    %c2_74 = arith.constant 2 : index
    %c1_75 = arith.constant 1 : index
    %286 = memref.load %arg11[%c2_74, %c1_75] : memref<4x4xf32, #tpu.memory_space<smem>>
    %287 = vector.extract_strided_slice %232 {offsets = [1, 0, 0], sizes = [1, 16, 16], strides = [1, 1, 1]} : vector<4x16x16xf32> to vector<1x16x16xf32>
    %288 = vector.shape_cast %287 : vector<1x16x16xf32> to vector<16x16xf32>
    %289 = vector.broadcast %286 : f32 to vector<16x16xf32>
    %290 = arith.mulf %289, %288 : vector<16x16xf32>
    %291 = arith.addf %285, %290 : vector<16x16xf32>
    %c2_76 = arith.constant 2 : index
    %c2_77 = arith.constant 2 : index
    %292 = memref.load %arg11[%c2_76, %c2_77] : memref<4x4xf32, #tpu.memory_space<smem>>
    %293 = vector.extract_strided_slice %232 {offsets = [2, 0, 0], sizes = [1, 16, 16], strides = [1, 1, 1]} : vector<4x16x16xf32> to vector<1x16x16xf32>
    %294 = vector.shape_cast %293 : vector<1x16x16xf32> to vector<16x16xf32>
    %295 = vector.broadcast %292 : f32 to vector<16x16xf32>
    %296 = arith.mulf %295, %294 : vector<16x16xf32>
    %297 = arith.addf %291, %296 : vector<16x16xf32>
    %c2_78 = arith.constant 2 : index
    %c3_79 = arith.constant 3 : index
    %298 = memref.load %arg11[%c2_78, %c3_79] : memref<4x4xf32, #tpu.memory_space<smem>>
    %299 = vector.extract_strided_slice %232 {offsets = [3, 0, 0], sizes = [1, 16, 16], strides = [1, 1, 1]} : vector<4x16x16xf32> to vector<1x16x16xf32>
    %300 = vector.shape_cast %299 : vector<1x16x16xf32> to vector<16x16xf32>
    %301 = vector.broadcast %298 : f32 to vector<16x16xf32>
    %302 = arith.mulf %301, %300 : vector<16x16xf32>
    %303 = arith.addf %297, %302 : vector<16x16xf32>
    %304 = vector.shape_cast %303 : vector<16x16xf32> to vector<1x16x16xf32>
    %c3_80 = arith.constant 3 : index
    %c0_81 = arith.constant 0 : index
    %305 = memref.load %arg11[%c3_80, %c0_81] : memref<4x4xf32, #tpu.memory_space<smem>>
    %306 = vector.extract_strided_slice %232 {offsets = [0, 0, 0], sizes = [1, 16, 16], strides = [1, 1, 1]} : vector<4x16x16xf32> to vector<1x16x16xf32>
    %307 = vector.shape_cast %306 : vector<1x16x16xf32> to vector<16x16xf32>
    %308 = vector.broadcast %305 : f32 to vector<16x16xf32>
    %309 = arith.mulf %308, %307 : vector<16x16xf32>
    %c3_82 = arith.constant 3 : index
    %c1_83 = arith.constant 1 : index
    %310 = memref.load %arg11[%c3_82, %c1_83] : memref<4x4xf32, #tpu.memory_space<smem>>
    %311 = vector.extract_strided_slice %232 {offsets = [1, 0, 0], sizes = [1, 16, 16], strides = [1, 1, 1]} : vector<4x16x16xf32> to vector<1x16x16xf32>
    %312 = vector.shape_cast %311 : vector<1x16x16xf32> to vector<16x16xf32>
    %313 = vector.broadcast %310 : f32 to vector<16x16xf32>
    %314 = arith.mulf %313, %312 : vector<16x16xf32>
    %315 = arith.addf %309, %314 : vector<16x16xf32>
    %c3_84 = arith.constant 3 : index
    %c2_85 = arith.constant 2 : index
    %316 = memref.load %arg11[%c3_84, %c2_85] : memref<4x4xf32, #tpu.memory_space<smem>>
    %317 = vector.extract_strided_slice %232 {offsets = [2, 0, 0], sizes = [1, 16, 16], strides = [1, 1, 1]} : vector<4x16x16xf32> to vector<1x16x16xf32>
    %318 = vector.shape_cast %317 : vector<1x16x16xf32> to vector<16x16xf32>
    %319 = vector.broadcast %316 : f32 to vector<16x16xf32>
    %320 = arith.mulf %319, %318 : vector<16x16xf32>
    %321 = arith.addf %315, %320 : vector<16x16xf32>
    %c3_86 = arith.constant 3 : index
    %c3_87 = arith.constant 3 : index
    %322 = memref.load %arg11[%c3_86, %c3_87] : memref<4x4xf32, #tpu.memory_space<smem>>
    %323 = vector.extract_strided_slice %232 {offsets = [3, 0, 0], sizes = [1, 16, 16], strides = [1, 1, 1]} : vector<4x16x16xf32> to vector<1x16x16xf32>
    %324 = vector.shape_cast %323 : vector<1x16x16xf32> to vector<16x16xf32>
    %325 = vector.broadcast %322 : f32 to vector<16x16xf32>
    %326 = arith.mulf %325, %324 : vector<16x16xf32>
    %327 = arith.addf %321, %326 : vector<16x16xf32>
    %328 = vector.shape_cast %327 : vector<16x16xf32> to vector<1x16x16xf32>
    %329 = tpu.concatenate %256, %280, %304, %328 in 0 : vector<1x16x16xf32>, vector<1x16x16xf32>, vector<1x16x16xf32>, vector<1x16x16xf32> -> vector<4x16x16xf32>
    %c2_i32_88 = arith.constant 2 : i32
    %330 = arith.muli %arg0, %c2_i32_88 : i32
    %c1_i32 = arith.constant 1 : i32
    %331 = arith.addi %330, %c1_i32 : i32
    %332 = arith.index_cast %331 : i32 to index
    %333 = memref.load %arg1[%332] : memref<2xi32, #tpu.memory_space<smem>>
    %334 = vector.extract_strided_slice %92 {offsets = [4, 0, 0], sizes = [4, 16, 16], strides = [1, 1, 1]} : vector<8x16x16xf32> to vector<4x16x16xf32>
    %335 = arith.addf %334, %112 : vector<4x16x16xf32>
    %c0_89 = arith.constant 0 : index
    %c0_90 = arith.constant 0 : index
    %336 = memref.load %arg10[%c0_89, %c0_90] : memref<4x4xf32, #tpu.memory_space<smem>>
    %337 = vector.extract_strided_slice %335 {offsets = [0, 0, 0], sizes = [1, 16, 16], strides = [1, 1, 1]} : vector<4x16x16xf32> to vector<1x16x16xf32>
    %338 = vector.shape_cast %337 : vector<1x16x16xf32> to vector<16x16xf32>
    %339 = vector.broadcast %336 : f32 to vector<16x16xf32>
    %340 = arith.mulf %339, %338 : vector<16x16xf32>
    %c0_91 = arith.constant 0 : index
    %c1_92 = arith.constant 1 : index
    %341 = memref.load %arg10[%c0_91, %c1_92] : memref<4x4xf32, #tpu.memory_space<smem>>
    %342 = vector.extract_strided_slice %335 {offsets = [1, 0, 0], sizes = [1, 16, 16], strides = [1, 1, 1]} : vector<4x16x16xf32> to vector<1x16x16xf32>
    %343 = vector.shape_cast %342 : vector<1x16x16xf32> to vector<16x16xf32>
    %344 = vector.broadcast %341 : f32 to vector<16x16xf32>
    %345 = arith.mulf %344, %343 : vector<16x16xf32>
    %346 = arith.addf %340, %345 : vector<16x16xf32>
    %c0_93 = arith.constant 0 : index
    %c2_94 = arith.constant 2 : index
    %347 = memref.load %arg10[%c0_93, %c2_94] : memref<4x4xf32, #tpu.memory_space<smem>>
    %348 = vector.extract_strided_slice %335 {offsets = [2, 0, 0], sizes = [1, 16, 16], strides = [1, 1, 1]} : vector<4x16x16xf32> to vector<1x16x16xf32>
    %349 = vector.shape_cast %348 : vector<1x16x16xf32> to vector<16x16xf32>
    %350 = vector.broadcast %347 : f32 to vector<16x16xf32>
    %351 = arith.mulf %350, %349 : vector<16x16xf32>
    %352 = arith.addf %346, %351 : vector<16x16xf32>
    %c0_95 = arith.constant 0 : index
    %c3_96 = arith.constant 3 : index
    %353 = memref.load %arg10[%c0_95, %c3_96] : memref<4x4xf32, #tpu.memory_space<smem>>
    %354 = vector.extract_strided_slice %335 {offsets = [3, 0, 0], sizes = [1, 16, 16], strides = [1, 1, 1]} : vector<4x16x16xf32> to vector<1x16x16xf32>
    %355 = vector.shape_cast %354 : vector<1x16x16xf32> to vector<16x16xf32>
    %356 = vector.broadcast %353 : f32 to vector<16x16xf32>
    %357 = arith.mulf %356, %355 : vector<16x16xf32>
    %358 = arith.addf %352, %357 : vector<16x16xf32>
    %359 = vector.shape_cast %358 : vector<16x16xf32> to vector<1x16x16xf32>
    %c1_97 = arith.constant 1 : index
    %c0_98 = arith.constant 0 : index
    %360 = memref.load %arg10[%c1_97, %c0_98] : memref<4x4xf32, #tpu.memory_space<smem>>
    %361 = vector.extract_strided_slice %335 {offsets = [0, 0, 0], sizes = [1, 16, 16], strides = [1, 1, 1]} : vector<4x16x16xf32> to vector<1x16x16xf32>
    %362 = vector.shape_cast %361 : vector<1x16x16xf32> to vector<16x16xf32>
    %363 = vector.broadcast %360 : f32 to vector<16x16xf32>
    %364 = arith.mulf %363, %362 : vector<16x16xf32>
    %c1_99 = arith.constant 1 : index
    %c1_100 = arith.constant 1 : index
    %365 = memref.load %arg10[%c1_99, %c1_100] : memref<4x4xf32, #tpu.memory_space<smem>>
    %366 = vector.extract_strided_slice %335 {offsets = [1, 0, 0], sizes = [1, 16, 16], strides = [1, 1, 1]} : vector<4x16x16xf32> to vector<1x16x16xf32>
    %367 = vector.shape_cast %366 : vector<1x16x16xf32> to vector<16x16xf32>
    %368 = vector.broadcast %365 : f32 to vector<16x16xf32>
    %369 = arith.mulf %368, %367 : vector<16x16xf32>
    %370 = arith.addf %364, %369 : vector<16x16xf32>
    %c1_101 = arith.constant 1 : index
    %c2_102 = arith.constant 2 : index
    %371 = memref.load %arg10[%c1_101, %c2_102] : memref<4x4xf32, #tpu.memory_space<smem>>
    %372 = vector.extract_strided_slice %335 {offsets = [2, 0, 0], sizes = [1, 16, 16], strides = [1, 1, 1]} : vector<4x16x16xf32> to vector<1x16x16xf32>
    %373 = vector.shape_cast %372 : vector<1x16x16xf32> to vector<16x16xf32>
    %374 = vector.broadcast %371 : f32 to vector<16x16xf32>
    %375 = arith.mulf %374, %373 : vector<16x16xf32>
    %376 = arith.addf %370, %375 : vector<16x16xf32>
    %c1_103 = arith.constant 1 : index
    %c3_104 = arith.constant 3 : index
    %377 = memref.load %arg10[%c1_103, %c3_104] : memref<4x4xf32, #tpu.memory_space<smem>>
    %378 = vector.extract_strided_slice %335 {offsets = [3, 0, 0], sizes = [1, 16, 16], strides = [1, 1, 1]} : vector<4x16x16xf32> to vector<1x16x16xf32>
    %379 = vector.shape_cast %378 : vector<1x16x16xf32> to vector<16x16xf32>
    %380 = vector.broadcast %377 : f32 to vector<16x16xf32>
    %381 = arith.mulf %380, %379 : vector<16x16xf32>
    %382 = arith.addf %376, %381 : vector<16x16xf32>
    %383 = vector.shape_cast %382 : vector<16x16xf32> to vector<1x16x16xf32>
    %c2_105 = arith.constant 2 : index
    %c0_106 = arith.constant 0 : index
    %384 = memref.load %arg10[%c2_105, %c0_106] : memref<4x4xf32, #tpu.memory_space<smem>>
    %385 = vector.extract_strided_slice %335 {offsets = [0, 0, 0], sizes = [1, 16, 16], strides = [1, 1, 1]} : vector<4x16x16xf32> to vector<1x16x16xf32>
    %386 = vector.shape_cast %385 : vector<1x16x16xf32> to vector<16x16xf32>
    %387 = vector.broadcast %384 : f32 to vector<16x16xf32>
    %388 = arith.mulf %387, %386 : vector<16x16xf32>
    %c2_107 = arith.constant 2 : index
    %c1_108 = arith.constant 1 : index
    %389 = memref.load %arg10[%c2_107, %c1_108] : memref<4x4xf32, #tpu.memory_space<smem>>
    %390 = vector.extract_strided_slice %335 {offsets = [1, 0, 0], sizes = [1, 16, 16], strides = [1, 1, 1]} : vector<4x16x16xf32> to vector<1x16x16xf32>
    %391 = vector.shape_cast %390 : vector<1x16x16xf32> to vector<16x16xf32>
    %392 = vector.broadcast %389 : f32 to vector<16x16xf32>
    %393 = arith.mulf %392, %391 : vector<16x16xf32>
    %394 = arith.addf %388, %393 : vector<16x16xf32>
    %c2_109 = arith.constant 2 : index
    %c2_110 = arith.constant 2 : index
    %395 = memref.load %arg10[%c2_109, %c2_110] : memref<4x4xf32, #tpu.memory_space<smem>>
    %396 = vector.extract_strided_slice %335 {offsets = [2, 0, 0], sizes = [1, 16, 16], strides = [1, 1, 1]} : vector<4x16x16xf32> to vector<1x16x16xf32>
    %397 = vector.shape_cast %396 : vector<1x16x16xf32> to vector<16x16xf32>
    %398 = vector.broadcast %395 : f32 to vector<16x16xf32>
    %399 = arith.mulf %398, %397 : vector<16x16xf32>
    %400 = arith.addf %394, %399 : vector<16x16xf32>
    %c2_111 = arith.constant 2 : index
    %c3_112 = arith.constant 3 : index
    %401 = memref.load %arg10[%c2_111, %c3_112] : memref<4x4xf32, #tpu.memory_space<smem>>
    %402 = vector.extract_strided_slice %335 {offsets = [3, 0, 0], sizes = [1, 16, 16], strides = [1, 1, 1]} : vector<4x16x16xf32> to vector<1x16x16xf32>
    %403 = vector.shape_cast %402 : vector<1x16x16xf32> to vector<16x16xf32>
    %404 = vector.broadcast %401 : f32 to vector<16x16xf32>
    %405 = arith.mulf %404, %403 : vector<16x16xf32>
    %406 = arith.addf %400, %405 : vector<16x16xf32>
    %407 = vector.shape_cast %406 : vector<16x16xf32> to vector<1x16x16xf32>
    %c3_113 = arith.constant 3 : index
    %c0_114 = arith.constant 0 : index
    %408 = memref.load %arg10[%c3_113, %c0_114] : memref<4x4xf32, #tpu.memory_space<smem>>
    %409 = vector.extract_strided_slice %335 {offsets = [0, 0, 0], sizes = [1, 16, 16], strides = [1, 1, 1]} : vector<4x16x16xf32> to vector<1x16x16xf32>
    %410 = vector.shape_cast %409 : vector<1x16x16xf32> to vector<16x16xf32>
    %411 = vector.broadcast %408 : f32 to vector<16x16xf32>
    %412 = arith.mulf %411, %410 : vector<16x16xf32>
    %c3_115 = arith.constant 3 : index
    %c1_116 = arith.constant 1 : index
    %413 = memref.load %arg10[%c3_115, %c1_116] : memref<4x4xf32, #tpu.memory_space<smem>>
    %414 = vector.extract_strided_slice %335 {offsets = [1, 0, 0], sizes = [1, 16, 16], strides = [1, 1, 1]} : vector<4x16x16xf32> to vector<1x16x16xf32>
    %415 = vector.shape_cast %414 : vector<1x16x16xf32> to vector<16x16xf32>
    %416 = vector.broadcast %413 : f32 to vector<16x16xf32>
    %417 = arith.mulf %416, %415 : vector<16x16xf32>
    %418 = arith.addf %412, %417 : vector<16x16xf32>
    %c3_117 = arith.constant 3 : index
    %c2_118 = arith.constant 2 : index
    %419 = memref.load %arg10[%c3_117, %c2_118] : memref<4x4xf32, #tpu.memory_space<smem>>
    %420 = vector.extract_strided_slice %335 {offsets = [2, 0, 0], sizes = [1, 16, 16], strides = [1, 1, 1]} : vector<4x16x16xf32> to vector<1x16x16xf32>
    %421 = vector.shape_cast %420 : vector<1x16x16xf32> to vector<16x16xf32>
    %422 = vector.broadcast %419 : f32 to vector<16x16xf32>
    %423 = arith.mulf %422, %421 : vector<16x16xf32>
    %424 = arith.addf %418, %423 : vector<16x16xf32>
    %c3_119 = arith.constant 3 : index
    %c3_120 = arith.constant 3 : index
    %425 = memref.load %arg10[%c3_119, %c3_120] : memref<4x4xf32, #tpu.memory_space<smem>>
    %426 = vector.extract_strided_slice %335 {offsets = [3, 0, 0], sizes = [1, 16, 16], strides = [1, 1, 1]} : vector<4x16x16xf32> to vector<1x16x16xf32>
    %427 = vector.shape_cast %426 : vector<1x16x16xf32> to vector<16x16xf32>
    %428 = vector.broadcast %425 : f32 to vector<16x16xf32>
    %429 = arith.mulf %428, %427 : vector<16x16xf32>
    %430 = arith.addf %424, %429 : vector<16x16xf32>
    %431 = vector.shape_cast %430 : vector<16x16xf32> to vector<1x16x16xf32>
    %432 = tpu.concatenate %359, %383, %407, %431 in 0 : vector<1x16x16xf32>, vector<1x16x16xf32>, vector<1x16x16xf32>, vector<1x16x16xf32> -> vector<4x16x16xf32>
    %433 = vector.broadcast %333 : i32 to vector<16x16xi32>
    %434 = arith.cmpi slt, %94, %433 : vector<16x16xi32>
    %435 = vector.shape_cast %434 : vector<16x16xi1> to vector<1x16x16xi1>
    %436 = vector.shape_cast %435 : vector<1x16x16xi1> to vector<1x16x16xi1>
    %437 = vector.broadcast %436 : vector<1x16x16xi1> to vector<4x16x16xi1>
    %cst_121 = arith.constant -1.000000e+04 : f32
    %438 = vector.broadcast %cst_121 : f32 to vector<4x16x16xf32>
    %439 = arith.select %437, %432, %438 : vector<4x16x16xi1>, vector<4x16x16xf32>
    %cst_122 = arith.constant dense<0xFF800000> : vector<4x16xf32>
    %440 = vector.multi_reduction <maximumf>, %439, %cst_122 [2] : vector<4x16x16xf32> to vector<4x16xf32>
    %441 = vector.shape_cast %440 : vector<4x16xf32> to vector<4x16x1xf32>
    %442 = vector.broadcast %441 : vector<4x16x1xf32> to vector<4x16x16xf32>
    %443 = arith.subf %439, %442 : vector<4x16x16xf32>
    %444 = math.exp %443 : vector<4x16x16xf32>
    %cst_123 = arith.constant dense<0.000000e+00> : vector<4x16xf32>
    %445 = vector.multi_reduction <add>, %444, %cst_123 [2] : vector<4x16x16xf32> to vector<4x16xf32>
    %446 = vector.shape_cast %445 : vector<4x16xf32> to vector<4x16x1xf32>
    %447 = tpu.reciprocal %446 {approx = true} : vector<4x16x1xf32> -> vector<4x16x1xf32>
    %448 = vector.broadcast %447 : vector<4x16x1xf32> to vector<4x16x16xf32>
    %449 = arith.mulf %444, %448 : vector<4x16x16xf32>
    %c0_124 = arith.constant 0 : index
    %c0_125 = arith.constant 0 : index
    %450 = memref.load %arg11[%c0_124, %c0_125] : memref<4x4xf32, #tpu.memory_space<smem>>
    %451 = vector.extract_strided_slice %449 {offsets = [0, 0, 0], sizes = [1, 16, 16], strides = [1, 1, 1]} : vector<4x16x16xf32> to vector<1x16x16xf32>
    %452 = vector.shape_cast %451 : vector<1x16x16xf32> to vector<16x16xf32>
    %453 = vector.broadcast %450 : f32 to vector<16x16xf32>
    %454 = arith.mulf %453, %452 : vector<16x16xf32>
    %c0_126 = arith.constant 0 : index
    %c1_127 = arith.constant 1 : index
    %455 = memref.load %arg11[%c0_126, %c1_127] : memref<4x4xf32, #tpu.memory_space<smem>>
    %456 = vector.extract_strided_slice %449 {offsets = [1, 0, 0], sizes = [1, 16, 16], strides = [1, 1, 1]} : vector<4x16x16xf32> to vector<1x16x16xf32>
    %457 = vector.shape_cast %456 : vector<1x16x16xf32> to vector<16x16xf32>
    %458 = vector.broadcast %455 : f32 to vector<16x16xf32>
    %459 = arith.mulf %458, %457 : vector<16x16xf32>
    %460 = arith.addf %454, %459 : vector<16x16xf32>
    %c0_128 = arith.constant 0 : index
    %c2_129 = arith.constant 2 : index
    %461 = memref.load %arg11[%c0_128, %c2_129] : memref<4x4xf32, #tpu.memory_space<smem>>
    %462 = vector.extract_strided_slice %449 {offsets = [2, 0, 0], sizes = [1, 16, 16], strides = [1, 1, 1]} : vector<4x16x16xf32> to vector<1x16x16xf32>
    %463 = vector.shape_cast %462 : vector<1x16x16xf32> to vector<16x16xf32>
    %464 = vector.broadcast %461 : f32 to vector<16x16xf32>
    %465 = arith.mulf %464, %463 : vector<16x16xf32>
    %466 = arith.addf %460, %465 : vector<16x16xf32>
    %c0_130 = arith.constant 0 : index
    %c3_131 = arith.constant 3 : index
    %467 = memref.load %arg11[%c0_130, %c3_131] : memref<4x4xf32, #tpu.memory_space<smem>>
    %468 = vector.extract_strided_slice %449 {offsets = [3, 0, 0], sizes = [1, 16, 16], strides = [1, 1, 1]} : vector<4x16x16xf32> to vector<1x16x16xf32>
    %469 = vector.shape_cast %468 : vector<1x16x16xf32> to vector<16x16xf32>
    %470 = vector.broadcast %467 : f32 to vector<16x16xf32>
    %471 = arith.mulf %470, %469 : vector<16x16xf32>
    %472 = arith.addf %466, %471 : vector<16x16xf32>
    %473 = vector.shape_cast %472 : vector<16x16xf32> to vector<1x16x16xf32>
    %c1_132 = arith.constant 1 : index
    %c0_133 = arith.constant 0 : index
    %474 = memref.load %arg11[%c1_132, %c0_133] : memref<4x4xf32, #tpu.memory_space<smem>>
    %475 = vector.extract_strided_slice %449 {offsets = [0, 0, 0], sizes = [1, 16, 16], strides = [1, 1, 1]} : vector<4x16x16xf32> to vector<1x16x16xf32>
    %476 = vector.shape_cast %475 : vector<1x16x16xf32> to vector<16x16xf32>
    %477 = vector.broadcast %474 : f32 to vector<16x16xf32>
    %478 = arith.mulf %477, %476 : vector<16x16xf32>
    %c1_134 = arith.constant 1 : index
    %c1_135 = arith.constant 1 : index
    %479 = memref.load %arg11[%c1_134, %c1_135] : memref<4x4xf32, #tpu.memory_space<smem>>
    %480 = vector.extract_strided_slice %449 {offsets = [1, 0, 0], sizes = [1, 16, 16], strides = [1, 1, 1]} : vector<4x16x16xf32> to vector<1x16x16xf32>
    %481 = vector.shape_cast %480 : vector<1x16x16xf32> to vector<16x16xf32>
    %482 = vector.broadcast %479 : f32 to vector<16x16xf32>
    %483 = arith.mulf %482, %481 : vector<16x16xf32>
    %484 = arith.addf %478, %483 : vector<16x16xf32>
    %c1_136 = arith.constant 1 : index
    %c2_137 = arith.constant 2 : index
    %485 = memref.load %arg11[%c1_136, %c2_137] : memref<4x4xf32, #tpu.memory_space<smem>>
    %486 = vector.extract_strided_slice %449 {offsets = [2, 0, 0], sizes = [1, 16, 16], strides = [1, 1, 1]} : vector<4x16x16xf32> to vector<1x16x16xf32>
    %487 = vector.shape_cast %486 : vector<1x16x16xf32> to vector<16x16xf32>
    %488 = vector.broadcast %485 : f32 to vector<16x16xf32>
    %489 = arith.mulf %488, %487 : vector<16x16xf32>
    %490 = arith.addf %484, %489 : vector<16x16xf32>
    %c1_138 = arith.constant 1 : index
    %c3_139 = arith.constant 3 : index
    %491 = memref.load %arg11[%c1_138, %c3_139] : memref<4x4xf32, #tpu.memory_space<smem>>
    %492 = vector.extract_strided_slice %449 {offsets = [3, 0, 0], sizes = [1, 16, 16], strides = [1, 1, 1]} : vector<4x16x16xf32> to vector<1x16x16xf32>
    %493 = vector.shape_cast %492 : vector<1x16x16xf32> to vector<16x16xf32>
    %494 = vector.broadcast %491 : f32 to vector<16x16xf32>
    %495 = arith.mulf %494, %493 : vector<16x16xf32>
    %496 = arith.addf %490, %495 : vector<16x16xf32>
    %497 = vector.shape_cast %496 : vector<16x16xf32> to vector<1x16x16xf32>
    %c2_140 = arith.constant 2 : index
    %c0_141 = arith.constant 0 : index
    %498 = memref.load %arg11[%c2_140, %c0_141] : memref<4x4xf32, #tpu.memory_space<smem>>
    %499 = vector.extract_strided_slice %449 {offsets = [0, 0, 0], sizes = [1, 16, 16], strides = [1, 1, 1]} : vector<4x16x16xf32> to vector<1x16x16xf32>
    %500 = vector.shape_cast %499 : vector<1x16x16xf32> to vector<16x16xf32>
    %501 = vector.broadcast %498 : f32 to vector<16x16xf32>
    %502 = arith.mulf %501, %500 : vector<16x16xf32>
    %c2_142 = arith.constant 2 : index
    %c1_143 = arith.constant 1 : index
    %503 = memref.load %arg11[%c2_142, %c1_143] : memref<4x4xf32, #tpu.memory_space<smem>>
    %504 = vector.extract_strided_slice %449 {offsets = [1, 0, 0], sizes = [1, 16, 16], strides = [1, 1, 1]} : vector<4x16x16xf32> to vector<1x16x16xf32>
    %505 = vector.shape_cast %504 : vector<1x16x16xf32> to vector<16x16xf32>
    %506 = vector.broadcast %503 : f32 to vector<16x16xf32>
    %507 = arith.mulf %506, %505 : vector<16x16xf32>
    %508 = arith.addf %502, %507 : vector<16x16xf32>
    %c2_144 = arith.constant 2 : index
    %c2_145 = arith.constant 2 : index
    %509 = memref.load %arg11[%c2_144, %c2_145] : memref<4x4xf32, #tpu.memory_space<smem>>
    %510 = vector.extract_strided_slice %449 {offsets = [2, 0, 0], sizes = [1, 16, 16], strides = [1, 1, 1]} : vector<4x16x16xf32> to vector<1x16x16xf32>
    %511 = vector.shape_cast %510 : vector<1x16x16xf32> to vector<16x16xf32>
    %512 = vector.broadcast %509 : f32 to vector<16x16xf32>
    %513 = arith.mulf %512, %511 : vector<16x16xf32>
    %514 = arith.addf %508, %513 : vector<16x16xf32>
    %c2_146 = arith.constant 2 : index
    %c3_147 = arith.constant 3 : index
    %515 = memref.load %arg11[%c2_146, %c3_147] : memref<4x4xf32, #tpu.memory_space<smem>>
    %516 = vector.extract_strided_slice %449 {offsets = [3, 0, 0], sizes = [1, 16, 16], strides = [1, 1, 1]} : vector<4x16x16xf32> to vector<1x16x16xf32>
    %517 = vector.shape_cast %516 : vector<1x16x16xf32> to vector<16x16xf32>
    %518 = vector.broadcast %515 : f32 to vector<16x16xf32>
    %519 = arith.mulf %518, %517 : vector<16x16xf32>
    %520 = arith.addf %514, %519 : vector<16x16xf32>
    %521 = vector.shape_cast %520 : vector<16x16xf32> to vector<1x16x16xf32>
    %c3_148 = arith.constant 3 : index
    %c0_149 = arith.constant 0 : index
    %522 = memref.load %arg11[%c3_148, %c0_149] : memref<4x4xf32, #tpu.memory_space<smem>>
    %523 = vector.extract_strided_slice %449 {offsets = [0, 0, 0], sizes = [1, 16, 16], strides = [1, 1, 1]} : vector<4x16x16xf32> to vector<1x16x16xf32>
    %524 = vector.shape_cast %523 : vector<1x16x16xf32> to vector<16x16xf32>
    %525 = vector.broadcast %522 : f32 to vector<16x16xf32>
    %526 = arith.mulf %525, %524 : vector<16x16xf32>
    %c3_150 = arith.constant 3 : index
    %c1_151 = arith.constant 1 : index
    %527 = memref.load %arg11[%c3_150, %c1_151] : memref<4x4xf32, #tpu.memory_space<smem>>
    %528 = vector.extract_strided_slice %449 {offsets = [1, 0, 0], sizes = [1, 16, 16], strides = [1, 1, 1]} : vector<4x16x16xf32> to vector<1x16x16xf32>
    %529 = vector.shape_cast %528 : vector<1x16x16xf32> to vector<16x16xf32>
    %530 = vector.broadcast %527 : f32 to vector<16x16xf32>
    %531 = arith.mulf %530, %529 : vector<16x16xf32>
    %532 = arith.addf %526, %531 : vector<16x16xf32>
    %c3_152 = arith.constant 3 : index
    %c2_153 = arith.constant 2 : index
    %533 = memref.load %arg11[%c3_152, %c2_153] : memref<4x4xf32, #tpu.memory_space<smem>>
    %534 = vector.extract_strided_slice %449 {offsets = [2, 0, 0], sizes = [1, 16, 16], strides = [1, 1, 1]} : vector<4x16x16xf32> to vector<1x16x16xf32>
    %535 = vector.shape_cast %534 : vector<1x16x16xf32> to vector<16x16xf32>
    %536 = vector.broadcast %533 : f32 to vector<16x16xf32>
    %537 = arith.mulf %536, %535 : vector<16x16xf32>
    %538 = arith.addf %532, %537 : vector<16x16xf32>
    %c3_154 = arith.constant 3 : index
    %c3_155 = arith.constant 3 : index
    %539 = memref.load %arg11[%c3_154, %c3_155] : memref<4x4xf32, #tpu.memory_space<smem>>
    %540 = vector.extract_strided_slice %449 {offsets = [3, 0, 0], sizes = [1, 16, 16], strides = [1, 1, 1]} : vector<4x16x16xf32> to vector<1x16x16xf32>
    %541 = vector.shape_cast %540 : vector<1x16x16xf32> to vector<16x16xf32>
    %542 = vector.broadcast %539 : f32 to vector<16x16xf32>
    %543 = arith.mulf %542, %541 : vector<16x16xf32>
    %544 = arith.addf %538, %543 : vector<16x16xf32>
    %545 = vector.shape_cast %544 : vector<16x16xf32> to vector<1x16x16xf32>
    %546 = tpu.concatenate %473, %497, %521, %545 in 0 : vector<1x16x16xf32>, vector<1x16x16xf32>, vector<1x16x16xf32>, vector<1x16x16xf32> -> vector<4x16x16xf32>
    %547 = tpu.concatenate %329, %546 in 0 : vector<4x16x16xf32>, vector<4x16x16xf32> -> vector<8x16x16xf32>
    %548 = arith.truncf %547 : vector<8x16x16xf32> to vector<8x16x16xbf16>
    "tpu.trace_start"() <{level = 10 : i32, message = "bts,bsd->btd"}> : () -> ()
    %cst_156 = arith.constant dense<0.000000e+00> : vector<8x16x8xf32>
    %549 = tpu.matmul %548, %91, %cst_156 {dimension_numbers = #tpu.dot_dimension_numbers<[2], [1], [1], [2], [0, 0, 0, 1, 1, 2], [0], [0]>} : vector<8x16x16xbf16>, vector<8x16x8xbf16>, vector<8x16x8xf32> -> vector<8x16x8xf32>
    "tpu.trace_stop"() : () -> ()
    %550 = vector.extract_strided_slice %549 {offsets = [0, 0, 0], sizes = [1, 16, 8], strides = [1, 1, 1]} : vector<8x16x8xf32> to vector<1x16x8xf32>
    %551 = vector.shape_cast %550 : vector<1x16x8xf32> to vector<16x8xf32>
    %552 = vector.extract_strided_slice %549 {offsets = [1, 0, 0], sizes = [1, 16, 8], strides = [1, 1, 1]} : vector<8x16x8xf32> to vector<1x16x8xf32>
    %553 = vector.shape_cast %552 : vector<1x16x8xf32> to vector<16x8xf32>
    %554 = vector.extract_strided_slice %549 {offsets = [2, 0, 0], sizes = [1, 16, 8], strides = [1, 1, 1]} : vector<8x16x8xf32> to vector<1x16x8xf32>
    %555 = vector.shape_cast %554 : vector<1x16x8xf32> to vector<16x8xf32>
    %556 = vector.extract_strided_slice %549 {offsets = [3, 0, 0], sizes = [1, 16, 8], strides = [1, 1, 1]} : vector<8x16x8xf32> to vector<1x16x8xf32>
    %557 = vector.shape_cast %556 : vector<1x16x8xf32> to vector<16x8xf32>
    %558 = tpu.concatenate %551, %553, %555, %557 in 1 : vector<16x8xf32>, vector<16x8xf32>, vector<16x8xf32>, vector<16x8xf32> -> vector<16x32xf32>
    %559 = vector.extract_strided_slice %549 {offsets = [4, 0, 0], sizes = [1, 16, 8], strides = [1, 1, 1]} : vector<8x16x8xf32> to vector<1x16x8xf32>
    %560 = vector.shape_cast %559 : vector<1x16x8xf32> to vector<16x8xf32>
    %561 = vector.extract_strided_slice %549 {offsets = [5, 0, 0], sizes = [1, 16, 8], strides = [1, 1, 1]} : vector<8x16x8xf32> to vector<1x16x8xf32>
    %562 = vector.shape_cast %561 : vector<1x16x8xf32> to vector<16x8xf32>
    %563 = vector.extract_strided_slice %549 {offsets = [6, 0, 0], sizes = [1, 16, 8], strides = [1, 1, 1]} : vector<8x16x8xf32> to vector<1x16x8xf32>
    %564 = vector.shape_cast %563 : vector<1x16x8xf32> to vector<16x8xf32>
    %565 = vector.extract_strided_slice %549 {offsets = [7, 0, 0], sizes = [1, 16, 8], strides = [1, 1, 1]} : vector<8x16x8xf32> to vector<1x16x8xf32>
    %566 = vector.shape_cast %565 : vector<1x16x8xf32> to vector<16x8xf32>
    %567 = tpu.concatenate %560, %562, %564, %566 in 1 : vector<16x8xf32>, vector<16x8xf32>, vector<16x8xf32>, vector<16x8xf32> -> vector<16x32xf32>
    %568 = tpu.concatenate %558, %567 in 0 : vector<16x32xf32>, vector<16x32xf32> -> vector<32x32xf32>
    %569 = arith.truncf %568 : vector<32x32xf32> to vector<32x32xbf16>
    %c0_157 = arith.constant 0 : index
    %c0_158 = arith.constant 0 : index
    %570 = vector.load %arg12[%c0_157, %c0_158] : memref<32x32xbf16, #tpu.memory_space<vmem>>, vector<32x32xbf16>
    %cst_159 = arith.constant dense<0.000000e+00> : vector<32x32xf32>
    %571 = tpu.matmul %569, %570, %cst_159 {dimension_numbers = #tpu.dot_dimension_numbers<[1], [0], [0], [1], [0, 0, 1, 1], [], []>} : vector<32x32xbf16>, vector<32x32xbf16>, vector<32x32xf32> -> vector<32x32xf32>
    %c0_160 = arith.constant 0 : index
    %c0_161 = arith.constant 0 : index
    %572 = vector.load %arg13[%c0_160, %c0_161] : memref<1x32xf32, #tpu.memory_space<vmem>>, vector<1x32xf32>
    %573 = vector.broadcast %572 : vector<1x32xf32> to vector<32x32xf32>
    %574 = arith.addf %571, %573 : vector<32x32xf32>
    %575 = arith.addf %0, %574 : vector<32x32xf32>
    %cst_162 = arith.constant dense<0.000000e+00> : vector<32xf32>
    %576 = vector.multi_reduction <add>, %575, %cst_162 [1] : vector<32x32xf32> to vector<32xf32>
    %577 = vector.shape_cast %576 : vector<32xf32> to vector<32x1xf32>
    %cst_163 = arith.constant 3.200000e+01 : f32
    %578 = vector.broadcast %cst_163 : f32 to vector<32x1xf32>
    %579 = arith.divf %577, %578 : vector<32x1xf32>
    %580 = vector.broadcast %579 : vector<32x1xf32> to vector<32x32xf32>
    %581 = arith.subf %575, %580 : vector<32x32xf32>
    %582 = arith.mulf %581, %581 : vector<32x32xf32>
    %cst_164 = arith.constant dense<0.000000e+00> : vector<32xf32>
    %583 = vector.multi_reduction <add>, %582, %cst_164 [1] : vector<32x32xf32> to vector<32xf32>
    %584 = vector.shape_cast %583 : vector<32xf32> to vector<32x1xf32>
    %cst_165 = arith.constant 3.200000e+01 : f32
    %585 = vector.broadcast %cst_165 : f32 to vector<32x1xf32>
    %586 = arith.divf %584, %585 : vector<32x1xf32>
    %587 = vector.broadcast %579 : vector<32x1xf32> to vector<32x32xf32>
    %588 = arith.subf %575, %587 : vector<32x32xf32>
    %cst_166 = arith.constant 9.99999974E-6 : f32
    %589 = vector.broadcast %cst_166 : f32 to vector<32x1xf32>
    %590 = arith.addf %586, %589 : vector<32x1xf32>
    %591 = math.rsqrt %590 : vector<32x1xf32>
    %592 = vector.broadcast %591 : vector<32x1xf32> to vector<32x32xf32>
    %593 = arith.mulf %588, %592 : vector<32x32xf32>
    %c0_167 = arith.constant 0 : index
    %c0_168 = arith.constant 0 : index
    %594 = vector.load %arg5[%c0_167, %c0_168] : memref<1x32xf32, #tpu.memory_space<vmem>>, vector<1x32xf32>
    %595 = vector.broadcast %594 : vector<1x32xf32> to vector<32x32xf32>
    %596 = arith.mulf %593, %595 : vector<32x32xf32>
    %c0_169 = arith.constant 0 : index
    %c0_170 = arith.constant 0 : index
    %597 = vector.load %arg6[%c0_169, %c0_170] : memref<1x32xf32, #tpu.memory_space<vmem>>, vector<1x32xf32>
    %598 = vector.broadcast %597 : vector<1x32xf32> to vector<32x32xf32>
    %599 = arith.addf %596, %598 : vector<32x32xf32>
    %600 = tpu.iota {dimensions = array<i32: 0>} : vector<16x1xi32>
    %c2_i32_171 = arith.constant 2 : i32
    %601 = arith.muli %arg0, %c2_i32_171 : i32
    %c0_i32_172 = arith.constant 0 : i32
    %602 = arith.addi %601, %c0_i32_172 : i32
    %603 = arith.index_cast %602 : i32 to index
    %604 = memref.load %arg1[%603] : memref<2xi32, #tpu.memory_space<smem>>
    %605 = vector.broadcast %604 : i32 to vector<16x1xi32>
    %606 = arith.cmpi slt, %600, %605 : vector<16x1xi32>
    %607 = arith.extui %606 : vector<16x1xi1> to vector<16x1xi32>
    %608 = arith.sitofp %607 : vector<16x1xi32> to vector<16x1xf32>
    %c2_i32_173 = arith.constant 2 : i32
    %609 = arith.muli %arg0, %c2_i32_173 : i32
    %c1_i32_174 = arith.constant 1 : i32
    %610 = arith.addi %609, %c1_i32_174 : i32
    %611 = arith.index_cast %610 : i32 to index
    %612 = memref.load %arg1[%611] : memref<2xi32, #tpu.memory_space<smem>>
    %613 = vector.broadcast %612 : i32 to vector<16x1xi32>
    %614 = arith.cmpi slt, %600, %613 : vector<16x1xi32>
    %615 = arith.extui %614 : vector<16x1xi1> to vector<16x1xi32>
    %616 = arith.sitofp %615 : vector<16x1xi32> to vector<16x1xf32>
    %617 = tpu.concatenate %608, %616 in 0 : vector<16x1xf32>, vector<16x1xf32> -> vector<32x1xf32>
    %618 = vector.broadcast %617 : vector<32x1xf32> to vector<32x32xf32>
    %619 = arith.mulf %599, %618 : vector<32x32xf32>
    %620 = vector.extract_strided_slice %619 {offsets = [31, 0], sizes = [1, 32], strides = [1, 1]} : vector<32x32xf32> to vector<1x32xf32>
    %621 = vector.extract_strided_slice %619 {offsets = [0, 0], sizes = [31, 32], strides = [1, 1]} : vector<32x32xf32> to vector<31x32xf32>
    %622 = tpu.concatenate %620, %621 in 0 : vector<1x32xf32>, vector<31x32xf32> -> vector<32x32xf32>
    %c1_i32_175 = arith.constant 1 : i32
    %623 = vector.broadcast %c1_i32_175 : i32 to vector<16x1xi32>
    %624 = arith.cmpi sge, %600, %623 : vector<16x1xi32>
    %c16_i32 = arith.constant 16 : i32
    %625 = vector.broadcast %c16_i32 : i32 to vector<16x1xi32>
    %626 = arith.cmpi slt, %600, %625 : vector<16x1xi32>
    %627 = arith.andi %624, %626 : vector<16x1xi1>
    %628 = arith.extui %627 : vector<16x1xi1> to vector<16x1xi32>
    %629 = arith.sitofp %628 : vector<16x1xi32> to vector<16x1xf32>
    %630 = tpu.concatenate %629, %629 in 0 : vector<16x1xf32>, vector<16x1xf32> -> vector<32x1xf32>
    %631 = vector.broadcast %630 : vector<32x1xf32> to vector<32x32xf32>
    %632 = arith.mulf %622, %631 : vector<32x32xf32>
    %633 = vector.extract_strided_slice %619 {offsets = [1, 0], sizes = [31, 32], strides = [1, 1]} : vector<32x32xf32> to vector<31x32xf32>
    %634 = vector.extract_strided_slice %619 {offsets = [0, 0], sizes = [1, 32], strides = [1, 1]} : vector<32x32xf32> to vector<1x32xf32>
    %635 = tpu.concatenate %633, %634 in 0 : vector<31x32xf32>, vector<1x32xf32> -> vector<32x32xf32>
    %c0_i32_176 = arith.constant 0 : i32
    %636 = vector.broadcast %c0_i32_176 : i32 to vector<16x1xi32>
    %637 = arith.cmpi sge, %600, %636 : vector<16x1xi32>
    %c15_i32 = arith.constant 15 : i32
    %638 = vector.broadcast %c15_i32 : i32 to vector<16x1xi32>
    %639 = arith.cmpi slt, %600, %638 : vector<16x1xi32>
    %640 = arith.andi %637, %639 : vector<16x1xi1>
    %641 = arith.extui %640 : vector<16x1xi1> to vector<16x1xi32>
    %642 = arith.sitofp %641 : vector<16x1xi32> to vector<16x1xf32>
    %643 = tpu.concatenate %642, %642 in 0 : vector<16x1xf32>, vector<16x1xf32> -> vector<32x1xf32>
    %644 = vector.broadcast %643 : vector<32x1xf32> to vector<32x32xf32>
    %645 = arith.mulf %635, %644 : vector<32x32xf32>
    %646 = tpu.concatenate %632, %619, %645 in 1 : vector<32x32xf32>, vector<32x32xf32>, vector<32x32xf32> -> vector<32x96xf32>
    %647 = arith.truncf %646 : vector<32x96xf32> to vector<32x96xbf16>
    %c0_177 = arith.constant 0 : index
    %c0_178 = arith.constant 0 : index
    %648 = vector.load %arg14[%c0_177, %c0_178] : memref<96x128xbf16, #tpu.memory_space<vmem>>, vector<96x128xbf16>
    %cst_179 = arith.constant dense<0.000000e+00> : vector<32x128xf32>
    %649 = tpu.matmul %647, %648, %cst_179 {dimension_numbers = #tpu.dot_dimension_numbers<[1], [0], [0], [1], [0, 0, 1, 1], [], []>} : vector<32x96xbf16>, vector<96x128xbf16>, vector<32x128xf32> -> vector<32x128xf32>
    %c0_180 = arith.constant 0 : index
    %c0_181 = arith.constant 0 : index
    %650 = vector.load %arg15[%c0_180, %c0_181] : memref<1x128xf32, #tpu.memory_space<vmem>>, vector<1x128xf32>
    %651 = vector.broadcast %650 : vector<1x128xf32> to vector<32x128xf32>
    %652 = arith.addf %649, %651 : vector<32x128xf32>
    %653 = vector.extract_strided_slice %652 {offsets = [0, 0], sizes = [32, 64], strides = [1, 1]} : vector<32x128xf32> to vector<32x64xf32>
    %654 = vector.extract_strided_slice %652 {offsets = [0, 64], sizes = [32, 64], strides = [1, 1]} : vector<32x128xf32> to vector<32x64xf32>
    %cst_182 = arith.constant 0.000000e+00 : f32
    %655 = vector.broadcast %cst_182 : f32 to vector<32x64xf32>
    %656 = arith.subf %655, %653 : vector<32x64xf32>
    %657 = math.exp %656 : vector<32x64xf32>
    %cst_183 = arith.constant 1.000000e+00 : f32
    %658 = vector.broadcast %cst_183 : f32 to vector<32x64xf32>
    %659 = arith.addf %658, %657 : vector<32x64xf32>
    %cst_184 = arith.constant 1.000000e+00 : f32
    %660 = vector.broadcast %cst_184 : f32 to vector<32x64xf32>
    %661 = arith.divf %660, %659 : vector<32x64xf32>
    %662 = arith.mulf %653, %661 : vector<32x64xf32>
    %663 = arith.mulf %662, %654 : vector<32x64xf32>
    %664 = vector.broadcast %617 : vector<32x1xf32> to vector<32x64xf32>
    %665 = arith.mulf %663, %664 : vector<32x64xf32>
    %666 = vector.extract_strided_slice %665 {offsets = [31, 0], sizes = [1, 64], strides = [1, 1]} : vector<32x64xf32> to vector<1x64xf32>
    %667 = vector.extract_strided_slice %665 {offsets = [0, 0], sizes = [31, 64], strides = [1, 1]} : vector<32x64xf32> to vector<31x64xf32>
    %668 = tpu.concatenate %666, %667 in 0 : vector<1x64xf32>, vector<31x64xf32> -> vector<32x64xf32>
    %c1_i32_185 = arith.constant 1 : i32
    %669 = vector.broadcast %c1_i32_185 : i32 to vector<16x1xi32>
    %670 = arith.cmpi sge, %600, %669 : vector<16x1xi32>
    %c16_i32_186 = arith.constant 16 : i32
    %671 = vector.broadcast %c16_i32_186 : i32 to vector<16x1xi32>
    %672 = arith.cmpi slt, %600, %671 : vector<16x1xi32>
    %673 = arith.andi %670, %672 : vector<16x1xi1>
    %674 = arith.extui %673 : vector<16x1xi1> to vector<16x1xi32>
    %675 = arith.sitofp %674 : vector<16x1xi32> to vector<16x1xf32>
    %676 = tpu.concatenate %675, %675 in 0 : vector<16x1xf32>, vector<16x1xf32> -> vector<32x1xf32>
    %677 = vector.broadcast %676 : vector<32x1xf32> to vector<32x64xf32>
    %678 = arith.mulf %668, %677 : vector<32x64xf32>
    %679 = vector.extract_strided_slice %665 {offsets = [1, 0], sizes = [31, 64], strides = [1, 1]} : vector<32x64xf32> to vector<31x64xf32>
    %680 = vector.extract_strided_slice %665 {offsets = [0, 0], sizes = [1, 64], strides = [1, 1]} : vector<32x64xf32> to vector<1x64xf32>
    %681 = tpu.concatenate %679, %680 in 0 : vector<31x64xf32>, vector<1x64xf32> -> vector<32x64xf32>
    %c0_i32_187 = arith.constant 0 : i32
    %682 = vector.broadcast %c0_i32_187 : i32 to vector<16x1xi32>
    %683 = arith.cmpi sge, %600, %682 : vector<16x1xi32>
    %c15_i32_188 = arith.constant 15 : i32
    %684 = vector.broadcast %c15_i32_188 : i32 to vector<16x1xi32>
    %685 = arith.cmpi slt, %600, %684 : vector<16x1xi32>
    %686 = arith.andi %683, %685 : vector<16x1xi1>
    %687 = arith.extui %686 : vector<16x1xi1> to vector<16x1xi32>
    %688 = arith.sitofp %687 : vector<16x1xi32> to vector<16x1xf32>
    %689 = tpu.concatenate %688, %688 in 0 : vector<16x1xf32>, vector<16x1xf32> -> vector<32x1xf32>
    %690 = vector.broadcast %689 : vector<32x1xf32> to vector<32x64xf32>
    %691 = arith.mulf %681, %690 : vector<32x64xf32>
    %692 = tpu.concatenate %678, %665, %691 in 1 : vector<32x64xf32>, vector<32x64xf32>, vector<32x64xf32> -> vector<32x192xf32>
    %693 = arith.truncf %692 : vector<32x192xf32> to vector<32x192xbf16>
    %c0_189 = arith.constant 0 : index
    %c0_190 = arith.constant 0 : index
    %694 = vector.load %arg16[%c0_189, %c0_190] : memref<192x32xbf16, #tpu.memory_space<vmem>>, vector<192x32xbf16>
    %cst_191 = arith.constant dense<0.000000e+00> : vector<32x32xf32>
    %695 = tpu.matmul %693, %694, %cst_191 {dimension_numbers = #tpu.dot_dimension_numbers<[1], [0], [0], [1], [0, 0, 1, 1], [], []>} : vector<32x192xbf16>, vector<192x32xbf16>, vector<32x32xf32> -> vector<32x32xf32>
    %c0_192 = arith.constant 0 : index
    %c0_193 = arith.constant 0 : index
    %696 = vector.load %arg17[%c0_192, %c0_193] : memref<1x32xf32, #tpu.memory_space<vmem>>, vector<1x32xf32>
    %697 = vector.broadcast %696 : vector<1x32xf32> to vector<32x32xf32>
    %698 = arith.addf %695, %697 : vector<32x32xf32>
    %699 = arith.addf %575, %698 : vector<32x32xf32>
    %c0_194 = arith.constant 0 : index
    %c0_195 = arith.constant 0 : index
    %700 = vector.load %arg18[%c0_194, %c0_195] : memref<32x32xf32, #tpu.memory_space<vmem>>, vector<32x32xf32>
    tpu.vector_store %arg18[%c0_194, %c0_195], %699 {strides = array<i32>} : memref<32x32xf32, #tpu.memory_space<vmem>>, vector<32x32xf32>,
    return
  }
  func.func @transform_0(%arg0: i32, %arg1: memref<2xi32, #tpu.memory_space<smem>>) -> (i32, i32) {
    %c0_i32 = arith.constant 0 : i32
    %c0_i32_0 = arith.constant 0 : i32
    return %arg0, %c0_i32 : i32, i32
  }
  func.func @transform_1(%arg0: i32, %arg1: memref<2xi32, #tpu.memory_space<smem>>) -> (i32, i32) {
    %c0_i32 = arith.constant 0 : i32
    %c0_i32_0 = arith.constant 0 : i32
    %c0_i32_1 = arith.constant 0 : i32
    return %c0_i32, %c0_i32_0 : i32, i32
  }
  func.func @transform_2(%arg0: i32, %arg1: memref<2xi32, #tpu.memory_space<smem>>) -> (i32, i32) {
    %c0_i32 = arith.constant 0 : i32
    %c0_i32_0 = arith.constant 0 : i32
    %c0_i32_1 = arith.constant 0 : i32
    return %c0_i32, %c0_i32_0 : i32, i32
  }
  func.func @transform_3(%arg0: i32, %arg1: memref<2xi32, #tpu.memory_space<smem>>) -> (i32, i32) {
    %c0_i32 = arith.constant 0 : i32
    %c0_i32_0 = arith.constant 0 : i32
    %c0_i32_1 = arith.constant 0 : i32
    return %c0_i32, %c0_i32_0 : i32, i32
  }
  func.func @transform_4(%arg0: i32, %arg1: memref<2xi32, #tpu.memory_space<smem>>) -> (i32, i32) {
    %c0_i32 = arith.constant 0 : i32
    %c0_i32_0 = arith.constant 0 : i32
    %c0_i32_1 = arith.constant 0 : i32
    return %c0_i32, %c0_i32_0 : i32, i32
  }
  func.func @transform_5(%arg0: i32, %arg1: memref<2xi32, #tpu.memory_space<smem>>) -> (i32, i32) {
    %c0_i32 = arith.constant 0 : i32
    %c0_i32_0 = arith.constant 0 : i32
    %c0_i32_1 = arith.constant 0 : i32
    return %c0_i32, %c0_i32_0 : i32, i32
  }
  func.func @transform_6(%arg0: i32, %arg1: memref<2xi32, #tpu.memory_space<smem>>) -> (i32, i32) {
    %c0_i32 = arith.constant 0 : i32
    %c0_i32_0 = arith.constant 0 : i32
    %c0_i32_1 = arith.constant 0 : i32
    return %c0_i32, %c0_i32_0 : i32, i32
  }
  func.func @transform_7(%arg0: i32, %arg1: memref<2xi32, #tpu.memory_space<smem>>) -> (i32, i32) {
    %c0_i32 = arith.constant 0 : i32
    %c0_i32_0 = arith.constant 0 : i32
    %c0_i32_1 = arith.constant 0 : i32
    return %c0_i32, %c0_i32_0 : i32, i32
  }
  func.func @transform_8(%arg0: i32, %arg1: memref<2xi32, #tpu.memory_space<smem>>) -> (i32, i32) {
    %c0_i32 = arith.constant 0 : i32
    %c0_i32_0 = arith.constant 0 : i32
    %c0_i32_1 = arith.constant 0 : i32
    return %c0_i32, %c0_i32_0 : i32, i32
  }
  func.func @transform_9(%arg0: i32, %arg1: memref<2xi32, #tpu.memory_space<smem>>) -> (i32, i32) {
    %c0_i32 = arith.constant 0 : i32
    %c0_i32_0 = arith.constant 0 : i32
    %c0_i32_1 = arith.constant 0 : i32
    return %c0_i32, %c0_i32_0 : i32, i32
  }
  func.func @transform_10(%arg0: i32, %arg1: memref<2xi32, #tpu.memory_space<smem>>) -> (i32, i32) {
    %c0_i32 = arith.constant 0 : i32
    %c0_i32_0 = arith.constant 0 : i32
    %c0_i32_1 = arith.constant 0 : i32
    return %c0_i32, %c0_i32_0 : i32, i32
  }
  func.func @transform_11(%arg0: i32, %arg1: memref<2xi32, #tpu.memory_space<smem>>) -> (i32, i32) {
    %c0_i32 = arith.constant 0 : i32
    %c0_i32_0 = arith.constant 0 : i32
    %c0_i32_1 = arith.constant 0 : i32
    return %c0_i32, %c0_i32_0 : i32, i32
  }
  func.func @transform_12(%arg0: i32, %arg1: memref<2xi32, #tpu.memory_space<smem>>) -> (i32, i32) {
    %c0_i32 = arith.constant 0 : i32
    %c0_i32_0 = arith.constant 0 : i32
    %c0_i32_1 = arith.constant 0 : i32
    return %c0_i32, %c0_i32_0 : i32, i32
  }
  func.func @transform_13(%arg0: i32, %arg1: memref<2xi32, #tpu.memory_space<smem>>) -> (i32, i32) {
    %c0_i32 = arith.constant 0 : i32
    %c0_i32_0 = arith.constant 0 : i32
    %c0_i32_1 = arith.constant 0 : i32
    return %c0_i32, %c0_i32_0 : i32, i32
  }
  func.func @transform_14(%arg0: i32, %arg1: memref<2xi32, #tpu.memory_space<smem>>) -> (i32, i32) {
    %c0_i32 = arith.constant 0 : i32
    %c0_i32_0 = arith.constant 0 : i32
    %c0_i32_1 = arith.constant 0 : i32
    return %c0_i32, %c0_i32_0 : i32, i32
  }
  func.func @transform_15(%arg0: i32, %arg1: memref<2xi32, #tpu.memory_space<smem>>) -> (i32, i32) {
    %c0_i32 = arith.constant 0 : i32
    %c0_i32_0 = arith.constant 0 : i32
    %c0_i32_1 = arith.constant 0 : i32
    return %c0_i32, %c0_i32_0 : i32, i32
  }
  func.func @transform_16(%arg0: i32, %arg1: memref<2xi32, #tpu.memory_space<smem>>) -> (i32, i32) {
    %c0_i32 = arith.constant 0 : i32
    %c0_i32_0 = arith.constant 0 : i32
    return %arg0, %c0_i32 : i32, i32
  }
}

</mosaic_0001>

<bundles_post_ra>
// kernel: tpu_custom_call.1
= control target key start
LH: loop header
LB: loop body
LE: loop exit
PB: predicated region body
PF: predicated region fallthrough
CT: control target
= control target key end

     0   :  { %s4694_s0 = inlined_call_operand.hbm [shape: s32[2], index: 0, kind: input, shape index: {}]   ;;  %s4695_s1 = inlined_call_operand.vmem [shape: f32[32,32], index: 1, kind: input, shape index: {}]   ;;  %s4696_s2 = inlined_call_operand.hbm [shape: f32[1,32], index: 2, kind: input, shape index: {}]   ;;  %s4697_s3 = inlined_call_operand.hbm [shape: f32[1,32], index: 3, kind: input, shape index: {}]   ;;  %s4698_s4 = inlined_call_operand.hbm [shape: f32[1,32], index: 4, kind: input, shape index: {}]   ;;  %s4699_s5 = inlined_call_operand.hbm [shape: f32[1,32], index: 5, kind: input, shape index: {}]   ;;  %s4700_s6 = inlined_call_operand.vmem [shape: bf16[32,32], index: 6, kind: input, shape index: {}]   ;;  %s4701_s7 = inlined_call_operand.vmem [shape: bf16[32,32], index: 7, kind: input, shape index: {}]   ;;  %s4702_s8 = inlined_call_operand.vmem [shape: bf16[32,32], index: 8, kind: input, shape index: {}]   ;;  %s4703_s9 = inlined_call_operand.vmem [shape: f32[4,4], index: 9, kind: input, shape index: {}]   ;;  %s4704_s10 = inlined_call_operand.vmem [shape: f32[4,4], index: 10, kind: input, shape index: {}]   ;;  %s4705_s11 = inlined_call_operand.vmem [shape: bf16[32,32], index: 11, kind: input, shape index: {}]   ;;  %s4706_s12 = inlined_call_operand.hbm [shape: f32[1,32], index: 12, kind: input, shape index: {}]   ;;  %s4707_s13 = inlined_call_operand.vmem [shape: bf16[96,128], index: 13, kind: input, shape index: {}]   ;;  %s4708_s14 = inlined_call_operand.hbm [shape: f32[1,128], index: 14, kind: input, shape index: {}]   ;;  %s4709_s15 = inlined_call_operand.vmem [shape: bf16[192,32], index: 15, kind: input, shape index: {}]   ;;  %s4710_s16 = inlined_call_operand.vmem [shape: f32[1,32], index: 16, kind: input, shape index: {}]   ;;  %s4711_s17 = inlined_call_operand.hbm [shape: f32[32,32], index: 17, kind: output, shape index: {}]  }
   0x1   :  { %4721 = sst [smem:[#allocation31_spill]] %s4694_s0 }
   0x2   :  { %4722 = sst [smem:[#allocation32_spill]] %s4695_s1  ;;  %s4724_s26 = sld [smem:[#allocation31_spill]] }
   0x3   :  { %4723 = sst [smem:[#allocation33_spill]] %s4705_s11 }
   0x8   :  { %s3262_s11 = scalar_lea.hbm %s4724_s26, 16 }
   0x9   :  { %p3263_p0 = scmp.ne.s32.totalorder %s4724_s26, %s3262_s11  ;;  %p3266_p1 = scmp.lt.u32.totalorder %s3262_s11, %s4724_s26 }
   0xb   :  { %p3268_p2 = pnand %p3266_p1, %p3263_p0 }
   0xd   :  { %3271 = shalt.err (!%p3268_p2)  }
   0xe   :  { %s3468_s30 = smov [#allocation3]  }
   0xf   :  { %23 = dma.hbm_to_smem %s4724_s26, 16, %s3468_s30, [#allocation2] }
  0x10   :  { %3450 = dma.done.wait [#allocation2], 16 }
  0x11   :  { %3451 = vsyncadd [#allocation2], 4294967280 }
  0x12   :  { %25 = sfence }
  0x13   :  { %26 = vsyncpa [#allocation5], 0 }
  0x14   :  { %27 = vsyncpa [#allocation9], 0 }
  0x15   :  { %28 = vsyncpa [#allocation12], 0 }
  0x16   :  { %29 = vsyncpa [#allocation7], 0 }
  0x17   :  { %30 = vsyncpa [#allocation15], 0 }
  0x18   :  { %31 = vsyncpa [#allocation18], 0 }
  0x19   :  { %32 = vsyncpa [#allocation6], 0  ;;  %s3469_s1 = smov [#allocation8]   ;;  %s3470_s11 = smov [#allocation11]  }
  0x1a   :  { %s51_s20 = sshll.u32 %s3469_s1, 4  ;;  %s71_s21 = sshll.u32 %s3470_s11, 4  ;;  %s52_s20 = int_to_ptr.vmem [resolvable:$true] %s51_s20  ;;  %s72_s21 = int_to_ptr.vmem [resolvable:$true] %s71_s21 }
  0x1b   :  { %s3272_s24 = scalar_lea.hbm %s4697_s3, 16 }
  0x1c   :  { %p3273_p3 = scmp.ne.s32.totalorder %s4697_s3, %s3272_s24  ;;  %p3276_p4 = scmp.lt.u32.totalorder %s3272_s24, %s4697_s3 }
  0x1e   :  { %p3278_p5 = pnand %p3276_p4, %p3273_p3 }
  0x20   :  { %3281 = shalt.err (!%p3278_p5)
}
  0x21   :  { %s3282_s29 = scalar_lea.vmem %s52_s20, 16  ;;  %s3286_s0 = scalar_lea.vmem %s52_s20, 32 }
  0x22   :  { %p3283_p6 = scmp.ne.s32.totalorder %s52_s20, %s3282_s29  ;;  %p3287_p7 = scmp.lt.s32.totalorder %s52_s20, %s52_s20 }
  0x23   :  { %p3288_p8 = scmp.lt.s32.totalorder %s3286_s0, %s3282_s29 }
  0x25   :  { %p3289_p9 = por %p3288_p8, %p3287_p7 }
  0x27   :  { %p3290_p10 = pnand %p3289_p9, %p3283_p6 }
  0x29   :  { %3293 = shalt.err (!%p3290_p10)
}
  0x2a   :  { %54 = dma.hbm_to_vmem [thread:$0]  %s4697_s3, 16, %s52_s20, [#allocation9]  }
  0x2b   :  { %s3294_s11 = scalar_lea.hbm %s4699_s5, 16 }
  0x2c   :  { %p3295_p11 = scmp.ne.s32.totalorder %s4699_s5, %s3294_s11  ;;  %p3298_p12 = scmp.lt.u32.totalorder %s3294_s11, %s4699_s5 }
  0x2e   :  { %p3300_p13 = pnand %p3298_p12, %p3295_p11 }
  0x30   :  { %3303 = shalt.err (!%p3300_p13)
}
  0x31   :  { %s3304_s26 = scalar_lea.vmem %s72_s21, 16  ;;  %s3308_s27 = scalar_lea.vmem %s72_s21, 32 }
  0x32   :  { %p3305_p0 = scmp.ne.s32.totalorder %s72_s21, %s3304_s26  ;;  %p3309_p1 = scmp.lt.s32.totalorder %s72_s21, %s72_s21 }
  0x33   :  { %p3310_p2 = scmp.lt.s32.totalorder %s3308_s27, %s3304_s26 }
  0x35   :  { %p3311_p3 = por %p3310_p2, %p3309_p1 }
  0x37   :  { %p3312_p4 = pnand %p3311_p3, %p3305_p0 }
  0x39   :  { %3315 = shalt.err (!%p3312_p4)
}
  0x3a   :  { %74 = dma.hbm_to_vmem [thread:$0]  %s4699_s5, 16, %s72_s21, [#allocation12]  }
  0x3b   :  { %s3471_s28 = smov [#allocation4]   ;;  %s3472_s0 = smov [#allocation10]  }
  0x3c   :  { %s41_s29 = sshll.u32 %s3471_s28, 4  ;;  %s61_s30 = sshll.u32 %s3472_s0, 4  ;;  %s42_s29 = int_to_ptr.vmem [resolvable:$true] %s41_s29  ;;  %s62_s30 = int_to_ptr.vmem [resolvable:$true] %s61_s30 }
  0x3d   :  { %s3316_s1 = scalar_lea.hbm %s4696_s2, 16 }
  0x3e   :  { %p3317_p5 = scmp.ne.s32.totalorder %s4696_s2, %s3316_s1  ;;  %p3320_p6 = scmp.lt.u32.totalorder %s3316_s1, %s4696_s2 }
  0x40   :  { %p3322_p7 = pnand %p3320_p6, %p3317_p5 }
  0x42   :  { %3325 = shalt.err (!%p3322_p7)
}
  0x43   :  { %s3326_s5 = scalar_lea.vmem %s42_s29, 16  ;;  %s3330_s21 = scalar_lea.vmem %s42_s29, 32 }
  0x44   :  { %p3327_p8 = scmp.ne.s32.totalorder %s42_s29, %s3326_s5  ;;  %p3331_p9 = scmp.lt.s32.totalorder %s42_s29, %s42_s29 }
  0x45   :  { %p3332_p10 = scmp.lt.s32.totalorder %s3330_s21, %s3326_s5 }
  0x47   :  { %p3333_p11 = por %p3332_p10, %p3331_p9 }
  0x49   :  { %p3334_p12 = pnand %p3333_p11, %p3327_p8 }
  0x4b   :  { %3337 = shalt.err (!%p3334_p12)
}
  0x4c   :  { %44 = dma.hbm_to_vmem [thread:$0]  %s4696_s2, 16, %s42_s29, [#allocation5]  }
  0x4d   :  { %s3338_s20 = scalar_lea.hbm %s4698_s4, 16 }
  0x4e   :  { %p3339_p13 = scmp.ne.s32.totalorder %s4698_s4, %s3338_s20  ;;  %p3342_p0 = scmp.lt.u32.totalorder %s3338_s20, %s4698_s4 }
  0x50   :  { %p3344_p1 = pnand %p3342_p0, %p3339_p13 }
  0x52   :  { %3347 = shalt.err (!%p3344_p1)
}
  0x53   :  { %s3348_s1 = scalar_lea.vmem %s62_s30, 16  ;;  %s3352_s11 = scalar_lea.vmem %s62_s30, 32 }
  0x54   :  { %p3349_p2 = scmp.ne.s32.totalorder %s62_s30, %s3348_s1  ;;  %p3353_p3 = scmp.lt.s32.totalorder %s62_s30, %s62_s30 }
  0x55   :  { %p3354_p4 = scmp.lt.s32.totalorder %s3352_s11, %s3348_s1 }
  0x57   :  { %p3355_p5 = por %p3354_p4, %p3353_p3 }
  0x59   :  { %p3356_p6 = pnand %p3355_p5, %p3349_p2 }
  0x5b   :  { %3359 = shalt.err (!%p3356_p6)
}
  0x5c   :  { %64 = dma.hbm_to_vmem [thread:$0]  %s4698_s4, 16, %s62_s30, [#allocation9]  }
  0x5d   :  { %s87_s24 = sshll.u32 %s4703_s9, 4  ;;  %s97_s25 = sshll.u32 %s4704_s10, 4  ;;  %s88_s24 = int_to_ptr.vmem [resolvable:$true] %s87_s24  ;;  %s98_s25 = int_to_ptr.vmem [resolvable:$true] %s97_s25 }
  0x5e   :  { %s3360_s26 = scalar_lea.vmem %s88_s24, 64  ;;  %p3365_p8 = scmp.lt.s32.totalorder %s88_s24, %s88_s24 }
  0x5f   :  { %p3361_p7 = scmp.ne.s32.totalorder %s88_s24, %s3360_s26  ;;  %p3366_p9 = scmp.lt.s32.totalorder %s3360_s26, %s3360_s26 }
  0x61   :  { %p3367_p10 = por %p3366_p9, %p3365_p8 }
  0x63   :  { %p3368_p11 = pnand %p3367_p10, %p3361_p7 }
  0x65   :  { %3371 = shalt.err (!%p3368_p11)
}
  0x66   :  { %s3473_s27 = smov [#allocation13]   ;;  %s3372_s4 = scalar_lea.vmem %s98_s25, 64 }
  0x67   :  { %90 = dma.vmem_to_smem %s88_s24, 64, %s3473_s27, [#allocation7]  }
  0x68   :  { %p3373_p12 = scmp.ne.s32.totalorder %s98_s25, %s3372_s4  ;;  %p3377_p13 = scmp.lt.s32.totalorder %s98_s25, %s98_s25 }
  0x69   :  { %p3378_p0 = scmp.lt.s32.totalorder %s3372_s4, %s3372_s4 }
  0x6b   :  { %p3379_p1 = por %p3378_p0, %p3377_p13 }
  0x6d   :  { %p3380_p2 = pnand %p3379_p1, %p3373_p12 }
  0x6f   :  { %3383 = shalt.err (!%p3380_p2)
}
  0x70   :  { %s3474_s9 = smov [#allocation14]   ;;  %s3475_s10 = smov [#allocation16]  }
  0x71   :  { %100 = dma.vmem_to_smem %s98_s25, 64, %s3474_s9, [#allocation15]  }
  0x72   :  { %s109_s30 = sshll.u32 %s3475_s10, 4  ;;  %s3476_s3 = smov [#allocation17]   ;;  %s110_s30 = int_to_ptr.vmem [resolvable:$true] %s109_s30 }
  0x73   :  { %s121_s20 = sshll.u32 %s3476_s3, 4  ;;  %s3384_s18 = scalar_lea.hbm %s4706_s12, 16  ;;  %s122_s20 = int_to_ptr.vmem [resolvable:$true] %s121_s20 }
  0x74   :  { %p3385_p3 = scmp.ne.s32.totalorder %s4706_s12, %s3384_s18  ;;  %p3388_p4 = scmp.lt.u32.totalorder %s3384_s18, %s4706_s12 }
  0x76   :  { %p3390_p5 = pnand %p3388_p4, %p3385_p3 }
  0x78   :  { %3393 = shalt.err (!%p3390_p5)
}
  0x79   :  { %s3394_s29 = scalar_lea.vmem %s110_s30, 16  ;;  %s3398_s22 = scalar_lea.vmem %s110_s30, 32 }
  0x7a   :  { %p3395_p6 = scmp.ne.s32.totalorder %s110_s30, %s3394_s29  ;;  %p3399_p7 = scmp.lt.s32.totalorder %s110_s30, %s110_s30 }
  0x7b   :  { %p3400_p8 = scmp.lt.s32.totalorder %s3398_s22, %s3394_s29 }
  0x7d   :  { %p3401_p9 = por %p3400_p8, %p3399_p7 }
  0x7f   :  { %p3402_p10 = pnand %p3401_p9, %p3395_p6 }
  0x81   :  { %3405 = shalt.err (!%p3402_p10)
}
  0x82   :  { %112 = dma.hbm_to_vmem [thread:$0]  %s4706_s12, 16, %s110_s30, [#allocation12]  }
  0x83   :  { %s3406_s25 = scalar_lea.hbm %s4708_s14, 16 }
  0x84   :  { %p3407_p11 = scmp.ne.s32.totalorder %s4708_s14, %s3406_s25  ;;  %p3410_p12 = scmp.lt.u32.totalorder %s3406_s25, %s4708_s14 }
  0x86   :  { %p3412_p13 = pnand %p3410_p12, %p3407_p11 }
  0x88   :  { %3415 = shalt.err (!%p3412_p13)
}
  0x89   :  { %s3416_s10 = scalar_lea.vmem %s122_s20, 16  ;;  %s3420_s3 = scalar_lea.vmem %s122_s20, 32 }
  0x8a   :  { %p3417_p0 = scmp.ne.s32.totalorder %s122_s20, %s3416_s10  ;;  %p3421_p1 = scmp.lt.s32.totalorder %s122_s20, %s122_s20 }
  0x8b   :  { %p3422_p2 = scmp.lt.s32.totalorder %s3420_s3, %s3416_s10 }
  0x8d   :  { %p3423_p3 = por %p3422_p2, %p3421_p1 }
  0x8f   :  { %p3424_p4 = pnand %p3423_p3, %p3417_p0 }
  0x91   :  { %3427 = shalt.err (!%p3424_p4)
}
  0x92   :  { %124 = dma.hbm_to_vmem [thread:$0]  %s4708_s14, 16, %s122_s20, [#allocation18]  }
  0x93   :  { %3452 = dma.done.wait [#allocation5], 16  }
  0x94   :  { %3453 = vsyncadd [#allocation5], 4294967280 }
  0x95   :  { %3454 = dma.done.wait [#allocation9], 32  }
  0x96   :  { %3455 = vsyncadd [#allocation9], 4294967264 }
  0x97   :  { %3456 = dma.done.wait [#allocation12], 16  }
  0x98   :  { %3457 = vsyncadd [#allocation12], 4294967280 }
  0x99   :  { %3458 = dma.done.wait [#allocation7], 64  }
  0x9a   :  { %3459 = vsyncadd [#allocation7], 4294967232 }
  0x9b   :  { %3460 = dma.done.wait [#allocation15], 64  }
  0x9c   :  { %3461 = vsyncadd [#allocation15], 4294967232 }
  0x9d   :  { %3462 = dma.done.wait [#allocation12], 16  }
  0x9e   :  { %3463 = vsyncadd [#allocation12], 4294967280 }
  0x9f   :  { %3464 = dma.done.wait [#allocation18], 16  }
  0xa0   :  { %3465 = vsyncadd [#allocation18], 4294967280 }
  0xa1   :  { %153 = sfence }
  0xa2   :  { %s4725_s18 = sld [smem:[#allocation32_spill]]  ;;  %vm159_vm0 = vcmask 261120   ;;  %v3136_v28 = vld [vmem:[%s4700_s6] sm:$0xff]   ;;  %v3137_v29 = vld [vmem:[%s4700_s6 + $0x8] sm:$0xff]   ;;  %vm3478_vm1 = vmmov 0   ;;  %vm582_vm2 = vcmask 64512  }
  0xa3   :  { %2797 = vmatprep.subr.bf16.mxu0 %v3136_v28  ;;  %v3138_v30 = vld [vmem:[%s4701_s7] sm:$0xff]   ;;  %v3139_v63 = vld [vmem:[%s4701_s7 + $0x8] sm:$0xff]   ;;  %s3479_s7 = smov 120   ;;  %s3481_s10 = smov 104   ;;  %vm1094_vm4 = vcmask 130048   ;;  %vm1881_vm6 = vcmask 195584  }
  0xa4   :  { %2798 = vmatpush3.bf16.msra.mxu0 %v3136_v28  ;;  %v2640_v45 = vld [vmem:[#allocation4] ss:$0 sm:$0xff]  ;;  %v2641_v51 = vld [vmem:[#allocation8] ss:$0 sm:$0xff]  ;;  %s994_s3 = sld [smem:[#allocation13]]  ;;  %s2664_s0 = sld [smem:[#allocation13 + $0x1]] }
  0xa5   :  { %2799 = vmatprep.subr.bf16.mxu0 %v3137_v29  ;;  %s2667_s12 = sld [smem:[#allocation13 + $0x80]]  ;;  %s2668_s14 = sld [smem:[#allocation13 + $0x81]]  ;;  %vm2118_vm13 = vcmask 1040384   ;;  %vm2154_vm14 = vcmask 1046528   ;;  %vm2224_vm15 = vcmask 523264  }
  0xa6   :  { %s2671_s30 = sld [smem:[#allocation13 + $0x100]]  ;;  %s2672_s20 = sld [smem:[#allocation13 + $0x101]] }
  0xa7   :  { %s2675_s28 = sld [smem:[#allocation13 + $0x180]]  ;;  %s2676_s19 = sld [smem:[#allocation13 + $0x181]] }
  0xa8   :  { %v155_v0 = vld [vmem:[%s4725_s18] sm:$0xff]  ;;  %v157_v1 = vld [vmem:[%s4725_s18 + $0x10] sm:$0xff]  ;;  %v156_v2 = vld [vmem:[%s4725_s18 + $0x8] sm:$0xff]  ;;  %2800 = vmatpush3.bf16.msra.mxu0 %v3137_v29  ;;  %s2665_s1 = sld [smem:[#allocation13 + $0x2]]  ;;  %s2666_s22 = sld [smem:[#allocation13 + $0x3]] }
  0xa9   :  { %v160_v3 = vsel %vm159_vm0, %v155_v0, 0.0  ;;  %v166_v4 = vsel %vm159_vm0, %v157_v1, 0.0  ;;  %v158_v5 = vld [vmem:[%s4725_s18 + $0x18] sm:$0xff]  ;;  %v163_v6 = vsel %vm159_vm0, %v156_v2, 0.0  ;;  %2805 = vmatprep.subr.bf16.mxu0 %v3138_v30  ;;  %s2669_s11 = sld [smem:[#allocation13 + $0x82]]  ;;  %s3829_s23 = sld [smem:[#allocation13 + $0x83]] }
  0xaa   :  { %161 = vadd.xlane.f32.xlu0 %v160_v3  ;;  %167 = vadd.xlane.f32.xlu1 %v166_v4  ;;  %v169_v7 = vsel %vm159_vm0, %v158_v5, 0.0  ;;  %s2673_s2 = sld [smem:[#allocation13 + $0x102]]  ;;  %s3833_s24 = sld [smem:[#allocation13 + $0x103]] }
  0xab   :  { %s2677_s29 = sld [smem:[#allocation13 + $0x182]]  ;;  %s3839_s5 = sld [smem:[#allocation3]] }
  0xac   :  { %s3892_s21 = sld [smem:[#allocation13 + $0x183]]  ;;  %s3902_s6 = sld [smem:[#allocation3 + $0x1]] }
  0xad   :  { %s1183_s25 = sld [smem:[#allocation14]]  ;;  %s2679_s9 = sld [smem:[#allocation14 + $0x1]] }
  0xae   :  { %164 = vadd.xlane.f32.xlu0 %v163_v6  ;;  %170 = vadd.xlane.f32.xlu1 %v169_v7  ;;  %s2682_s26 = sld [smem:[#allocation14 + $0x80]] }
  0xaf   :  { %s2686_s27 = sld [smem:[#allocation14 + $0x100]] }
  0xb0   :  { %s2690_s4 = sld [smem:[#allocation14 + $0x180]] }
 0x137   :  { %v162_v8 = vpop.xlane.xlu0 %161  ;;  %v168_v9 = vpop.xlane.xlu1 %167 }
 0x138   :  { %v173_v10 = vmul.f32 0.03125, %v162_v8  ;;  %v175_v11 = vmul.f32 0.03125, %v168_v9 }
 0x13a   :  { %v177_v12 = vsub.f32 %v155_v0, %v173_v10  ;;  %v179_v13 = vsub.f32 %v157_v1, %v175_v11  ;;  %v3140_v0 = vld [vmem:[%s4702_s8] sm:$0xff]   ;;  %v3141_v1 = vld [vmem:[%s4702_s8 + $0x8] sm:$0xff]   ;;  %s3480_s8 = smov 112  }
 0x13b   :  { %v165_v14 = vpop.xlane.xlu0 %164  ;;  %v171_v15 = vpop.xlane.xlu1 %170 }
 0x13c   :  { %v174_v16 = vmul.f32 0.03125, %v165_v14  ;;  %v176_v17 = vmul.f32 0.03125, %v171_v15  ;;  %v181_v18 = vmul.f32 %v177_v12, %v177_v12  ;;  %v183_v19 = vmul.f32 %v179_v13, %v179_v13 }
 0x13e   :  { %v178_v20 = vsub.f32 %v156_v2, %v174_v16  ;;  %v180_v21 = vsub.f32 %v158_v5, %v176_v17  ;;  %v185_v22 = vsel %vm159_vm0, %v181_v18, 0.0  ;;  %v191_v23 = vsel %vm159_vm0, %v183_v19, 0.0 }
 0x13f   :  { %186 = vadd.xlane.f32.xlu0 %v185_v22  ;;  %v4715_v2 = vmov 0.0  }
 0x140   :  { %v182_v24 = vmul.f32 %v178_v20, %v178_v20  ;;  %v184_v25 = vmul.f32 %v180_v21, %v180_v21  ;;  %2833 = vmatprep.subr.bf16.mxu1 %v4715_v2  ;;  %2835 = vmatprep.mubr.msk.bf16.mxu1 %vm3478_vm1, %v4715_v2 }
 0x142   :  { %v188_v26 = vsel %vm159_vm0, %v182_v24, 0.0  ;;  %v194_v27 = vsel %vm159_vm0, %v184_v25, 0.0 }
 0x143   :  { %192 = vadd.xlane.f32.xlu0 %v191_v23  ;;  %189 = vadd.xlane.f32.xlu1 %v188_v26 }
 0x147   :  { %195 = vadd.xlane.f32.xlu1 %v194_v27 }
 0x1cc   :  { %v187_v31 = vpop.xlane.xlu0 %186 }
 0x1cd   :  { %v197_v32 = vmul.f32 0.03125, %v187_v31 }
 0x1cf   :  { %v201_v33 = vadd.f32 1e-05, %v197_v32 }
 0x1d0   :  { %v190_v34 = vpop.xlane.xlu1 %189  ;;  %v193_v35 = vpop.xlane.xlu0 %192 }
 0x1d1   :  { %3162 = vrsqrt.f32 %v201_v33  ;;  %v198_v36 = vmul.f32 0.03125, %v190_v34  ;;  %v199_v37 = vmul.f32 0.03125, %v193_v35 }
 0x1d3   :  { %v202_v38 = vadd.f32 1e-05, %v198_v36  ;;  %v203_v39 = vadd.f32 1e-05, %v199_v37 }
 0x1d4   :  { %v196_v40 = vpop.xlane.xlu1 %195 }
 0x1d5   :  { %3164 = vrsqrt.f32 %v202_v38  ;;  %v200_v41 = vmul.f32 0.03125, %v196_v40 }
 0x1d6   :  { %3166 = vrsqrt.f32 %v203_v39 }
 0x1d7   :  { %v204_v42 = vadd.f32 1e-05, %v200_v41 }
 0x1d9   :  { %3168 = vrsqrt.f32 %v204_v42 }
 0x1db   :  { %v3163_v43 = vpop.eup %3162 }
 0x1dc   :  { %v209_v44 = vmul.f32 %v3163_v43, %v177_v12 }
 0x1de   :  { %v220_v49 = vmul.f32 %v2640_v45, %v209_v44 }
 0x1df   :  { %v3165_v46 = vpop.eup %3164 }
 0x1e0   :  { %v3167_v47 = vpop.eup %3166  ;;  %v210_v48 = vmul.f32 %v3165_v46, %v178_v20  ;;  %v231_v55 = vadd.f32 %v2641_v51, %v220_v49 }
 0x1e1   :  { %v211_v50 = vmul.f32 %v3167_v47, %v179_v13 }
 0x1e2   :  { %v221_v52 = vmul.f32 %v2640_v45, %v210_v48 }
 0x1e3   :  { %v3169_v53 = vpop.eup %3168  ;;  %v222_v57 = vmul.f32 %v2640_v45, %v211_v50 }
 0x1e4   :  { %v212_v54 = vmul.f32 %v3169_v53, %v180_v21  ;;  %v232_v56 = vadd.f32 %v2641_v51, %v221_v52 }
 0x1e5   :  { %v233_v60 = vadd.f32 %v2641_v51, %v222_v57 }
 0x1e6   :  { %v235_v58 = vpack.c.bf16 %v232_v56, %v231_v55  ;;  %v223_v59 = vmul.f32 %v2640_v45, %v212_v54 }
 0x1e8   :  { %2801 = vmatprep.mubr.msk.bf16.mxu0 %vm159_vm0, %v235_v58  ;;  %v234_v61 = vadd.f32 %v2641_v51, %v223_v59 }
 0x1ea   :  { %v236_v62 = vpack.c.bf16 %v234_v61, %v233_v60 }
 0x1ec   :  { %2802 = vmatmul.mubr.msk.bf16.vlgmr.msra.gmra.mrb[0].mxu0 %vm159_vm0, %v236_v62 }
 0x1ed   :  { %2806 = vmatpush3.bf16.msra.mxu0 %v3138_v30  ;;  %2809 = vmatprep.mubr.msk.bf16.mxu0 %vm159_vm0, %v235_v58 }
 0x1ee   :  { %2807 = vmatprep.subr.bf16.mxu0 %v3139_v63 }
 0x1f1   :  { %2808 = vmatpush3.bf16.msra.mxu0 %v3139_v63 }
 0x1f2   :  { %2813 = vmatprep.subr.bf16.mxu0 %v3140_v0 }
 0x1f4   :  { %2810 = vmatmul.mubr.msk.bf16.vlgmr.msra.gmra.mrb[4].mxu0 %vm159_vm0, %v236_v62 }
 0x1f5   :  { %2814 = vmatpush3.bf16.msra.mxu0 %v3140_v0  ;;  %2817 = vmatprep.mubr.msk.bf16.mxu0 %vm159_vm0, %v235_v58 }
 0x1f6   :  { %2815 = vmatprep.subr.bf16.mxu0 %v3141_v1 }
 0x1f9   :  { %2816 = vmatpush3.bf16.msra.mxu0 %v3141_v1 }
 0x1fa   :  { %2821 = vmatprep.subr.bf16.mxu0 %v4715_v2 }
 0x1fc   :  { %2818 = vmatmul.mubr.msk.bf16.vlgmr.msra.gmra.mrb[8].mxu0 %vm159_vm0, %v236_v62 }
 0x1fd   :  { %2823 = vmatprep.mubr.msk.bf16.mxu0 %vm3478_vm1, %v4715_v2 }
 0x2bf   :  { %v3721_v3 = vpop.f32.mrb[0].mxu0 }
 0x2c0   :  { %v293_v4 = vpop.f32.mrb[1].mxu0 }
 0x2c1   :  { %v3723_v5 = vpop.f32.mrb[2].mxu0 }
 0x2c2   :  { %v482_v6 = vpack.c.bf16 %v3723_v5, %v3721_v3  ;;  %v296_v7 = vpop.f32.mrb[3].mxu0  ;;  %v3004_v8 = vpack.i.bf16 %v3723_v5, %v3721_v3 }
 0x2c3   :  { %v478_v9 = vpack.c.bf16 %v296_v7, %v293_v4  ;;  %v2969_v10 = vpack.i.bf16 %v296_v7, %v293_v4 }
 0x2c5   :  { %2970 = vrot.lane.b32.xlu1 %v2969_v10, %s3479_s7 }
 0x2c7   :  { %v3730_v11 = vpop.f32.mrb[4].mxu0 }
 0x2c8   :  { %v358_v12 = vpop.f32.mrb[5].mxu0 }
 0x2c9   :  { %v3732_v13 = vpop.f32.mrb[6].mxu0 }
 0x2ca   :  { %v361_v14 = vpop.f32.mrb[7].mxu0  ;;  %v2994_v15 = vpack.i.bf16 %v3732_v13, %v3730_v11  ;;  %v530_v16 = vpack.c.bf16 %v3732_v13, %v3730_v11 }
 0x2cb   :  { %v2974_v17 = vpack.i.bf16 %v361_v14, %v358_v12  ;;  %v526_v18 = vpack.c.bf16 %v361_v14, %v358_v12 }
 0x2cc   :  { %v775_v54 = vsel %vm582_vm2, %v530_v16, 0 }
 0x2cd   :  { %2975 = vrot.lane.b32.xlu1 %v2974_v17, %s3480_s8  ;;  %2965 = vrot.lane.b32.xlu0 %v2974_v17, %s3479_s7  ;;  %v587_v19 = vsel %vm582_vm2, %v526_v18, 0 }
 0x2ce   :  { %2822 = vmatpush3.bf16.xpose.msra.mxu0 %v587_v19 }
 0x2cf   :  { %v3741_v20 = vpop.f32.mrb[8].mxu0  ;;  %2827 = vmatprep.subr.bf16.mxu0 %v4715_v2 }
 0x2d0   :  { %v3744_v21 = vpop.f32.mrb[9].mxu0 }
 0x2d1   :  { %2980 = vrot.lane.b32.xlu1 %v2974_v17, %s3481_s10  ;;  %2985 = vrot.lane.b32.xlu0 %v2969_v10, %s3480_s8  ;;  %v3748_v22 = vpop.f32.mrb[10].mxu0 }
 0x2d2   :  { %v3752_v24 = vpop.f32.mrb[11].mxu0  ;;  %v3756_v25 = vpack.i.bf16 %v3748_v22, %v3741_v20 }
 0x2d3   :  { %v574_v26 = vpack.c.bf16 %v3752_v24, %v3744_v21  ;;  %v3762_v27 = vpack.i.bf16 %v3752_v24, %v3744_v21 }
 0x2d5   :  { %2990 = vrot.lane.b32.xlu1 %v2969_v10, %s3481_s10  ;;  %2995 = vrot.lane.b32.xlu0 %v2994_v15, %s3479_s7 }
 0x2d6   :  { %2824 = vmatmul.mubr.msk.bf16.vlgmr.msra.gmra.mrb[12].mxu0 %vm582_vm2, %v478_v9 }
 0x2d7   :  { %2829 = vmatprep.mubr.msk.bf16.mxu0 %vm3478_vm1, %v4715_v2 }
 0x2d9   :  { %3000 = vrot.lane.b32.xlu1 %v2994_v15, %s3480_s8  ;;  %3005 = vrot.lane.b32.xlu0 %v3004_v8, %s3479_s7 }
 0x2dd   :  { %3010 = vrot.lane.b32.xlu1 %v2994_v15, %s3481_s10  ;;  %3015 = vrot.lane.b32.xlu0 %v3004_v8, %s3480_s8 }
 0x2e1   :  { %3020 = vrot.lane.b32.xlu1 %v3004_v8, %s3481_s10 }
 0x337   :  { %v2971_v28 = vpop.permute.xlu1 %2970 }
 0x338   :  { %v2973_v43 = vunpack.i.h.bf16 %v2971_v28  ;;  %v2972_v44 = vunpack.i.l.bf16 %v2971_v28 }
 0x33a   :  { %v479_v50 = vpack.c.bf16 %v2973_v43, %v2972_v44 }
 0x33f   :  { %v2976_v29 = vpop.permute.xlu1 %2975  ;;  %v2966_v30 = vpop.permute.xlu0 %2965 }
 0x340   :  { %v2978_v31 = vunpack.i.h.bf16 %v2976_v29  ;;  %v2977_v32 = vunpack.i.l.bf16 %v2976_v29  ;;  %v2968_v33 = vunpack.i.h.bf16 %v2966_v30  ;;  %v2967_v34 = vunpack.i.l.bf16 %v2966_v30 }
 0x341   :  { %v959_v29 = vlaneseq }
 0x342   :  { %v527_v35 = vpack.c.bf16 %v2968_v33, %v2967_v34  ;;  %v528_v36 = vpack.c.bf16 %v2978_v31, %v2977_v32 }
 0x343   :  { %v2981_v37 = vpop.permute.xlu1 %2980  ;;  %v2986_v38 = vpop.permute.xlu0 %2985  ;;  %v3816_v30 = vshrl.u32 %v959_v29, 7  ;;  %v3818_v31 = vand.u32 127, %v959_v29 }
 0x344   :  { %v2983_v39 = vunpack.i.h.bf16 %v2981_v37  ;;  %v2982_v40 = vunpack.i.l.bf16 %v2981_v37  ;;  %v634_v41 = vsel %vm582_vm2, %v527_v35, 0  ;;  %v681_v42 = vsel %vm582_vm2, %v528_v36, 0 }
 0x345   :  { %2828 = vmatpush3.bf16.xpose.msra.mxu0 %v634_v41  ;;  %2834 = vmatpush3.bf16.xpose.msra.mxu1 %v681_v42  ;;  %v2988_v45 = vunpack.i.h.bf16 %v2986_v38  ;;  %v2987_v46 = vunpack.i.l.bf16 %v2986_v38  ;;  %4726 = vst [vmem:[#allocation29_spill] sm:$0xff] %v3816_v30  ;;  %v3821_v32 = vadd.s32 8, %v3816_v30  ;;  %v964_v33 = vsub.s32 %v3816_v30, %v3818_v31 }
 0x346   :  { %2839 = vmatprep.subr.bf16.mxu0 %v4715_v2  ;;  %2845 = vmatprep.subr.bf16.mxu1 %v4715_v2  ;;  %v529_v49 = vpack.c.bf16 %v2983_v39, %v2982_v40 }
 0x347   :  { %v2991_v47 = vpop.permute.xlu1 %2990  ;;  %v2996_v48 = vpop.permute.xlu0 %2995  ;;  %v480_v51 = vpack.c.bf16 %v2988_v45, %v2987_v46  ;;  %4727 = vst [vmem:[#allocation30_spill] sm:$0xff] %v3821_v32  ;;  %v965_v34 = vsub.s32 %v3821_v32, %v3818_v31  ;;  %v967_v35 = vsub.s32 0, %v964_v33  ;;  %v3835_v45 = vstv %s994_s3  ;;  %s2687_s3 = sld [smem:[#allocation14 + $0x101]] }
 0x348   :  { %v2998_v53 = vunpack.i.h.bf16 %v2996_v48  ;;  %v2997_v55 = vunpack.i.l.bf16 %v2996_v48  ;;  %v728_v58 = vsel %vm582_vm2, %v529_v49, 0  ;;  %v2993_v60 = vunpack.i.h.bf16 %v2991_v47 }
 0x349   :  { %v2992_v61 = vunpack.i.l.bf16 %v2991_v47  ;;  %v970_v36 = vsub.s32 0, %v965_v34  ;;  %v2662_v37 = vmin.u32 %v967_v35, %v964_v33  ;;  %v3837_v46 = vstv %s2667_s12  ;;  %s2680_s12 = sld [smem:[#allocation14 + $0x2]] }
 0x34a   :  { %v531_v62 = vpack.c.bf16 %v2998_v53, %v2997_v55  ;;  %v3842_v48 = vstv %s2671_s30  ;;  %v3844_v49 = vstv %s2675_s28  ;;  %s2688_s30 = sld [smem:[#allocation14 + $0x102]]  ;;  %s4216_s28 = sld [smem:[#allocation14 + $0x3]] }
 0x34b   :  { %v3001_v52 = vpop.permute.xlu1 %3000  ;;  %v3006_v59 = vpop.permute.xlu0 %3005  ;;  %v481_v1 = vpack.c.bf16 %v2993_v60, %v2992_v61  ;;  %v2663_v38 = vmin.u32 %v970_v36, %v965_v34  ;;  %v972_v39 = vcvt.s32.f32 %v2662_v37  ;;  %v3865_v60 = vstv %s2669_s11  ;;  %s3483_s11 = smov 16  }
 0x34c   :  { %v3003_v56 = vunpack.i.h.bf16 %v3001_v52  ;;  %v3002_v57 = vunpack.i.l.bf16 %v3001_v52  ;;  %2830 = vmatmul.mubr.msk.bf16.vlgmr.msra.gmra.mrb[16].mxu0 %vm582_vm2, %v479_v50  ;;  %2836 = vmatmul.mubr.msk.bf16.vlgmr.msra.gmra.mrb[0].mxu1 %vm582_vm2, %v480_v51  ;;  %v822_v9 = vsel %vm582_vm2, %v531_v62, 0  ;;  %v3008_v11 = vunpack.i.h.bf16 %v3006_v59 }
 0x34d   :  { %2840 = vmatpush3.bf16.xpose.msra.mxu0 %v728_v58  ;;  %2846 = vmatpush3.bf16.xpose.msra.mxu1 %v775_v54  ;;  %v3007_v12 = vunpack.i.l.bf16 %v3006_v59  ;;  %v973_v40 = vcvt.s32.f32 %v2663_v38  ;;  %v974_v41 = vsub.f32 0.0, %v972_v39  ;;  %v3848_v51 = vstv %s2664_s0  ;;  %s4218_s0 = sld [smem:[#allocation14 + $0x182]] }
 0x34e   :  { %2841 = vmatprep.mubr.msk.bf16.mxu0 %vm3478_vm1, %v4715_v2  ;;  %2847 = vmatprep.mubr.msk.bf16.mxu1 %vm3478_vm1, %v4715_v2  ;;  %v532_v63 = vpack.c.bf16 %v3003_v56, %v3002_v57  ;;  %v3857_v56 = vstv %s2668_s14  ;;  %v3859_v57 = vstv %s2672_s20  ;;  %v3861_v58 = vstv %s2676_s19  ;;  %s4220_s14 = sld [smem:[#allocation14 + $0x83]] }
 0x34f   :  { %2851 = vmatprep.subr.bf16.mxu0 %v4715_v2  ;;  %2857 = vmatprep.subr.bf16.mxu1 %v4715_v2  ;;  %v3011_v0 = vpop.permute.xlu1 %3010  ;;  %v3016_v4 = vpop.permute.xlu0 %3015  ;;  %v483_v5 = vpack.c.bf16 %v3008_v11, %v3007_v12  ;;  %v975_v42 = vsub.f32 0.0, %v973_v40  ;;  %v3827_v43 = vmul.f32 0.088388346, %v974_v41  ;;  %v3846_v50 = vmul.f32 0.044194173, %v974_v41  ;;  %s4222_s20 = sld [smem:[#allocation14 + $0x103]] }
 0x350   :  { %v3013_v7 = vunpack.i.h.bf16 %v3011_v0  ;;  %v3012_v8 = vunpack.i.l.bf16 %v3011_v0  ;;  %v869_v10 = vsel %vm582_vm2, %v532_v63, 0  ;;  %v3018_v13 = vunpack.i.h.bf16 %v3016_v4  ;;  %s4294_s19 = sld [smem:[#allocation14 + $0x183]] }
 0x351   :  { %v3017_v14 = vunpack.i.l.bf16 %v3016_v4  ;;  %v3831_v44 = vmul.f32 0.088388346, %v975_v42  ;;  %v3850_v52 = vmul.f32 0.022097087, %v974_v41  ;;  %v3852_v53 = vmul.f32 0.044194173, %v975_v42 }
 0x352   :  { %v533_v3 = vpack.c.bf16 %v3013_v7, %v3012_v8  ;;  %v3854_v54 = vmul.f32 0.022097087, %v975_v42  ;;  %v3863_v59 = vstv %s2665_s1  ;;  %v3867_v61 = vstv %s2673_s2  ;;  %s3482_s1 = smov 8   ;;  %s3484_s2 = smov 24  }
 0x353   :  { %v3021_v15 = vpop.permute.xlu1 %3020  ;;  %v3869_v62 = vstv %s2677_s29  ;;  %v3872_v0 = vmul.f32 0.011048543, %v974_v41  ;;  %v3876_v4 = vstv %s2666_s22  ;;  %v3882_v12 = vstv %s3829_s23  ;;  %s4734_s23 = sld [smem:[#allocation33_spill]]  ;;  %s3489_s22 = smov [#allocation19]  }
 0x354   :  { %2842 = vmatmul.mubr.msk.bf16.vlgmr.msra.gmra.mrb[20].mxu0 %vm582_vm2, %v481_v1  ;;  %2848 = vmatmul.mubr.msk.bf16.vlgmr.msra.gmra.mrb[4].mxu1 %vm582_vm2, %v482_v6  ;;  %v484_v6 = vpack.c.bf16 %v3018_v13, %v3017_v14  ;;  %v916_v16 = vsel %vm582_vm2, %v533_v3, 0  ;;  %v3023_v17 = vunpack.i.h.bf16 %v3021_v15  ;;  %v3022_v18 = vunpack.i.l.bf16 %v3021_v15 }
 0x355   :  { %2852 = vmatpush3.bf16.xpose.msra.mxu0 %v822_v9  ;;  %2858 = vmatpush3.bf16.xpose.msra.mxu1 %v869_v10  ;;  %v3874_v1 = vmul.f32 0.011048543, %v975_v42  ;;  %v3890_v15 = vstv %s3833_s24 }
 0x356   :  { %2853 = vmatprep.mubr.msk.bf16.mxu0 %vm3478_vm1, %v4715_v2  ;;  %2859 = vmatprep.mubr.msk.bf16.mxu1 %vm3478_vm1, %v4715_v2  ;;  %v485_v19 = vpack.c.bf16 %v3023_v17, %v3022_v18 }
 0x357   :  { %2863 = vmatprep.subr.bf16.mxu0 %v4715_v2  ;;  %2869 = vmatprep.subr.bf16.mxu1 %v4715_v2 }
 0x35c   :  { %2854 = vmatmul.mubr.msk.bf16.vlgmr.msra.gmra.mrb[24].mxu0 %vm582_vm2, %v483_v5  ;;  %2860 = vmatmul.mubr.msk.bf16.vlgmr.msra.gmra.mrb[8].mxu1 %vm582_vm2, %v484_v6 }
 0x35d   :  { %2864 = vmatpush3.bf16.xpose.msra.mxu0 %v916_v16  ;;  %2870 = vmatpush3.bf16.msra.mxu1 %v574_v26 }
 0x35e   :  { %2865 = vmatprep.mubr.msk.bf16.mxu0 %vm3478_vm1, %v4715_v2  ;;  %2871 = vmatprep.mubr.msk.bf16.mxu1 %vm3478_vm1, %v4715_v2 }
 0x35f   :  { %2881 = vmatprep.subr.bf16.mxu1 %v4715_v2  ;;  %2875 = vmatprep.subr.bf16.mxu0 %v4715_v2 }
 0x364   :  { %2866 = vmatmul.mubr.msk.bf16.vlgmr.msra.gmra.mrb[28].mxu0 %vm582_vm2, %v485_v19 }
 0x365   :  { %2877 = vmatprep.mubr.msk.bf16.mxu0 %vm3478_vm1, %v4715_v2 }
 0x3a9   :  { %v623_v21 = vpop.f32.mrb[12].mxu0 }
 0x3aa   :  { %v2825_v24 = vpop.f32.mrb[13].mxu0  ;;  %v986_v47 = vadd.f32 %v3827_v43, %v623_v21 }
 0x3ab   :  { %v626_v26 = vpop.f32.mrb[14].mxu0  ;;  %v1082_v24 = vstv %s3839_s5 }
 0x3ac   :  { %v2826_v28 = vpop.f32.mrb[15].mxu0  ;;  %v987_v55 = vadd.f32 %v3831_v44, %v626_v26  ;;  %v996_v63 = vmul.f32 %v3835_v45, %v986_v47  ;;  %v1018_v7 = vmul.f32 %v3837_v46, %v986_v47  ;;  %v1040_v8 = vmul.f32 %v3842_v48, %v986_v47 }
 0x3ad   :  { %v1062_v9 = vmul.f32 %v3844_v49, %v986_v47  ;;  %vm3928_vm3 = vcmp.lt.s32.totalorder %v3818_v31, %v1082_v24 }
 0x3ae   :  { %v997_v13 = vmul.f32 %v3835_v45, %v987_v55  ;;  %v1019_v16 = vmul.f32 %v3837_v46, %v987_v55  ;;  %v1041_v17 = vmul.f32 %v3842_v48, %v987_v55  ;;  %v1063_v18 = vmul.f32 %v3844_v49, %v987_v55 }
 0x41f   :  { %v670_v10 = vpop.f32.mrb[16].mxu0  ;;  %v717_v11 = vpop.f32.mrb[0].mxu1 }
 0x420   :  { %v988_v14 = vadd.f32 %v3846_v50, %v670_v10  ;;  %v3887_v3 = vadd.f32 %v3850_v52, %v717_v11  ;;  %v2831_v5 = vpop.f32.mrb[17].mxu0  ;;  %v2837_v6 = vpop.f32.mrb[1].mxu1 }
 0x421   :  { %v673_v19 = vpop.f32.mrb[18].mxu0  ;;  %v720_v21 = vpop.f32.mrb[2].mxu1 }
 0x422   :  { %v1000_v26 = vmul.f32 %v3848_v51, %v988_v14  ;;  %v1022_v28 = vmul.f32 %v3857_v56, %v988_v14  ;;  %v1044_v29 = vmul.f32 %v3859_v57, %v988_v14  ;;  %v1066_v33 = vmul.f32 %v3861_v58, %v988_v14  ;;  %v2832_v34 = vpop.f32.mrb[19].mxu0  ;;  %v2838_v35 = vpop.f32.mrb[3].mxu1 }
 0x423   :  { %v989_v36 = vadd.f32 %v3852_v53, %v673_v19  ;;  %v991_v37 = vadd.f32 %v3854_v54, %v720_v21  ;;  %v1006_v38 = vmul.f32 %v3863_v59, %v3887_v3  ;;  %v1028_v39 = vmul.f32 %v3865_v60, %v3887_v3 }
 0x424   :  { %v1002_v40 = vadd.f32 %v1000_v26, %v996_v63  ;;  %v1024_v41 = vadd.f32 %v1022_v28, %v1018_v7  ;;  %v1046_v42 = vadd.f32 %v1044_v29, %v1040_v8  ;;  %v1050_v47 = vmul.f32 %v3867_v61, %v3887_v3 }
 0x425   :  { %v1001_v55 = vmul.f32 %v3848_v51, %v989_v36  ;;  %v1023_v10 = vmul.f32 %v3857_v56, %v989_v36  ;;  %v1045_v11 = vmul.f32 %v3859_v57, %v989_v36  ;;  %v1067_v14 = vmul.f32 %v3861_v58, %v989_v36 }
 0x426   :  { %v1008_v5 = vadd.f32 %v1006_v38, %v1002_v40  ;;  %v1007_v6 = vmul.f32 %v3863_v59, %v991_v37  ;;  %v1030_v19 = vadd.f32 %v1028_v39, %v1024_v41  ;;  %v1051_v63 = vmul.f32 %v3867_v61, %v991_v37 }
 0x427   :  { %v764_v7 = vpop.f32.mrb[20].mxu0  ;;  %v811_v8 = vpop.f32.mrb[4].mxu1  ;;  %v1003_v21 = vadd.f32 %v1001_v55, %v997_v13  ;;  %v1047_v26 = vadd.f32 %v1045_v11, %v1041_v17  ;;  %v1052_v28 = vadd.f32 %v1050_v47, %v1046_v42  ;;  %v1069_v29 = vadd.f32 %v1067_v14, %v1063_v18 }
 0x428   :  { %v3919_v34 = vadd.f32 %v3872_v0, %v764_v7  ;;  %v3922_v35 = vadd.f32 %v3827_v43, %v811_v8  ;;  %v2843_v36 = vpop.f32.mrb[21].mxu0  ;;  %v2849_v38 = vpop.f32.mrb[5].mxu1  ;;  %v3925_v40 = vstv %s3892_s21  ;;  %v1025_v39 = vadd.f32 %v1023_v10, %v1019_v16 }
 0x429   :  { %v767_v41 = vpop.f32.mrb[22].mxu0  ;;  %v814_v23 = vpop.f32.mrb[6].mxu1  ;;  %v1009_v17 = vadd.f32 %v1007_v6, %v1003_v21  ;;  %v1053_v18 = vadd.f32 %v1051_v63, %v1047_v26  ;;  %v1068_v42 = vadd.f32 %v1066_v33, %v1062_v9  ;;  %v1073_v43 = vmul.f32 %v3869_v62, %v991_v37 }
 0x42a   :  { %v2844_v47 = vpop.f32.mrb[23].mxu0  ;;  %v2850_v55 = vpop.f32.mrb[7].mxu1  ;;  %v1029_v11 = vmul.f32 %v3865_v60, %v991_v37  ;;  %v1337_v14 = vstv %s3902_s6  ;;  %v993_v16 = vadd.f32 %v3874_v1, %v767_v41  ;;  %v1274_v10 = vadd.f32 %v3831_v44, %v814_v23 }
 0x42b   :  { %v1012_v24 = vmul.f32 %v3876_v4, %v3919_v34  ;;  %v1034_v6 = vmul.f32 %v3882_v12, %v3919_v34  ;;  %v1281_v9 = vmul.f32 %v3922_v35, %v3835_v45  ;;  %v1056_v33 = vmul.f32 %v3890_v15, %v3919_v34 }
 0x42c   :  { %v1075_v63 = vadd.f32 %v1073_v43, %v1069_v29  ;;  %v1031_v7 = vadd.f32 %v1029_v11, %v1025_v39  ;;  %v3947_v37 = vmul.f32 %v3922_v35, %v3837_v46  ;;  %v3951_v23 = vmul.f32 %v3922_v35, %v3842_v48 }
 0x42d   :  { %v1282_v44 = vmul.f32 %v1274_v10, %v3835_v45  ;;  %v1072_v8 = vmul.f32 %v3869_v62, %v3887_v3  ;;  %v1014_v21 = vadd.f32 %v1012_v24, %v1008_v5  ;;  %v1013_v26 = vmul.f32 %v3876_v4, %v993_v16 }
 0x42e   :  { %v1036_v36 = vadd.f32 %v1034_v6, %v1030_v19  ;;  %v1057_v29 = vmul.f32 %v3890_v15, %v993_v16  ;;  %v1296_v38 = vmul.f32 %v1274_v10, %v3837_v46  ;;  %v3960_v39 = vmul.f32 %v1274_v10, %v3842_v48 }
 0x42f   :  { %v858_v41 = vpop.f32.mrb[24].mxu0  ;;  %v905_v47 = vpop.f32.mrb[8].mxu1  ;;  %v1058_v55 = vadd.f32 %v1056_v33, %v1052_v28  ;;  %v1074_v43 = vadd.f32 %v1072_v8, %v1068_v42  ;;  %v3967_v3 = vsel %vm3928_vm3, %v1014_v21, -10000.0  ;;  %v1015_v19 = vadd.f32 %v1013_v26, %v1009_v17 }
 0x430   :  { %v3963_v45 = vadd.f32 %v3846_v50, %v858_v41  ;;  %v2861_v11 = vpop.f32.mrb[9].mxu1  ;;  %v2855_v5 = vpop.f32.mrb[25].mxu0  ;;  %v1079_v24 = vmul.f32 %v3925_v40, %v993_v16  ;;  %v3971_v46 = vmul.f32 %v1274_v10, %v3844_v49  ;;  %v1095_v48 = vsel %vm1094_vm4, %v3967_v3, -inf }
 0x431   :  { %v861_v28 = vpop.f32.mrb[26].mxu0  ;;  %v908_v42 = vpop.f32.mrb[10].mxu1  ;;  %v1059_v6 = vadd.f32 %v1057_v29, %v1053_v18  ;;  %v1035_v50 = vmul.f32 %v3882_v12, %v993_v16  ;;  %v3979_v8 = vadd.f32 %v3850_v52, %v905_v47  ;;  %1096 = vmax.xlane.f32.xlu0 %v1095_v48  ;;  %v3983_v10 = vsel %vm3928_vm3, %v1036_v36, -10000.0 }
 0x432   :  { %v1283_v33 = vmul.f32 %v3963_v45, %v3848_v51  ;;  %v2862_v17 = vpop.f32.mrb[11].mxu1  ;;  %v2856_v21 = vpop.f32.mrb[27].mxu0  ;;  %v3987_v26 = vsel %vm3928_vm3, %v1058_v55, -10000.0  ;;  %v1297_v18 = vmul.f32 %v3963_v45, %v3857_v56  ;;  %v1276_v16 = vadd.f32 %v3852_v53, %v861_v28 }
 0x433   :  { %v3993_v29 = vadd.f32 %v3854_v54, %v908_v42  ;;  %v3997_v52 = vsel %vm3928_vm3, %v1015_v19, -10000.0  ;;  %v1311_v36 = vmul.f32 %v3963_v45, %v3859_v57  ;;  %v4005_v47 = vsel %vm3928_vm3, %v1059_v6, -10000.0 }
 0x434   :  { %v1098_v41 = vsel %vm1094_vm4, %v3997_v52, -inf  ;;  %v1081_v55 = vadd.f32 %v1079_v24, %v1075_v63  ;;  %v1284_v53 = vmul.f32 %v1276_v16, %v3848_v51  ;;  %v1298_v54 = vmul.f32 %v1276_v16, %v3857_v56 }
 0x435   :  { %1099 = vmax.xlane.f32.xlu1 %v1098_v41  ;;  %v1101_v11 = vsel %vm1094_vm4, %v3983_v10, -inf  ;;  %v1107_v5 = vsel %vm1094_vm4, %v3987_v26, -inf  ;;  %v1312_v19 = vmul.f32 %v1276_v16, %v3859_v57  ;;  %v1110_v48 = vsel %vm1094_vm4, %v4005_v47, -inf }
 0x436   :  { %1102 = vmax.xlane.f32.xlu0 %v1101_v11  ;;  %v1037_v28 = vadd.f32 %v1035_v50, %v1031_v7  ;;  %v1078_v63 = vmul.f32 %v3925_v40, %v3919_v34  ;;  %vm4019_vm5 = vcmp.lt.s32.totalorder %v3818_v31, %v1337_v14  ;;  %v4025_v24 = vsel %vm3928_vm3, %v1081_v55, -10000.0 }
 0x437   :  { %v952_v56 = vpop.f32.mrb[28].mxu0  ;;  %v1286_v42 = vadd.f32 %v1284_v53, %v1282_v44  ;;  %v1288_v57 = vmul.f32 %v3993_v29, %v3863_v59  ;;  %v1285_v6 = vadd.f32 %v1283_v33, %v1281_v9  ;;  %v1287_v14 = vmul.f32 %v3979_v8, %v3863_v59 }
 0x438   :  { %v1279_v7 = vadd.f32 %v3872_v0, %v952_v56  ;;  %v2867_v50 = vpop.f32.mrb[29].mxu0  ;;  %v4032_v34 = vsel %vm3928_vm3, %v1037_v28, -10000.0  ;;  %v1080_v31 = vadd.f32 %v1078_v63, %v1074_v43  ;;  %v1326_v17 = vmul.f32 %v1276_v16, %v3861_v58 }
 0x439   :  { %1111 = vmax.xlane.f32.xlu1 %v1110_v48  ;;  %v955_v21 = vpop.f32.mrb[30].mxu0  ;;  %v1290_v44 = vadd.f32 %v1288_v57, %v1286_v42  ;;  %v1300_v41 = vadd.f32 %v1298_v54, %v1296_v38  ;;  %v1302_v9 = vmul.f32 %v3993_v29, %v3865_v60  ;;  %v1116_v33 = vsel %vm1094_vm4, %v4025_v24, -inf }
 0x43a   :  { %1108 = vmax.xlane.f32.xlu0 %v1107_v5  ;;  %v1280_v0 = vadd.f32 %v3874_v1, %v955_v21  ;;  %v2868_v55 = vpop.f32.mrb[31].mxu0  ;;  %v1289_v43 = vadd.f32 %v1287_v14, %v1285_v6  ;;  %v1291_v53 = vmul.f32 %v1279_v7, %v3876_v4  ;;  %v1104_v59 = vsel %vm1094_vm4, %v4032_v34, -inf }
 0x43b   :  { %v1304_v16 = vadd.f32 %v1302_v9, %v1300_v41  ;;  %v1299_v11 = vadd.f32 %v1297_v18, %v3947_v37  ;;  %v1301_v38 = vmul.f32 %v3979_v8, %v3865_v60  ;;  %v1305_v48 = vmul.f32 %v1279_v7, %v3882_v12 }
 0x43c   :  { %v1292_v54 = vmul.f32 %v1280_v0, %v3876_v4  ;;  %v1293_v5 = vadd.f32 %v1291_v53, %v1289_v43  ;;  %v1306_v1 = vmul.f32 %v1280_v0, %v3882_v12  ;;  %v1314_v63 = vadd.f32 %v1312_v19, %v3960_v39 }
 0x43d   :  { %1117 = vmax.xlane.f32.xlu1 %v1116_v33  ;;  %v1303_v28 = vadd.f32 %v1301_v38, %v1299_v11  ;;  %v1316_v56 = vmul.f32 %v3993_v29, %v3867_v61  ;;  %v1320_v42 = vmul.f32 %v1280_v0, %v3890_v15  ;;  %v4057_v60 = vsel %vm3928_vm3, %v1080_v31, -10000.0 }
 0x43e   :  { %1105 = vmax.xlane.f32.xlu0 %v1104_v59  ;;  %v1294_v4 = vadd.f32 %v1292_v54, %v1290_v44  ;;  %v1308_v37 = vadd.f32 %v1306_v1, %v1304_v16  ;;  %v1313_v18 = vadd.f32 %v1311_v36, %v3951_v23  ;;  %v1323_v12 = vmul.f32 %v3922_v35, %v3844_v49 }
 0x43f   :  { %v1325_v39 = vmul.f32 %v3963_v45, %v3861_v58  ;;  %v1307_v19 = vadd.f32 %v1305_v48, %v1303_v28  ;;  %v1318_v57 = vadd.f32 %v1316_v56, %v1314_v63  ;;  %v1315_v13 = vmul.f32 %v3979_v8, %v3867_v61 }
 0x440   :  { %v4066_v6 = vsel %vm4019_vm5, %v1294_v4, -10000.0  ;;  %v1319_v50 = vmul.f32 %v1279_v7, %v3890_v15  ;;  %v1328_v31 = vadd.f32 %v1326_v17, %v3971_v46  ;;  %v1113_v23 = vsel %vm1094_vm4, %v4057_v60, -inf }
 0x441   :  { %v1352_v49 = vsel %vm1094_vm4, %v4066_v6, -inf  ;;  %v4078_v58 = vsel %vm4019_vm5, %v1293_v5, -10000.0  ;;  %v1322_v35 = vadd.f32 %v1320_v42, %v1318_v57  ;;  %v4082_v61 = vsel %vm4019_vm5, %v1308_v37, -10000.0 }
 0x442   :  { %1114 = vmax.xlane.f32.xlu0 %v1113_v23  ;;  %1353 = vmax.xlane.f32.xlu1 %v1352_v49  ;;  %v1317_v15 = vadd.f32 %v1315_v13, %v1313_v18  ;;  %v1330_v45 = vmul.f32 %v3993_v29, %v3869_v62  ;;  %v1334_v46 = vmul.f32 %v1280_v0, %v3925_v40  ;;  %v1349_v41 = vsel %vm1094_vm4, %v4078_v58, -inf }
 0x443   :  { %v1327_v36 = vadd.f32 %v1325_v39, %v1323_v12  ;;  %v1329_v14 = vmul.f32 %v3979_v8, %v3869_v62  ;;  %v1333_v17 = vmul.f32 %v1279_v7, %v3925_v40  ;;  %v1358_v9 = vsel %vm1094_vm4, %v4082_v61, -inf }
 0x444   :  { %v1321_v21 = vadd.f32 %v1319_v50, %v1317_v15  ;;  %v1332_v44 = vadd.f32 %v1330_v45, %v1328_v31  ;;  %v4096_v29 = vsel %vm4019_vm5, %v1307_v19, -10000.0  ;;  %v4100_v62 = vsel %vm4019_vm5, %v1322_v35, -10000.0 }
 0x445   :  { %v1331_v33 = vadd.f32 %v1329_v14, %v1327_v36  ;;  %v1355_v7 = vsel %vm1094_vm4, %v4096_v29, -inf  ;;  %v1364_v0 = vsel %vm1094_vm4, %v4100_v62, -inf }
 0x446   :  { %1350 = vmax.xlane.f32.xlu0 %v1349_v41  ;;  %1359 = vmax.xlane.f32.xlu1 %v1358_v9  ;;  %v1336_v40 = vadd.f32 %v1334_v46, %v1332_v44  ;;  %v4108_v55 = vsel %vm4019_vm5, %v1321_v21, -10000.0 }
 0x447   :  { %v1335_v8 = vadd.f32 %v1333_v17, %v1331_v33  ;;  %v1361_v53 = vsel %vm1094_vm4, %v4108_v55, -inf }
 0x448   :  { %v4112_v43 = vsel %vm4019_vm5, %v1336_v40, -10000.0 }
 0x449   :  { %v1370_v59 = vsel %vm1094_vm4, %v4112_v43, -inf  ;;  %v4120_v16 = vsel %vm4019_vm5, %v1335_v8, -10000.0 }
 0x44a   :  { %1356 = vmax.xlane.f32.xlu0 %v1355_v7  ;;  %1365 = vmax.xlane.f32.xlu1 %v1364_v0  ;;  %v1367_v11 = vsel %vm1094_vm4, %v4120_v16, -inf }
 0x44e   :  { %1362 = vmax.xlane.f32.xlu0 %v1361_v53  ;;  %1371 = vmax.xlane.f32.xlu1 %v1370_v59 }
 0x452   :  { %1368 = vmax.xlane.f32.xlu0 %v1367_v11 }
 0x4be   :  { %v1097_v38 = vpop.xlane.xlu0 %1096 }
 0x4bf   :  { %v1119_v54 = vsub.f32 %v3967_v3, %v1097_v38 }
 0x4c1   :  { %v1127_v5 = vmul.f32 1.442695, %v1119_v54 }
 0x4c2   :  { %v1100_v1 = vpop.xlane.xlu1 %1099 }
 0x4c3   :  { %v1120_v48 = vsub.f32 %v3997_v52, %v1100_v1  ;;  %v1103_v28 = vpop.xlane.xlu0 %1102  ;;  %3170 = vpow2.f32 %v1127_v5 }
 0x4c4   :  { %v1121_v63 = vsub.f32 %v3983_v10, %v1103_v28 }
 0x4c5   :  { %v1129_v56 = vmul.f32 1.442695, %v1120_v48 }
 0x4c6   :  { %v1131_v42 = vmul.f32 1.442695, %v1121_v63  ;;  %v1112_v51 = vpop.xlane.xlu1 %1111 }
 0x4c7   :  { %3172 = vpow2.f32 %v1129_v56  ;;  %v1109_v4 = vpop.xlane.xlu0 %1108  ;;  %v1124_v18 = vsub.f32 %v4005_v47, %v1112_v51 }
 0x4c8   :  { %3174 = vpow2.f32 %v1131_v42  ;;  %v1123_v37 = vsub.f32 %v3987_v26, %v1109_v4 }
 0x4c9   :  { %v1137_v57 = vmul.f32 1.442695, %v1124_v18 }
 0x4ca   :  { %v1135_v12 = vmul.f32 1.442695, %v1123_v37  ;;  %v1118_v3 = vpop.xlane.xlu1 %1117 }
 0x4cb   :  { %v1106_v39 = vpop.xlane.xlu0 %1105  ;;  %v1126_v10 = vsub.f32 %v4025_v24, %v1118_v3 }
 0x4cc   :  { %3176 = vpow2.f32 %v1135_v12  ;;  %v1122_v52 = vsub.f32 %v4032_v34, %v1106_v39 }
 0x4cd   :  { %v4130_v19 = vpop.eup %3170  ;;  %v1141_v34 = vmul.f32 1.442695, %v1126_v10 }
 0x4ce   :  { %v1133_v13 = vmul.f32 1.442695, %v1122_v52  ;;  %v1143_v31 = vsel %vm1094_vm4, %v4130_v19, 0.0 }
 0x4cf   :  { %v1115_v50 = vpop.xlane.xlu0 %1114  ;;  %1144 = vadd.xlane.f32.xlu0 %v1143_v31  ;;  %v1354_v56 = vpop.xlane.xlu1 %1353 }
 0x4d0   :  { %3178 = vpow2.f32 %v1133_v13  ;;  %v1125_v26 = vsub.f32 %v4057_v60, %v1115_v50  ;;  %v1374_v51 = vsub.f32 %v4066_v6, %v1354_v56  ;;  %v4247_v56 = vstv %s2688_s30 }
 0x4d1   :  { %v4136_v47 = vpop.eup %3172  ;;  %3180 = vpow2.f32 %v1137_v57 }
 0x4d2   :  { %v4138_v23 = vpop.eup %3174  ;;  %v1139_v49 = vmul.f32 1.442695, %v1125_v26  ;;  %v1146_v35 = vsel %vm1094_vm4, %v4136_v47, 0.0  ;;  %v1383_v37 = vmul.f32 1.442695, %v1374_v51  ;;  %v4252_v51 = vstv %s4216_s28 }
 0x4d3   :  { %1147 = vadd.xlane.f32.xlu1 %v1146_v35  ;;  %v1351_v24 = vpop.xlane.xlu0 %1350  ;;  %v1149_v15 = vsel %vm1094_vm4, %v4138_v23, 0.0  ;;  %v1360_v42 = vpop.xlane.xlu1 %1359 }
 0x4d4   :  { %3182 = vpow2.f32 %v1139_v49  ;;  %v1373_v45 = vsub.f32 %v4078_v58, %v1351_v24  ;;  %1150 = vadd.xlane.f32.xlu0 %v1149_v15  ;;  %v1376_v18 = vsub.f32 %v4082_v61, %v1360_v42 }
 0x4d5   :  { %3184 = vpow2.f32 %v1141_v34 }
 0x4d6   :  { %v4145_v60 = vpop.eup %3176  ;;  %v1381_v46 = vmul.f32 1.442695, %v1373_v45  ;;  %v1387_v12 = vmul.f32 1.442695, %v1376_v18  ;;  %v4260_v18 = vstv %s4220_s14 }
 0x4d7   :  { %v1357_v36 = vpop.xlane.xlu0 %1356  ;;  %v1155_v14 = vsel %vm1094_vm4, %v4145_v60, 0.0  ;;  %v1366_v4 = vpop.xlane.xlu1 %1365 }
 0x4d8   :  { %3186 = vpow2.f32 %v1381_v46  ;;  %v1375_v17 = vsub.f32 %v4096_v29, %v1357_v36  ;;  %1156 = vadd.xlane.f32.xlu0 %v1155_v14  ;;  %v1378_v3 = vsub.f32 %v4100_v62, %v1366_v4  ;;  %v4224_v14 = vstv %s1183_s25  ;;  %s2712_s25 = sld [smem:[#allocation3 + $0x1]] }
 0x4d9   :  { %v4255_v4 = vstv %s4218_s0 }
 0x4da   :  { %v4150_v21 = vpop.eup %3178  ;;  %v1385_v44 = vmul.f32 1.442695, %v1375_v17  ;;  %v1391_v52 = vmul.f32 1.442695, %v1378_v3  ;;  %v4226_v17 = vstv %s2682_s26 }
 0x4db   :  { %v1363_v41 = vpop.xlane.xlu0 %1362  ;;  %v1152_v58 = vsel %vm1094_vm4, %v4150_v21, 0.0  ;;  %v4154_v9 = vpop.eup %3180 }
 0x4dc   :  { %3188 = vpow2.f32 %v1385_v44  ;;  %v1377_v33 = vsub.f32 %v4108_v55, %v1363_v41  ;;  %1153 = vadd.xlane.f32.xlu1 %v1152_v58  ;;  %v1158_v0 = vsel %vm1094_vm4, %v4154_v9, 0.0  ;;  %v1372_v39 = vpop.xlane.xlu1 %1371  ;;  %v4228_v44 = vstv %s2686_s27 }
 0x4dd   :  { %v1380_v57 = vsub.f32 %v4112_v43, %v1372_v39  ;;  %v4266_v39 = vstv %s4222_s20 }
 0x4de   :  { %v4157_v40 = vpop.eup %3182  ;;  %v1389_v8 = vmul.f32 1.442695, %v1377_v33 }
 0x4df   :  { %v1369_v7 = vpop.xlane.xlu0 %1368  ;;  %v1161_v29 = vsel %vm1094_vm4, %v4157_v40, 0.0  ;;  %v4163_v53 = vpop.eup %3184 }
 0x4e0   :  { %3190 = vpow2.f32 %v1389_v8  ;;  %v1379_v59 = vsub.f32 %v4120_v16, %v1369_v7  ;;  %1162 = vadd.xlane.f32.xlu0 %v1161_v29  ;;  %1159 = vadd.xlane.f32.xlu1 %v1158_v0  ;;  %v1164_v54 = vsel %vm1094_vm4, %v4163_v53, 0.0  ;;  %v4230_v8 = vstv %s2690_s4 }
 0x4e1   :  { %v4232_v7 = vstv %s2679_s9 }
 0x4e2   :  { %v4166_v11 = vpop.eup %3186  ;;  %v1393_v55 = vmul.f32 1.442695, %v1379_v59 }
 0x4e3   :  { %v1397_v38 = vsel %vm1094_vm4, %v4166_v11, 0.0 }
 0x4e4   :  { %3192 = vpow2.f32 %v1393_v55  ;;  %1398 = vadd.xlane.f32.xlu0 %v1397_v38  ;;  %1165 = vadd.xlane.f32.xlu1 %v1164_v54  ;;  %v4238_v55 = vstv %s2687_s3 }
 0x4e5   :  { %3194 = vpow2.f32 %v1383_v37 }
 0x4e6   :  { %v4172_v5 = vpop.eup %3188  ;;  %3196 = vpow2.f32 %v1387_v12 }
 0x4e7   :  { %v1403_v1 = vsel %vm1094_vm4, %v4172_v5, 0.0  ;;  %3198 = vpow2.f32 %v1391_v52 }
 0x4e8   :  { %1404 = vadd.xlane.f32.xlu0 %v1403_v1 }
 0x4ea   :  { %v4176_v16 = vpop.eup %3190 }
 0x4eb   :  { %v1409_v48 = vsel %vm1094_vm4, %v4176_v16, 0.0 }
 0x4ec   :  { %1410 = vadd.xlane.f32.xlu0 %v1409_v48  ;;  %v4243_v48 = vstv %s2680_s12 }
 0x4ee   :  { %v4180_v28 = vpop.eup %3192 }
 0x4ef   :  { %v1415_v63 = vsel %vm1094_vm4, %v4180_v28, 0.0  ;;  %v4196_v10 = vpop.eup %3194 }
 0x4f0   :  { %1416 = vadd.xlane.f32.xlu0 %v1415_v63  ;;  %v1400_v6 = vsel %vm1094_vm4, %v4196_v10, 0.0  ;;  %v4200_v13 = vpop.eup %3196 }
 0x4f1   :  { %v1406_v61 = vsel %vm1094_vm4, %v4200_v13, 0.0  ;;  %v4204_v62 = vpop.eup %3198 }
 0x4f2   :  { %v1412_v43 = vsel %vm1094_vm4, %v4204_v62, 0.0 }
 0x4f5   :  { %3030 = vrot.lane.b32.xlu1 %v3762_v27, %s3480_s8 }
 0x4f9   :  { %3035 = vrot.lane.b32.xlu1 %v3762_v27, %s3481_s10 }
 0x506   :  { %3025 = vrot.lane.b32.xlu0 %v3762_v27, %s3479_s7  ;;  %v1395_v27 = vmul.f32 1.442695, %v1380_v57 }
 0x508   :  { %3200 = vpow2.f32 %v1395_v27 }
 0x50a   :  { %3045 = vrot.lane.b32.xlu0 %v3756_v25, %s3480_s8  ;;  %s2683_s8 = sld [smem:[#allocation14 + $0x81]] }
 0x510   :  { %v4234_v29 = vstv %s2683_s8 }
 0x512   :  { %v4208_v50 = vpop.eup %3200 }
 0x513   :  { %v1418_v31 = vsel %vm1094_vm4, %v4208_v50, 0.0 }
 0x51d   :  { %1401 = vadd.xlane.f32.xlu1 %v1400_v6 }
 0x521   :  { %1407 = vadd.xlane.f32.xlu1 %v1406_v61 }
 0x525   :  { %1413 = vadd.xlane.f32.xlu1 %v1412_v43 }
 0x529   :  { %1419 = vadd.xlane.f32.xlu1 %v1418_v31 }
 0x53a   :  { %3040 = vrot.lane.b32.xlu1 %v3756_v25, %s3479_s7  ;;  %s2691_s7 = sld [smem:[#allocation14 + $0x181]] }
 0x53e   :  { %3050 = vrot.lane.b32.xlu1 %v3756_v25, %s3481_s10  ;;  %s2684_s10 = sld [smem:[#allocation14 + $0x82]] }
 0x540   :  { %v4240_v38 = vstv %s2691_s7 }
 0x544   :  { %v4245_v63 = vstv %s2684_s10 }
 0x55c   :  { %v1145_v26 = vpop.xlane.xlu0 %1144 }
 0x560   :  { %v1148_v49 = vpop.xlane.xlu1 %1147 }
 0x561   :  { %v1151_v34 = vpop.xlane.xlu0 %1150 }
 0x562   :  { %3202 = vrcp.f32 %v1151_v34 }
 0x563   :  { %3204 = vrcp.f32 %v1145_v26 }
 0x564   :  { %3206 = vrcp.f32 %v1148_v49 }
 0x565   :  { %v1157_v35 = vpop.xlane.xlu0 %1156 }
 0x566   :  { %3208 = vrcp.f32 %v1157_v35 }
 0x569   :  { %v1154_v24 = vpop.xlane.xlu1 %1153 }
 0x56a   :  { %3210 = vrcp.f32 %v1154_v24 }
 0x56c   :  { %v3203_v45 = vpop.eup %3202 }
 0x56d   :  { %v1163_v25 = vpop.xlane.xlu0 %1162  ;;  %v1160_v15 = vpop.xlane.xlu1 %1159  ;;  %v1177_v0 = vmul.f32 %v3203_v45, %v4138_v23 }
 0x56e   :  { %v3205_v46 = vpop.eup %3204  ;;  %3212 = vrcp.f32 %v1163_v25 }
 0x56f   :  { %v3207_v36 = vpop.eup %3206  ;;  %3214 = vrcp.f32 %v1160_v15  ;;  %v1175_v59 = vmul.f32 %v3205_v46, %v4130_v19  ;;  %v1189_v37 = vmul.f32 %v4232_v7, %v1177_v0  ;;  %v1255_v27 = vmul.f32 %v4240_v38, %v1177_v0 }
 0x570   :  { %v3209_v33 = vpop.eup %3208  ;;  %v1176_v1 = vmul.f32 %v3207_v36, %v4136_v47  ;;  %v1211_v47 = vmul.f32 %v4234_v29, %v1177_v0 }
 0x571   :  { %v1399_v41 = vpop.xlane.xlu0 %1398  ;;  %v1166_v58 = vpop.xlane.xlu1 %1165  ;;  %v1179_v23 = vmul.f32 %v3209_v33, %v4145_v60  ;;  %v1185_v12 = vmul.f32 %v4224_v14, %v1175_v59  ;;  %v1207_v3 = vmul.f32 %v4226_v17, %v1175_v59  ;;  %v1233_v60 = vmul.f32 %v4238_v55, %v1177_v0 }
 0x572   :  { %3216 = vrcp.f32 %v1166_v58  ;;  %v1251_v52 = vmul.f32 %v4230_v8, %v1175_v59  ;;  %v1186_v57 = vmul.f32 %v4224_v14, %v1176_v1  ;;  %v1208_v6 = vmul.f32 %v4226_v17, %v1176_v1 }
 0x573   :  { %v1230_v61 = vmul.f32 %v4228_v44, %v1176_v1  ;;  %v1195_v26 = vmul.f32 %v4243_v48, %v1179_v23  ;;  %v1252_v49 = vmul.f32 %v4230_v8, %v1176_v1  ;;  %v1191_v24 = vadd.f32 %v1189_v37, %v1185_v12 }
 0x574   :  { %v3211_v54 = vpop.eup %3210  ;;  %v1213_v25 = vadd.f32 %v1211_v47, %v1207_v3  ;;  %v1217_v36 = vmul.f32 %v4245_v63, %v1179_v23  ;;  %v1239_v0 = vmul.f32 %v4247_v56, %v1179_v23 }
 0x575   :  { %v1178_v19 = vmul.f32 %v3211_v54, %v4150_v21  ;;  %v1405_v42 = vpop.xlane.xlu0 %1404  ;;  %v1229_v21 = vmul.f32 %v4228_v44, %v1175_v59  ;;  %v3031_v35 = vpop.permute.xlu1 %3030  ;;  %v4284_v59 = vadd.f32 %v1255_v27, %v1251_v52 }
 0x576   :  { %3218 = vrcp.f32 %v1405_v42  ;;  %v1197_v42 = vadd.f32 %v1195_v26, %v1191_v24  ;;  %v1219_v52 = vadd.f32 %v1217_v36, %v1213_v25 }
 0x577   :  { %v1190_v43 = vmul.f32 %v4232_v7, %v1178_v19  ;;  %3220 = vrcp.f32 %v1399_v41  ;;  %v1212_v45 = vmul.f32 %v4234_v29, %v1178_v19  ;;  %v1235_v58 = vadd.f32 %v1233_v60, %v1229_v21 }
 0x578   :  { %v3213_v34 = vpop.eup %3212  ;;  %v1234_v3 = vmul.f32 %v4238_v55, %v1178_v19  ;;  %v3033_v60 = vunpack.i.h.bf16 %v3031_v35  ;;  %v1256_v27 = vmul.f32 %v4240_v38, %v1178_v19 }
 0x579   :  { %v1411_v31 = vpop.xlane.xlu0 %1410  ;;  %v3215_v15 = vpop.eup %3214  ;;  %v4279_v46 = vmul.f32 %v3213_v34, %v4157_v40  ;;  %v1192_v1 = vadd.f32 %v1190_v43, %v1186_v57  ;;  %v4289_v40 = vmul.f32 %v4255_v4, %v1179_v23  ;;  %v1214_v21 = vadd.f32 %v1212_v45, %v1208_v6 }
 0x57a   :  { %v1180_v33 = vmul.f32 %v3215_v15, %v4154_v9  ;;  %3222 = vrcp.f32 %v1411_v31  ;;  %v3032_v43 = vunpack.i.l.bf16 %v3031_v35  ;;  %v3036_v23 = vpop.permute.xlu1 %3035  ;;  %v1236_v36 = vadd.f32 %v1234_v3, %v1230_v61 }
 0x57b   :  { %v1201_v37 = vmul.f32 %v4252_v51, %v4279_v46  ;;  %v1223_v15 = vmul.f32 %v4260_v18, %v4279_v46  ;;  %v3038_v35 = vunpack.i.h.bf16 %v3036_v23  ;;  %v3037_v45 = vunpack.i.l.bf16 %v3036_v23 }
 0x57c   :  { %v3217_v41 = vpop.eup %3216  ;;  %v1196_v9 = vmul.f32 %v4243_v48, %v1180_v33  ;;  %v1218_v12 = vmul.f32 %v4245_v63, %v1180_v33  ;;  %v1240_v25 = vmul.f32 %v4247_v56, %v1180_v33  ;;  %v1241_v30 = vadd.f32 %v1239_v0, %v1235_v58 }
 0x57d   :  { %v1417_v54 = vpop.xlane.xlu0 %1416  ;;  %v1182_v47 = vmul.f32 %v3217_v41, %v4163_v53  ;;  %v1203_v34 = vadd.f32 %v1201_v37, %v1197_v42  ;;  %v1225_v32 = vadd.f32 %v1223_v15, %v1219_v52  ;;  %v1245_v61 = vmul.f32 %v4266_v39, %v4279_v46 }
 0x57e   :  { %3224 = vrcp.f32 %v1417_v54  ;;  %v1198_v31 = vadd.f32 %v1196_v9, %v1192_v1  ;;  %v1220_v24 = vadd.f32 %v1218_v12, %v1214_v21  ;;  %v576_v21 = vpack.c.bf16 %v3033_v60, %v3032_v43 }
 0x57f   :  { %v1202_v53 = vmul.f32 %v4252_v51, %v1182_v47  ;;  %v1224_v41 = vmul.f32 %v4260_v18, %v1182_v47  ;;  %v1246_v12 = vmul.f32 %v4266_v39, %v1182_v47  ;;  %v1258_v3 = vadd.f32 %v1256_v27, %v1252_v49 }
 0x580   :  { %v3219_v57 = vpop.eup %3218  ;;  %v4732_v52 = vmov 0.0   ;;  %v577_v43 = vpack.c.bf16 %v3038_v35, %v3037_v45  ;;  %v1247_v23 = vadd.f32 %v1245_v61, %v1241_v30 }
 0x581   :  { %v3026_v26 = vpop.permute.xlu0 %3025  ;;  %v1204_v6 = vadd.f32 %v1202_v53, %v1198_v31  ;;  %v4304_v19 = vmul.f32 %v3219_v57, %v4172_v5  ;;  %v3221_v1 = vpop.eup %3220  ;;  %v1226_v9 = vadd.f32 %v1224_v41, %v1220_v24  ;;  %v1262_v31 = vmul.f32 %v4255_v4, %v1180_v33 }
 0x582   :  { %v3028_v54 = vunpack.i.h.bf16 %v3026_v26  ;;  %v3027_v2 = vunpack.i.l.bf16 %v3026_v26  ;;  %v1242_v5 = vadd.f32 %v1240_v25, %v1236_v36  ;;  %v4312_v57 = vstv %s4294_s19 }
 0x583   :  { %v1493_v37 = vpack.c.bf16 %v1204_v6, %v1203_v34  ;;  %v1494_v60 = vpack.c.bf16 %v1226_v9, %v1225_v32  ;;  %v1268_v58 = vmul.f32 %v4312_v57, %v1182_v47  ;;  %v1481_v0 = vmul.f32 %v4304_v19, %v4240_v38 }
 0x584   :  { %v575_v42 = vpack.c.bf16 %v3028_v54, %v3027_v2  ;;  %v3223_v53 = vpop.eup %3222  ;;  %v4315_v2 = vmul.f32 %v3221_v1, %v4166_v11  ;;  %v1248_v49 = vadd.f32 %v1246_v12, %v1242_v5  ;;  %v1264_v47 = vadd.f32 %v1262_v31, %v1258_v3 }
 0x585   :  { %2872 = vmatmul.mubr.msk.bf16.vlgmr.msra.gmra.mrb[12].mxu1 %vm1094_vm4, %v1493_v37  ;;  %v4325_v11 = vmul.f32 %v3223_v53, %v4176_v16  ;;  %v1267_v27 = vmul.f32 %v4312_v57, %v4279_v46  ;;  %v1263_v16 = vadd.f32 %v4289_v40, %v4284_v59  ;;  %v4733_v41 = vpack.c.bf16 %v3748_v22, %v3741_v20  ;;  %v4356_v36 = vpop.permute.xlu0 %3045 }
 0x586   :  { %2876 = vmatpush3.bf16.msra.mxu0 %v575_v42  ;;  %2882 = vmatpush3.bf16.msra.mxu1 %v576_v21  ;;  %v1479_v26 = vmul.f32 %v4315_v2, %v4230_v8  ;;  %v1270_v34 = vadd.f32 %v1268_v58, %v1264_v47  ;;  %v1439_v1 = vmul.f32 %v4304_v19, %v4232_v7  ;;  %v3048_v3 = vunpack.i.h.bf16 %v4356_v36 }
 0x587   :  { %2887 = vmatprep.subr.bf16.mxu0 %v4732_v52  ;;  %2883 = vmatprep.mubr.msk.bf16.mxu1 %vm3478_vm1, %v4732_v52  ;;  %v1269_v24 = vadd.f32 %v1267_v27, %v1263_v16  ;;  %v1485_v46 = vmul.f32 %v4325_v11, %v4255_v4  ;;  %v1453_v9 = vmul.f32 %v4304_v19, %v4234_v29 }
 0x588   :  { %v3225_v33 = vpop.eup %3224  ;;  %2893 = vmatprep.subr.bf16.mxu1 %v4732_v52  ;;  %v1483_v15 = vadd.f32 %v1481_v0, %v1479_v26  ;;  %v1437_v53 = vmul.f32 %v4315_v2, %v4224_v14  ;;  %v1451_v5 = vmul.f32 %v4315_v2, %v4226_v17  ;;  %v1467_v61 = vmul.f32 %v4304_v19, %v4238_v55 }
 0x589   :  { %v4328_v32 = vmul.f32 %v3225_v33, %v4180_v28  ;;  %2878 = vmatmul.mubr.msk.bf16.vlgmr.msra.gmra.mrb[32].mxu0 %vm1094_vm4, %v1494_v60  ;;  %v1495_v28 = vpack.c.bf16 %v1248_v49, %v1247_v23  ;;  %v1496_v54 = vpack.c.bf16 %v1270_v34, %v1269_v24  ;;  %v1457_v47 = vmul.f32 %v4325_v11, %v4245_v63 }
 0x58a   :  { %2888 = vmatpush3.bf16.msra.mxu0 %v577_v43  ;;  %2889 = vmatprep.mubr.msk.bf16.mxu0 %vm3478_vm1, %v4732_v52  ;;  %v1487_v59 = vadd.f32 %v1485_v46, %v1483_v15  ;;  %v1441_v49 = vadd.f32 %v1439_v1, %v1437_v53  ;;  %v3047_v24 = vunpack.i.l.bf16 %v4356_v36 }
 0x58b   :  { %2899 = vmatprep.subr.bf16.mxu0 %v4732_v52  ;;  %v1489_v30 = vmul.f32 %v4328_v32, %v4312_v57 }
 0x58d   :  { %2884 = vmatmul.mubr.msk.bf16.vlgmr.msra.gmra.mrb[16].mxu1 %vm1094_vm4, %v1495_v28  ;;  %v4352_v40 = vadd.f32 %v1489_v30, %v1487_v59 }
 0x58e   :  { %2894 = vmatpush3.bf16.msra.mxu1 %v4733_v41  ;;  %2895 = vmatprep.mubr.msk.bf16.mxu1 %vm3478_vm1, %v4732_v52 }
 0x58f   :  { %2905 = vmatprep.subr.bf16.mxu1 %v4732_v52 }
 0x591   :  { %2890 = vmatmul.mubr.msk.bf16.vlgmr.msra.gmra.mrb[36].mxu0 %vm1094_vm4, %v1496_v54 }
 0x592   :  { %2901 = vmatprep.mubr.msk.bf16.mxu0 %vm3478_vm1, %v4732_v52 }
 0x5aa   :  { %v1402_v6 = vpop.xlane.xlu1 %1401 }
 0x5ab   :  { %3226 = vrcp.f32 %v1402_v6 }
 0x5ae   :  { %v1408_v25 = vpop.xlane.xlu1 %1407 }
 0x5af   :  { %3228 = vrcp.f32 %v1408_v25 }
 0x5b2   :  { %v1414_v20 = vpop.xlane.xlu1 %1413 }
 0x5b3   :  { %3230 = vrcp.f32 %v1414_v20 }
 0x5b5   :  { %v3227_v35 = vpop.eup %3226 }
 0x5b6   :  { %v1420_v22 = vpop.xlane.xlu1 %1419  ;;  %v1430_v12 = vmul.f32 %v3227_v35, %v4196_v10  ;;  %v1443_v10 = vmul.f32 %v4325_v11, %v4243_v48 }
 0x5b7   :  { %3232 = vrcp.f32 %v1420_v22 }
 0x5b8   :  { %v1438_v19 = vmul.f32 %v1430_v12, %v4224_v14  ;;  %v1452_v27 = vmul.f32 %v1430_v12, %v4226_v17  ;;  %v1480_v23 = vmul.f32 %v1430_v12, %v4230_v8  ;;  %v1445_v14 = vadd.f32 %v1443_v10, %v1441_v49 }
 0x5b9   :  { %v3229_v45 = vpop.eup %3228  ;;  %v1461_v17 = vmul.f32 %v4328_v32, %v4260_v18  ;;  %v1466_v20 = vmul.f32 %v1430_v12, %v4228_v44 }
 0x5ba   :  { %v1432_v42 = vmul.f32 %v3229_v45, %v4200_v13  ;;  %v3041_v37 = vpop.permute.xlu1 %3040 }
 0x5bb   :  { %v3043_v21 = vunpack.i.h.bf16 %v3041_v37  ;;  %v3042_v31 = vunpack.i.l.bf16 %v3041_v37 }
 0x5bc   :  { %v1440_v60 = vmul.f32 %v1432_v42, %v4232_v7  ;;  %v1454_v58 = vmul.f32 %v1432_v42, %v4234_v29  ;;  %v1482_v0 = vmul.f32 %v1432_v42, %v4240_v38  ;;  %v1447_v7 = vmul.f32 %v4328_v32, %v4252_v51 }
 0x5bd   :  { %v3231_v13 = vpop.eup %3230  ;;  %v579_v33 = vpack.c.bf16 %v3043_v21, %v3042_v31  ;;  %v1455_v29 = vadd.f32 %v1453_v9, %v1451_v5  ;;  %v580_v21 = vpack.c.bf16 %v3048_v3, %v3047_v24 }
 0x5be   :  { %v1434_v43 = vmul.f32 %v3231_v13, %v4204_v62  ;;  %v1442_v34 = vadd.f32 %v1440_v60, %v1438_v19  ;;  %v1456_v28 = vadd.f32 %v1454_v58, %v1452_v27  ;;  %v3051_v8 = vpop.permute.xlu1 %3050  ;;  %v1484_v30 = vadd.f32 %v1482_v0, %v1480_v23 }
 0x5bf   :  { %2900 = vmatpush3.bf16.msra.mxu0 %v579_v33  ;;  %v1459_v46 = vadd.f32 %v1457_v47, %v1455_v29  ;;  %v3053_v22 = vunpack.i.h.bf16 %v3051_v8  ;;  %v3052_v35 = vunpack.i.l.bf16 %v3051_v8 }
 0x5c0   :  { %2911 = vmatprep.subr.bf16.mxu0 %v4732_v52  ;;  %v1444_v38 = vmul.f32 %v1434_v43, %v4243_v48  ;;  %v1458_v62 = vmul.f32 %v1434_v43, %v4245_v63  ;;  %v1486_v26 = vmul.f32 %v1434_v43, %v4255_v4  ;;  %v1468_v48 = vmul.f32 %v1432_v42, %v4238_v55 }
 0x5c1   :  { %v3233_v16 = vpop.eup %3232  ;;  %v1449_v63 = vadd.f32 %v1447_v7, %v1445_v14  ;;  %v1472_v1 = vmul.f32 %v1434_v43, %v4247_v56  ;;  %v1465_v42 = vmul.f32 %v4315_v2, %v4228_v44  ;;  %v581_v31 = vpack.c.bf16 %v3053_v22, %v3052_v35 }
 0x5c2   :  { %v1436_v15 = vmul.f32 %v3233_v16, %v4208_v50  ;;  %v1446_v41 = vadd.f32 %v1444_v38, %v1442_v34  ;;  %v1460_v54 = vadd.f32 %v1458_v62, %v1456_v28  ;;  %v1488_v6 = vadd.f32 %v1486_v26, %v1484_v30  ;;  %v3142_v62 = vld [vmem:[%s4734_s23] sm:$0xff]  }
 0x5c3   :  { %v1463_v50 = vadd.f32 %v1461_v17, %v1459_v46  ;;  %v1470_v37 = vadd.f32 %v1468_v48, %v1466_v20  ;;  %v1469_v53 = vadd.f32 %v1467_v61, %v1465_v42  ;;  %v1475_v44 = vmul.f32 %v4328_v32, %v4266_v39  ;;  %v3143_v46 = vld [vmem:[%s4734_s23 + $0x8] sm:$0xff]  }
 0x5c4   :  { %v1448_v4 = vmul.f32 %v1436_v15, %v4252_v51  ;;  %v1462_v59 = vmul.f32 %v1436_v15, %v4260_v18  ;;  %v1490_v25 = vmul.f32 %v1436_v15, %v4312_v57  ;;  %v1471_v51 = vmul.f32 %v4325_v11, %v4247_v56 }
 0x5c5   :  { %v1476_v57 = vmul.f32 %v1436_v15, %v4266_v39  ;;  %v1474_v5 = vadd.f32 %v1472_v1, %v1470_v37 }
 0x5c6   :  { %v1450_v45 = vadd.f32 %v1448_v4, %v1446_v41  ;;  %v1464_v36 = vadd.f32 %v1462_v59, %v1460_v54  ;;  %v1492_v55 = vadd.f32 %v1490_v25, %v1488_v6  ;;  %v1473_v56 = vadd.f32 %v1471_v51, %v1469_v53 }
 0x5c7   :  { %v1478_v2 = vadd.f32 %v1476_v57, %v1474_v5 }
 0x5c8   :  { %v1497_v18 = vpack.c.bf16 %v1450_v45, %v1449_v63  ;;  %v1498_v9 = vpack.c.bf16 %v1464_v36, %v1463_v50  ;;  %v1500_v12 = vpack.c.bf16 %v1492_v55, %v4352_v40  ;;  %v1477_v11 = vadd.f32 %v1475_v44, %v1473_v56 }
 0x5ca   :  { %2896 = vmatmul.mubr.msk.bf16.vlgmr.msra.gmra.mrb[20].mxu1 %vm1094_vm4, %v1497_v18  ;;  %2902 = vmatmul.mubr.msk.bf16.vlgmr.msra.gmra.mrb[40].mxu0 %vm1094_vm4, %v1498_v9  ;;  %v1499_v40 = vpack.c.bf16 %v1478_v2, %v1477_v11 }
 0x5cb   :  { %2906 = vmatpush3.bf16.msra.mxu1 %v580_v21  ;;  %2912 = vmatpush3.bf16.msra.mxu0 %v581_v31 }
 0x5cc   :  { %2907 = vmatprep.mubr.msk.bf16.mxu1 %vm3478_vm1, %v4732_v52  ;;  %2913 = vmatprep.mubr.msk.bf16.mxu0 %vm3478_vm1, %v4732_v52  ;;  %vm2286_vm1 = vcmask 785408  }
 0x5cd   :  { %2917 = vmatprep.subr.bf16.mxu1 %v3142_v62 }
 0x5d2   :  { %2908 = vmatmul.mubr.msk.bf16.vlgmr.msra.gmra.mrb[24].mxu1 %vm1094_vm4, %v1499_v40  ;;  %2914 = vmatmul.mubr.msk.bf16.vlgmr.msra.gmra.mrb[44].mxu0 %vm1094_vm4, %v1500_v12 }
 0x5d3   :  { %2918 = vmatpush3.bf16.msra.mxu1 %v3142_v62 }
 0x5d4   :  { %2919 = vmatprep.subr.bf16.mxu1 %v3143_v46 }
 0x5d7   :  { %2920 = vmatpush3.bf16.msra.mxu1 %v3143_v46 }
 0x658   :  { %v1538_v61 = vpop.f32.mrb[12].mxu1 }
 0x659   :  { %v2873_v3 = vpop.f32.mrb[13].mxu1 }
 0x65a   :  { %v1541_v13 = vpop.f32.mrb[14].mxu1 }
 0x65b   :  { %v2874_v39 = vpop.f32.mrb[15].mxu1 }
 0x65c   :  { %v1582_v32 = vpop.f32.mrb[32].mxu0 }
 0x65d   :  { %v2879_v60 = vpop.f32.mrb[33].mxu0 }
 0x65e   :  { %v1585_v58 = vpop.f32.mrb[34].mxu0 }
 0x65f   :  { %v3054_v33 = vpack.i.bf16 %v1585_v58, %v1582_v32  ;;  %v2880_v10 = vpop.f32.mrb[35].mxu0 }
 0x660   :  { %v1626_v0 = vpop.f32.mrb[16].mxu1 }
 0x661   :  { %3055 = vrot.lane.b32.xlu0 %v3054_v33, %s3482_s1  ;;  %v2885_v43 = vpop.f32.mrb[17].mxu1 }
 0x662   :  { %v1629_v49 = vpop.f32.mrb[18].mxu1  ;;  %v2703_v43 = vld [vmem:[#allocation16] ss:$0 sm:$0xff] }
 0x663   :  { %v3059_v47 = vpack.i.bf16 %v1629_v49, %v1626_v0  ;;  %v2886_v19 = vpop.f32.mrb[19].mxu1  ;;  %v3485_v0 = vmov 0  }
 0x664   :  { %v1670_v27 = vpop.f32.mrb[36].mxu0  ;;  %3090 = vset.pattern.permute.xlu1 %v3485_v0  ;;  %3084 = vset.pattern.permute.xlu0 %v3485_v0 }
 0x665   :  { %v2891_v7 = vpop.f32.mrb[37].mxu0  ;;  %3060 = vrot.lane.b32.xlu1 %v3059_v47, %s3483_s11  ;;  %2561 = vmatprep.subr.bf16.mxu1 %v3485_v0 }
 0x666   :  { %v1673_v29 = vpop.f32.mrb[38].mxu0 }
 0x667   :  { %v3064_v23 = vpack.i.bf16 %v1673_v29, %v1670_v27  ;;  %v2892_v38 = vpop.f32.mrb[39].mxu0 }
 0x669   :  { %3065 = vrot.lane.b32.xlu1 %v3064_v23, %s3484_s2  ;;  %v3258_v23 = vld [vmem:[%s4725_s18] sm:$0xff] }
 0x69d   :  { %v1714_v26 = vpop.f32.mrb[20].mxu1  ;;  %v1758_v16 = vpop.f32.mrb[40].mxu0 }
 0x69e   :  { %v2897_v34 = vpop.f32.mrb[21].mxu1  ;;  %v2903_v14 = vpop.f32.mrb[41].mxu0 }
 0x69f   :  { %v1717_v28 = vpop.f32.mrb[22].mxu1  ;;  %v1761_v17 = vpop.f32.mrb[42].mxu0  ;;  %v3260_v14 = vld [vmem:[%s4725_s18 + $0x8] sm:$0xff] }
 0x6a0   :  { %v3069_v24 = vpack.i.bf16 %v1761_v17, %v1758_v16  ;;  %v2898_v15 = vpop.f32.mrb[23].mxu1  ;;  %v2904_v8 = vpop.f32.mrb[43].mxu0 }
 0x6a1   :  { %v3261_v15 = vld [vmem:[%s4725_s18 + $0x18] sm:$0xff] }
 0x6a2   :  { %3070 = vrot.lane.b32.xlu0 %v3069_v24, %s3482_s1 }
 0x6a5   :  { %v1802_v30 = vpop.f32.mrb[24].mxu1  ;;  %v1846_v48 = vpop.f32.mrb[44].mxu0 }
 0x6a6   :  { %v2909_v41 = vpop.f32.mrb[25].mxu1  ;;  %v2915_v63 = vpop.f32.mrb[45].mxu0 }
 0x6a7   :  { %v1805_v54 = vpop.f32.mrb[26].mxu1  ;;  %v1849_v4 = vpop.f32.mrb[46].mxu0  ;;  %v4735_v41 = vld [vmem:[#allocation29_spill] sm:$0xff]  ;;  %v4736_v63 = vld [vmem:[#allocation30_spill] sm:$0xff] }
 0x6a8   :  { %v3074_v59 = vpack.i.bf16 %v1805_v54, %v1802_v30  ;;  %v3079_v6 = vpack.i.bf16 %v1849_v4, %v1846_v48  ;;  %v2910_v25 = vpop.f32.mrb[27].mxu1  ;;  %v2916_v20 = vpop.f32.mrb[47].mxu0  ;;  %v2081_v30 = vstv %s2712_s25  ;;  %vm2171_vm9 = vcmp.lt.s32.totalorder %v4736_v63, 15 }
 0x6a9   :  { %vm2082_vm7 = vcmp.lt.s32.totalorder %v4735_v41, %v2081_v30  ;;  %vm2083_vm8 = vcmp.lt.s32.totalorder %v4736_v63, %v2081_v30  ;;  %vm2130_vm12 = vcmp.ge.s32.totalorder %v4735_v41, 1 }
 0x6aa   :  { %3080 = vrot.lane.b32.xlu1 %v3079_v6, %s3484_s2  ;;  %3075 = vrot.lane.b32.xlu0 %v3074_v59, %s3483_s11  ;;  %v2713_v54 = vsel %vm2082_vm7, 1.0, %v4732_v52  ;;  %v2714_v4 = vsel %vm2083_vm8, 1.0, %v4732_v52  ;;  %s3487_s2 = smov 32  }
 0x6ab   :  { %v3091_v59 = vpack.i.bf16 %v2714_v4, %v2713_v54 }
 0x6d3   :  { %v3056_v22 = vpop.permute.xlu0 %3055 }
 0x6d4   :  { %v3058_v50 = vunpack.i.h.bf16 %v3056_v22  ;;  %v3057_v45 = vunpack.i.l.bf16 %v3056_v22 }
 0x6d6   :  { %v1877_v42 = vsel %vm582_vm2, %v1538_v61, %v3057_v45  ;;  %v1878_v37 = vsel %vm582_vm2, %v1541_v13, %v3058_v50 }
 0x6d7   :  { %v3061_v35 = vpop.permute.xlu1 %3060 }
 0x6d8   :  { %v3063_v36 = vunpack.i.h.bf16 %v3061_v35  ;;  %v3062_v1 = vunpack.i.l.bf16 %v3061_v35 }
 0x6da   :  { %v1880_v9 = vsel %vm1094_vm4, %v1878_v37, %v3063_v36  ;;  %v1879_v57 = vsel %vm1094_vm4, %v1877_v42, %v3062_v1 }
 0x6db   :  { %v3066_v55 = vpop.permute.xlu1 %3065 }
 0x6dc   :  { %v3068_v51 = vunpack.i.h.bf16 %v3066_v55  ;;  %v3067_v18 = vunpack.i.l.bf16 %v3066_v55 }
 0x6de   :  { %v1882_v12 = vsel %vm1881_vm6, %v1879_v57, %v3067_v18  ;;  %v1883_v21 = vsel %vm1881_vm6, %v1880_v9, %v3068_v51 }
 0x6df   :  { %v1914_v31 = vpack.c.bf16 %v1883_v21, %v1882_v12 }
 0x6e1   :  { %2921 = vmatprep.mubr.msk.bf16.mxu1 %vm159_vm0, %v1914_v31 }
 0x714   :  { %v3071_v53 = vpop.permute.xlu0 %3070 }
 0x715   :  { %v3073_v5 = vunpack.i.h.bf16 %v3071_v53  ;;  %v3072_v44 = vunpack.i.l.bf16 %v3071_v53 }
 0x717   :  { %v1908_v13 = vsel %vm582_vm2, %v1714_v26, %v3072_v44  ;;  %v1909_v39 = vsel %vm582_vm2, %v1717_v28, %v3073_v5  ;;  %v3259_v26 = vld [vmem:[%s4725_s18 + $0x10] sm:$0xff]  ;;  %s2072_s18 = sld [smem:[#allocation3]]  ;;  %v2716_v44 = vsel %vm2171_vm9, 1.0, %v4732_v52 }
 0x71c   :  { %v3081_v56 = vpop.permute.xlu1 %3080  ;;  %v3076_v2 = vpop.permute.xlu0 %3075 }
 0x71d   :  { %v3083_v11 = vunpack.i.h.bf16 %v3081_v56  ;;  %v3082_v40 = vunpack.i.l.bf16 %v3081_v56  ;;  %v3078_v61 = vunpack.i.h.bf16 %v3076_v2  ;;  %v3077_v3 = vunpack.i.l.bf16 %v3076_v2 }
 0x71e   :  { %v2073_v5 = vstv %s2072_s18 }
 0x71f   :  { %v1911_v32 = vsel %vm1094_vm4, %v1909_v39, %v3078_v61  ;;  %v1910_v60 = vsel %vm1094_vm4, %v1908_v13, %v3077_v3  ;;  %vm2074_vm10 = vcmp.lt.s32.totalorder %v4735_v41, %v2073_v5  ;;  %vm2075_vm11 = vcmp.lt.s32.totalorder %v4736_v63, %v2073_v5  ;;  %v3144_v39 = vld [vmem:[%s4707_s13] sm:$0xff]  }
 0x720   :  { %v1913_v58 = vsel %vm1881_vm6, %v1911_v32, %v3083_v11  ;;  %v1912_v33 = vsel %vm1881_vm6, %v1910_v60, %v3082_v40  ;;  %v2710_v56 = vsel %vm2074_vm10, 1.0, %v4732_v52  ;;  %v2711_v2 = vsel %vm2075_vm11, 1.0, %v4732_v52  ;;  %v3145_v32 = vld [vmem:[%s4707_s13 + $0x8] sm:$0xff]   ;;  %2925 = vmatprep.subr.bf16.mxu0 %v3144_v39 }
 0x721   :  { %v1915_v10 = vpack.c.bf16 %v1913_v58, %v1912_v33  ;;  %v3486_v11 = vmov 1.0   ;;  %v2715_v61 = vsel %vm2130_vm12, 1.0, %v4732_v52  ;;  %v3085_v3 = vpack.i.bf16 %v2711_v2, %v2710_v56  ;;  %2926 = vmatpush3.bf16.msra.mxu0 %v3144_v39 }
 0x722   :  { %v3096_v40 = vpack.i.bf16 %v2716_v44, %v3486_v11  ;;  %v3101_v13 = vpack.i.bf16 %v3486_v11, %v2715_v61  ;;  %2927 = vmatprep.subr.bf16.mxu0 %v3145_v32 }
 0x723   :  { %2922 = vmatmul.mubr.msk.bf16.vlgmr.msra.gmra.mrb[28].mxu1 %vm159_vm0, %v1915_v10 }
 0x725   :  { %2928 = vmatpush3.bf16.msra.mxu0 %v3145_v32 }
 0x7f6   :  { %v2923_v49 = vpop.f32.mrb[28].mxu1 }
 0x7f7   :  { %v1979_v47 = vpop.f32.mrb[29].mxu1  ;;  %v1988_v19 = vadd.f32 %v2923_v49, %v2703_v43 }
 0x7f8   :  { %v1980_v27 = vadd.f32 %v2703_v43, %v1979_v47  ;;  %v2924_v7 = vpop.f32.mrb[30].mxu1 }
 0x7f9   :  { %v1982_v29 = vpop.f32.mrb[31].mxu1  ;;  %v4449_v16 = vadd.f32 %v3259_v26, %v1988_v19  ;;  %v1991_v34 = vadd.f32 %v2924_v7, %v2703_v43  ;;  %v2708_v26 = vld [vmem:[#allocation10] ss:$0 sm:$0xff] }
 0x7fa   :  { %v4444_v38 = vadd.f32 %v3258_v23, %v1980_v27  ;;  %v1983_v62 = vadd.f32 %v2703_v43, %v1982_v29 }
 0x7fb   :  { %v4463_v8 = vadd.f32 %v3261_v15, %v1991_v34  ;;  %v2004_v46 = vsel %vm159_vm0, %v4449_v16, 0.0  ;;  %v3146_v15 = vld [vmem:[%s4707_s13 + $0x10] sm:$0xff]  }
 0x7fc   :  { %v4454_v28 = vadd.f32 %v3260_v14, %v1983_v62  ;;  %v1998_v17 = vsel %vm159_vm0, %v4444_v38, 0.0  ;;  %v2709_v14 = vld [vmem:[#allocation11] ss:$0 sm:$0xff]  ;;  %2929 = vmatprep.subr.bf16.mxu0 %v3146_v15 }
 0x7fd   :  { %1999 = vadd.xlane.f32.xlu0 %v1998_v17  ;;  %v2007_v48 = vsel %vm159_vm0, %v4463_v8, 0.0  ;;  %2930 = vmatpush3.bf16.msra.mxu0 %v3146_v15 }
 0x7fe   :  { %v2001_v24 = vsel %vm159_vm0, %v4454_v28, 0.0 }
 0x7ff   :  { %2002 = vadd.xlane.f32.xlu1 %v2001_v24 }
 0x801   :  { %2005 = vadd.xlane.f32.xlu0 %v2004_v46 }
 0x805   :  { %2008 = vadd.xlane.f32.xlu0 %v2007_v48 }
 0x810   :  { %3092 = vperm.xlu1 %3090, %v3091_v59  }
 0x88a   :  { %v2000_v6 = vpop.xlane.xlu0 %1999 }
 0x88b   :  { %v2010_v25 = vmul.f32 0.03125, %v2000_v6 }
 0x88c   :  { %v2003_v20 = vpop.xlane.xlu1 %2002 }
 0x88d   :  { %v4474_v50 = vsub.f32 %v4444_v38, %v2010_v25  ;;  %v2011_v45 = vmul.f32 0.03125, %v2003_v20  ;;  %v3147_v20 = vld [vmem:[%s4707_s13 + $0x18] sm:$0xff]  }
 0x88e   :  { %v2006_v22 = vpop.xlane.xlu0 %2005  ;;  %2931 = vmatprep.subr.bf16.mxu0 %v3147_v20 }
 0x88f   :  { %v2012_v35 = vmul.f32 0.03125, %v2006_v22  ;;  %v4478_v37 = vsub.f32 %v4454_v28, %v2011_v45  ;;  %v2018_v9 = vmul.f32 %v4474_v50, %v4474_v50  ;;  %2932 = vmatpush3.bf16.msra.mxu0 %v3147_v20 }
 0x890   :  { %v4503_v60 = vpop.permute.xlu1 %3092 }
 0x891   :  { %v2016_v36 = vsub.f32 %v4449_v16, %v2012_v35  ;;  %v2022_v12 = vsel %vm159_vm0, %v2018_v9, 0.0  ;;  %v2019_v31 = vmul.f32 %v4478_v37, %v4478_v37  ;;  %v3094_v54 = vunpack.i.l.bf16 %v4503_v60 }
 0x892   :  { %v2009_v1 = vpop.xlane.xlu0 %2008  ;;  %v3095_v22 = vunpack.i.h.bf16 %v4503_v60 }
 0x893   :  { %v2013_v55 = vmul.f32 0.03125, %v2009_v1  ;;  %v2020_v42 = vmul.f32 %v2016_v36, %v2016_v36  ;;  %v2025_v53 = vsel %vm159_vm0, %v2019_v31, 0.0  ;;  %v3148_v31 = vld [vmem:[%s4707_s13 + $0x20] sm:$0xff]  }
 0x894   :  { %2933 = vmatprep.subr.bf16.mxu0 %v3148_v31 }
 0x895   :  { %v2017_v51 = vsub.f32 %v4463_v8, %v2013_v55  ;;  %v2028_v18 = vsel %vm159_vm0, %v2020_v42, 0.0  ;;  %2934 = vmatpush3.bf16.msra.mxu0 %v3148_v31 }
 0x896   :  { %2029 = vadd.xlane.f32.xlu0 %v2028_v18 }
 0x897   :  { %v2021_v57 = vmul.f32 %v2017_v51, %v2017_v51 }
 0x899   :  { %v2031_v21 = vsel %vm159_vm0, %v2021_v57, 0.0 }
 0x89a   :  { %2023 = vadd.xlane.f32.xlu0 %v2022_v12  ;;  %2032 = vadd.xlane.f32.xlu1 %v2031_v21 }
 0x89e   :  { %2026 = vadd.xlane.f32.xlu1 %v2025_v53 }
 0x8af   :  { %3097 = vperm.xlu1 %3090, %v3096_v40  }
 0x8b0   :  { %3086 = vperm.xlu0 %3084, %v3085_v3  }
 0x8b3   :  { %3102 = vperm.xlu1 %3090, %v3101_v13  }
 0x923   :  { %v2030_v52 = vpop.xlane.xlu0 %2029 }
 0x924   :  { %v2036_v58 = vmul.f32 0.03125, %v2030_v52  ;;  %v3149_v52 = vld [vmem:[%s4707_s13 + $0x28] sm:$0xff]   ;;  %s3488_s13 = smov 64  }
 0x925   :  { %2935 = vmatprep.subr.bf16.mxu0 %v3149_v52 }
 0x926   :  { %v2040_v33 = vadd.f32 1e-05, %v2036_v58  ;;  %2936 = vmatpush3.bf16.msra.mxu0 %v3149_v52  ;;  %v3151_v52 = vld [vmem:[%s4709_s15 + $0x8] sm:$0xff]  }
 0x927   :  { %v2033_v10 = vpop.xlane.xlu1 %2032  ;;  %v2024_v43 = vpop.xlane.xlu0 %2023 }
 0x928   :  { %3234 = vrsqrt.f32 %v2040_v33  ;;  %v2037_v49 = vmul.f32 0.03125, %v2033_v10  ;;  %v2034_v47 = vmul.f32 0.03125, %v2024_v43 }
 0x92a   :  { %v2041_v19 = vadd.f32 1e-05, %v2037_v49  ;;  %v2038_v27 = vadd.f32 1e-05, %v2034_v47 }
 0x92b   :  { %v2027_v7 = vpop.xlane.xlu1 %2026 }
 0x92c   :  { %3236 = vrsqrt.f32 %v2041_v19  ;;  %v2035_v29 = vmul.f32 0.03125, %v2027_v7 }
 0x92d   :  { %3238 = vrsqrt.f32 %v2038_v27 }
 0x92e   :  { %v2039_v23 = vadd.f32 1e-05, %v2035_v29 }
 0x92f   :  { %v4508_v48 = vpop.permute.xlu0 %3086  ;;  %v3098_v53 = vpop.permute.xlu1 %3097 }
 0x930   :  { %3240 = vrsqrt.f32 %v2039_v23  ;;  %v3088_v25 = vunpack.i.l.bf16 %v4508_v48  ;;  %v3089_v55 = vunpack.i.h.bf16 %v4508_v48  ;;  %v4532_v13 = vunpack.i.h.bf16 %v3098_v53 }
 0x931   :  { %v4534_v39 = vunpack.i.l.bf16 %v3098_v53  ;;  %v2717_v53 = vld [vmem:[#allocation17] ss:$0 sm:$0xff] }
 0x932   :  { %v3235_v62 = vpop.eup %3234 }
 0x933   :  { %v2048_v34 = vmul.f32 %v3235_v62, %v2016_v36  ;;  %v3103_v62 = vpop.permute.xlu1 %3102 }
 0x935   :  { %v2059_v17 = vmul.f32 %v2708_v26, %v2048_v34 }
 0x936   :  { %v3237_v24 = vpop.eup %3236 }
 0x937   :  { %v3239_v46 = vpop.eup %3238  ;;  %v2049_v30 = vmul.f32 %v3237_v24, %v2017_v51  ;;  %v2070_v41 = vadd.f32 %v2709_v14, %v2059_v17  ;;  %v4553_v17 = vunpack.i.l.bf16 %v3103_v62 }
 0x938   :  { %v2046_v63 = vmul.f32 %v3239_v46, %v4474_v50 }
 0x939   :  { %v2060_v4 = vmul.f32 %v2708_v26, %v2049_v30  ;;  %v2110_v50 = vmul.f32 %v3094_v54, %v2070_v41 }
 0x93a   :  { %v3241_v59 = vpop.eup %3240  ;;  %v2057_v6 = vmul.f32 %v2708_v26, %v2046_v63 }
 0x93b   :  { %v2047_v35 = vmul.f32 %v3241_v59, %v4478_v37  ;;  %v2071_v45 = vadd.f32 %v2709_v14, %v2060_v4  ;;  %v2122_v57 = vrot.slane %v2110_v50, 7  ;;  %v2158_v2 = vrot.slane %v2110_v50, 1 }
 0x93c   :  { %v2068_v36 = vadd.f32 %v2709_v14, %v2057_v6 }
 0x93d   :  { %v2058_v1 = vmul.f32 %v2708_v26, %v2047_v35  ;;  %v2111_v42 = vmul.f32 %v3095_v22, %v2071_v45 }
 0x93e   :  { %v2108_v51 = vmul.f32 %v3088_v25, %v2068_v36 }
 0x93f   :  { %v2069_v18 = vadd.f32 %v2709_v14, %v2058_v1  ;;  %v2113_v9 = vrot.slane %v2111_v42, 7  ;;  %v3106_v37 = vpack.i.bf16 %v2111_v42, %v2110_v50  ;;  %v2160_v21 = vrot.slane %v2111_v42, 1 }
 0x940   :  { %v2119_v12 = vrot.slane %v2108_v51, 7  ;;  %v2155_v44 = vrot.slane %v2108_v51, 1  ;;  %v4551_v14 = vunpack.i.h.bf16 %v3103_v62 }
 0x941   :  { %v2109_v5 = vmul.f32 %v3089_v55, %v2069_v18  ;;  %3107 = vrot.lane.b32.xlu1 %v3106_v37, %s3487_s2  ;;  %v2124_v56 = vsel %vm2118_vm13, %v2122_v57, %v2113_v9  ;;  %v2161_v32 = vsel %vm2154_vm14, %v2158_v2, %v2160_v21 }
 0x942   :  { %v2129_v11 = vsel %vm2118_vm13, %v2113_v9, %v2119_v12  ;;  %v2167_v10 = vsel %vm2154_vm14, %v2160_v21, %v2155_v44  ;;  %v2190_v7 = vmul.f32 %v4534_v39, %v2161_v32  ;;  %v2153_v1 = vmul.f32 %v4551_v14, %v2124_v56 }
 0x943   :  { %v2120_v40 = vrot.slane %v2109_v5, 7  ;;  %v2156_v61 = vrot.slane %v2109_v5, 1  ;;  %v3111_v3 = vpack.i.bf16 %v2109_v5, %v2108_v51  ;;  %v2191_v29 = vmul.f32 %v4532_v13, %v2167_v10  ;;  %v3154_v10 = vld [vmem:[%s4709_s15 + $0x20] sm:$0xff]  }
 0x944   :  { %v2150_v46 = vmul.f32 %v4553_v17, %v2129_v11 }
 0x945   :  { %3112 = vrot.lane.b32.xlu1 %v3111_v3, %s3487_s2  ;;  %v2157_v58 = vsel %vm2154_vm14, %v2155_v44, %v2156_v61  ;;  %v2159_v33 = vsel %vm2154_vm14, %v2156_v61, %v2158_v2  ;;  %v2123_v43 = vsel %vm2118_vm13, %v2120_v40, %v2122_v57  ;;  %v2121_v19 = vsel %vm2118_vm13, %v2119_v12, %v2120_v40  ;;  %v3150_v3 = vld [vmem:[%s4709_s15] sm:$0xff]  }
 0x946   :  { %v2188_v49 = vmul.f32 %v4534_v39, %v2157_v58  ;;  %v2189_v47 = vmul.f32 %v4532_v13, %v2159_v33  ;;  %v3121_v23 = vpack.i.bf16 %v2191_v29, %v2190_v7  ;;  %v2151_v30 = vmul.f32 %v4551_v14, %v2121_v19  ;;  %2562 = vmatpush1.bf16.msra.mxu1 %v3150_v3  ;;  %v3152_v58 = vld [vmem:[%s4709_s15 + $0x10] sm:$0xff]   ;;  %v3153_v33 = vld [vmem:[%s4709_s15 + $0x18] sm:$0xff]   ;;  %v3158_v19 = vld [vmem:[%s4709_s15 + $0x40] sm:$0xff]  }
 0x947   :  { %v2152_v36 = vmul.f32 %v4553_v17, %v2123_v43  ;;  %2563 = vmatprep.subr.bf16.mxu1 %v3485_v0  ;;  %v3155_v43 = vld [vmem:[%s4709_s15 + $0x28] sm:$0xff]   ;;  %v3160_v7 = vld [vmem:[%s4709_s15 + $0x50] sm:$0xff]  }
 0x948   :  { %v3116_v27 = vpack.i.bf16 %v2189_v47, %v2188_v49  ;;  %v3156_v49 = vld [vmem:[%s4709_s15 + $0x30] sm:$0xff]   ;;  %v3157_v47 = vld [vmem:[%s4709_s15 + $0x38] sm:$0xff]  }
 0x94a   :  { %3117 = vrot.lane.b32.xlu1 %v3116_v27, %s3488_s13  ;;  %2564 = vmatpush1.bf16.msra.mxu1 %v3151_v52  ;;  %v3159_v27 = vld [vmem:[%s4709_s15 + $0x48] sm:$0xff]  }
 0x94b   :  { %2565 = vmatprep.subr.bf16.mxu1 %v3485_v0 }
 0x94e   :  { %3122 = vrot.lane.b32.xlu1 %v3121_v23, %s3488_s13  ;;  %2566 = vmatpush1.bf16.msra.mxu1 %v3152_v58 }
 0x94f   :  { %2567 = vmatprep.subr.bf16.mxu1 %v3485_v0 }
 0x952   :  { %2568 = vmatpush1.bf16.msra.mxu1 %v3153_v33 }
 0x953   :  { %2569 = vmatprep.subr.bf16.mxu1 %v3485_v0 }
 0x956   :  { %2570 = vmatpush1.bf16.msra.mxu1 %v3154_v10 }
 0x957   :  { %2571 = vmatprep.subr.bf16.mxu1 %v3485_v0 }
 0x95a   :  { %2572 = vmatpush1.bf16.msra.mxu1 %v3155_v43 }
 0x95b   :  { %2573 = vmatprep.subr.bf16.mxu1 %v3485_v0 }
 0x95e   :  { %2574 = vmatpush1.bf16.msra.mxu1 %v3156_v49 }
 0x95f   :  { %2575 = vmatprep.subr.bf16.mxu1 %v3485_v0 }
 0x962   :  { %2576 = vmatpush1.bf16.msra.mxu1 %v3157_v47 }
 0x963   :  { %2577 = vmatprep.subr.bf16.mxu1 %v3485_v0 }
 0x966   :  { %2578 = vmatpush1.bf16.msra.mxu1 %v3158_v19 }
 0x967   :  { %2579 = vmatprep.subr.bf16.mxu1 %v3485_v0 }
 0x96a   :  { %2580 = vmatpush1.bf16.msra.mxu1 %v3159_v27 }
 0x96b   :  { %2581 = vmatprep.subr.bf16.mxu1 %v3485_v0 }
 0x96e   :  { %2582 = vmatpush1.bf16.msra.mxu1 %v3160_v7 }
 0x96f   :  { %2583 = vmatprep.subr.bf16.mxu1 %v3485_v0 }
 0x9b3   :  { %v3108_v26 = vpop.permute.xlu1 %3107 }
 0x9b4   :  { %v3110_v59 = vunpack.i.h.bf16 %v3108_v26  ;;  %v3109_v6 = vunpack.i.l.bf16 %v3108_v26 }
 0x9b6   :  { %v2222_v37 = vsel %vm159_vm0, %v2152_v36, %v3109_v6  ;;  %v2223_v57 = vsel %vm159_vm0, %v2153_v1, %v3110_v59 }
 0x9b7   :  { %v3113_v34 = vpop.permute.xlu1 %3112 }
 0x9b8   :  { %v3115_v24 = vunpack.i.h.bf16 %v3113_v34  ;;  %v3114_v15 = vunpack.i.l.bf16 %v3113_v34 }
 0x9ba   :  { %v2220_v20 = vsel %vm159_vm0, %v2150_v46, %v3114_v15  ;;  %v2221_v35 = vsel %vm159_vm0, %v2151_v30, %v3115_v24 }
 0x9bc   :  { %v3118_v41 = vpop.permute.xlu1 %3117 }
 0x9bd   :  { %v3120_v63 = vunpack.i.h.bf16 %v3118_v41  ;;  %v3119_v4 = vunpack.i.l.bf16 %v3118_v41 }
 0x9bf   :  { %v2225_v45 = vsel %vm2224_vm15, %v2220_v20, %v3119_v4  ;;  %v2226_v50 = vsel %vm2224_vm15, %v2221_v35, %v3120_v63 }
 0x9c0   :  { %v2229_v42 = vpack.c.bf16 %v2226_v50, %v2225_v45  ;;  %v3123_v51 = vpop.permute.xlu1 %3122 }
 0x9c1   :  { %v3125_v18 = vunpack.i.h.bf16 %v3123_v51  ;;  %v3124_v9 = vunpack.i.l.bf16 %v3123_v51 }
 0x9c2   :  { %2937 = vmatprep.mubr.msk.bf16.mxu0 %vm2286_vm1, %v2229_v42  ;;  %v3161_v42 = vld [vmem:[%s4709_s15 + $0x58] sm:$0xff]  }
 0x9c3   :  { %v2228_v12 = vsel %vm2224_vm15, %v2223_v57, %v3125_v18  ;;  %v2227_v21 = vsel %vm2224_vm15, %v2222_v37, %v3124_v9  ;;  %2584 = vmatpush1.bf16.msra.mxu1 %v3161_v42 }
 0x9c4   :  { %v2230_v31 = vpack.c.bf16 %v2228_v12, %v2227_v21 }
 0x9c6   :  { %2938 = vmatmul.mubr.msk.bf16.vlgmr.msra.gmra.mrb[48].mxu0 %vm2286_vm1, %v2230_v31 }
 0xa99   :  { %v2939_v5 = vpop.f32.mrb[48].mxu0 }
 0xa9a   :  { %v2327_v44 = vpop.f32.mrb[49].mxu0  ;;  %v4573_v61 = vadd.f32 %v2939_v5, %v2717_v53 }
 0xa9b   :  { %v4567_v2 = vadd.f32 %v2717_v53, %v2327_v44  ;;  %v2940_v56 = vpop.f32.mrb[50].mxu0 }
 0xa9c   :  { %v2330_v11 = vpop.f32.mrb[51].mxu0  ;;  %v4580_v32 = vadd.f32 %v2940_v56, %v2717_v53  ;;  %v2344_v62 = vsub.f32 0.0, %v4573_v61 }
 0xa9d   :  { %v4569_v40 = vadd.f32 %v2717_v53, %v2330_v11  ;;  %2374 = vrot.lane.b32.xlu1 %v4567_v2, %s3488_s13  ;;  %v2342_v29 = vsub.f32 0.0, %v4567_v2 }
 0xa9e   :  { %v2345_v34 = vsub.f32 0.0, %v4580_v32  ;;  %v2350_v15 = vmul.f32 1.442695, %v2344_v62 }
 0xa9f   :  { %2376 = vrot.lane.b32.xlu0 %v4569_v40, %s3488_s13  ;;  %v2343_v23 = vsub.f32 0.0, %v4569_v40  ;;  %v2346_v26 = vmul.f32 1.442695, %v2342_v29 }
 0xaa0   :  { %v2352_v46 = vmul.f32 1.442695, %v2345_v34 }
 0xaa1   :  { %2378 = vrot.lane.b32.xlu1 %v4573_v61, %s3488_s13  ;;  %v2348_v24 = vmul.f32 1.442695, %v2343_v23  ;;  %3242 = vpow2.f32 %v2346_v26 }
 0xaa3   :  { %2380 = vrot.lane.b32.xlu0 %v4580_v32, %s3488_s13  ;;  %3244 = vpow2.f32 %v2348_v24 }
 0xaa4   :  { %3246 = vpow2.f32 %v2350_v15 }
 0xaa5   :  { %3248 = vpow2.f32 %v2352_v46 }
 0xaab   :  { %v3243_v30 = vpop.eup %3242 }
 0xaac   :  { %v2354_v63 = vadd.f32 1.0, %v3243_v30 }
 0xaad   :  { %v3245_v41 = vpop.eup %3244 }
 0xaae   :  { %v3247_v0 = vpop.eup %3246  ;;  %v2355_v4 = vadd.f32 1.0, %v3245_v41  ;;  %3250 = vrcp.f32 %v2354_v63 }
 0xaaf   :  { %v3249_v59 = vpop.eup %3248  ;;  %v2356_v6 = vadd.f32 1.0, %v3247_v0 }
 0xab0   :  { %v2357_v20 = vadd.f32 1.0, %v3249_v59  ;;  %3252 = vrcp.f32 %v2355_v4 }
 0xab1   :  { %3254 = vrcp.f32 %v2356_v6 }
 0xab2   :  { %3256 = vrcp.f32 %v2357_v20 }
 0xab8   :  { %v3251_v35 = vpop.eup %3250 }
 0xab9   :  { %v2366_v50 = vmul.f32 %v3251_v35, %v4567_v2 }
 0xaba   :  { %v3253_v45 = vpop.eup %3252 }
 0xabb   :  { %v3255_v36 = vpop.eup %3254  ;;  %v2367_v18 = vmul.f32 %v3253_v45, %v4569_v40 }
 0xabc   :  { %v3257_v9 = vpop.eup %3256  ;;  %v2368_v21 = vmul.f32 %v3255_v36, %v4573_v61  ;;  %v2726_v36 = vld [vmem:[%s4710_s16] ss:$0 sm:$0xff]  ;;  %s2623_s16 = sshll.u32 %s3489_s22, 4  ;;  %s2624_s16 = int_to_ptr.vmem [resolvable:$true] %s2623_s16 }
 0xabd   :  { %v2369_v44 = vmul.f32 %v3257_v9, %v4580_v32  ;;  %p3433_p6 = scmp.lt.s32.totalorder %s2624_s16, %s2624_s16 }
 0xb0f   :  { %v2375_v1 = vpop.permute.xlu1 %2374 }
 0xb10   :  { %v2386_v51 = vmul.f32 %v2375_v1, %v2366_v50 }
 0xb11   :  { %v2377_v37 = vpop.permute.xlu0 %2376 }
 0xb12   :  { %v2390_v57 = vmul.f32 %v3088_v25, %v2386_v51  ;;  %v2387_v12 = vmul.f32 %v2377_v37, %v2367_v18 }
 0xb13   :  { %v2379_v31 = vpop.permute.xlu1 %2378 }
 0xb14   :  { %v2391_v53 = vmul.f32 %v3089_v55, %v2387_v12  ;;  %v2388_v5 = vmul.f32 %v2379_v31, %v2368_v21  ;;  %v2415_v2 = vrot.slane %v2390_v57, 1  ;;  %v2400_v58 = vrot.slane %v2390_v57, 7 }
 0xb15   :  { %v2381_v56 = vpop.permute.xlu0 %2380 }
 0xb16   :  { %v2401_v11 = vrot.slane %v2391_v53, 7  ;;  %v2416_v40 = vrot.slane %v2391_v53, 1  ;;  %v2392_v3 = vmul.f32 %v3094_v54, %v2388_v5  ;;  %v2389_v52 = vmul.f32 %v2381_v56, %v2369_v44 }
 0xb17   :  { %v3126_v25 = vpack.i.bf16 %v2391_v53, %v2390_v57 }
 0xb18   :  { %v2403_v33 = vrot.slane %v2392_v3, 7  ;;  %v2418_v10 = vrot.slane %v2392_v3, 1  ;;  %v2393_v61 = vmul.f32 %v3095_v22, %v2389_v52  ;;  %v2417_v48 = vsel %vm2154_vm14, %v2415_v2, %v2416_v40 }
 0xb19   :  { %3127 = vrot.lane.b32.xlu1 %v3126_v25, %s3488_s13  ;;  %v2402_v55 = vsel %vm2118_vm13, %v2400_v58, %v2401_v11  ;;  %v2428_v54 = vmul.f32 %v4534_v39, %v2417_v48 }
 0xb1a   :  { %v2395_v32 = vrot.slane %v2393_v61, 7  ;;  %v2420_v43 = vrot.slane %v2393_v61, 1  ;;  %v3131_v49 = vpack.i.bf16 %v2393_v61, %v2392_v3  ;;  %v2419_v47 = vsel %vm2154_vm14, %v2416_v40, %v2418_v10 }
 0xb1b   :  { %v2429_v19 = vmul.f32 %v4532_v13, %v2419_v47  ;;  %v2404_v27 = vsel %vm2118_vm13, %v2401_v11, %v2403_v33  ;;  %v2412_v41 = vmul.f32 %v4551_v14, %v2402_v55 }
 0xb1c   :  { %3132 = vrot.lane.b32.xlu0 %v3131_v49, %s3488_s13  ;;  %v2410_v60 = vsel %vm2118_vm13, %v2395_v32, %v2400_v58  ;;  %v2421_v22 = vsel %vm2154_vm14, %v2418_v10, %v2420_v43  ;;  %v2427_v7 = vsel %vm2154_vm14, %v2420_v43, %v2415_v2  ;;  %v2405_v29 = vsel %vm2118_vm13, %v2403_v33, %v2395_v32  ;;  %s3428_s13 = scalar_lea.vmem %s2624_s16, 512 }
 0xb1d   :  { %v2449_v23 = vpack.c.bf16 %v2429_v19, %v2428_v54  ;;  %v2430_v62 = vmul.f32 %v4534_v39, %v2421_v22  ;;  %v2431_v26 = vmul.f32 %v4532_v13, %v2427_v7  ;;  %v2411_v30 = vmul.f32 %v4553_v17, %v2410_v60  ;;  %p3429_p5 = scmp.ne.s32.totalorder %s2624_s16, %s3428_s13  ;;  %p3434_p7 = scmp.lt.s32.totalorder %s3428_s13, %s3428_s13 }
 0xb1e   :  { %v2413_v59 = vmul.f32 %v4553_v17, %v2404_v27  ;;  %v2414_v20 = vmul.f32 %v4551_v14, %v2405_v29 }
 0xb1f   :  { %2739 = vmatprep.mubr.msk.bf16.mxu1 %vm2224_vm15, %v2449_v23  ;;  %v2451_v34 = vpack.c.bf16 %v2431_v26, %v2430_v62  ;;  %p3435_p8 = por %p3434_p7, %p3433_p6 }
 0xb21   :  { %p3436_p9 = pnand %p3435_p8, %p3429_p5 }
 0xb8b   :  { %v3128_v24 = vpop.permute.xlu1 %3127 }
 0xb8c   :  { %v3130_v15 = vunpack.i.h.bf16 %v3128_v24  ;;  %v3129_v46 = vunpack.i.l.bf16 %v3128_v24 }
 0xb8e   :  { %v2444_v63 = vsel %vm2224_vm15, %v2411_v30, %v3129_v46  ;;  %v2445_v0 = vsel %vm2224_vm15, %v2412_v41, %v3130_v15  ;;  %v3133_v4 = vpop.permute.xlu0 %3132 }
 0xb8f   :  { %v2448_v39 = vpack.c.bf16 %v2445_v0, %v2444_v63  ;;  %v3135_v6 = vunpack.i.h.bf16 %v3133_v4  ;;  %v3134_v13 = vunpack.i.l.bf16 %v3133_v4 }
 0xb91   :  { %2594 = vmatmul.mubr.bf16.vlgmr.msra.gmra.mrb[32].mxu1 %v2448_v39  ;;  %v2446_v35 = vsel %vm2224_vm15, %v2413_v59, %v3134_v13  ;;  %v2447_v45 = vsel %vm2224_vm15, %v2414_v20, %v3135_v6 }
 0xb92   :  { %2740 = vmatprep.mubr.msk.bf16.mxu1 %vm2224_vm15, %v2451_v34  ;;  %v2450_v50 = vpack.c.bf16 %v2447_v45, %v2446_v35 }
 0xb99   :  { %2602 = vmatmul.mubr.bf16.gmra.mrb[36].mxu1 %v2450_v50 }
 0xc64   :  { %v2595_v1 = vpop.f32.mrb[32].mxu1 }
 0xc65   :  { %v2596_v17 = vadd.f32 %v2726_v36, %v2595_v1  ;;  %v2597_v42 = vpop.f32.mrb[33].mxu1 }
 0xc66   :  { %v2598_v51 = vpop.f32.mrb[34].mxu1 }
 0xc67   :  { %v2610_v18 = vadd.f32 %v2596_v17, %v4444_v38  ;;  %v2599_v14 = vadd.f32 %v2726_v36, %v2598_v51  ;;  %v2600_v9 = vpop.f32.mrb[35].mxu1 }
 0xc69   :  { %2614 = vst.msk [vmem:[#allocation19] sm:$0xff] %vm159_vm0, %v2610_v18  ;;  %v2611_v37 = vadd.f32 %v2599_v14, %v4454_v28 }
 0xc6b   :  { %2615 = vst.msk [vmem:[#allocation19 + $0x8] sm:$0xff] %vm159_vm0, %v2611_v37 }
 0xc6c   :  { %v2603_v57 = vpop.f32.mrb[36].mxu1 }
 0xc6d   :  { %v2604_v12 = vadd.f32 %v2726_v36, %v2603_v57  ;;  %v2605_v21 = vpop.f32.mrb[37].mxu1 }
 0xc6e   :  { %v2606_v31 = vpop.f32.mrb[38].mxu1 }
 0xc6f   :  { %v2612_v53 = vadd.f32 %v2604_v12, %v4449_v16  ;;  %v2607_v5 = vadd.f32 %v2726_v36, %v2606_v31  ;;  %v2608_v44 = vpop.f32.mrb[39].mxu1 }
 0xc71   :  { %2616 = vst.msk [vmem:[#allocation19 + $0x10] sm:$0xff] %vm159_vm0, %v2612_v53  ;;  %v2613_v38 = vadd.f32 %v2607_v5, %v4463_v8 }
 0xc73   :  { %2617 = vst.msk [vmem:[#allocation19 + $0x18] sm:$0xff] %vm159_vm0, %v2613_v38 }
 0xc74   :  { %3439 = shalt.err (!%p3436_p9)
}
 0xc75   :  { %s3440_s5 = scalar_lea.hbm %s4711_s17, 512 }
 0xc76   :  { %p3441_p10 = scmp.ne.s32.totalorder %s4711_s17, %s3440_s5  ;;  %p3444_p11 = scmp.lt.u32.totalorder %s3440_s5, %s4711_s17 }
 0xc78   :  { %p3446_p12 = pnand %p3444_p11, %p3441_p10 }
 0xc7a   :  { %3449 = shalt.err (!%p3446_p12)
}
 0xc7b   :  { %s3490_s27 = smov 128  }
 0xc7c   :  { %2629 = dma.vmem_to_hbm [thread:$0]  %s2624_s16, 512, %s4711_s17, [#allocation6], %s3490_s27, %s3490_s27, %s3482_s1  }
 0xc7d   :  { %3466 = dma.done.wait [#allocation6], 512  }
 0xc7e   :  { %3467 = vsyncadd [#allocation6], 4294966784 }
 0xc7f   :  { %2633 = vsyncpa [#allocation5], 1 }
 0xc80   :  { %2634 = vsyncpa [#allocation9], 1 }
 0xc81   :  { %2635 = vsyncpa [#allocation12], 1 }
 0xc82   :  { %2636 = vsyncpa [#allocation18], 1 }
 0xc83   :  { %2637 = vsyncpa [#allocation6], 1 }
 0xc84   :  { %2638 = vsyncpa [#allocation7], 1 }
 0xc85   :  { %2639 = vsyncpa [#allocation15], 1 }

// kernel: tpu_custom_call.1
= control target key start
LH: loop header
LB: loop body
LE: loop exit
PB: predicated region body
PF: predicated region fallthrough
CT: control target
= control target key end

     0   :  { %s4694_s0 = inlined_call_operand.hbm [shape: s32[2], index: 0, kind: input, shape index: {}]   ;;  %s4695_s1 = inlined_call_operand.vmem [shape: f32[32,32], index: 1, kind: input, shape index: {}]   ;;  %s4696_s2 = inlined_call_operand.hbm [shape: f32[1,32], index: 2, kind: input, shape index: {}]   ;;  %s4697_s3 = inlined_call_operand.hbm [shape: f32[1,32], index: 3, kind: input, shape index: {}]   ;;  %s4698_s4 = inlined_call_operand.hbm [shape: f32[1,32], index: 4, kind: input, shape index: {}]   ;;  %s4699_s5 = inlined_call_operand.hbm [shape: f32[1,32], index: 5, kind: input, shape index: {}]   ;;  %s4700_s6 = inlined_call_operand.vmem [shape: bf16[32,32], index: 6, kind: input, shape index: {}]   ;;  %s4701_s7 = inlined_call_operand.vmem [shape: bf16[32,32], index: 7, kind: input, shape index: {}]   ;;  %s4702_s8 = inlined_call_operand.vmem [shape: bf16[32,32], index: 8, kind: input, shape index: {}]   ;;  %s4703_s9 = inlined_call_operand.vmem [shape: f32[4,4], index: 9, kind: input, shape index: {}]   ;;  %s4704_s10 = inlined_call_operand.vmem [shape: f32[4,4], index: 10, kind: input, shape index: {}]   ;;  %s4705_s11 = inlined_call_operand.vmem [shape: bf16[32,32], index: 11, kind: input, shape index: {}]   ;;  %s4706_s12 = inlined_call_operand.hbm [shape: f32[1,32], index: 12, kind: input, shape index: {}]   ;;  %s4707_s13 = inlined_call_operand.vmem [shape: bf16[96,128], index: 13, kind: input, shape index: {}]   ;;  %s4708_s14 = inlined_call_operand.hbm [shape: f32[1,128], index: 14, kind: input, shape index: {}]   ;;  %s4709_s15 = inlined_call_operand.vmem [shape: bf16[192,32], index: 15, kind: input, shape index: {}]   ;;  %s4710_s16 = inlined_call_operand.vmem [shape: f32[1,32], index: 16, kind: input, shape index: {}]   ;;  %s4711_s17 = inlined_call_operand.hbm [shape: f32[32,32], index: 17, kind: output, shape index: {}]  }
   0x1   :  { %4721 = sst [smem:[#allocation31_spill]] %s4694_s0 }
   0x2   :  { %4722 = sst [smem:[#allocation32_spill]] %s4695_s1  ;;  %s4724_s26 = sld [smem:[#allocation31_spill]] }
   0x3   :  { %4723 = sst [smem:[#allocation33_spill]] %s4705_s11 }
   0x8   :  { %s3262_s11 = scalar_lea.hbm %s4724_s26, 16 }
   0x9   :  { %p3263_p0 = scmp.ne.s32.totalorder %s4724_s26, %s3262_s11  ;;  %p3266_p1 = scmp.lt.u32.totalorder %s3262_s11, %s4724_s26 }
   0xb   :  { %p3268_p2 = pnand %p3266_p1, %p3263_p0 }
   0xd   :  { %3271 = shalt.err (!%p3268_p2)  }
   0xe   :  { %s3468_s30 = smov [#allocation3]  }
   0xf   :  { %23 = dma.hbm_to_smem %s4724_s26, 16, %s3468_s30, [#allocation2] }
  0x10   :  { %3450 = dma.done.wait [#allocation2], 16 }
  0x11   :  { %3451 = vsyncadd [#allocation2], 4294967280 }
  0x12   :  { %25 = sfence }
  0x13   :  { %26 = vsyncpa [#allocation5], 0 }
  0x14   :  { %27 = vsyncpa [#allocation9], 0 }
  0x15   :  { %28 = vsyncpa [#allocation12], 0 }
  0x16   :  { %29 = vsyncpa [#allocation7], 0 }
  0x17   :  { %30 = vsyncpa [#allocation15], 0 }
  0x18   :  { %31 = vsyncpa [#allocation18], 0 }
  0x19   :  { %32 = vsyncpa [#allocation6], 0  ;;  %s3469_s1 = smov [#allocation8]   ;;  %s3470_s11 = smov [#allocation11]  }
  0x1a   :  { %s51_s20 = sshll.u32 %s3469_s1, 4  ;;  %s71_s21 = sshll.u32 %s3470_s11, 4  ;;  %s52_s20 = int_to_ptr.vmem [resolvable:$true] %s51_s20  ;;  %s72_s21 = int_to_ptr.vmem [resolvable:$true] %s71_s21 }
  0x1b   :  { %s3272_s24 = scalar_lea.hbm %s4697_s3, 16 }
  0x1c   :  { %p3273_p3 = scmp.ne.s32.totalorder %s4697_s3, %s3272_s24  ;;  %p3276_p4 = scmp.lt.u32.totalorder %s3272_s24, %s4697_s3 }
  0x1e   :  { %p3278_p5 = pnand %p3276_p4, %p3273_p3 }
  0x20   :  { %3281 = shalt.err (!%p3278_p5)
}
  0x21   :  { %s3282_s29 = scalar_lea.vmem %s52_s20, 16  ;;  %s3286_s0 = scalar_lea.vmem %s52_s20, 32 }
  0x22   :  { %p3283_p6 = scmp.ne.s32.totalorder %s52_s20, %s3282_s29  ;;  %p3287_p7 = scmp.lt.s32.totalorder %s52_s20, %s52_s20 }
  0x23   :  { %p3288_p8 = scmp.lt.s32.totalorder %s3286_s0, %s3282_s29 }
  0x25   :  { %p3289_p9 = por %p3288_p8, %p3287_p7 }
  0x27   :  { %p3290_p10 = pnand %p3289_p9, %p3283_p6 }
  0x29   :  { %3293 = shalt.err (!%p3290_p10)
}
  0x2a   :  { %54 = dma.hbm_to_vmem [thread:$0]  %s4697_s3, 16, %s52_s20, [#allocation9]  }
  0x2b   :  { %s3294_s11 = scalar_lea.hbm %s4699_s5, 16 }
  0x2c   :  { %p3295_p11 = scmp.ne.s32.totalorder %s4699_s5, %s3294_s11  ;;  %p3298_p12 = scmp.lt.u32.totalorder %s3294_s11, %s4699_s5 }
  0x2e   :  { %p3300_p13 = pnand %p3298_p12, %p3295_p11 }
  0x30   :  { %3303 = shalt.err (!%p3300_p13)
}
  0x31   :  { %s3304_s26 = scalar_lea.vmem %s72_s21, 16  ;;  %s3308_s27 = scalar_lea.vmem %s72_s21, 32 }
  0x32   :  { %p3305_p0 = scmp.ne.s32.totalorder %s72_s21, %s3304_s26  ;;  %p3309_p1 = scmp.lt.s32.totalorder %s72_s21, %s72_s21 }
  0x33   :  { %p3310_p2 = scmp.lt.s32.totalorder %s3308_s27, %s3304_s26 }
  0x35   :  { %p3311_p3 = por %p3310_p2, %p3309_p1 }
  0x37   :  { %p3312_p4 = pnand %p3311_p3, %p3305_p0 }
  0x39   :  { %3315 = shalt.err (!%p3312_p4)
}
  0x3a   :  { %74 = dma.hbm_to_vmem [thread:$0]  %s4699_s5, 16, %s72_s21, [#allocation12]  }
  0x3b   :  { %s3471_s28 = smov [#allocation4]   ;;  %s3472_s0 = smov [#allocation10]  }
  0x3c   :  { %s41_s29 = sshll.u32 %s3471_s28, 4  ;;  %s61_s30 = sshll.u32 %s3472_s0, 4  ;;  %s42_s29 = int_to_ptr.vmem [resolvable:$true] %s41_s29  ;;  %s62_s30 = int_to_ptr.vmem [resolvable:$true] %s61_s30 }
  0x3d   :  { %s3316_s1 = scalar_lea.hbm %s4696_s2, 16 }
  0x3e   :  { %p3317_p5 = scmp.ne.s32.totalorder %s4696_s2, %s3316_s1  ;;  %p3320_p6 = scmp.lt.u32.totalorder %s3316_s1, %s4696_s2 }
  0x40   :  { %p3322_p7 = pnand %p3320_p6, %p3317_p5 }
  0x42   :  { %3325 = shalt.err (!%p3322_p7)
}
  0x43   :  { %s3326_s5 = scalar_lea.vmem %s42_s29, 16  ;;  %s3330_s21 = scalar_lea.vmem %s42_s29, 32 }
  0x44   :  { %p3327_p8 = scmp.ne.s32.totalorder %s42_s29, %s3326_s5  ;;  %p3331_p9 = scmp.lt.s32.totalorder %s42_s29, %s42_s29 }
  0x45   :  { %p3332_p10 = scmp.lt.s32.totalorder %s3330_s21, %s3326_s5 }
  0x47   :  { %p3333_p11 = por %p3332_p10, %p3331_p9 }
  0x49   :  { %p3334_p12 = pnand %p3333_p11, %p3327_p8 }
  0x4b   :  { %3337 = shalt.err (!%p3334_p12)
}
  0x4c   :  { %44 = dma.hbm_to_vmem [thread:$0]  %s4696_s2, 16, %s42_s29, [#allocation5]  }
  0x4d   :  { %s3338_s20 = scalar_lea.hbm %s4698_s4, 16 }
  0x4e   :  { %p3339_p13 = scmp.ne.s32.totalorder %s4698_s4, %s3338_s20  ;;  %p3342_p0 = scmp.lt.u32.totalorder %s3338_s20, %s4698_s4 }
  0x50   :  { %p3344_p1 = pnand %p3342_p0, %p3339_p13 }
  0x52   :  { %3347 = shalt.err (!%p3344_p1)
}
  0x53   :  { %s3348_s1 = scalar_lea.vmem %s62_s30, 16  ;;  %s3352_s11 = scalar_lea.vmem %s62_s30, 32 }
  0x54   :  { %p3349_p2 = scmp.ne.s32.totalorder %s62_s30, %s3348_s1  ;;  %p3353_p3 = scmp.lt.s32.totalorder %s62_s30, %s62_s30 }
  0x55   :  { %p3354_p4 = scmp.lt.s32.totalorder %s3352_s11, %s3348_s1 }
  0x57   :  { %p3355_p5 = por %p3354_p4, %p3353_p3 }
  0x59   :  { %p3356_p6 = pnand %p3355_p5, %p3349_p2 }
  0x5b   :  { %3359 = shalt.err (!%p3356_p6)
}
  0x5c   :  { %64 = dma.hbm_to_vmem [thread:$0]  %s4698_s4, 16, %s62_s30, [#allocation9]  }
  0x5d   :  { %s87_s24 = sshll.u32 %s4703_s9, 4  ;;  %s97_s25 = sshll.u32 %s4704_s10, 4  ;;  %s88_s24 = int_to_ptr.vmem [resolvable:$true] %s87_s24  ;;  %s98_s25 = int_to_ptr.vmem [resolvable:$true] %s97_s25 }
  0x5e   :  { %s3360_s26 = scalar_lea.vmem %s88_s24, 64  ;;  %p3365_p8 = scmp.lt.s32.totalorder %s88_s24, %s88_s24 }
  0x5f   :  { %p3361_p7 = scmp.ne.s32.totalorder %s88_s24, %s3360_s26  ;;  %p3366_p9 = scmp.lt.s32.totalorder %s3360_s26, %s3360_s26 }
  0x61   :  { %p3367_p10 = por %p3366_p9, %p3365_p8 }
  0x63   :  { %p3368_p11 = pnand %p3367_p10, %p3361_p7 }
  0x65   :  { %3371 = shalt.err (!%p3368_p11)
}
  0x66   :  { %s3473_s27 = smov [#allocation13]   ;;  %s3372_s4 = scalar_lea.vmem %s98_s25, 64 }
  0x67   :  { %90 = dma.vmem_to_smem %s88_s24, 64, %s3473_s27, [#allocation7]  }
  0x68   :  { %p3373_p12 = scmp.ne.s32.totalorder %s98_s25, %s3372_s4  ;;  %p3377_p13 = scmp.lt.s32.totalorder %s98_s25, %s98_s25 }
  0x69   :  { %p3378_p0 = scmp.lt.s32.totalorder %s3372_s4, %s3372_s4 }
  0x6b   :  { %p3379_p1 = por %p3378_p0, %p3377_p13 }
  0x6d   :  { %p3380_p2 = pnand %p3379_p1, %p3373_p12 }
  0x6f   :  { %3383 = shalt.err (!%p3380_p2)
}
  0x70   :  { %s3474_s9 = smov [#allocation14]   ;;  %s3475_s10 = smov [#allocation16]  }
  0x71   :  { %100 = dma.vmem_to_smem %s98_s25, 64, %s3474_s9, [#allocation15]  }
  0x72   :  { %s109_s30 = sshll.u32 %s3475_s10, 4  ;;  %s3476_s3 = smov [#allocation17]   ;;  %s110_s30 = int_to_ptr.vmem [resolvable:$true] %s109_s30 }
  0x73   :  { %s121_s20 = sshll.u32 %s3476_s3, 4  ;;  %s3384_s18 = scalar_lea.hbm %s4706_s12, 16  ;;  %s122_s20 = int_to_ptr.vmem [resolvable:$true] %s121_s20 }
  0x74   :  { %p3385_p3 = scmp.ne.s32.totalorder %s4706_s12, %s3384_s18  ;;  %p3388_p4 = scmp.lt.u32.totalorder %s3384_s18, %s4706_s12 }
  0x76   :  { %p3390_p5 = pnand %p3388_p4, %p3385_p3 }
  0x78   :  { %3393 = shalt.err (!%p3390_p5)
}
  0x79   :  { %s3394_s29 = scalar_lea.vmem %s110_s30, 16  ;;  %s3398_s22 = scalar_lea.vmem %s110_s30, 32 }
  0x7a   :  { %p3395_p6 = scmp.ne.s32.totalorder %s110_s30, %s3394_s29  ;;  %p3399_p7 = scmp.lt.s32.totalorder %s110_s30, %s110_s30 }
  0x7b   :  { %p3400_p8 = scmp.lt.s32.totalorder %s3398_s22, %s3394_s29 }
  0x7d   :  { %p3401_p9 = por %p3400_p8, %p3399_p7 }
  0x7f   :  { %p3402_p10 = pnand %p3401_p9, %p3395_p6 }
  0x81   :  { %3405 = shalt.err (!%p3402_p10)
}
  0x82   :  { %112 = dma.hbm_to_vmem [thread:$0]  %s4706_s12, 16, %s110_s30, [#allocation12]  }
  0x83   :  { %s3406_s25 = scalar_lea.hbm %s4708_s14, 16 }
  0x84   :  { %p3407_p11 = scmp.ne.s32.totalorder %s4708_s14, %s3406_s25  ;;  %p3410_p12 = scmp.lt.u32.totalorder %s3406_s25, %s4708_s14 }
  0x86   :  { %p3412_p13 = pnand %p3410_p12, %p3407_p11 }
  0x88   :  { %3415 = shalt.err (!%p3412_p13)
}
  0x89   :  { %s3416_s10 = scalar_lea.vmem %s122_s20, 16  ;;  %s3420_s3 = scalar_lea.vmem %s122_s20, 32 }
  0x8a   :  { %p3417_p0 = scmp.ne.s32.totalorder %s122_s20, %s3416_s10  ;;  %p3421_p1 = scmp.lt.s32.totalorder %s122_s20, %s122_s20 }
  0x8b   :  { %p3422_p2 = scmp.lt.s32.totalorder %s3420_s3, %s3416_s10 }
  0x8d   :  { %p3423_p3 = por %p3422_p2, %p3421_p1 }
  0x8f   :  { %p3424_p4 = pnand %p3423_p3, %p3417_p0 }
  0x91   :  { %3427 = shalt.err (!%p3424_p4)
}
  0x92   :  { %124 = dma.hbm_to_vmem [thread:$0]  %s4708_s14, 16, %s122_s20, [#allocation18]  }
  0x93   :  { %3452 = dma.done.wait [#allocation5], 16  }
  0x94   :  { %3453 = vsyncadd [#allocation5], 4294967280 }
  0x95   :  { %3454 = dma.done.wait [#allocation9], 32  }
  0x96   :  { %3455 = vsyncadd [#allocation9], 4294967264 }
  0x97   :  { %3456 = dma.done.wait [#allocation12], 16  }
  0x98   :  { %3457 = vsyncadd [#allocation12], 4294967280 }
  0x99   :  { %3458 = dma.done.wait [#allocation7], 64  }
  0x9a   :  { %3459 = vsyncadd [#allocation7], 4294967232 }
  0x9b   :  { %3460 = dma.done.wait [#allocation15], 64  }
  0x9c   :  { %3461 = vsyncadd [#allocation15], 4294967232 }
  0x9d   :  { %3462 = dma.done.wait [#allocation12], 16  }
  0x9e   :  { %3463 = vsyncadd [#allocation12], 4294967280 }
  0x9f   :  { %3464 = dma.done.wait [#allocation18], 16  }
  0xa0   :  { %3465 = vsyncadd [#allocation18], 4294967280 }
  0xa1   :  { %153 = sfence }
  0xa2   :  { %s4725_s18 = sld [smem:[#allocation32_spill]]  ;;  %vm159_vm0 = vcmask 261120   ;;  %v3136_v28 = vld [vmem:[%s4700_s6] sm:$0xff]   ;;  %v3137_v29 = vld [vmem:[%s4700_s6 + $0x8] sm:$0xff]   ;;  %vm3478_vm1 = vmmov 0   ;;  %vm582_vm2 = vcmask 64512  }
  0xa3   :  { %2797 = vmatprep.subr.bf16.mxu0 %v3136_v28  ;;  %v3138_v30 = vld [vmem:[%s4701_s7] sm:$0xff]   ;;  %v3139_v63 = vld [vmem:[%s4701_s7 + $0x8] sm:$0xff]   ;;  %s3479_s7 = smov 120   ;;  %s3481_s10 = smov 104   ;;  %vm1094_vm4 = vcmask 130048   ;;  %vm1881_vm6 = vcmask 195584  }
  0xa4   :  { %2798 = vmatpush3.bf16.msra.mxu0 %v3136_v28  ;;  %v2640_v45 = vld [vmem:[#allocation4] ss:$0 sm:$0xff]  ;;  %v2641_v51 = vld [vmem:[#allocation8] ss:$0 sm:$0xff]  ;;  %s994_s3 = sld [smem:[#allocation13]]  ;;  %s2664_s0 = sld [smem:[#allocation13 + $0x1]] }
  0xa5   :  { %2799 = vmatprep.subr.bf16.mxu0 %v3137_v29  ;;  %s2667_s12 = sld [smem:[#allocation13 + $0x80]]  ;;  %s2668_s14 = sld [smem:[#allocation13 + $0x81]]  ;;  %vm2118_vm13 = vcmask 1040384   ;;  %vm2154_vm14 = vcmask 1046528   ;;  %vm2224_vm15 = vcmask 523264  }
  0xa6   :  { %s2671_s30 = sld [smem:[#allocation13 + $0x100]]  ;;  %s2672_s20 = sld [smem:[#allocation13 + $0x101]] }
  0xa7   :  { %s2675_s28 = sld [smem:[#allocation13 + $0x180]]  ;;  %s2676_s19 = sld [smem:[#allocation13 + $0x181]] }
  0xa8   :  { %v155_v0 = vld [vmem:[%s4725_s18] sm:$0xff]  ;;  %v157_v1 = vld [vmem:[%s4725_s18 + $0x10] sm:$0xff]  ;;  %v156_v2 = vld [vmem:[%s4725_s18 + $0x8] sm:$0xff]  ;;  %2800 = vmatpush3.bf16.msra.mxu0 %v3137_v29  ;;  %s2665_s1 = sld [smem:[#allocation13 + $0x2]]  ;;  %s2666_s22 = sld [smem:[#allocation13 + $0x3]] }
  0xa9   :  { %v160_v3 = vsel %vm159_vm0, %v155_v0, 0.0  ;;  %v166_v4 = vsel %vm159_vm0, %v157_v1, 0.0  ;;  %v158_v5 = vld [vmem:[%s4725_s18 + $0x18] sm:$0xff]  ;;  %v163_v6 = vsel %vm159_vm0, %v156_v2, 0.0  ;;  %2805 = vmatprep.subr.bf16.mxu0 %v3138_v30  ;;  %s2669_s11 = sld [smem:[#allocation13 + $0x82]]  ;;  %s3829_s23 = sld [smem:[#allocation13 + $0x83]] }
  0xaa   :  { %161 = vadd.xlane.f32.xlu0 %v160_v3  ;;  %167 = vadd.xlane.f32.xlu1 %v166_v4  ;;  %v169_v7 = vsel %vm159_vm0, %v158_v5, 0.0  ;;  %s2673_s2 = sld [smem:[#allocation13 + $0x102]]  ;;  %s3833_s24 = sld [smem:[#allocation13 + $0x103]] }
  0xab   :  { %s2677_s29 = sld [smem:[#allocation13 + $0x182]]  ;;  %s3839_s5 = sld [smem:[#allocation3]] }
  0xac   :  { %s3892_s21 = sld [smem:[#allocation13 + $0x183]]  ;;  %s3902_s6 = sld [smem:[#allocation3 + $0x1]] }
  0xad   :  { %s1183_s25 = sld [smem:[#allocation14]]  ;;  %s2679_s9 = sld [smem:[#allocation14 + $0x1]] }
  0xae   :  { %164 = vadd.xlane.f32.xlu0 %v163_v6  ;;  %170 = vadd.xlane.f32.xlu1 %v169_v7  ;;  %s2682_s26 = sld [smem:[#allocation14 + $0x80]] }
  0xaf   :  { %s2686_s27 = sld [smem:[#allocation14 + $0x100]] }
  0xb0   :  { %s2690_s4 = sld [smem:[#allocation14 + $0x180]] }
 0x137   :  { %v162_v8 = vpop.xlane.xlu0 %161  ;;  %v168_v9 = vpop.xlane.xlu1 %167 }
 0x138   :  { %v173_v10 = vmul.f32 0.03125, %v162_v8  ;;  %v175_v11 = vmul.f32 0.03125, %v168_v9 }
 0x13a   :  { %v177_v12 = vsub.f32 %v155_v0, %v173_v10  ;;  %v179_v13 = vsub.f32 %v157_v1, %v175_v11  ;;  %v3140_v0 = vld [vmem:[%s4702_s8] sm:$0xff]   ;;  %v3141_v1 = vld [vmem:[%s4702_s8 + $0x8] sm:$0xff]   ;;  %s3480_s8 = smov 112  }
 0x13b   :  { %v165_v14 = vpop.xlane.xlu0 %164  ;;  %v171_v15 = vpop.xlane.xlu1 %170 }
 0x13c   :  { %v174_v16 = vmul.f32 0.03125, %v165_v14  ;;  %v176_v17 = vmul.f32 0.03125, %v171_v15  ;;  %v181_v18 = vmul.f32 %v177_v12, %v177_v12  ;;  %v183_v19 = vmul.f32 %v179_v13, %v179_v13 }
 0x13e   :  { %v178_v20 = vsub.f32 %v156_v2, %v174_v16  ;;  %v180_v21 = vsub.f32 %v158_v5, %v176_v17  ;;  %v185_v22 = vsel %vm159_vm0, %v181_v18, 0.0  ;;  %v191_v23 = vsel %vm159_vm0, %v183_v19, 0.0 }
 0x13f   :  { %186 = vadd.xlane.f32.xlu0 %v185_v22  ;;  %v4715_v2 = vmov 0.0  }
 0x140   :  { %v182_v24 = vmul.f32 %v178_v20, %v178_v20  ;;  %v184_v25 = vmul.f32 %v180_v21, %v180_v21  ;;  %2833 = vmatprep.subr.bf16.mxu1 %v4715_v2  ;;  %2835 = vmatprep.mubr.msk.bf16.mxu1 %vm3478_vm1, %v4715_v2 }
 0x142   :  { %v188_v26 = vsel %vm159_vm0, %v182_v24, 0.0  ;;  %v194_v27 = vsel %vm159_vm0, %v184_v25, 0.0 }
 0x143   :  { %192 = vadd.xlane.f32.xlu0 %v191_v23  ;;  %189 = vadd.xlane.f32.xlu1 %v188_v26 }
 0x147   :  { %195 = vadd.xlane.f32.xlu1 %v194_v27 }
 0x1cc   :  { %v187_v31 = vpop.xlane.xlu0 %186 }
 0x1cd   :  { %v197_v32 = vmul.f32 0.03125, %v187_v31 }
 0x1cf   :  { %v201_v33 = vadd.f32 1e-05, %v197_v32 }
 0x1d0   :  { %v190_v34 = vpop.xlane.xlu1 %189  ;;  %v193_v35 = vpop.xlane.xlu0 %192 }
 0x1d1   :  { %3162 = vrsqrt.f32 %v201_v33  ;;  %v198_v36 = vmul.f32 0.03125, %v190_v34  ;;  %v199_v37 = vmul.f32 0.03125, %v193_v35 }
 0x1d3   :  { %v202_v38 = vadd.f32 1e-05, %v198_v36  ;;  %v203_v39 = vadd.f32 1e-05, %v199_v37 }
 0x1d4   :  { %v196_v40 = vpop.xlane.xlu1 %195 }
 0x1d5   :  { %3164 = vrsqrt.f32 %v202_v38  ;;  %v200_v41 = vmul.f32 0.03125, %v196_v40 }
 0x1d6   :  { %3166 = vrsqrt.f32 %v203_v39 }
 0x1d7   :  { %v204_v42 = vadd.f32 1e-05, %v200_v41 }
 0x1d9   :  { %3168 = vrsqrt.f32 %v204_v42 }
 0x1db   :  { %v3163_v43 = vpop.eup %3162 }
 0x1dc   :  { %v209_v44 = vmul.f32 %v3163_v43, %v177_v12 }
 0x1de   :  { %v220_v49 = vmul.f32 %v2640_v45, %v209_v44 }
 0x1df   :  { %v3165_v46 = vpop.eup %3164 }
 0x1e0   :  { %v3167_v47 = vpop.eup %3166  ;;  %v210_v48 = vmul.f32 %v3165_v46, %v178_v20  ;;  %v231_v55 = vadd.f32 %v2641_v51, %v220_v49 }
 0x1e1   :  { %v211_v50 = vmul.f32 %v3167_v47, %v179_v13 }
 0x1e2   :  { %v221_v52 = vmul.f32 %v2640_v45, %v210_v48 }
 0x1e3   :  { %v3169_v53 = vpop.eup %3168  ;;  %v222_v57 = vmul.f32 %v2640_v45, %v211_v50 }
 0x1e4   :  { %v212_v54 = vmul.f32 %v3169_v53, %v180_v21  ;;  %v232_v56 = vadd.f32 %v2641_v51, %v221_v52 }
 0x1e5   :  { %v233_v60 = vadd.f32 %v2641_v51, %v222_v57 }
 0x1e6   :  { %v235_v58 = vpack.c.bf16 %v232_v56, %v231_v55  ;;  %v223_v59 = vmul.f32 %v2640_v45, %v212_v54 }
 0x1e8   :  { %2801 = vmatprep.mubr.msk.bf16.mxu0 %vm159_vm0, %v235_v58  ;;  %v234_v61 = vadd.f32 %v2641_v51, %v223_v59 }
 0x1ea   :  { %v236_v62 = vpack.c.bf16 %v234_v61, %v233_v60 }
 0x1ec   :  { %2802 = vmatmul.mubr.msk.bf16.vlgmr.msra.gmra.mrb[0].mxu0 %vm159_vm0, %v236_v62 }
 0x1ed   :  { %2806 = vmatpush3.bf16.msra.mxu0 %v3138_v30  ;;  %2809 = vmatprep.mubr.msk.bf16.mxu0 %vm159_vm0, %v235_v58 }
 0x1ee   :  { %2807 = vmatprep.subr.bf16.mxu0 %v3139_v63 }
 0x1f1   :  { %2808 = vmatpush3.bf16.msra.mxu0 %v3139_v63 }
 0x1f2   :  { %2813 = vmatprep.subr.bf16.mxu0 %v3140_v0 }
 0x1f4   :  { %2810 = vmatmul.mubr.msk.bf16.vlgmr.msra.gmra.mrb[4].mxu0 %vm159_vm0, %v236_v62 }
 0x1f5   :  { %2814 = vmatpush3.bf16.msra.mxu0 %v3140_v0  ;;  %2817 = vmatprep.mubr.msk.bf16.mxu0 %vm159_vm0, %v235_v58 }
 0x1f6   :  { %2815 = vmatprep.subr.bf16.mxu0 %v3141_v1 }
 0x1f9   :  { %2816 = vmatpush3.bf16.msra.mxu0 %v3141_v1 }
 0x1fa   :  { %2821 = vmatprep.subr.bf16.mxu0 %v4715_v2 }
 0x1fc   :  { %2818 = vmatmul.mubr.msk.bf16.vlgmr.msra.gmra.mrb[8].mxu0 %vm159_vm0, %v236_v62 }
 0x1fd   :  { %2823 = vmatprep.mubr.msk.bf16.mxu0 %vm3478_vm1, %v4715_v2 }
 0x2bf   :  { %v3721_v3 = vpop.f32.mrb[0].mxu0 }
 0x2c0   :  { %v293_v4 = vpop.f32.mrb[1].mxu0 }
 0x2c1   :  { %v3723_v5 = vpop.f32.mrb[2].mxu0 }
 0x2c2   :  { %v482_v6 = vpack.c.bf16 %v3723_v5, %v3721_v3  ;;  %v296_v7 = vpop.f32.mrb[3].mxu0  ;;  %v3004_v8 = vpack.i.bf16 %v3723_v5, %v3721_v3 }
 0x2c3   :  { %v478_v9 = vpack.c.bf16 %v296_v7, %v293_v4  ;;  %v2969_v10 = vpack.i.bf16 %v296_v7, %v293_v4 }
 0x2c5   :  { %2970 = vrot.lane.b32.xlu1 %v2969_v10, %s3479_s7 }
 0x2c7   :  { %v3730_v11 = vpop.f32.mrb[4].mxu0 }
 0x2c8   :  { %v358_v12 = vpop.f32.mrb[5].mxu0 }
 0x2c9   :  { %v3732_v13 = vpop.f32.mrb[6].mxu0 }
 0x2ca   :  { %v361_v14 = vpop.f32.mrb[7].mxu0  ;;  %v2994_v15 = vpack.i.bf16 %v3732_v13, %v3730_v11  ;;  %v530_v16 = vpack.c.bf16 %v3732_v13, %v3730_v11 }
 0x2cb   :  { %v2974_v17 = vpack.i.bf16 %v361_v14, %v358_v12  ;;  %v526_v18 = vpack.c.bf16 %v361_v14, %v358_v12 }
 0x2cc   :  { %v775_v54 = vsel %vm582_vm2, %v530_v16, 0 }
 0x2cd   :  { %2975 = vrot.lane.b32.xlu1 %v2974_v17, %s3480_s8  ;;  %2965 = vrot.lane.b32.xlu0 %v2974_v17, %s3479_s7  ;;  %v587_v19 = vsel %vm582_vm2, %v526_v18, 0 }
 0x2ce   :  { %2822 = vmatpush3.bf16.xpose.msra.mxu0 %v587_v19 }
 0x2cf   :  { %v3741_v20 = vpop.f32.mrb[8].mxu0  ;;  %2827 = vmatprep.subr.bf16.mxu0 %v4715_v2 }
 0x2d0   :  { %v3744_v21 = vpop.f32.mrb[9].mxu0 }
 0x2d1   :  { %2980 = vrot.lane.b32.xlu1 %v2974_v17, %s3481_s10  ;;  %2985 = vrot.lane.b32.xlu0 %v2969_v10, %s3480_s8  ;;  %v3748_v22 = vpop.f32.mrb[10].mxu0 }
 0x2d2   :  { %v3752_v24 = vpop.f32.mrb[11].mxu0  ;;  %v3756_v25 = vpack.i.bf16 %v3748_v22, %v3741_v20 }
 0x2d3   :  { %v574_v26 = vpack.c.bf16 %v3752_v24, %v3744_v21  ;;  %v3762_v27 = vpack.i.bf16 %v3752_v24, %v3744_v21 }
 0x2d5   :  { %2990 = vrot.lane.b32.xlu1 %v2969_v10, %s3481_s10  ;;  %2995 = vrot.lane.b32.xlu0 %v2994_v15, %s3479_s7 }
 0x2d6   :  { %2824 = vmatmul.mubr.msk.bf16.vlgmr.msra.gmra.mrb[12].mxu0 %vm582_vm2, %v478_v9 }
 0x2d7   :  { %2829 = vmatprep.mubr.msk.bf16.mxu0 %vm3478_vm1, %v4715_v2 }
 0x2d9   :  { %3000 = vrot.lane.b32.xlu1 %v2994_v15, %s3480_s8  ;;  %3005 = vrot.lane.b32.xlu0 %v3004_v8, %s3479_s7 }
 0x2dd   :  { %3010 = vrot.lane.b32.xlu1 %v2994_v15, %s3481_s10  ;;  %3015 = vrot.lane.b32.xlu0 %v3004_v8, %s3480_s8 }
 0x2e1   :  { %3020 = vrot.lane.b32.xlu1 %v3004_v8, %s3481_s10 }
 0x337   :  { %v2971_v28 = vpop.permute.xlu1 %2970 }
 0x338   :  { %v2973_v43 = vunpack.i.h.bf16 %v2971_v28  ;;  %v2972_v44 = vunpack.i.l.bf16 %v2971_v28 }
 0x33a   :  { %v479_v50 = vpack.c.bf16 %v2973_v43, %v2972_v44 }
 0x33f   :  { %v2976_v29 = vpop.permute.xlu1 %2975  ;;  %v2966_v30 = vpop.permute.xlu0 %2965 }
 0x340   :  { %v2978_v31 = vunpack.i.h.bf16 %v2976_v29  ;;  %v2977_v32 = vunpack.i.l.bf16 %v2976_v29  ;;  %v2968_v33 = vunpack.i.h.bf16 %v2966_v30  ;;  %v2967_v34 = vunpack.i.l.bf16 %v2966_v30 }
 0x341   :  { %v959_v29 = vlaneseq }
 0x342   :  { %v527_v35 = vpack.c.bf16 %v2968_v33, %v2967_v34  ;;  %v528_v36 = vpack.c.bf16 %v2978_v31, %v2977_v32 }
 0x343   :  { %v2981_v37 = vpop.permute.xlu1 %2980  ;;  %v2986_v38 = vpop.permute.xlu0 %2985  ;;  %v3816_v30 = vshrl.u32 %v959_v29, 7  ;;  %v3818_v31 = vand.u32 127, %v959_v29 }
 0x344   :  { %v2983_v39 = vunpack.i.h.bf16 %v2981_v37  ;;  %v2982_v40 = vunpack.i.l.bf16 %v2981_v37  ;;  %v634_v41 = vsel %vm582_vm2, %v527_v35, 0  ;;  %v681_v42 = vsel %vm582_vm2, %v528_v36, 0 }
 0x345   :  { %2828 = vmatpush3.bf16.xpose.msra.mxu0 %v634_v41  ;;  %2834 = vmatpush3.bf16.xpose.msra.mxu1 %v681_v42  ;;  %v2988_v45 = vunpack.i.h.bf16 %v2986_v38  ;;  %v2987_v46 = vunpack.i.l.bf16 %v2986_v38  ;;  %4726 = vst [vmem:[#allocation29_spill] sm:$0xff] %v3816_v30  ;;  %v3821_v32 = vadd.s32 8, %v3816_v30  ;;  %v964_v33 = vsub.s32 %v3816_v30, %v3818_v31 }
 0x346   :  { %2839 = vmatprep.subr.bf16.mxu0 %v4715_v2  ;;  %2845 = vmatprep.subr.bf16.mxu1 %v4715_v2  ;;  %v529_v49 = vpack.c.bf16 %v2983_v39, %v2982_v40 }
 0x347   :  { %v2991_v47 = vpop.permute.xlu1 %2990  ;;  %v2996_v48 = vpop.permute.xlu0 %2995  ;;  %v480_v51 = vpack.c.bf16 %v2988_v45, %v2987_v46  ;;  %4727 = vst [vmem:[#allocation30_spill] sm:$0xff] %v3821_v32  ;;  %v965_v34 = vsub.s32 %v3821_v32, %v3818_v31  ;;  %v967_v35 = vsub.s32 0, %v964_v33  ;;  %v3835_v45 = vstv %s994_s3  ;;  %s2687_s3 = sld [smem:[#allocation14 + $0x101]] }
 0x348   :  { %v2998_v53 = vunpack.i.h.bf16 %v2996_v48  ;;  %v2997_v55 = vunpack.i.l.bf16 %v2996_v48  ;;  %v728_v58 = vsel %vm582_vm2, %v529_v49, 0  ;;  %v2993_v60 = vunpack.i.h.bf16 %v2991_v47 }
 0x349   :  { %v2992_v61 = vunpack.i.l.bf16 %v2991_v47  ;;  %v970_v36 = vsub.s32 0, %v965_v34  ;;  %v2662_v37 = vmin.u32 %v967_v35, %v964_v33  ;;  %v3837_v46 = vstv %s2667_s12  ;;  %s2680_s12 = sld [smem:[#allocation14 + $0x2]] }
 0x34a   :  { %v531_v62 = vpack.c.bf16 %v2998_v53, %v2997_v55  ;;  %v3842_v48 = vstv %s2671_s30  ;;  %v3844_v49 = vstv %s2675_s28  ;;  %s2688_s30 = sld [smem:[#allocation14 + $0x102]]  ;;  %s4216_s28 = sld [smem:[#allocation14 + $0x3]] }
 0x34b   :  { %v3001_v52 = vpop.permute.xlu1 %3000  ;;  %v3006_v59 = vpop.permute.xlu0 %3005  ;;  %v481_v1 = vpack.c.bf16 %v2993_v60, %v2992_v61  ;;  %v2663_v38 = vmin.u32 %v970_v36, %v965_v34  ;;  %v972_v39 = vcvt.s32.f32 %v2662_v37  ;;  %v3865_v60 = vstv %s2669_s11  ;;  %s3483_s11 = smov 16  }
 0x34c   :  { %v3003_v56 = vunpack.i.h.bf16 %v3001_v52  ;;  %v3002_v57 = vunpack.i.l.bf16 %v3001_v52  ;;  %2830 = vmatmul.mubr.msk.bf16.vlgmr.msra.gmra.mrb[16].mxu0 %vm582_vm2, %v479_v50  ;;  %2836 = vmatmul.mubr.msk.bf16.vlgmr.msra.gmra.mrb[0].mxu1 %vm582_vm2, %v480_v51  ;;  %v822_v9 = vsel %vm582_vm2, %v531_v62, 0  ;;  %v3008_v11 = vunpack.i.h.bf16 %v3006_v59 }
 0x34d   :  { %2840 = vmatpush3.bf16.xpose.msra.mxu0 %v728_v58  ;;  %2846 = vmatpush3.bf16.xpose.msra.mxu1 %v775_v54  ;;  %v3007_v12 = vunpack.i.l.bf16 %v3006_v59  ;;  %v973_v40 = vcvt.s32.f32 %v2663_v38  ;;  %v974_v41 = vsub.f32 0.0, %v972_v39  ;;  %v3848_v51 = vstv %s2664_s0  ;;  %s4218_s0 = sld [smem:[#allocation14 + $0x182]] }
 0x34e   :  { %2841 = vmatprep.mubr.msk.bf16.mxu0 %vm3478_vm1, %v4715_v2  ;;  %2847 = vmatprep.mubr.msk.bf16.mxu1 %vm3478_vm1, %v4715_v2  ;;  %v532_v63 = vpack.c.bf16 %v3003_v56, %v3002_v57  ;;  %v3857_v56 = vstv %s2668_s14  ;;  %v3859_v57 = vstv %s2672_s20  ;;  %v3861_v58 = vstv %s2676_s19  ;;  %s4220_s14 = sld [smem:[#allocation14 + $0x83]] }
 0x34f   :  { %2851 = vmatprep.subr.bf16.mxu0 %v4715_v2  ;;  %2857 = vmatprep.subr.bf16.mxu1 %v4715_v2  ;;  %v3011_v0 = vpop.permute.xlu1 %3010  ;;  %v3016_v4 = vpop.permute.xlu0 %3015  ;;  %v483_v5 = vpack.c.bf16 %v3008_v11, %v3007_v12  ;;  %v975_v42 = vsub.f32 0.0, %v973_v40  ;;  %v3827_v43 = vmul.f32 0.088388346, %v974_v41  ;;  %v3846_v50 = vmul.f32 0.044194173, %v974_v41  ;;  %s4222_s20 = sld [smem:[#allocation14 + $0x103]] }
 0x350   :  { %v3013_v7 = vunpack.i.h.bf16 %v3011_v0  ;;  %v3012_v8 = vunpack.i.l.bf16 %v3011_v0  ;;  %v869_v10 = vsel %vm582_vm2, %v532_v63, 0  ;;  %v3018_v13 = vunpack.i.h.bf16 %v3016_v4  ;;  %s4294_s19 = sld [smem:[#allocation14 + $0x183]] }
 0x351   :  { %v3017_v14 = vunpack.i.l.bf16 %v3016_v4  ;;  %v3831_v44 = vmul.f32 0.088388346, %v975_v42  ;;  %v3850_v52 = vmul.f32 0.022097087, %v974_v41  ;;  %v3852_v53 = vmul.f32 0.044194173, %v975_v42 }
 0x352   :  { %v533_v3 = vpack.c.bf16 %v3013_v7, %v3012_v8  ;;  %v3854_v54 = vmul.f32 0.022097087, %v975_v42  ;;  %v3863_v59 = vstv %s2665_s1  ;;  %v3867_v61 = vstv %s2673_s2  ;;  %s3482_s1 = smov 8   ;;  %s3484_s2 = smov 24  }
 0x353   :  { %v3021_v15 = vpop.permute.xlu1 %3020  ;;  %v3869_v62 = vstv %s2677_s29  ;;  %v3872_v0 = vmul.f32 0.011048543, %v974_v41  ;;  %v3876_v4 = vstv %s2666_s22  ;;  %v3882_v12 = vstv %s3829_s23  ;;  %s4734_s23 = sld [smem:[#allocation33_spill]]  ;;  %s3489_s22 = smov [#allocation19]  }
 0x354   :  { %2842 = vmatmul.mubr.msk.bf16.vlgmr.msra.gmra.mrb[20].mxu0 %vm582_vm2, %v481_v1  ;;  %2848 = vmatmul.mubr.msk.bf16.vlgmr.msra.gmra.mrb[4].mxu1 %vm582_vm2, %v482_v6  ;;  %v484_v6 = vpack.c.bf16 %v3018_v13, %v3017_v14  ;;  %v916_v16 = vsel %vm582_vm2, %v533_v3, 0  ;;  %v3023_v17 = vunpack.i.h.bf16 %v3021_v15  ;;  %v3022_v18 = vunpack.i.l.bf16 %v3021_v15 }
 0x355   :  { %2852 = vmatpush3.bf16.xpose.msra.mxu0 %v822_v9  ;;  %2858 = vmatpush3.bf16.xpose.msra.mxu1 %v869_v10  ;;  %v3874_v1 = vmul.f32 0.011048543, %v975_v42  ;;  %v3890_v15 = vstv %s3833_s24 }
 0x356   :  { %2853 = vmatprep.mubr.msk.bf16.mxu0 %vm3478_vm1, %v4715_v2  ;;  %2859 = vmatprep.mubr.msk.bf16.mxu1 %vm3478_vm1, %v4715_v2  ;;  %v485_v19 = vpack.c.bf16 %v3023_v17, %v3022_v18 }
 0x357   :  { %2863 = vmatprep.subr.bf16.mxu0 %v4715_v2  ;;  %2869 = vmatprep.subr.bf16.mxu1 %v4715_v2 }
 0x35c   :  { %2854 = vmatmul.mubr.msk.bf16.vlgmr.msra.gmra.mrb[24].mxu0 %vm582_vm2, %v483_v5  ;;  %2860 = vmatmul.mubr.msk.bf16.vlgmr.msra.gmra.mrb[8].mxu1 %vm582_vm2, %v484_v6 }
 0x35d   :  { %2864 = vmatpush3.bf16.xpose.msra.mxu0 %v916_v16  ;;  %2870 = vmatpush3.bf16.msra.mxu1 %v574_v26 }
 0x35e   :  { %2865 = vmatprep.mubr.msk.bf16.mxu0 %vm3478_vm1, %v4715_v2  ;;  %2871 = vmatprep.mubr.msk.bf16.mxu1 %vm3478_vm1, %v4715_v2 }
 0x35f   :  { %2881 = vmatprep.subr.bf16.mxu1 %v4715_v2  ;;  %2875 = vmatprep.subr.bf16.mxu0 %v4715_v2 }
 0x364   :  { %2866 = vmatmul.mubr.msk.bf16.vlgmr.msra.gmra.mrb[28].mxu0 %vm582_vm2, %v485_v19 }
 0x365   :  { %2877 = vmatprep.mubr.msk.bf16.mxu0 %vm3478_vm1, %v4715_v2 }
 0x3a9   :  { %v623_v21 = vpop.f32.mrb[12].mxu0 }
 0x3aa   :  { %v2825_v24 = vpop.f32.mrb[13].mxu0  ;;  %v986_v47 = vadd.f32 %v3827_v43, %v623_v21 }
 0x3ab   :  { %v626_v26 = vpop.f32.mrb[14].mxu0  ;;  %v1082_v24 = vstv %s3839_s5 }
 0x3ac   :  { %v2826_v28 = vpop.f32.mrb[15].mxu0  ;;  %v987_v55 = vadd.f32 %v3831_v44, %v626_v26  ;;  %v996_v63 = vmul.f32 %v3835_v45, %v986_v47  ;;  %v1018_v7 = vmul.f32 %v3837_v46, %v986_v47  ;;  %v1040_v8 = vmul.f32 %v3842_v48, %v986_v47 }
 0x3ad   :  { %v1062_v9 = vmul.f32 %v3844_v49, %v986_v47  ;;  %vm3928_vm3 = vcmp.lt.s32.totalorder %v3818_v31, %v1082_v24 }
 0x3ae   :  { %v997_v13 = vmul.f32 %v3835_v45, %v987_v55  ;;  %v1019_v16 = vmul.f32 %v3837_v46, %v987_v55  ;;  %v1041_v17 = vmul.f32 %v3842_v48, %v987_v55  ;;  %v1063_v18 = vmul.f32 %v3844_v49, %v987_v55 }
 0x41f   :  { %v670_v10 = vpop.f32.mrb[16].mxu0  ;;  %v717_v11 = vpop.f32.mrb[0].mxu1 }
 0x420   :  { %v988_v14 = vadd.f32 %v3846_v50, %v670_v10  ;;  %v3887_v3 = vadd.f32 %v3850_v52, %v717_v11  ;;  %v2831_v5 = vpop.f32.mrb[17].mxu0  ;;  %v2837_v6 = vpop.f32.mrb[1].mxu1 }
 0x421   :  { %v673_v19 = vpop.f32.mrb[18].mxu0  ;;  %v720_v21 = vpop.f32.mrb[2].mxu1 }
 0x422   :  { %v1000_v26 = vmul.f32 %v3848_v51, %v988_v14  ;;  %v1022_v28 = vmul.f32 %v3857_v56, %v988_v14  ;;  %v1044_v29 = vmul.f32 %v3859_v57, %v988_v14  ;;  %v1066_v33 = vmul.f32 %v3861_v58, %v988_v14  ;;  %v2832_v34 = vpop.f32.mrb[19].mxu0  ;;  %v2838_v35 = vpop.f32.mrb[3].mxu1 }
 0x423   :  { %v989_v36 = vadd.f32 %v3852_v53, %v673_v19  ;;  %v991_v37 = vadd.f32 %v3854_v54, %v720_v21  ;;  %v1006_v38 = vmul.f32 %v3863_v59, %v3887_v3  ;;  %v1028_v39 = vmul.f32 %v3865_v60, %v3887_v3 }
 0x424   :  { %v1002_v40 = vadd.f32 %v1000_v26, %v996_v63  ;;  %v1024_v41 = vadd.f32 %v1022_v28, %v1018_v7  ;;  %v1046_v42 = vadd.f32 %v1044_v29, %v1040_v8  ;;  %v1050_v47 = vmul.f32 %v3867_v61, %v3887_v3 }
 0x425   :  { %v1001_v55 = vmul.f32 %v3848_v51, %v989_v36  ;;  %v1023_v10 = vmul.f32 %v3857_v56, %v989_v36  ;;  %v1045_v11 = vmul.f32 %v3859_v57, %v989_v36  ;;  %v1067_v14 = vmul.f32 %v3861_v58, %v989_v36 }
 0x426   :  { %v1008_v5 = vadd.f32 %v1006_v38, %v1002_v40  ;;  %v1007_v6 = vmul.f32 %v3863_v59, %v991_v37  ;;  %v1030_v19 = vadd.f32 %v1028_v39, %v1024_v41  ;;  %v1051_v63 = vmul.f32 %v3867_v61, %v991_v37 }
 0x427   :  { %v764_v7 = vpop.f32.mrb[20].mxu0  ;;  %v811_v8 = vpop.f32.mrb[4].mxu1  ;;  %v1003_v21 = vadd.f32 %v1001_v55, %v997_v13  ;;  %v1047_v26 = vadd.f32 %v1045_v11, %v1041_v17  ;;  %v1052_v28 = vadd.f32 %v1050_v47, %v1046_v42  ;;  %v1069_v29 = vadd.f32 %v1067_v14, %v1063_v18 }
 0x428   :  { %v3919_v34 = vadd.f32 %v3872_v0, %v764_v7  ;;  %v3922_v35 = vadd.f32 %v3827_v43, %v811_v8  ;;  %v2843_v36 = vpop.f32.mrb[21].mxu0  ;;  %v2849_v38 = vpop.f32.mrb[5].mxu1  ;;  %v3925_v40 = vstv %s3892_s21  ;;  %v1025_v39 = vadd.f32 %v1023_v10, %v1019_v16 }
 0x429   :  { %v767_v41 = vpop.f32.mrb[22].mxu0  ;;  %v814_v23 = vpop.f32.mrb[6].mxu1  ;;  %v1009_v17 = vadd.f32 %v1007_v6, %v1003_v21  ;;  %v1053_v18 = vadd.f32 %v1051_v63, %v1047_v26  ;;  %v1068_v42 = vadd.f32 %v1066_v33, %v1062_v9  ;;  %v1073_v43 = vmul.f32 %v3869_v62, %v991_v37 }
 0x42a   :  { %v2844_v47 = vpop.f32.mrb[23].mxu0  ;;  %v2850_v55 = vpop.f32.mrb[7].mxu1  ;;  %v1029_v11 = vmul.f32 %v3865_v60, %v991_v37  ;;  %v1337_v14 = vstv %s3902_s6  ;;  %v993_v16 = vadd.f32 %v3874_v1, %v767_v41  ;;  %v1274_v10 = vadd.f32 %v3831_v44, %v814_v23 }
 0x42b   :  { %v1012_v24 = vmul.f32 %v3876_v4, %v3919_v34  ;;  %v1034_v6 = vmul.f32 %v3882_v12, %v3919_v34  ;;  %v1281_v9 = vmul.f32 %v3922_v35, %v3835_v45  ;;  %v1056_v33 = vmul.f32 %v3890_v15, %v3919_v34 }
 0x42c   :  { %v1075_v63 = vadd.f32 %v1073_v43, %v1069_v29  ;;  %v1031_v7 = vadd.f32 %v1029_v11, %v1025_v39  ;;  %v3947_v37 = vmul.f32 %v3922_v35, %v3837_v46  ;;  %v3951_v23 = vmul.f32 %v3922_v35, %v3842_v48 }
 0x42d   :  { %v1282_v44 = vmul.f32 %v1274_v10, %v3835_v45  ;;  %v1072_v8 = vmul.f32 %v3869_v62, %v3887_v3  ;;  %v1014_v21 = vadd.f32 %v1012_v24, %v1008_v5  ;;  %v1013_v26 = vmul.f32 %v3876_v4, %v993_v16 }
 0x42e   :  { %v1036_v36 = vadd.f32 %v1034_v6, %v1030_v19  ;;  %v1057_v29 = vmul.f32 %v3890_v15, %v993_v16  ;;  %v1296_v38 = vmul.f32 %v1274_v10, %v3837_v46  ;;  %v3960_v39 = vmul.f32 %v1274_v10, %v3842_v48 }
 0x42f   :  { %v858_v41 = vpop.f32.mrb[24].mxu0  ;;  %v905_v47 = vpop.f32.mrb[8].mxu1  ;;  %v1058_v55 = vadd.f32 %v1056_v33, %v1052_v28  ;;  %v1074_v43 = vadd.f32 %v1072_v8, %v1068_v42  ;;  %v3967_v3 = vsel %vm3928_vm3, %v1014_v21, -10000.0  ;;  %v1015_v19 = vadd.f32 %v1013_v26, %v1009_v17 }
 0x430   :  { %v3963_v45 = vadd.f32 %v3846_v50, %v858_v41  ;;  %v2861_v11 = vpop.f32.mrb[9].mxu1  ;;  %v2855_v5 = vpop.f32.mrb[25].mxu0  ;;  %v1079_v24 = vmul.f32 %v3925_v40, %v993_v16  ;;  %v3971_v46 = vmul.f32 %v1274_v10, %v3844_v49  ;;  %v1095_v48 = vsel %vm1094_vm4, %v3967_v3, -inf }
 0x431   :  { %v861_v28 = vpop.f32.mrb[26].mxu0  ;;  %v908_v42 = vpop.f32.mrb[10].mxu1  ;;  %v1059_v6 = vadd.f32 %v1057_v29, %v1053_v18  ;;  %v1035_v50 = vmul.f32 %v3882_v12, %v993_v16  ;;  %v3979_v8 = vadd.f32 %v3850_v52, %v905_v47  ;;  %1096 = vmax.xlane.f32.xlu0 %v1095_v48  ;;  %v3983_v10 = vsel %vm3928_vm3, %v1036_v36, -10000.0 }
 0x432   :  { %v1283_v33 = vmul.f32 %v3963_v45, %v3848_v51  ;;  %v2862_v17 = vpop.f32.mrb[11].mxu1  ;;  %v2856_v21 = vpop.f32.mrb[27].mxu0  ;;  %v3987_v26 = vsel %vm3928_vm3, %v1058_v55, -10000.0  ;;  %v1297_v18 = vmul.f32 %v3963_v45, %v3857_v56  ;;  %v1276_v16 = vadd.f32 %v3852_v53, %v861_v28 }
 0x433   :  { %v3993_v29 = vadd.f32 %v3854_v54, %v908_v42  ;;  %v3997_v52 = vsel %vm3928_vm3, %v1015_v19, -10000.0  ;;  %v1311_v36 = vmul.f32 %v3963_v45, %v3859_v57  ;;  %v4005_v47 = vsel %vm3928_vm3, %v1059_v6, -10000.0 }
 0x434   :  { %v1098_v41 = vsel %vm1094_vm4, %v3997_v52, -inf  ;;  %v1081_v55 = vadd.f32 %v1079_v24, %v1075_v63  ;;  %v1284_v53 = vmul.f32 %v1276_v16, %v3848_v51  ;;  %v1298_v54 = vmul.f32 %v1276_v16, %v3857_v56 }
 0x435   :  { %1099 = vmax.xlane.f32.xlu1 %v1098_v41  ;;  %v1101_v11 = vsel %vm1094_vm4, %v3983_v10, -inf  ;;  %v1107_v5 = vsel %vm1094_vm4, %v3987_v26, -inf  ;;  %v1312_v19 = vmul.f32 %v1276_v16, %v3859_v57  ;;  %v1110_v48 = vsel %vm1094_vm4, %v4005_v47, -inf }
 0x436   :  { %1102 = vmax.xlane.f32.xlu0 %v1101_v11  ;;  %v1037_v28 = vadd.f32 %v1035_v50, %v1031_v7  ;;  %v1078_v63 = vmul.f32 %v3925_v40, %v3919_v34  ;;  %vm4019_vm5 = vcmp.lt.s32.totalorder %v3818_v31, %v1337_v14  ;;  %v4025_v24 = vsel %vm3928_vm3, %v1081_v55, -10000.0 }
 0x437   :  { %v952_v56 = vpop.f32.mrb[28].mxu0  ;;  %v1286_v42 = vadd.f32 %v1284_v53, %v1282_v44  ;;  %v1288_v57 = vmul.f32 %v3993_v29, %v3863_v59  ;;  %v1285_v6 = vadd.f32 %v1283_v33, %v1281_v9  ;;  %v1287_v14 = vmul.f32 %v3979_v8, %v3863_v59 }
 0x438   :  { %v1279_v7 = vadd.f32 %v3872_v0, %v952_v56  ;;  %v2867_v50 = vpop.f32.mrb[29].mxu0  ;;  %v4032_v34 = vsel %vm3928_vm3, %v1037_v28, -10000.0  ;;  %v1080_v31 = vadd.f32 %v1078_v63, %v1074_v43  ;;  %v1326_v17 = vmul.f32 %v1276_v16, %v3861_v58 }
 0x439   :  { %1111 = vmax.xlane.f32.xlu1 %v1110_v48  ;;  %v955_v21 = vpop.f32.mrb[30].mxu0  ;;  %v1290_v44 = vadd.f32 %v1288_v57, %v1286_v42  ;;  %v1300_v41 = vadd.f32 %v1298_v54, %v1296_v38  ;;  %v1302_v9 = vmul.f32 %v3993_v29, %v3865_v60  ;;  %v1116_v33 = vsel %vm1094_vm4, %v4025_v24, -inf }
 0x43a   :  { %1108 = vmax.xlane.f32.xlu0 %v1107_v5  ;;  %v1280_v0 = vadd.f32 %v3874_v1, %v955_v21  ;;  %v2868_v55 = vpop.f32.mrb[31].mxu0  ;;  %v1289_v43 = vadd.f32 %v1287_v14, %v1285_v6  ;;  %v1291_v53 = vmul.f32 %v1279_v7, %v3876_v4  ;;  %v1104_v59 = vsel %vm1094_vm4, %v4032_v34, -inf }
 0x43b   :  { %v1304_v16 = vadd.f32 %v1302_v9, %v1300_v41  ;;  %v1299_v11 = vadd.f32 %v1297_v18, %v3947_v37  ;;  %v1301_v38 = vmul.f32 %v3979_v8, %v3865_v60  ;;  %v1305_v48 = vmul.f32 %v1279_v7, %v3882_v12 }
 0x43c   :  { %v1292_v54 = vmul.f32 %v1280_v0, %v3876_v4  ;;  %v1293_v5 = vadd.f32 %v1291_v53, %v1289_v43  ;;  %v1306_v1 = vmul.f32 %v1280_v0, %v3882_v12  ;;  %v1314_v63 = vadd.f32 %v1312_v19, %v3960_v39 }
 0x43d   :  { %1117 = vmax.xlane.f32.xlu1 %v1116_v33  ;;  %v1303_v28 = vadd.f32 %v1301_v38, %v1299_v11  ;;  %v1316_v56 = vmul.f32 %v3993_v29, %v3867_v61  ;;  %v1320_v42 = vmul.f32 %v1280_v0, %v3890_v15  ;;  %v4057_v60 = vsel %vm3928_vm3, %v1080_v31, -10000.0 }
 0x43e   :  { %1105 = vmax.xlane.f32.xlu0 %v1104_v59  ;;  %v1294_v4 = vadd.f32 %v1292_v54, %v1290_v44  ;;  %v1308_v37 = vadd.f32 %v1306_v1, %v1304_v16  ;;  %v1313_v18 = vadd.f32 %v1311_v36, %v3951_v23  ;;  %v1323_v12 = vmul.f32 %v3922_v35, %v3844_v49 }
 0x43f   :  { %v1325_v39 = vmul.f32 %v3963_v45, %v3861_v58  ;;  %v1307_v19 = vadd.f32 %v1305_v48, %v1303_v28  ;;  %v1318_v57 = vadd.f32 %v1316_v56, %v1314_v63  ;;  %v1315_v13 = vmul.f32 %v3979_v8, %v3867_v61 }
 0x440   :  { %v4066_v6 = vsel %vm4019_vm5, %v1294_v4, -10000.0  ;;  %v1319_v50 = vmul.f32 %v1279_v7, %v3890_v15  ;;  %v1328_v31 = vadd.f32 %v1326_v17, %v3971_v46  ;;  %v1113_v23 = vsel %vm1094_vm4, %v4057_v60, -inf }
 0x441   :  { %v1352_v49 = vsel %vm1094_vm4, %v4066_v6, -inf  ;;  %v4078_v58 = vsel %vm4019_vm5, %v1293_v5, -10000.0  ;;  %v1322_v35 = vadd.f32 %v1320_v42, %v1318_v57  ;;  %v4082_v61 = vsel %vm4019_vm5, %v1308_v37, -10000.0 }
 0x442   :  { %1114 = vmax.xlane.f32.xlu0 %v1113_v23  ;;  %1353 = vmax.xlane.f32.xlu1 %v1352_v49  ;;  %v1317_v15 = vadd.f32 %v1315_v13, %v1313_v18  ;;  %v1330_v45 = vmul.f32 %v3993_v29, %v3869_v62  ;;  %v1334_v46 = vmul.f32 %v1280_v0, %v3925_v40  ;;  %v1349_v41 = vsel %vm1094_vm4, %v4078_v58, -inf }
 0x443   :  { %v1327_v36 = vadd.f32 %v1325_v39, %v1323_v12  ;;  %v1329_v14 = vmul.f32 %v3979_v8, %v3869_v62  ;;  %v1333_v17 = vmul.f32 %v1279_v7, %v3925_v40  ;;  %v1358_v9 = vsel %vm1094_vm4, %v4082_v61, -inf }
 0x444   :  { %v1321_v21 = vadd.f32 %v1319_v50, %v1317_v15  ;;  %v1332_v44 = vadd.f32 %v1330_v45, %v1328_v31  ;;  %v4096_v29 = vsel %vm4019_vm5, %v1307_v19, -10000.0  ;;  %v4100_v62 = vsel %vm4019_vm5, %v1322_v35, -10000.0 }
 0x445   :  { %v1331_v33 = vadd.f32 %v1329_v14, %v1327_v36  ;;  %v1355_v7 = vsel %vm1094_vm4, %v4096_v29, -inf  ;;  %v1364_v0 = vsel %vm1094_vm4, %v4100_v62, -inf }
 0x446   :  { %1350 = vmax.xlane.f32.xlu0 %v1349_v41  ;;  %1359 = vmax.xlane.f32.xlu1 %v1358_v9  ;;  %v1336_v40 = vadd.f32 %v1334_v46, %v1332_v44  ;;  %v4108_v55 = vsel %vm4019_vm5, %v1321_v21, -10000.0 }
 0x447   :  { %v1335_v8 = vadd.f32 %v1333_v17, %v1331_v33  ;;  %v1361_v53 = vsel %vm1094_vm4, %v4108_v55, -inf }
 0x448   :  { %v4112_v43 = vsel %vm4019_vm5, %v1336_v40, -10000.0 }
 0x449   :  { %v1370_v59 = vsel %vm1094_vm4, %v4112_v43, -inf  ;;  %v4120_v16 = vsel %vm4019_vm5, %v1335_v8, -10000.0 }
 0x44a   :  { %1356 = vmax.xlane.f32.xlu0 %v1355_v7  ;;  %1365 = vmax.xlane.f32.xlu1 %v1364_v0  ;;  %v1367_v11 = vsel %vm1094_vm4, %v4120_v16, -inf }
 0x44e   :  { %1362 = vmax.xlane.f32.xlu0 %v1361_v53  ;;  %1371 = vmax.xlane.f32.xlu1 %v1370_v59 }
 0x452   :  { %1368 = vmax.xlane.f32.xlu0 %v1367_v11 }
 0x4be   :  { %v1097_v38 = vpop.xlane.xlu0 %1096 }
 0x4bf   :  { %v1119_v54 = vsub.f32 %v3967_v3, %v1097_v38 }
 0x4c1   :  { %v1127_v5 = vmul.f32 1.442695, %v1119_v54 }
 0x4c2   :  { %v1100_v1 = vpop.xlane.xlu1 %1099 }
 0x4c3   :  { %v1120_v48 = vsub.f32 %v3997_v52, %v1100_v1  ;;  %v1103_v28 = vpop.xlane.xlu0 %1102  ;;  %3170 = vpow2.f32 %v1127_v5 }
 0x4c4   :  { %v1121_v63 = vsub.f32 %v3983_v10, %v1103_v28 }
 0x4c5   :  { %v1129_v56 = vmul.f32 1.442695, %v1120_v48 }
 0x4c6   :  { %v1131_v42 = vmul.f32 1.442695, %v1121_v63  ;;  %v1112_v51 = vpop.xlane.xlu1 %1111 }
 0x4c7   :  { %3172 = vpow2.f32 %v1129_v56  ;;  %v1109_v4 = vpop.xlane.xlu0 %1108  ;;  %v1124_v18 = vsub.f32 %v4005_v47, %v1112_v51 }
 0x4c8   :  { %3174 = vpow2.f32 %v1131_v42  ;;  %v1123_v37 = vsub.f32 %v3987_v26, %v1109_v4 }
 0x4c9   :  { %v1137_v57 = vmul.f32 1.442695, %v1124_v18 }
 0x4ca   :  { %v1135_v12 = vmul.f32 1.442695, %v1123_v37  ;;  %v1118_v3 = vpop.xlane.xlu1 %1117 }
 0x4cb   :  { %v1106_v39 = vpop.xlane.xlu0 %1105  ;;  %v1126_v10 = vsub.f32 %v4025_v24, %v1118_v3 }
 0x4cc   :  { %3176 = vpow2.f32 %v1135_v12  ;;  %v1122_v52 = vsub.f32 %v4032_v34, %v1106_v39 }
 0x4cd   :  { %v4130_v19 = vpop.eup %3170  ;;  %v1141_v34 = vmul.f32 1.442695, %v1126_v10 }
 0x4ce   :  { %v1133_v13 = vmul.f32 1.442695, %v1122_v52  ;;  %v1143_v31 = vsel %vm1094_vm4, %v4130_v19, 0.0 }
 0x4cf   :  { %v1115_v50 = vpop.xlane.xlu0 %1114  ;;  %1144 = vadd.xlane.f32.xlu0 %v1143_v31  ;;  %v1354_v56 = vpop.xlane.xlu1 %1353 }
 0x4d0   :  { %3178 = vpow2.f32 %v1133_v13  ;;  %v1125_v26 = vsub.f32 %v4057_v60, %v1115_v50  ;;  %v1374_v51 = vsub.f32 %v4066_v6, %v1354_v56  ;;  %v4247_v56 = vstv %s2688_s30 }
 0x4d1   :  { %v4136_v47 = vpop.eup %3172  ;;  %3180 = vpow2.f32 %v1137_v57 }
 0x4d2   :  { %v4138_v23 = vpop.eup %3174  ;;  %v1139_v49 = vmul.f32 1.442695, %v1125_v26  ;;  %v1146_v35 = vsel %vm1094_vm4, %v4136_v47, 0.0  ;;  %v1383_v37 = vmul.f32 1.442695, %v1374_v51  ;;  %v4252_v51 = vstv %s4216_s28 }
 0x4d3   :  { %1147 = vadd.xlane.f32.xlu1 %v1146_v35  ;;  %v1351_v24 = vpop.xlane.xlu0 %1350  ;;  %v1149_v15 = vsel %vm1094_vm4, %v4138_v23, 0.0  ;;  %v1360_v42 = vpop.xlane.xlu1 %1359 }
 0x4d4   :  { %3182 = vpow2.f32 %v1139_v49  ;;  %v1373_v45 = vsub.f32 %v4078_v58, %v1351_v24  ;;  %1150 = vadd.xlane.f32.xlu0 %v1149_v15  ;;  %v1376_v18 = vsub.f32 %v4082_v61, %v1360_v42 }
 0x4d5   :  { %3184 = vpow2.f32 %v1141_v34 }
 0x4d6   :  { %v4145_v60 = vpop.eup %3176  ;;  %v1381_v46 = vmul.f32 1.442695, %v1373_v45  ;;  %v1387_v12 = vmul.f32 1.442695, %v1376_v18  ;;  %v4260_v18 = vstv %s4220_s14 }
 0x4d7   :  { %v1357_v36 = vpop.xlane.xlu0 %1356  ;;  %v1155_v14 = vsel %vm1094_vm4, %v4145_v60, 0.0  ;;  %v1366_v4 = vpop.xlane.xlu1 %1365 }
 0x4d8   :  { %3186 = vpow2.f32 %v1381_v46  ;;  %v1375_v17 = vsub.f32 %v4096_v29, %v1357_v36  ;;  %1156 = vadd.xlane.f32.xlu0 %v1155_v14  ;;  %v1378_v3 = vsub.f32 %v4100_v62, %v1366_v4  ;;  %v4224_v14 = vstv %s1183_s25  ;;  %s2712_s25 = sld [smem:[#allocation3 + $0x1]] }
 0x4d9   :  { %v4255_v4 = vstv %s4218_s0 }
 0x4da   :  { %v4150_v21 = vpop.eup %3178  ;;  %v1385_v44 = vmul.f32 1.442695, %v1375_v17  ;;  %v1391_v52 = vmul.f32 1.442695, %v1378_v3  ;;  %v4226_v17 = vstv %s2682_s26 }
 0x4db   :  { %v1363_v41 = vpop.xlane.xlu0 %1362  ;;  %v1152_v58 = vsel %vm1094_vm4, %v4150_v21, 0.0  ;;  %v4154_v9 = vpop.eup %3180 }
 0x4dc   :  { %3188 = vpow2.f32 %v1385_v44  ;;  %v1377_v33 = vsub.f32 %v4108_v55, %v1363_v41  ;;  %1153 = vadd.xlane.f32.xlu1 %v1152_v58  ;;  %v1158_v0 = vsel %vm1094_vm4, %v4154_v9, 0.0  ;;  %v1372_v39 = vpop.xlane.xlu1 %1371  ;;  %v4228_v44 = vstv %s2686_s27 }
 0x4dd   :  { %v1380_v57 = vsub.f32 %v4112_v43, %v1372_v39  ;;  %v4266_v39 = vstv %s4222_s20 }
 0x4de   :  { %v4157_v40 = vpop.eup %3182  ;;  %v1389_v8 = vmul.f32 1.442695, %v1377_v33 }
 0x4df   :  { %v1369_v7 = vpop.xlane.xlu0 %1368  ;;  %v1161_v29 = vsel %vm1094_vm4, %v4157_v40, 0.0  ;;  %v4163_v53 = vpop.eup %3184 }
 0x4e0   :  { %3190 = vpow2.f32 %v1389_v8  ;;  %v1379_v59 = vsub.f32 %v4120_v16, %v1369_v7  ;;  %1162 = vadd.xlane.f32.xlu0 %v1161_v29  ;;  %1159 = vadd.xlane.f32.xlu1 %v1158_v0  ;;  %v1164_v54 = vsel %vm1094_vm4, %v4163_v53, 0.0  ;;  %v4230_v8 = vstv %s2690_s4 }
 0x4e1   :  { %v4232_v7 = vstv %s2679_s9 }
 0x4e2   :  { %v4166_v11 = vpop.eup %3186  ;;  %v1393_v55 = vmul.f32 1.442695, %v1379_v59 }
 0x4e3   :  { %v1397_v38 = vsel %vm1094_vm4, %v4166_v11, 0.0 }
 0x4e4   :  { %3192 = vpow2.f32 %v1393_v55  ;;  %1398 = vadd.xlane.f32.xlu0 %v1397_v38  ;;  %1165 = vadd.xlane.f32.xlu1 %v1164_v54  ;;  %v4238_v55 = vstv %s2687_s3 }
 0x4e5   :  { %3194 = vpow2.f32 %v1383_v37 }
 0x4e6   :  { %v4172_v5 = vpop.eup %3188  ;;  %3196 = vpow2.f32 %v1387_v12 }
 0x4e7   :  { %v1403_v1 = vsel %vm1094_vm4, %v4172_v5, 0.0  ;;  %3198 = vpow2.f32 %v1391_v52 }
 0x4e8   :  { %1404 = vadd.xlane.f32.xlu0 %v1403_v1 }
 0x4ea   :  { %v4176_v16 = vpop.eup %3190 }
 0x4eb   :  { %v1409_v48 = vsel %vm1094_vm4, %v4176_v16, 0.0 }
 0x4ec   :  { %1410 = vadd.xlane.f32.xlu0 %v1409_v48  ;;  %v4243_v48 = vstv %s2680_s12 }
 0x4ee   :  { %v4180_v28 = vpop.eup %3192 }
 0x4ef   :  { %v1415_v63 = vsel %vm1094_vm4, %v4180_v28, 0.0  ;;  %v4196_v10 = vpop.eup %3194 }
 0x4f0   :  { %1416 = vadd.xlane.f32.xlu0 %v1415_v63  ;;  %v1400_v6 = vsel %vm1094_vm4, %v4196_v10, 0.0  ;;  %v4200_v13 = vpop.eup %3196 }
 0x4f1   :  { %v1406_v61 = vsel %vm1094_vm4, %v4200_v13, 0.0  ;;  %v4204_v62 = vpop.eup %3198 }
 0x4f2   :  { %v1412_v43 = vsel %vm1094_vm4, %v4204_v62, 0.0 }
 0x4f5   :  { %3030 = vrot.lane.b32.xlu1 %v3762_v27, %s3480_s8 }
 0x4f9   :  { %3035 = vrot.lane.b32.xlu1 %v3762_v27, %s3481_s10 }
 0x506   :  { %3025 = vrot.lane.b32.xlu0 %v3762_v27, %s3479_s7  ;;  %v1395_v27 = vmul.f32 1.442695, %v1380_v57 }
 0x508   :  { %3200 = vpow2.f32 %v1395_v27 }
 0x50a   :  { %3045 = vrot.lane.b32.xlu0 %v3756_v25, %s3480_s8  ;;  %s2683_s8 = sld [smem:[#allocation14 + $0x81]] }
 0x510   :  { %v4234_v29 = vstv %s2683_s8 }
 0x512   :  { %v4208_v50 = vpop.eup %3200 }
 0x513   :  { %v1418_v31 = vsel %vm1094_vm4, %v4208_v50, 0.0 }
 0x51d   :  { %1401 = vadd.xlane.f32.xlu1 %v1400_v6 }
 0x521   :  { %1407 = vadd.xlane.f32.xlu1 %v1406_v61 }
 0x525   :  { %1413 = vadd.xlane.f32.xlu1 %v1412_v43 }
 0x529   :  { %1419 = vadd.xlane.f32.xlu1 %v1418_v31 }
 0x53a   :  { %3040 = vrot.lane.b32.xlu1 %v3756_v25, %s3479_s7  ;;  %s2691_s7 = sld [smem:[#allocation14 + $0x181]] }
 0x53e   :  { %3050 = vrot.lane.b32.xlu1 %v3756_v25, %s3481_s10  ;;  %s2684_s10 = sld [smem:[#allocation14 + $0x82]] }
 0x540   :  { %v4240_v38 = vstv %s2691_s7 }
 0x544   :  { %v4245_v63 = vstv %s2684_s10 }
 0x55c   :  { %v1145_v26 = vpop.xlane.xlu0 %1144 }
 0x560   :  { %v1148_v49 = vpop.xlane.xlu1 %1147 }
 0x561   :  { %v1151_v34 = vpop.xlane.xlu0 %1150 }
 0x562   :  { %3202 = vrcp.f32 %v1151_v34 }
 0x563   :  { %3204 = vrcp.f32 %v1145_v26 }
 0x564   :  { %3206 = vrcp.f32 %v1148_v49 }
 0x565   :  { %v1157_v35 = vpop.xlane.xlu0 %1156 }
 0x566   :  { %3208 = vrcp.f32 %v1157_v35 }
 0x569   :  { %v1154_v24 = vpop.xlane.xlu1 %1153 }
 0x56a   :  { %3210 = vrcp.f32 %v1154_v24 }
 0x56c   :  { %v3203_v45 = vpop.eup %3202 }
 0x56d   :  { %v1163_v25 = vpop.xlane.xlu0 %1162  ;;  %v1160_v15 = vpop.xlane.xlu1 %1159  ;;  %v1177_v0 = vmul.f32 %v3203_v45, %v4138_v23 }
 0x56e   :  { %v3205_v46 = vpop.eup %3204  ;;  %3212 = vrcp.f32 %v1163_v25 }
 0x56f   :  { %v3207_v36 = vpop.eup %3206  ;;  %3214 = vrcp.f32 %v1160_v15  ;;  %v1175_v59 = vmul.f32 %v3205_v46, %v4130_v19  ;;  %v1189_v37 = vmul.f32 %v4232_v7, %v1177_v0  ;;  %v1255_v27 = vmul.f32 %v4240_v38, %v1177_v0 }
 0x570   :  { %v3209_v33 = vpop.eup %3208  ;;  %v1176_v1 = vmul.f32 %v3207_v36, %v4136_v47  ;;  %v1211_v47 = vmul.f32 %v4234_v29, %v1177_v0 }
 0x571   :  { %v1399_v41 = vpop.xlane.xlu0 %1398  ;;  %v1166_v58 = vpop.xlane.xlu1 %1165  ;;  %v1179_v23 = vmul.f32 %v3209_v33, %v4145_v60  ;;  %v1185_v12 = vmul.f32 %v4224_v14, %v1175_v59  ;;  %v1207_v3 = vmul.f32 %v4226_v17, %v1175_v59  ;;  %v1233_v60 = vmul.f32 %v4238_v55, %v1177_v0 }
 0x572   :  { %3216 = vrcp.f32 %v1166_v58  ;;  %v1251_v52 = vmul.f32 %v4230_v8, %v1175_v59  ;;  %v1186_v57 = vmul.f32 %v4224_v14, %v1176_v1  ;;  %v1208_v6 = vmul.f32 %v4226_v17, %v1176_v1 }
 0x573   :  { %v1230_v61 = vmul.f32 %v4228_v44, %v1176_v1  ;;  %v1195_v26 = vmul.f32 %v4243_v48, %v1179_v23  ;;  %v1252_v49 = vmul.f32 %v4230_v8, %v1176_v1  ;;  %v1191_v24 = vadd.f32 %v1189_v37, %v1185_v12 }
 0x574   :  { %v3211_v54 = vpop.eup %3210  ;;  %v1213_v25 = vadd.f32 %v1211_v47, %v1207_v3  ;;  %v1217_v36 = vmul.f32 %v4245_v63, %v1179_v23  ;;  %v1239_v0 = vmul.f32 %v4247_v56, %v1179_v23 }
 0x575   :  { %v1178_v19 = vmul.f32 %v3211_v54, %v4150_v21  ;;  %v1405_v42 = vpop.xlane.xlu0 %1404  ;;  %v1229_v21 = vmul.f32 %v4228_v44, %v1175_v59  ;;  %v3031_v35 = vpop.permute.xlu1 %3030  ;;  %v4284_v59 = vadd.f32 %v1255_v27, %v1251_v52 }
 0x576   :  { %3218 = vrcp.f32 %v1405_v42  ;;  %v1197_v42 = vadd.f32 %v1195_v26, %v1191_v24  ;;  %v1219_v52 = vadd.f32 %v1217_v36, %v1213_v25 }
 0x577   :  { %v1190_v43 = vmul.f32 %v4232_v7, %v1178_v19  ;;  %3220 = vrcp.f32 %v1399_v41  ;;  %v1212_v45 = vmul.f32 %v4234_v29, %v1178_v19  ;;  %v1235_v58 = vadd.f32 %v1233_v60, %v1229_v21 }
 0x578   :  { %v3213_v34 = vpop.eup %3212  ;;  %v1234_v3 = vmul.f32 %v4238_v55, %v1178_v19  ;;  %v3033_v60 = vunpack.i.h.bf16 %v3031_v35  ;;  %v1256_v27 = vmul.f32 %v4240_v38, %v1178_v19 }
 0x579   :  { %v1411_v31 = vpop.xlane.xlu0 %1410  ;;  %v3215_v15 = vpop.eup %3214  ;;  %v4279_v46 = vmul.f32 %v3213_v34, %v4157_v40  ;;  %v1192_v1 = vadd.f32 %v1190_v43, %v1186_v57  ;;  %v4289_v40 = vmul.f32 %v4255_v4, %v1179_v23  ;;  %v1214_v21 = vadd.f32 %v1212_v45, %v1208_v6 }
 0x57a   :  { %v1180_v33 = vmul.f32 %v3215_v15, %v4154_v9  ;;  %3222 = vrcp.f32 %v1411_v31  ;;  %v3032_v43 = vunpack.i.l.bf16 %v3031_v35  ;;  %v3036_v23 = vpop.permute.xlu1 %3035  ;;  %v1236_v36 = vadd.f32 %v1234_v3, %v1230_v61 }
 0x57b   :  { %v1201_v37 = vmul.f32 %v4252_v51, %v4279_v46  ;;  %v1223_v15 = vmul.f32 %v4260_v18, %v4279_v46  ;;  %v3038_v35 = vunpack.i.h.bf16 %v3036_v23  ;;  %v3037_v45 = vunpack.i.l.bf16 %v3036_v23 }
 0x57c   :  { %v3217_v41 = vpop.eup %3216  ;;  %v1196_v9 = vmul.f32 %v4243_v48, %v1180_v33  ;;  %v1218_v12 = vmul.f32 %v4245_v63, %v1180_v33  ;;  %v1240_v25 = vmul.f32 %v4247_v56, %v1180_v33  ;;  %v1241_v30 = vadd.f32 %v1239_v0, %v1235_v58 }
 0x57d   :  { %v1417_v54 = vpop.xlane.xlu0 %1416  ;;  %v1182_v47 = vmul.f32 %v3217_v41, %v4163_v53  ;;  %v1203_v34 = vadd.f32 %v1201_v37, %v1197_v42  ;;  %v1225_v32 = vadd.f32 %v1223_v15, %v1219_v52  ;;  %v1245_v61 = vmul.f32 %v4266_v39, %v4279_v46 }
 0x57e   :  { %3224 = vrcp.f32 %v1417_v54  ;;  %v1198_v31 = vadd.f32 %v1196_v9, %v1192_v1  ;;  %v1220_v24 = vadd.f32 %v1218_v12, %v1214_v21  ;;  %v576_v21 = vpack.c.bf16 %v3033_v60, %v3032_v43 }
 0x57f   :  { %v1202_v53 = vmul.f32 %v4252_v51, %v1182_v47  ;;  %v1224_v41 = vmul.f32 %v4260_v18, %v1182_v47  ;;  %v1246_v12 = vmul.f32 %v4266_v39, %v1182_v47  ;;  %v1258_v3 = vadd.f32 %v1256_v27, %v1252_v49 }
 0x580   :  { %v3219_v57 = vpop.eup %3218  ;;  %v4732_v52 = vmov 0.0   ;;  %v577_v43 = vpack.c.bf16 %v3038_v35, %v3037_v45  ;;  %v1247_v23 = vadd.f32 %v1245_v61, %v1241_v30 }
 0x581   :  { %v3026_v26 = vpop.permute.xlu0 %3025  ;;  %v1204_v6 = vadd.f32 %v1202_v53, %v1198_v31  ;;  %v4304_v19 = vmul.f32 %v3219_v57, %v4172_v5  ;;  %v3221_v1 = vpop.eup %3220  ;;  %v1226_v9 = vadd.f32 %v1224_v41, %v1220_v24  ;;  %v1262_v31 = vmul.f32 %v4255_v4, %v1180_v33 }
 0x582   :  { %v3028_v54 = vunpack.i.h.bf16 %v3026_v26  ;;  %v3027_v2 = vunpack.i.l.bf16 %v3026_v26  ;;  %v1242_v5 = vadd.f32 %v1240_v25, %v1236_v36  ;;  %v4312_v57 = vstv %s4294_s19 }
 0x583   :  { %v1493_v37 = vpack.c.bf16 %v1204_v6, %v1203_v34  ;;  %v1494_v60 = vpack.c.bf16 %v1226_v9, %v1225_v32  ;;  %v1268_v58 = vmul.f32 %v4312_v57, %v1182_v47  ;;  %v1481_v0 = vmul.f32 %v4304_v19, %v4240_v38 }
 0x584   :  { %v575_v42 = vpack.c.bf16 %v3028_v54, %v3027_v2  ;;  %v3223_v53 = vpop.eup %3222  ;;  %v4315_v2 = vmul.f32 %v3221_v1, %v4166_v11  ;;  %v1248_v49 = vadd.f32 %v1246_v12, %v1242_v5  ;;  %v1264_v47 = vadd.f32 %v1262_v31, %v1258_v3 }
 0x585   :  { %2872 = vmatmul.mubr.msk.bf16.vlgmr.msra.gmra.mrb[12].mxu1 %vm1094_vm4, %v1493_v37  ;;  %v4325_v11 = vmul.f32 %v3223_v53, %v4176_v16  ;;  %v1267_v27 = vmul.f32 %v4312_v57, %v4279_v46  ;;  %v1263_v16 = vadd.f32 %v4289_v40, %v4284_v59  ;;  %v4733_v41 = vpack.c.bf16 %v3748_v22, %v3741_v20  ;;  %v4356_v36 = vpop.permute.xlu0 %3045 }
 0x586   :  { %2876 = vmatpush3.bf16.msra.mxu0 %v575_v42  ;;  %2882 = vmatpush3.bf16.msra.mxu1 %v576_v21  ;;  %v1479_v26 = vmul.f32 %v4315_v2, %v4230_v8  ;;  %v1270_v34 = vadd.f32 %v1268_v58, %v1264_v47  ;;  %v1439_v1 = vmul.f32 %v4304_v19, %v4232_v7  ;;  %v3048_v3 = vunpack.i.h.bf16 %v4356_v36 }
 0x587   :  { %2887 = vmatprep.subr.bf16.mxu0 %v4732_v52  ;;  %2883 = vmatprep.mubr.msk.bf16.mxu1 %vm3478_vm1, %v4732_v52  ;;  %v1269_v24 = vadd.f32 %v1267_v27, %v1263_v16  ;;  %v1485_v46 = vmul.f32 %v4325_v11, %v4255_v4  ;;  %v1453_v9 = vmul.f32 %v4304_v19, %v4234_v29 }
 0x588   :  { %v3225_v33 = vpop.eup %3224  ;;  %2893 = vmatprep.subr.bf16.mxu1 %v4732_v52  ;;  %v1483_v15 = vadd.f32 %v1481_v0, %v1479_v26  ;;  %v1437_v53 = vmul.f32 %v4315_v2, %v4224_v14  ;;  %v1451_v5 = vmul.f32 %v4315_v2, %v4226_v17  ;;  %v1467_v61 = vmul.f32 %v4304_v19, %v4238_v55 }
 0x589   :  { %v4328_v32 = vmul.f32 %v3225_v33, %v4180_v28  ;;  %2878 = vmatmul.mubr.msk.bf16.vlgmr.msra.gmra.mrb[32].mxu0 %vm1094_vm4, %v1494_v60  ;;  %v1495_v28 = vpack.c.bf16 %v1248_v49, %v1247_v23  ;;  %v1496_v54 = vpack.c.bf16 %v1270_v34, %v1269_v24  ;;  %v1457_v47 = vmul.f32 %v4325_v11, %v4245_v63 }
 0x58a   :  { %2888 = vmatpush3.bf16.msra.mxu0 %v577_v43  ;;  %2889 = vmatprep.mubr.msk.bf16.mxu0 %vm3478_vm1, %v4732_v52  ;;  %v1487_v59 = vadd.f32 %v1485_v46, %v1483_v15  ;;  %v1441_v49 = vadd.f32 %v1439_v1, %v1437_v53  ;;  %v3047_v24 = vunpack.i.l.bf16 %v4356_v36 }
 0x58b   :  { %2899 = vmatprep.subr.bf16.mxu0 %v4732_v52  ;;  %v1489_v30 = vmul.f32 %v4328_v32, %v4312_v57 }
 0x58d   :  { %2884 = vmatmul.mubr.msk.bf16.vlgmr.msra.gmra.mrb[16].mxu1 %vm1094_vm4, %v1495_v28  ;;  %v4352_v40 = vadd.f32 %v1489_v30, %v1487_v59 }
 0x58e   :  { %2894 = vmatpush3.bf16.msra.mxu1 %v4733_v41  ;;  %2895 = vmatprep.mubr.msk.bf16.mxu1 %vm3478_vm1, %v4732_v52 }
 0x58f   :  { %2905 = vmatprep.subr.bf16.mxu1 %v4732_v52 }
 0x591   :  { %2890 = vmatmul.mubr.msk.bf16.vlgmr.msra.gmra.mrb[36].mxu0 %vm1094_vm4, %v1496_v54 }
 0x592   :  { %2901 = vmatprep.mubr.msk.bf16.mxu0 %vm3478_vm1, %v4732_v52 }
 0x5aa   :  { %v1402_v6 = vpop.xlane.xlu1 %1401 }
 0x5ab   :  { %3226 = vrcp.f32 %v1402_v6 }
 0x5ae   :  { %v1408_v25 = vpop.xlane.xlu1 %1407 }
 0x5af   :  { %3228 = vrcp.f32 %v1408_v25 }
 0x5b2   :  { %v1414_v20 = vpop.xlane.xlu1 %1413 }
 0x5b3   :  { %3230 = vrcp.f32 %v1414_v20 }
 0x5b5   :  { %v3227_v35 = vpop.eup %3226 }
 0x5b6   :  { %v1420_v22 = vpop.xlane.xlu1 %1419  ;;  %v1430_v12 = vmul.f32 %v3227_v35, %v4196_v10  ;;  %v1443_v10 = vmul.f32 %v4325_v11, %v4243_v48 }
 0x5b7   :  { %3232 = vrcp.f32 %v1420_v22 }
 0x5b8   :  { %v1438_v19 = vmul.f32 %v1430_v12, %v4224_v14  ;;  %v1452_v27 = vmul.f32 %v1430_v12, %v4226_v17  ;;  %v1480_v23 = vmul.f32 %v1430_v12, %v4230_v8  ;;  %v1445_v14 = vadd.f32 %v1443_v10, %v1441_v49 }
 0x5b9   :  { %v3229_v45 = vpop.eup %3228  ;;  %v1461_v17 = vmul.f32 %v4328_v32, %v4260_v18  ;;  %v1466_v20 = vmul.f32 %v1430_v12, %v4228_v44 }
 0x5ba   :  { %v1432_v42 = vmul.f32 %v3229_v45, %v4200_v13  ;;  %v3041_v37 = vpop.permute.xlu1 %3040 }
 0x5bb   :  { %v3043_v21 = vunpack.i.h.bf16 %v3041_v37  ;;  %v3042_v31 = vunpack.i.l.bf16 %v3041_v37 }
 0x5bc   :  { %v1440_v60 = vmul.f32 %v1432_v42, %v4232_v7  ;;  %v1454_v58 = vmul.f32 %v1432_v42, %v4234_v29  ;;  %v1482_v0 = vmul.f32 %v1432_v42, %v4240_v38  ;;  %v1447_v7 = vmul.f32 %v4328_v32, %v4252_v51 }
 0x5bd   :  { %v3231_v13 = vpop.eup %3230  ;;  %v579_v33 = vpack.c.bf16 %v3043_v21, %v3042_v31  ;;  %v1455_v29 = vadd.f32 %v1453_v9, %v1451_v5  ;;  %v580_v21 = vpack.c.bf16 %v3048_v3, %v3047_v24 }
 0x5be   :  { %v1434_v43 = vmul.f32 %v3231_v13, %v4204_v62  ;;  %v1442_v34 = vadd.f32 %v1440_v60, %v1438_v19  ;;  %v1456_v28 = vadd.f32 %v1454_v58, %v1452_v27  ;;  %v3051_v8 = vpop.permute.xlu1 %3050  ;;  %v1484_v30 = vadd.f32 %v1482_v0, %v1480_v23 }
 0x5bf   :  { %2900 = vmatpush3.bf16.msra.mxu0 %v579_v33  ;;  %v1459_v46 = vadd.f32 %v1457_v47, %v1455_v29  ;;  %v3053_v22 = vunpack.i.h.bf16 %v3051_v8  ;;  %v3052_v35 = vunpack.i.l.bf16 %v3051_v8 }
 0x5c0   :  { %2911 = vmatprep.subr.bf16.mxu0 %v4732_v52  ;;  %v1444_v38 = vmul.f32 %v1434_v43, %v4243_v48  ;;  %v1458_v62 = vmul.f32 %v1434_v43, %v4245_v63  ;;  %v1486_v26 = vmul.f32 %v1434_v43, %v4255_v4  ;;  %v1468_v48 = vmul.f32 %v1432_v42, %v4238_v55 }
 0x5c1   :  { %v3233_v16 = vpop.eup %3232  ;;  %v1449_v63 = vadd.f32 %v1447_v7, %v1445_v14  ;;  %v1472_v1 = vmul.f32 %v1434_v43, %v4247_v56  ;;  %v1465_v42 = vmul.f32 %v4315_v2, %v4228_v44  ;;  %v581_v31 = vpack.c.bf16 %v3053_v22, %v3052_v35 }
 0x5c2   :  { %v1436_v15 = vmul.f32 %v3233_v16, %v4208_v50  ;;  %v1446_v41 = vadd.f32 %v1444_v38, %v1442_v34  ;;  %v1460_v54 = vadd.f32 %v1458_v62, %v1456_v28  ;;  %v1488_v6 = vadd.f32 %v1486_v26, %v1484_v30  ;;  %v3142_v62 = vld [vmem:[%s4734_s23] sm:$0xff]  }
 0x5c3   :  { %v1463_v50 = vadd.f32 %v1461_v17, %v1459_v46  ;;  %v1470_v37 = vadd.f32 %v1468_v48, %v1466_v20  ;;  %v1469_v53 = vadd.f32 %v1467_v61, %v1465_v42  ;;  %v1475_v44 = vmul.f32 %v4328_v32, %v4266_v39  ;;  %v3143_v46 = vld [vmem:[%s4734_s23 + $0x8] sm:$0xff]  }
 0x5c4   :  { %v1448_v4 = vmul.f32 %v1436_v15, %v4252_v51  ;;  %v1462_v59 = vmul.f32 %v1436_v15, %v4260_v18  ;;  %v1490_v25 = vmul.f32 %v1436_v15, %v4312_v57  ;;  %v1471_v51 = vmul.f32 %v4325_v11, %v4247_v56 }
 0x5c5   :  { %v1476_v57 = vmul.f32 %v1436_v15, %v4266_v39  ;;  %v1474_v5 = vadd.f32 %v1472_v1, %v1470_v37 }
 0x5c6   :  { %v1450_v45 = vadd.f32 %v1448_v4, %v1446_v41  ;;  %v1464_v36 = vadd.f32 %v1462_v59, %v1460_v54  ;;  %v1492_v55 = vadd.f32 %v1490_v25, %v1488_v6  ;;  %v1473_v56 = vadd.f32 %v1471_v51, %v1469_v53 }
 0x5c7   :  { %v1478_v2 = vadd.f32 %v1476_v57, %v1474_v5 }
 0x5c8   :  { %v1497_v18 = vpack.c.bf16 %v1450_v45, %v1449_v63  ;;  %v1498_v9 = vpack.c.bf16 %v1464_v36, %v1463_v50  ;;  %v1500_v12 = vpack.c.bf16 %v1492_v55, %v4352_v40  ;;  %v1477_v11 = vadd.f32 %v1475_v44, %v1473_v56 }
 0x5ca   :  { %2896 = vmatmul.mubr.msk.bf16.vlgmr.msra.gmra.mrb[20].mxu1 %vm1094_vm4, %v1497_v18  ;;  %2902 = vmatmul.mubr.msk.bf16.vlgmr.msra.gmra.mrb[40].mxu0 %vm1094_vm4, %v1498_v9  ;;  %v1499_v40 = vpack.c.bf16 %v1478_v2, %v1477_v11 }
 0x5cb   :  { %2906 = vmatpush3.bf16.msra.mxu1 %v580_v21  ;;  %2912 = vmatpush3.bf16.msra.mxu0 %v581_v31 }
 0x5cc   :  { %2907 = vmatprep.mubr.msk.bf16.mxu1 %vm3478_vm1, %v4732_v52  ;;  %2913 = vmatprep.mubr.msk.bf16.mxu0 %vm3478_vm1, %v4732_v52  ;;  %vm2286_vm1 = vcmask 785408  }
 0x5cd   :  { %2917 = vmatprep.subr.bf16.mxu1 %v3142_v62 }
 0x5d2   :  { %2908 = vmatmul.mubr.msk.bf16.vlgmr.msra.gmra.mrb[24].mxu1 %vm1094_vm4, %v1499_v40  ;;  %2914 = vmatmul.mubr.msk.bf16.vlgmr.msra.gmra.mrb[44].mxu0 %vm1094_vm4, %v1500_v12 }
 0x5d3   :  { %2918 = vmatpush3.bf16.msra.mxu1 %v3142_v62 }
 0x5d4   :  { %2919 = vmatprep.subr.bf16.mxu1 %v3143_v46 }
 0x5d7   :  { %2920 = vmatpush3.bf16.msra.mxu1 %v3143_v46 }
 0x658   :  { %v1538_v61 = vpop.f32.mrb[12].mxu1 }
 0x659   :  { %v2873_v3 = vpop.f32.mrb[13].mxu1 }
 0x65a   :  { %v1541_v13 = vpop.f32.mrb[14].mxu1 }
 0x65b   :  { %v2874_v39 = vpop.f32.mrb[15].mxu1 }
 0x65c   :  { %v1582_v32 = vpop.f32.mrb[32].mxu0 }
 0x65d   :  { %v2879_v60 = vpop.f32.mrb[33].mxu0 }
 0x65e   :  { %v1585_v58 = vpop.f32.mrb[34].mxu0 }
 0x65f   :  { %v3054_v33 = vpack.i.bf16 %v1585_v58, %v1582_v32  ;;  %v2880_v10 = vpop.f32.mrb[35].mxu0 }
 0x660   :  { %v1626_v0 = vpop.f32.mrb[16].mxu1 }
 0x661   :  { %3055 = vrot.lane.b32.xlu0 %v3054_v33, %s3482_s1  ;;  %v2885_v43 = vpop.f32.mrb[17].mxu1 }
 0x662   :  { %v1629_v49 = vpop.f32.mrb[18].mxu1  ;;  %v2703_v43 = vld [vmem:[#allocation16] ss:$0 sm:$0xff] }
 0x663   :  { %v3059_v47 = vpack.i.bf16 %v1629_v49, %v1626_v0  ;;  %v2886_v19 = vpop.f32.mrb[19].mxu1  ;;  %v3485_v0 = vmov 0  }
 0x664   :  { %v1670_v27 = vpop.f32.mrb[36].mxu0  ;;  %3090 = vset.pattern.permute.xlu1 %v3485_v0  ;;  %3084 = vset.pattern.permute.xlu0 %v3485_v0 }
 0x665   :  { %v2891_v7 = vpop.f32.mrb[37].mxu0  ;;  %3060 = vrot.lane.b32.xlu1 %v3059_v47, %s3483_s11  ;;  %2561 = vmatprep.subr.bf16.mxu1 %v3485_v0 }
 0x666   :  { %v1673_v29 = vpop.f32.mrb[38].mxu0 }
 0x667   :  { %v3064_v23 = vpack.i.bf16 %v1673_v29, %v1670_v27  ;;  %v2892_v38 = vpop.f32.mrb[39].mxu0 }
 0x669   :  { %3065 = vrot.lane.b32.xlu1 %v3064_v23, %s3484_s2  ;;  %v3258_v23 = vld [vmem:[%s4725_s18] sm:$0xff] }
 0x69d   :  { %v1714_v26 = vpop.f32.mrb[20].mxu1  ;;  %v1758_v16 = vpop.f32.mrb[40].mxu0 }
 0x69e   :  { %v2897_v34 = vpop.f32.mrb[21].mxu1  ;;  %v2903_v14 = vpop.f32.mrb[41].mxu0 }
 0x69f   :  { %v1717_v28 = vpop.f32.mrb[22].mxu1  ;;  %v1761_v17 = vpop.f32.mrb[42].mxu0  ;;  %v3260_v14 = vld [vmem:[%s4725_s18 + $0x8] sm:$0xff] }
 0x6a0   :  { %v3069_v24 = vpack.i.bf16 %v1761_v17, %v1758_v16  ;;  %v2898_v15 = vpop.f32.mrb[23].mxu1  ;;  %v2904_v8 = vpop.f32.mrb[43].mxu0 }
 0x6a1   :  { %v3261_v15 = vld [vmem:[%s4725_s18 + $0x18] sm:$0xff] }
 0x6a2   :  { %3070 = vrot.lane.b32.xlu0 %v3069_v24, %s3482_s1 }
 0x6a5   :  { %v1802_v30 = vpop.f32.mrb[24].mxu1  ;;  %v1846_v48 = vpop.f32.mrb[44].mxu0 }
 0x6a6   :  { %v2909_v41 = vpop.f32.mrb[25].mxu1  ;;  %v2915_v63 = vpop.f32.mrb[45].mxu0 }
 0x6a7   :  { %v1805_v54 = vpop.f32.mrb[26].mxu1  ;;  %v1849_v4 = vpop.f32.mrb[46].mxu0  ;;  %v4735_v41 = vld [vmem:[#allocation29_spill] sm:$0xff]  ;;  %v4736_v63 = vld [vmem:[#allocation30_spill] sm:$0xff] }
 0x6a8   :  { %v3074_v59 = vpack.i.bf16 %v1805_v54, %v1802_v30  ;;  %v3079_v6 = vpack.i.bf16 %v1849_v4, %v1846_v48  ;;  %v2910_v25 = vpop.f32.mrb[27].mxu1  ;;  %v2916_v20 = vpop.f32.mrb[47].mxu0  ;;  %v2081_v30 = vstv %s2712_s25  ;;  %vm2171_vm9 = vcmp.lt.s32.totalorder %v4736_v63, 15 }
 0x6a9   :  { %vm2082_vm7 = vcmp.lt.s32.totalorder %v4735_v41, %v2081_v30  ;;  %vm2083_vm8 = vcmp.lt.s32.totalorder %v4736_v63, %v2081_v30  ;;  %vm2130_vm12 = vcmp.ge.s32.totalorder %v4735_v41, 1 }
 0x6aa   :  { %3080 = vrot.lane.b32.xlu1 %v3079_v6, %s3484_s2  ;;  %3075 = vrot.lane.b32.xlu0 %v3074_v59, %s3483_s11  ;;  %v2713_v54 = vsel %vm2082_vm7, 1.0, %v4732_v52  ;;  %v2714_v4 = vsel %vm2083_vm8, 1.0, %v4732_v52  ;;  %s3487_s2 = smov 32  }
 0x6ab   :  { %v3091_v59 = vpack.i.bf16 %v2714_v4, %v2713_v54 }
 0x6d3   :  { %v3056_v22 = vpop.permute.xlu0 %3055 }
 0x6d4   :  { %v3058_v50 = vunpack.i.h.bf16 %v3056_v22  ;;  %v3057_v45 = vunpack.i.l.bf16 %v3056_v22 }
 0x6d6   :  { %v1877_v42 = vsel %vm582_vm2, %v1538_v61, %v3057_v45  ;;  %v1878_v37 = vsel %vm582_vm2, %v1541_v13, %v3058_v50 }
 0x6d7   :  { %v3061_v35 = vpop.permute.xlu1 %3060 }
 0x6d8   :  { %v3063_v36 = vunpack.i.h.bf16 %v3061_v35  ;;  %v3062_v1 = vunpack.i.l.bf16 %v3061_v35 }
 0x6da   :  { %v1880_v9 = vsel %vm1094_vm4, %v1878_v37, %v3063_v36  ;;  %v1879_v57 = vsel %vm1094_vm4, %v1877_v42, %v3062_v1 }
 0x6db   :  { %v3066_v55 = vpop.permute.xlu1 %3065 }
 0x6dc   :  { %v3068_v51 = vunpack.i.h.bf16 %v3066_v55  ;;  %v3067_v18 = vunpack.i.l.bf16 %v3066_v55 }
 0x6de   :  { %v1882_v12 = vsel %vm1881_vm6, %v1879_v57, %v3067_v18  ;;  %v1883_v21 = vsel %vm1881_vm6, %v1880_v9, %v3068_v51 }
 0x6df   :  { %v1914_v31 = vpack.c.bf16 %v1883_v21, %v1882_v12 }
 0x6e1   :  { %2921 = vmatprep.mubr.msk.bf16.mxu1 %vm159_vm0, %v1914_v31 }
 0x714   :  { %v3071_v53 = vpop.permute.xlu0 %3070 }
 0x715   :  { %v3073_v5 = vunpack.i.h.bf16 %v3071_v53  ;;  %v3072_v44 = vunpack.i.l.bf16 %v3071_v53 }
 0x717   :  { %v1908_v13 = vsel %vm582_vm2, %v1714_v26, %v3072_v44  ;;  %v1909_v39 = vsel %vm582_vm2, %v1717_v28, %v3073_v5  ;;  %v3259_v26 = vld [vmem:[%s4725_s18 + $0x10] sm:$0xff]  ;;  %s2072_s18 = sld [smem:[#allocation3]]  ;;  %v2716_v44 = vsel %vm2171_vm9, 1.0, %v4732_v52 }
 0x71c   :  { %v3081_v56 = vpop.permute.xlu1 %3080  ;;  %v3076_v2 = vpop.permute.xlu0 %3075 }
 0x71d   :  { %v3083_v11 = vunpack.i.h.bf16 %v3081_v56  ;;  %v3082_v40 = vunpack.i.l.bf16 %v3081_v56  ;;  %v3078_v61 = vunpack.i.h.bf16 %v3076_v2  ;;  %v3077_v3 = vunpack.i.l.bf16 %v3076_v2 }
 0x71e   :  { %v2073_v5 = vstv %s2072_s18 }
 0x71f   :  { %v1911_v32 = vsel %vm1094_vm4, %v1909_v39, %v3078_v61  ;;  %v1910_v60 = vsel %vm1094_vm4, %v1908_v13, %v3077_v3  ;;  %vm2074_vm10 = vcmp.lt.s32.totalorder %v4735_v41, %v2073_v5  ;;  %vm2075_vm11 = vcmp.lt.s32.totalorder %v4736_v63, %v2073_v5  ;;  %v3144_v39 = vld [vmem:[%s4707_s13] sm:$0xff]  }
 0x720   :  { %v1913_v58 = vsel %vm1881_vm6, %v1911_v32, %v3083_v11  ;;  %v1912_v33 = vsel %vm1881_vm6, %v1910_v60, %v3082_v40  ;;  %v2710_v56 = vsel %vm2074_vm10, 1.0, %v4732_v52  ;;  %v2711_v2 = vsel %vm2075_vm11, 1.0, %v4732_v52  ;;  %v3145_v32 = vld [vmem:[%s4707_s13 + $0x8] sm:$0xff]   ;;  %2925 = vmatprep.subr.bf16.mxu0 %v3144_v39 }
 0x721   :  { %v1915_v10 = vpack.c.bf16 %v1913_v58, %v1912_v33  ;;  %v3486_v11 = vmov 1.0   ;;  %v2715_v61 = vsel %vm2130_vm12, 1.0, %v4732_v52  ;;  %v3085_v3 = vpack.i.bf16 %v2711_v2, %v2710_v56  ;;  %2926 = vmatpush3.bf16.msra.mxu0 %v3144_v39 }
 0x722   :  { %v3096_v40 = vpack.i.bf16 %v2716_v44, %v3486_v11  ;;  %v3101_v13 = vpack.i.bf16 %v3486_v11, %v2715_v61  ;;  %2927 = vmatprep.subr.bf16.mxu0 %v3145_v32 }
 0x723   :  { %2922 = vmatmul.mubr.msk.bf16.vlgmr.msra.gmra.mrb[28].mxu1 %vm159_vm0, %v1915_v10 }
 0x725   :  { %2928 = vmatpush3.bf16.msra.mxu0 %v3145_v32 }
 0x7f6   :  { %v2923_v49 = vpop.f32.mrb[28].mxu1 }
 0x7f7   :  { %v1979_v47 = vpop.f32.mrb[29].mxu1  ;;  %v1988_v19 = vadd.f32 %v2923_v49, %v2703_v43 }
 0x7f8   :  { %v1980_v27 = vadd.f32 %v2703_v43, %v1979_v47  ;;  %v2924_v7 = vpop.f32.mrb[30].mxu1 }
 0x7f9   :  { %v1982_v29 = vpop.f32.mrb[31].mxu1  ;;  %v4449_v16 = vadd.f32 %v3259_v26, %v1988_v19  ;;  %v1991_v34 = vadd.f32 %v2924_v7, %v2703_v43  ;;  %v2708_v26 = vld [vmem:[#allocation10] ss:$0 sm:$0xff] }
 0x7fa   :  { %v4444_v38 = vadd.f32 %v3258_v23, %v1980_v27  ;;  %v1983_v62 = vadd.f32 %v2703_v43, %v1982_v29 }
 0x7fb   :  { %v4463_v8 = vadd.f32 %v3261_v15, %v1991_v34  ;;  %v2004_v46 = vsel %vm159_vm0, %v4449_v16, 0.0  ;;  %v3146_v15 = vld [vmem:[%s4707_s13 + $0x10] sm:$0xff]  }
 0x7fc   :  { %v4454_v28 = vadd.f32 %v3260_v14, %v1983_v62  ;;  %v1998_v17 = vsel %vm159_vm0, %v4444_v38, 0.0  ;;  %v2709_v14 = vld [vmem:[#allocation11] ss:$0 sm:$0xff]  ;;  %2929 = vmatprep.subr.bf16.mxu0 %v3146_v15 }
 0x7fd   :  { %1999 = vadd.xlane.f32.xlu0 %v1998_v17  ;;  %v2007_v48 = vsel %vm159_vm0, %v4463_v8, 0.0  ;;  %2930 = vmatpush3.bf16.msra.mxu0 %v3146_v15 }
 0x7fe   :  { %v2001_v24 = vsel %vm159_vm0, %v4454_v28, 0.0 }
 0x7ff   :  { %2002 = vadd.xlane.f32.xlu1 %v2001_v24 }
 0x801   :  { %2005 = vadd.xlane.f32.xlu0 %v2004_v46 }
 0x805   :  { %2008 = vadd.xlane.f32.xlu0 %v2007_v48 }
 0x810   :  { %3092 = vperm.xlu1 %3090, %v3091_v59  }
 0x88a   :  { %v2000_v6 = vpop.xlane.xlu0 %1999 }
 0x88b   :  { %v2010_v25 = vmul.f32 0.03125, %v2000_v6 }
 0x88c   :  { %v2003_v20 = vpop.xlane.xlu1 %2002 }
 0x88d   :  { %v4474_v50 = vsub.f32 %v4444_v38, %v2010_v25  ;;  %v2011_v45 = vmul.f32 0.03125, %v2003_v20  ;;  %v3147_v20 = vld [vmem:[%s4707_s13 + $0x18] sm:$0xff]  }
 0x88e   :  { %v2006_v22 = vpop.xlane.xlu0 %2005  ;;  %2931 = vmatprep.subr.bf16.mxu0 %v3147_v20 }
 0x88f   :  { %v2012_v35 = vmul.f32 0.03125, %v2006_v22  ;;  %v4478_v37 = vsub.f32 %v4454_v28, %v2011_v45  ;;  %v2018_v9 = vmul.f32 %v4474_v50, %v4474_v50  ;;  %2932 = vmatpush3.bf16.msra.mxu0 %v3147_v20 }
 0x890   :  { %v4503_v60 = vpop.permute.xlu1 %3092 }
 0x891   :  { %v2016_v36 = vsub.f32 %v4449_v16, %v2012_v35  ;;  %v2022_v12 = vsel %vm159_vm0, %v2018_v9, 0.0  ;;  %v2019_v31 = vmul.f32 %v4478_v37, %v4478_v37  ;;  %v3094_v54 = vunpack.i.l.bf16 %v4503_v60 }
 0x892   :  { %v2009_v1 = vpop.xlane.xlu0 %2008  ;;  %v3095_v22 = vunpack.i.h.bf16 %v4503_v60 }
 0x893   :  { %v2013_v55 = vmul.f32 0.03125, %v2009_v1  ;;  %v2020_v42 = vmul.f32 %v2016_v36, %v2016_v36  ;;  %v2025_v53 = vsel %vm159_vm0, %v2019_v31, 0.0  ;;  %v3148_v31 = vld [vmem:[%s4707_s13 + $0x20] sm:$0xff]  }
 0x894   :  { %2933 = vmatprep.subr.bf16.mxu0 %v3148_v31 }
 0x895   :  { %v2017_v51 = vsub.f32 %v4463_v8, %v2013_v55  ;;  %v2028_v18 = vsel %vm159_vm0, %v2020_v42, 0.0  ;;  %2934 = vmatpush3.bf16.msra.mxu0 %v3148_v31 }
 0x896   :  { %2029 = vadd.xlane.f32.xlu0 %v2028_v18 }
 0x897   :  { %v2021_v57 = vmul.f32 %v2017_v51, %v2017_v51 }
 0x899   :  { %v2031_v21 = vsel %vm159_vm0, %v2021_v57, 0.0 }
 0x89a   :  { %2023 = vadd.xlane.f32.xlu0 %v2022_v12  ;;  %2032 = vadd.xlane.f32.xlu1 %v2031_v21 }
 0x89e   :  { %2026 = vadd.xlane.f32.xlu1 %v2025_v53 }
 0x8af   :  { %3097 = vperm.xlu1 %3090, %v3096_v40  }
 0x8b0   :  { %3086 = vperm.xlu0 %3084, %v3085_v3  }
 0x8b3   :  { %3102 = vperm.xlu1 %3090, %v3101_v13  }
 0x923   :  { %v2030_v52 = vpop.xlane.xlu0 %2029 }
 0x924   :  { %v2036_v58 = vmul.f32 0.03125, %v2030_v52  ;;  %v3149_v52 = vld [vmem:[%s4707_s13 + $0x28] sm:$0xff]   ;;  %s3488_s13 = smov 64  }
 0x925   :  { %2935 = vmatprep.subr.bf16.mxu0 %v3149_v52 }
 0x926   :  { %v2040_v33 = vadd.f32 1e-05, %v2036_v58  ;;  %2936 = vmatpush3.bf16.msra.mxu0 %v3149_v52  ;;  %v3151_v52 = vld [vmem:[%s4709_s15 + $0x8] sm:$0xff]  }
 0x927   :  { %v2033_v10 = vpop.xlane.xlu1 %2032  ;;  %v2024_v43 = vpop.xlane.xlu0 %2023 }
 0x928   :  { %3234 = vrsqrt.f32 %v2040_v33  ;;  %v2037_v49 = vmul.f32 0.03125, %v2033_v10  ;;  %v2034_v47 = vmul.f32 0.03125, %v2024_v43 }
 0x92a   :  { %v2041_v19 = vadd.f32 1e-05, %v2037_v49  ;;  %v2038_v27 = vadd.f32 1e-05, %v2034_v47 }
 0x92b   :  { %v2027_v7 = vpop.xlane.xlu1 %2026 }
 0x92c   :  { %3236 = vrsqrt.f32 %v2041_v19  ;;  %v2035_v29 = vmul.f32 0.03125, %v2027_v7 }
 0x92d   :  { %3238 = vrsqrt.f32 %v2038_v27 }
 0x92e   :  { %v2039_v23 = vadd.f32 1e-05, %v2035_v29 }
 0x92f   :  { %v4508_v48 = vpop.permute.xlu0 %3086  ;;  %v3098_v53 = vpop.permute.xlu1 %3097 }
 0x930   :  { %3240 = vrsqrt.f32 %v2039_v23  ;;  %v3088_v25 = vunpack.i.l.bf16 %v4508_v48  ;;  %v3089_v55 = vunpack.i.h.bf16 %v4508_v48  ;;  %v4532_v13 = vunpack.i.h.bf16 %v3098_v53 }
 0x931   :  { %v4534_v39 = vunpack.i.l.bf16 %v3098_v53  ;;  %v2717_v53 = vld [vmem:[#allocation17] ss:$0 sm:$0xff] }
 0x932   :  { %v3235_v62 = vpop.eup %3234 }
 0x933   :  { %v2048_v34 = vmul.f32 %v3235_v62, %v2016_v36  ;;  %v3103_v62 = vpop.permute.xlu1 %3102 }
 0x935   :  { %v2059_v17 = vmul.f32 %v2708_v26, %v2048_v34 }
 0x936   :  { %v3237_v24 = vpop.eup %3236 }
 0x937   :  { %v3239_v46 = vpop.eup %3238  ;;  %v2049_v30 = vmul.f32 %v3237_v24, %v2017_v51  ;;  %v2070_v41 = vadd.f32 %v2709_v14, %v2059_v17  ;;  %v4553_v17 = vunpack.i.l.bf16 %v3103_v62 }
 0x938   :  { %v2046_v63 = vmul.f32 %v3239_v46, %v4474_v50 }
 0x939   :  { %v2060_v4 = vmul.f32 %v2708_v26, %v2049_v30  ;;  %v2110_v50 = vmul.f32 %v3094_v54, %v2070_v41 }
 0x93a   :  { %v3241_v59 = vpop.eup %3240  ;;  %v2057_v6 = vmul.f32 %v2708_v26, %v2046_v63 }
 0x93b   :  { %v2047_v35 = vmul.f32 %v3241_v59, %v4478_v37  ;;  %v2071_v45 = vadd.f32 %v2709_v14, %v2060_v4  ;;  %v2122_v57 = vrot.slane %v2110_v50, 7  ;;  %v2158_v2 = vrot.slane %v2110_v50, 1 }
 0x93c   :  { %v2068_v36 = vadd.f32 %v2709_v14, %v2057_v6 }
 0x93d   :  { %v2058_v1 = vmul.f32 %v2708_v26, %v2047_v35  ;;  %v2111_v42 = vmul.f32 %v3095_v22, %v2071_v45 }
 0x93e   :  { %v2108_v51 = vmul.f32 %v3088_v25, %v2068_v36 }
 0x93f   :  { %v2069_v18 = vadd.f32 %v2709_v14, %v2058_v1  ;;  %v2113_v9 = vrot.slane %v2111_v42, 7  ;;  %v3106_v37 = vpack.i.bf16 %v2111_v42, %v2110_v50  ;;  %v2160_v21 = vrot.slane %v2111_v42, 1 }
 0x940   :  { %v2119_v12 = vrot.slane %v2108_v51, 7  ;;  %v2155_v44 = vrot.slane %v2108_v51, 1  ;;  %v4551_v14 = vunpack.i.h.bf16 %v3103_v62 }
 0x941   :  { %v2109_v5 = vmul.f32 %v3089_v55, %v2069_v18  ;;  %3107 = vrot.lane.b32.xlu1 %v3106_v37, %s3487_s2  ;;  %v2124_v56 = vsel %vm2118_vm13, %v2122_v57, %v2113_v9  ;;  %v2161_v32 = vsel %vm2154_vm14, %v2158_v2, %v2160_v21 }
 0x942   :  { %v2129_v11 = vsel %vm2118_vm13, %v2113_v9, %v2119_v12  ;;  %v2167_v10 = vsel %vm2154_vm14, %v2160_v21, %v2155_v44  ;;  %v2190_v7 = vmul.f32 %v4534_v39, %v2161_v32  ;;  %v2153_v1 = vmul.f32 %v4551_v14, %v2124_v56 }
 0x943   :  { %v2120_v40 = vrot.slane %v2109_v5, 7  ;;  %v2156_v61 = vrot.slane %v2109_v5, 1  ;;  %v3111_v3 = vpack.i.bf16 %v2109_v5, %v2108_v51  ;;  %v2191_v29 = vmul.f32 %v4532_v13, %v2167_v10  ;;  %v3154_v10 = vld [vmem:[%s4709_s15 + $0x20] sm:$0xff]  }
 0x944   :  { %v2150_v46 = vmul.f32 %v4553_v17, %v2129_v11 }
 0x945   :  { %3112 = vrot.lane.b32.xlu1 %v3111_v3, %s3487_s2  ;;  %v2157_v58 = vsel %vm2154_vm14, %v2155_v44, %v2156_v61  ;;  %v2159_v33 = vsel %vm2154_vm14, %v2156_v61, %v2158_v2  ;;  %v2123_v43 = vsel %vm2118_vm13, %v2120_v40, %v2122_v57  ;;  %v2121_v19 = vsel %vm2118_vm13, %v2119_v12, %v2120_v40  ;;  %v3150_v3 = vld [vmem:[%s4709_s15] sm:$0xff]  }
 0x946   :  { %v2188_v49 = vmul.f32 %v4534_v39, %v2157_v58  ;;  %v2189_v47 = vmul.f32 %v4532_v13, %v2159_v33  ;;  %v3121_v23 = vpack.i.bf16 %v2191_v29, %v2190_v7  ;;  %v2151_v30 = vmul.f32 %v4551_v14, %v2121_v19  ;;  %2562 = vmatpush1.bf16.msra.mxu1 %v3150_v3  ;;  %v3152_v58 = vld [vmem:[%s4709_s15 + $0x10] sm:$0xff]   ;;  %v3153_v33 = vld [vmem:[%s4709_s15 + $0x18] sm:$0xff]   ;;  %v3158_v19 = vld [vmem:[%s4709_s15 + $0x40] sm:$0xff]  }
 0x947   :  { %v2152_v36 = vmul.f32 %v4553_v17, %v2123_v43  ;;  %2563 = vmatprep.subr.bf16.mxu1 %v3485_v0  ;;  %v3155_v43 = vld [vmem:[%s4709_s15 + $0x28] sm:$0xff]   ;;  %v3160_v7 = vld [vmem:[%s4709_s15 + $0x50] sm:$0xff]  }
 0x948   :  { %v3116_v27 = vpack.i.bf16 %v2189_v47, %v2188_v49  ;;  %v3156_v49 = vld [vmem:[%s4709_s15 + $0x30] sm:$0xff]   ;;  %v3157_v47 = vld [vmem:[%s4709_s15 + $0x38] sm:$0xff]  }
 0x94a   :  { %3117 = vrot.lane.b32.xlu1 %v3116_v27, %s3488_s13  ;;  %2564 = vmatpush1.bf16.msra.mxu1 %v3151_v52  ;;  %v3159_v27 = vld [vmem:[%s4709_s15 + $0x48] sm:$0xff]  }
 0x94b   :  { %2565 = vmatprep.subr.bf16.mxu1 %v3485_v0 }
 0x94e   :  { %3122 = vrot.lane.b32.xlu1 %v3121_v23, %s3488_s13  ;;  %2566 = vmatpush1.bf16.msra.mxu1 %v3152_v58 }
 0x94f   :  { %2567 = vmatprep.subr.bf16.mxu1 %v3485_v0 }
 0x952   :  { %2568 = vmatpush1.bf16.msra.mxu1 %v3153_v33 }
 0x953   :  { %2569 = vmatprep.subr.bf16.mxu1 %v3485_v0 }
 0x956   :  { %2570 = vmatpush1.bf16.msra.mxu1 %v3154_v10 }
 0x957   :  { %2571 = vmatprep.subr.bf16.mxu1 %v3485_v0 }
 0x95a   :  { %2572 = vmatpush1.bf16.msra.mxu1 %v3155_v43 }
 0x95b   :  { %2573 = vmatprep.subr.bf16.mxu1 %v3485_v0 }
 0x95e   :  { %2574 = vmatpush1.bf16.msra.mxu1 %v3156_v49 }
 0x95f   :  { %2575 = vmatprep.subr.bf16.mxu1 %v3485_v0 }
 0x962   :  { %2576 = vmatpush1.bf16.msra.mxu1 %v3157_v47 }
 0x963   :  { %2577 = vmatprep.subr.bf16.mxu1 %v3485_v0 }
 0x966   :  { %2578 = vmatpush1.bf16.msra.mxu1 %v3158_v19 }
 0x967   :  { %2579 = vmatprep.subr.bf16.mxu1 %v3485_v0 }
 0x96a   :  { %2580 = vmatpush1.bf16.msra.mxu1 %v3159_v27 }
 0x96b   :  { %2581 = vmatprep.subr.bf16.mxu1 %v3485_v0 }
 0x96e   :  { %2582 = vmatpush1.bf16.msra.mxu1 %v3160_v7 }
 0x96f   :  { %2583 = vmatprep.subr.bf16.mxu1 %v3485_v0 }
 0x9b3   :  { %v3108_v26 = vpop.permute.xlu1 %3107 }
 0x9b4   :  { %v3110_v59 = vunpack.i.h.bf16 %v3108_v26  ;;  %v3109_v6 = vunpack.i.l.bf16 %v3108_v26 }
 0x9b6   :  { %v2222_v37 = vsel %vm159_vm0, %v2152_v36, %v3109_v6  ;;  %v2223_v57 = vsel %vm159_vm0, %v2153_v1, %v3110_v59 }
 0x9b7   :  { %v3113_v34 = vpop.permute.xlu1 %3112 }
 0x9b8   :  { %v3115_v24 = vunpack.i.h.bf16 %v3113_v34  ;;  %v3114_v15 = vunpack.i.l.bf16 %v3113_v34 }
 0x9ba   :  { %v2220_v20 = vsel %vm159_vm0, %v2150_v46, %v3114_v15  ;;  %v2221_v35 = vsel %vm159_vm0, %v2151_v30, %v3115_v24 }
 0x9bc   :  { %v3118_v41 = vpop.permute.xlu1 %3117 }
 0x9bd   :  { %v3120_v63 = vunpack.i.h.bf16 %v3118_v41  ;;  %v3119_v4 = vunpack.i.l.bf16 %v3118_v41 }
 0x9bf   :  { %v2225_v45 = vsel %vm2224_vm15, %v2220_v20, %v3119_v4  ;;  %v2226_v50 = vsel %vm2224_vm15, %v2221_v35, %v3120_v63 }
 0x9c0   :  { %v2229_v42 = vpack.c.bf16 %v2226_v50, %v2225_v45  ;;  %v3123_v51 = vpop.permute.xlu1 %3122 }
 0x9c1   :  { %v3125_v18 = vunpack.i.h.bf16 %v3123_v51  ;;  %v3124_v9 = vunpack.i.l.bf16 %v3123_v51 }
 0x9c2   :  { %2937 = vmatprep.mubr.msk.bf16.mxu0 %vm2286_vm1, %v2229_v42  ;;  %v3161_v42 = vld [vmem:[%s4709_s15 + $0x58] sm:$0xff]  }
 0x9c3   :  { %v2228_v12 = vsel %vm2224_vm15, %v2223_v57, %v3125_v18  ;;  %v2227_v21 = vsel %vm2224_vm15, %v2222_v37, %v3124_v9  ;;  %2584 = vmatpush1.bf16.msra.mxu1 %v3161_v42 }
 0x9c4   :  { %v2230_v31 = vpack.c.bf16 %v2228_v12, %v2227_v21 }
 0x9c6   :  { %2938 = vmatmul.mubr.msk.bf16.vlgmr.msra.gmra.mrb[48].mxu0 %vm2286_vm1, %v2230_v31 }
 0xa99   :  { %v2939_v5 = vpop.f32.mrb[48].mxu0 }
 0xa9a   :  { %v2327_v44 = vpop.f32.mrb[49].mxu0  ;;  %v4573_v61 = vadd.f32 %v2939_v5, %v2717_v53 }
 0xa9b   :  { %v4567_v2 = vadd.f32 %v2717_v53, %v2327_v44  ;;  %v2940_v56 = vpop.f32.mrb[50].mxu0 }
 0xa9c   :  { %v2330_v11 = vpop.f32.mrb[51].mxu0  ;;  %v4580_v32 = vadd.f32 %v2940_v56, %v2717_v53  ;;  %v2344_v62 = vsub.f32 0.0, %v4573_v61 }
 0xa9d   :  { %v4569_v40 = vadd.f32 %v2717_v53, %v2330_v11  ;;  %2374 = vrot.lane.b32.xlu1 %v4567_v2, %s3488_s13  ;;  %v2342_v29 = vsub.f32 0.0, %v4567_v2 }
 0xa9e   :  { %v2345_v34 = vsub.f32 0.0, %v4580_v32  ;;  %v2350_v15 = vmul.f32 1.442695, %v2344_v62 }
 0xa9f   :  { %2376 = vrot.lane.b32.xlu0 %v4569_v40, %s3488_s13  ;;  %v2343_v23 = vsub.f32 0.0, %v4569_v40  ;;  %v2346_v26 = vmul.f32 1.442695, %v2342_v29 }
 0xaa0   :  { %v2352_v46 = vmul.f32 1.442695, %v2345_v34 }
 0xaa1   :  { %2378 = vrot.lane.b32.xlu1 %v4573_v61, %s3488_s13  ;;  %v2348_v24 = vmul.f32 1.442695, %v2343_v23  ;;  %3242 = vpow2.f32 %v2346_v26 }
 0xaa3   :  { %2380 = vrot.lane.b32.xlu0 %v4580_v32, %s3488_s13  ;;  %3244 = vpow2.f32 %v2348_v24 }
 0xaa4   :  { %3246 = vpow2.f32 %v2350_v15 }
 0xaa5   :  { %3248 = vpow2.f32 %v2352_v46 }
 0xaab   :  { %v3243_v30 = vpop.eup %3242 }
 0xaac   :  { %v2354_v63 = vadd.f32 1.0, %v3243_v30 }
 0xaad   :  { %v3245_v41 = vpop.eup %3244 }
 0xaae   :  { %v3247_v0 = vpop.eup %3246  ;;  %v2355_v4 = vadd.f32 1.0, %v3245_v41  ;;  %3250 = vrcp.f32 %v2354_v63 }
 0xaaf   :  { %v3249_v59 = vpop.eup %3248  ;;  %v2356_v6 = vadd.f32 1.0, %v3247_v0 }
 0xab0   :  { %v2357_v20 = vadd.f32 1.0, %v3249_v59  ;;  %3252 = vrcp.f32 %v2355_v4 }
 0xab1   :  { %3254 = vrcp.f32 %v2356_v6 }
 0xab2   :  { %3256 = vrcp.f32 %v2357_v20 }
 0xab8   :  { %v3251_v35 = vpop.eup %3250 }
 0xab9   :  { %v2366_v50 = vmul.f32 %v3251_v35, %v4567_v2 }
 0xaba   :  { %v3253_v45 = vpop.eup %3252 }
 0xabb   :  { %v3255_v36 = vpop.eup %3254  ;;  %v2367_v18 = vmul.f32 %v3253_v45, %v4569_v40 }
 0xabc   :  { %v3257_v9 = vpop.eup %3256  ;;  %v2368_v21 = vmul.f32 %v3255_v36, %v4573_v61  ;;  %v2726_v36 = vld [vmem:[%s4710_s16] ss:$0 sm:$0xff]  ;;  %s2623_s16 = sshll.u32 %s3489_s22, 4  ;;  %s2624_s16 = int_to_ptr.vmem [resolvable:$true] %s2623_s16 }
 0xabd   :  { %v2369_v44 = vmul.f32 %v3257_v9, %v4580_v32  ;;  %p3433_p6 = scmp.lt.s32.totalorder %s2624_s16, %s2624_s16 }
 0xb0f   :  { %v2375_v1 = vpop.permute.xlu1 %2374 }
 0xb10   :  { %v2386_v51 = vmul.f32 %v2375_v1, %v2366_v50 }
 0xb11   :  { %v2377_v37 = vpop.permute.xlu0 %2376 }
 0xb12   :  { %v2390_v57 = vmul.f32 %v3088_v25, %v2386_v51  ;;  %v2387_v12 = vmul.f32 %v2377_v37, %v2367_v18 }
 0xb13   :  { %v2379_v31 = vpop.permute.xlu1 %2378 }
 0xb14   :  { %v2391_v53 = vmul.f32 %v3089_v55, %v2387_v12  ;;  %v2388_v5 = vmul.f32 %v2379_v31, %v2368_v21  ;;  %v2415_v2 = vrot.slane %v2390_v57, 1  ;;  %v2400_v58 = vrot.slane %v2390_v57, 7 }
 0xb15   :  { %v2381_v56 = vpop.permute.xlu0 %2380 }
 0xb16   :  { %v2401_v11 = vrot.slane %v2391_v53, 7  ;;  %v2416_v40 = vrot.slane %v2391_v53, 1  ;;  %v2392_v3 = vmul.f32 %v3094_v54, %v2388_v5  ;;  %v2389_v52 = vmul.f32 %v2381_v56, %v2369_v44 }
 0xb17   :  { %v3126_v25 = vpack.i.bf16 %v2391_v53, %v2390_v57 }
 0xb18   :  { %v2403_v33 = vrot.slane %v2392_v3, 7  ;;  %v2418_v10 = vrot.slane %v2392_v3, 1  ;;  %v2393_v61 = vmul.f32 %v3095_v22, %v2389_v52  ;;  %v2417_v48 = vsel %vm2154_vm14, %v2415_v2, %v2416_v40 }
 0xb19   :  { %3127 = vrot.lane.b32.xlu1 %v3126_v25, %s3488_s13  ;;  %v2402_v55 = vsel %vm2118_vm13, %v2400_v58, %v2401_v11  ;;  %v2428_v54 = vmul.f32 %v4534_v39, %v2417_v48 }
 0xb1a   :  { %v2395_v32 = vrot.slane %v2393_v61, 7  ;;  %v2420_v43 = vrot.slane %v2393_v61, 1  ;;  %v3131_v49 = vpack.i.bf16 %v2393_v61, %v2392_v3  ;;  %v2419_v47 = vsel %vm2154_vm14, %v2416_v40, %v2418_v10 }
 0xb1b   :  { %v2429_v19 = vmul.f32 %v4532_v13, %v2419_v47  ;;  %v2404_v27 = vsel %vm2118_vm13, %v2401_v11, %v2403_v33  ;;  %v2412_v41 = vmul.f32 %v4551_v14, %v2402_v55 }
 0xb1c   :  { %3132 = vrot.lane.b32.xlu0 %v3131_v49, %s3488_s13  ;;  %v2410_v60 = vsel %vm2118_vm13, %v2395_v32, %v2400_v58  ;;  %v2421_v22 = vsel %vm2154_vm14, %v2418_v10, %v2420_v43  ;;  %v2427_v7 = vsel %vm2154_vm14, %v2420_v43, %v2415_v2  ;;  %v2405_v29 = vsel %vm2118_vm13, %v2403_v33, %v2395_v32  ;;  %s3428_s13 = scalar_lea.vmem %s2624_s16, 512 }
 0xb1d   :  { %v2449_v23 = vpack.c.bf16 %v2429_v19, %v2428_v54  ;;  %v2430_v62 = vmul.f32 %v4534_v39, %v2421_v22  ;;  %v2431_v26 = vmul.f32 %v4532_v13, %v2427_v7  ;;  %v2411_v30 = vmul.f32 %v4553_v17, %v2410_v60  ;;  %p3429_p5 = scmp.ne.s32.totalorder %s2624_s16, %s3428_s13  ;;  %p3434_p7 = scmp.lt.s32.totalorder %s3428_s13, %s3428_s13 }
 0xb1e   :  { %v2413_v59 = vmul.f32 %v4553_v17, %v2404_v27  ;;  %v2414_v20 = vmul.f32 %v4551_v14, %v2405_v29 }
 0xb1f   :  { %2739 = vmatprep.mubr.msk.bf16.mxu1 %vm2224_vm15, %v2449_v23  ;;  %v2451_v34 = vpack.c.bf16 %v2431_v26, %v2430_v62  ;;  %p3435_p8 = por %p3434_p7, %p3433_p6 }
 0xb21   :  { %p3436_p9 = pnand %p3435_p8, %p3429_p5 }
 0xb8b   :  { %v3128_v24 = vpop.permute.xlu1 %3127 }
 0xb8c   :  { %v3130_v15 = vunpack.i.h.bf16 %v3128_v24  ;;  %v3129_v46 = vunpack.i.l.bf16 %v3128_v24 }
 0xb8e   :  { %v2444_v63 = vsel %vm2224_vm15, %v2411_v30, %v3129_v46  ;;  %v2445_v0 = vsel %vm2224_vm15, %v2412_v41, %v3130_v15  ;;  %v3133_v4 = vpop.permute.xlu0 %3132 }
 0xb8f   :  { %v2448_v39 = vpack.c.bf16 %v2445_v0, %v2444_v63  ;;  %v3135_v6 = vunpack.i.h.bf16 %v3133_v4  ;;  %v3134_v13 = vunpack.i.l.bf16 %v3133_v4 }
 0xb91   :  { %2594 = vmatmul.mubr.bf16.vlgmr.msra.gmra.mrb[32].mxu1 %v2448_v39  ;;  %v2446_v35 = vsel %vm2224_vm15, %v2413_v59, %v3134_v13  ;;  %v2447_v45 = vsel %vm2224_vm15, %v2414_v20, %v3135_v6 }
 0xb92   :  { %2740 = vmatprep.mubr.msk.bf16.mxu1 %vm2224_vm15, %v2451_v34  ;;  %v2450_v50 = vpack.c.bf16 %v2447_v45, %v2446_v35 }
 0xb99   :  { %2602 = vmatmul.mubr.bf16.gmra.mrb[36].mxu1 %v2450_v50 }
 0xc64   :  { %v2595_v1 = vpop.f32.mrb[32].mxu1 }
 0xc65   :  { %v2596_v17 = vadd.f32 %v2726_v36, %v2595_v1  ;;  %v2597_v42 = vpop.f32.mrb[33].mxu1 }
 0xc66   :  { %v2598_v51 = vpop.f32.mrb[34].mxu1 }
 0xc67   :  { %v2610_v18 = vadd.f32 %v2596_v17, %v4444_v38  ;;  %v2599_v14 = vadd.f32 %v2726_v36, %v2598_v51  ;;  %v2600_v9 = vpop.f32.mrb[35].mxu1 }
 0xc69   :  { %2614 = vst.msk [vmem:[#allocation19] sm:$0xff] %vm159_vm0, %v2610_v18  ;;  %v2611_v37 = vadd.f32 %v2599_v14, %v4454_v28 }
 0xc6b   :  { %2615 = vst.msk [vmem:[#allocation19 + $0x8] sm:$0xff] %vm159_vm0, %v2611_v37 }
 0xc6c   :  { %v2603_v57 = vpop.f32.mrb[36].mxu1 }
 0xc6d   :  { %v2604_v12 = vadd.f32 %v2726_v36, %v2603_v57  ;;  %v2605_v21 = vpop.f32.mrb[37].mxu1 }
 0xc6e   :  { %v2606_v31 = vpop.f32.mrb[38].mxu1 }
 0xc6f   :  { %v2612_v53 = vadd.f32 %v2604_v12, %v4449_v16  ;;  %v2607_v5 = vadd.f32 %v2726_v36, %v2606_v31  ;;  %v2608_v44 = vpop.f32.mrb[39].mxu1 }
 0xc71   :  { %2616 = vst.msk [vmem:[#allocation19 + $0x10] sm:$0xff] %vm159_vm0, %v2612_v53  ;;  %v2613_v38 = vadd.f32 %v2607_v5, %v4463_v8 }
 0xc73   :  { %2617 = vst.msk [vmem:[#allocation19 + $0x18] sm:$0xff] %vm159_vm0, %v2613_v38 }
 0xc74   :  { %3439 = shalt.err (!%p3436_p9)
}
 0xc75   :  { %s3440_s5 = scalar_lea.hbm %s4711_s17, 512 }
 0xc76   :  { %p3441_p10 = scmp.ne.s32.totalorder %s4711_s17, %s3440_s5  ;;  %p3444_p11 = scmp.lt.u32.totalorder %s3440_s5, %s4711_s17 }
 0xc78   :  { %p3446_p12 = pnand %p3444_p11, %p3441_p10 }
 0xc7a   :  { %3449 = shalt.err (!%p3446_p12)
}
 0xc7b   :  { %s3490_s27 = smov 128  }
 0xc7c   :  { %2629 = dma.vmem_to_hbm [thread:$0]  %s2624_s16, 512, %s4711_s17, [#allocation6], %s3490_s27, %s3490_s27, %s3482_s1  }
 0xc7d   :  { %3466 = dma.done.wait [#allocation6], 512  }
 0xc7e   :  { %3467 = vsyncadd [#allocation6], 4294966784 }
 0xc7f   :  { %2633 = vsyncpa [#allocation5], 1 }
 0xc80   :  { %2634 = vsyncpa [#allocation9], 1 }
 0xc81   :  { %2635 = vsyncpa [#allocation12], 1 }
 0xc82   :  { %2636 = vsyncpa [#allocation18], 1 }
 0xc83   :  { %2637 = vsyncpa [#allocation6], 1 }
 0xc84   :  { %2638 = vsyncpa [#allocation7], 1 }
 0xc85   :  { %2639 = vsyncpa [#allocation15], 1 }

</bundles_post_ra>
